<compile_context>
chip_gen: v6e
topology: v6e:2x2x1
jax: 0.10.0
libtpu: 0.0.40
codegen_flags: <defaults>
</compile_context>

<pallas_src>
import jax
import jax.numpy as jnp
from jax import lax
from jax.experimental import pallas as pl
from jax.experimental.pallas import tpu as pltpu

H1 = 20       # layer-1 width per head
H2 = 10       # layer-2 width per head
LANES = 128   # TPU lane width
CHUNK = 16    # rows per inner-loop step (2 vregs per [CHUNK,128] slab)


def _ceil(a, b):
    return -(-a // b)


def _vi_kernel(
    x_ref, eps_ref,
    w1m_ref, b1m_ref, w2m_ref, b2m_ref, w3m_ref, b3m_ref,   # mu head
    w1v_ref, b1v_ref, w2v_ref, b2v_ref, w3v_ref, b3v_ref,   # log_var head
    z_ref, mu_ref, lv_ref,                                   # outputs [tr, LANES]
):
    n_chunks = x_ref.shape[0] // CHUNK  # static

    def head(x, w1_ref, b1_ref, w2_ref, b2_ref, w3_ref, b3_ref):
        # Layer 1: 20 ReLU units, broadcast MACs on the VPU (computed just
        # before this head's k-loop so only one head's h1 is ever live).
        h1 = [jnp.maximum(x * w1_ref[j] + b1_ref[j], 0.0) for j in range(H1)]
        out = None
        for k in range(H2):
            # Layer-2 unit k: H1-wide reduction with 4 partial accumulators
            # (shortens the serial add chain; plenty of ILP across the 10 units).
            acc = [h1[j] * w2_ref[j, k] for j in range(4)]
            for j in range(4, H1):
                acc[j % 4] = acc[j % 4] + h1[j] * w2_ref[j, k]
            h2k = jnp.maximum((acc[0] + acc[1]) + (acc[2] + acc[3]) + b2_ref[k], 0.0)
            # Layer-3 contribution of unit k.
            c = h2k * w3_ref[k]
            out = c if out is None else out + c
        return out + b3_ref[0]

    def body(c, carry):
        off = pl.multiple_of(c * CHUNK, CHUNK)
        x = x_ref[pl.ds(off, CHUNK), :]                       # [CHUNK, LANES]
        mu = head(x, w1m_ref, b1m_ref, w2m_ref, b2m_ref, w3m_ref, b3m_ref)
        log_var = head(x, w1v_ref, b1v_ref, w2v_ref, b2v_ref, w3v_ref, b3v_ref)
        # reparameterize: sigma = exp(0.5*log_var) + 1e-5 ; z = mu + sigma*eps
        eps = eps_ref[pl.ds(off, CHUNK), :]
        sigma = jnp.exp(0.5 * log_var) + 1e-05                # exp -> EUP slot
        z = mu + sigma * eps
        z_ref[pl.ds(off, CHUNK), :] = z
        mu_ref[pl.ds(off, CHUNK), :] = mu
        lv_ref[pl.ds(off, CHUNK), :] = log_var
        return carry

    lax.fori_loop(0, n_chunks, body, 0)


def vi_forward(x, eps, params, tile_rows=1024):
    """x, eps: [N, 1] (or [N]) float32. Returns (z, mu, log_var), each [N, 1]."""
    xf = x.reshape(-1).astype(jnp.float32)
    ef = eps.reshape(-1).astype(jnp.float32)
    n = xf.shape[0]

    # Pad the batch to whole [tr, 128] lane-dense tiles; tr is a multiple of
    # CHUNK.  For v7x megacore, cap tr so the grid has >= 2 steps when there
    # is enough work for two TensorCores.
    rows_needed = _ceil(n, LANES)
    tr_req = max(CHUNK, _ceil(tile_rows, CHUNK) * CHUNK)
    if rows_needed >= 2 * CHUNK:
        cap = _ceil(_ceil(rows_needed, 2), CHUNK) * CHUNK
    else:
        cap = _ceil(rows_needed, CHUNK) * CHUNK
    tr = min(tr_req, cap)
    n_tiles = _ceil(rows_needed, tr)
    padded_rows = n_tiles * tr
    pad = padded_rows * LANES - n
    xp = jnp.pad(xf, (0, pad)).reshape(padded_rows, LANES)
    ep = jnp.pad(ef, (0, pad)).reshape(padded_rows, LANES)

    # Tiny weights/biases -> SMEM (scalar reads, broadcast onto vregs).
    w1m, b1m = params["w1m"].reshape(-1), params["b1m"].reshape(-1)
    w2m, b2m = params["w2m"], params["b2m"].reshape(-1)
    w3m, b3m = params["w3m"].reshape(-1), params["b3m"].reshape(-1)
    w1v, b1v = params["w1v"].reshape(-1), params["b1v"].reshape(-1)
    w2v, b2v = params["w2v"], params["b2v"].reshape(-1)
    w3v, b3v = params["w3v"].reshape(-1), params["b3v"].reshape(-1)

    data_spec = pl.BlockSpec((tr, LANES), lambda i: (i, 0))
    smem_spec = pl.BlockSpec(memory_space=pltpu.MemorySpace.SMEM)

    z, mu, lv = pl.pallas_call(
        _vi_kernel,
        grid=(n_tiles,),
        in_specs=[data_spec, data_spec] + [smem_spec] * 12,
        out_specs=(data_spec, data_spec, data_spec),
        out_shape=(
            jax.ShapeDtypeStruct((padded_rows, LANES), jnp.float32),
            jax.ShapeDtypeStruct((padded_rows, LANES), jnp.float32),
            jax.ShapeDtypeStruct((padded_rows, LANES), jnp.float32),
        ),
        compiler_params=pltpu.CompilerParams(
            dimension_semantics=("parallel",),          # megacore on v7x
            vmem_limit_bytes=32 * 1024 * 1024,
        ),
    )(xp, ep, w1m, b1m, w2m, b2m, w3m, b3m, w1v, b1v, w2v, b2v, w3v, b3v)

    def _unpad(a):
        return a.reshape(-1)[:n].reshape(n, 1)

    return _unpad(z), _unpad(mu), _unpad(lv)


def init_params(key):
    """Deterministic init mimicking PyTorch Linear default (uniform +-1/sqrt(fan_in)).
    Weights stored as [in_features, out_features]; biases as [1, out_features]."""
    def linear(key, fan_in, fan_out):
        kw, kb = jax.random.split(key)
        bound = 1.0 / jnp.sqrt(jnp.float32(fan_in))
        w = jax.random.uniform(kw, (fan_in, fan_out), jnp.float32, -bound, bound)
        b = jax.random.uniform(kb, (1, fan_out), jnp.float32, -bound, bound)
        return w, b

    keys = jax.random.split(key, 6)
    w1m, b1m = linear(keys[0], 1, H1)
    w2m, b2m = linear(keys[1], H1, H2)
    w3m, b3m = linear(keys[2], H2, 1)
    w1v, b1v = linear(keys[3], 1, H1)
    w2v, b2v = linear(keys[4], H1, H2)
    w3v, b3v = linear(keys[5], H2, 1)
    return dict(w1m=w1m, b1m=b1m, w2m=w2m, b2m=b2m, w3m=w3m, b3m=b3m,
                w1v=w1v, b1v=b1v, w2v=w2v, b2v=b2v, w3v=w3v, b3v=b3v)


def reference_forward(x, eps, p):
    """Pure-JAX reference of the PyTorch VI.forward for correctness check."""
    def mlp(x, w1, b1, w2, b2, w3, b3):
        h1 = jnp.maximum(x @ w1 + b1, 0.0)
        h2 = jnp.maximum(h1 @ w2 + b2, 0.0)
        return h2 @ w3 + b3
    mu = mlp(x, p["w1m"], p["b1m"], p["w2m"], p["b2m"], p["w3m"], p["b3m"])
    log_var = mlp(x, p["w1v"], p["b1v"], p["w2v"], p["b2v"], p["w3v"], p["b3v"])
    sigma = jnp.exp(0.5 * log_var) + 1e-05
    return mu + sigma * eps, mu, log_var


if __name__ == "__main__":
    key = jax.random.PRNGKey(0)
    k_param, k_x, k_eps = jax.random.split(key, 3)

    N = 300  # small batch; deliberately not a multiple of 128 to exercise padding
    x = jax.random.normal(k_x, (N, 1), jnp.float32)
    eps = jax.random.normal(k_eps, (N, 1), jnp.float32)  # randn_like(sigma)
    params = init_params(k_param)

    z, mu, log_var = vi_forward(x, eps, params)
    jax.block_until_ready((z, mu, log_var))

    z_ref, mu_ref, lv_ref = reference_forward(x, eps, params)
    assert jnp.allclose(mu, mu_ref, atol=2e-5, rtol=1e-4)
    assert jnp.allclose(log_var, lv_ref, atol=2e-5, rtol=1e-4)
    assert jnp.allclose(z, z_ref, atol=2e-5, rtol=1e-4)

    # Also exercise a larger, tile-splitting batch to cover the multi-tile path.
    N2 = 70000
    x2 = jax.random.normal(jax.random.PRNGKey(1), (N2, 1), jnp.float32)
    e2 = jax.random.normal(jax.random.PRNGKey(2), (N2, 1), jnp.float32)
    z2, mu2, lv2 = vi_forward(x2, e2, params)
    jax.block_until_ready((z2, mu2, lv2))
    z2r, mu2r, lv2r = reference_forward(x2, e2, params)
    assert jnp.allclose(mu2, mu2r, atol=2e-5, rtol=1e-4)
    assert jnp.allclose(lv2, lv2r, atol=2e-5, rtol=1e-4)
    assert jnp.allclose(z2, z2r, atol=2e-5, rtol=1e-4)

    print("KERNEL_OK")
</pallas_src>

<mosaic_0001>
module attributes {stable_mosaic.version = 11 : i64} {
  func.func @_vi_kernel(%arg0: i32, %arg1: memref<16x128xf32, #tpu.memory_space<vmem>>, %arg2: memref<16x128xf32, #tpu.memory_space<vmem>>, %arg3: memref<20xf32, #tpu.memory_space<smem>>, %arg4: memref<20xf32, #tpu.memory_space<smem>>, %arg5: memref<20x10xf32, #tpu.memory_space<smem>>, %arg6: memref<10xf32, #tpu.memory_space<smem>>, %arg7: memref<10xf32, #tpu.memory_space<smem>>, %arg8: memref<1xf32, #tpu.memory_space<smem>>, %arg9: memref<20xf32, #tpu.memory_space<smem>>, %arg10: memref<20xf32, #tpu.memory_space<smem>>, %arg11: memref<20x10xf32, #tpu.memory_space<smem>>, %arg12: memref<10xf32, #tpu.memory_space<smem>>, %arg13: memref<10xf32, #tpu.memory_space<smem>>, %arg14: memref<1xf32, #tpu.memory_space<smem>>, %arg15: memref<16x128xf32, #tpu.memory_space<vmem>>, %arg16: memref<16x128xf32, #tpu.memory_space<vmem>>, %arg17: memref<16x128xf32, #tpu.memory_space<vmem>>) attributes {dimension_semantics = [#tpu.dimension_semantics<parallel>], iteration_bounds = array<i64: 1>, scalar_prefetch = 0 : i64, scratch_operands = 0 : i64, tpu.core_type = #tpu.core_type<tc>, window_params = [{transform_indices = @transform_0, window_bounds = array<i64: 16, 128>}, {transform_indices = @transform_1, window_bounds = array<i64: 16, 128>}, {transform_indices = @transform_2, window_bounds = array<i64: 20>}, {transform_indices = @transform_3, window_bounds = array<i64: 20>}, {transform_indices = @transform_4, window_bounds = array<i64: 20, 10>}, {transform_indices = @transform_5, window_bounds = array<i64: 10>}, {transform_indices = @transform_6, window_bounds = array<i64: 10>}, {transform_indices = @transform_7, window_bounds = array<i64: 1>}, {transform_indices = @transform_8, window_bounds = array<i64: 20>}, {transform_indices = @transform_9, window_bounds = array<i64: 20>}, {transform_indices = @transform_10, window_bounds = array<i64: 20, 10>}, {transform_indices = @transform_11, window_bounds = array<i64: 10>}, {transform_indices = @transform_12, window_bounds = array<i64: 10>}, {transform_indices = @transform_13, window_bounds = array<i64: 1>}, {transform_indices = @transform_14, window_bounds = array<i64: 16, 128>}, {transform_indices = @transform_15, window_bounds = array<i64: 16, 128>}, {transform_indices = @transform_16, window_bounds = array<i64: 16, 128>}]} {
    %c0_i32 = arith.constant 0 : i32
    %c16_i32 = arith.constant 16 : i32
    %0 = arith.muli %c0_i32, %c16_i32 : i32
    %1 = tpu.assume_multiple %0, 16 : i32
    %2 = arith.index_cast %1 : i32 to index
    %c0 = arith.constant 0 : index
    %3 = vector.load %arg1[%2, %c0] : memref<16x128xf32, #tpu.memory_space<vmem>>, vector<16x128xf32>
    %c0_0 = arith.constant 0 : index
    %4 = memref.load %arg3[%c0_0] : memref<20xf32, #tpu.memory_space<smem>>
    %5 = vector.broadcast %4 : f32 to vector<16x128xf32>
    %6 = arith.mulf %3, %5 : vector<16x128xf32>
    %c0_1 = arith.constant 0 : index
    %7 = memref.load %arg4[%c0_1] : memref<20xf32, #tpu.memory_space<smem>>
    %8 = vector.broadcast %7 : f32 to vector<16x128xf32>
    %9 = arith.addf %6, %8 : vector<16x128xf32>
    %cst = arith.constant 0.000000e+00 : f32
    %10 = vector.broadcast %cst : f32 to vector<16x128xf32>
    %11 = arith.maximumf %9, %10 : vector<16x128xf32>
    %c1 = arith.constant 1 : index
    %12 = memref.load %arg3[%c1] : memref<20xf32, #tpu.memory_space<smem>>
    %13 = vector.broadcast %12 : f32 to vector<16x128xf32>
    %14 = arith.mulf %3, %13 : vector<16x128xf32>
    %c1_2 = arith.constant 1 : index
    %15 = memref.load %arg4[%c1_2] : memref<20xf32, #tpu.memory_space<smem>>
    %16 = vector.broadcast %15 : f32 to vector<16x128xf32>
    %17 = arith.addf %14, %16 : vector<16x128xf32>
    %cst_3 = arith.constant 0.000000e+00 : f32
    %18 = vector.broadcast %cst_3 : f32 to vector<16x128xf32>
    %19 = arith.maximumf %17, %18 : vector<16x128xf32>
    %c2 = arith.constant 2 : index
    %20 = memref.load %arg3[%c2] : memref<20xf32, #tpu.memory_space<smem>>
    %21 = vector.broadcast %20 : f32 to vector<16x128xf32>
    %22 = arith.mulf %3, %21 : vector<16x128xf32>
    %c2_4 = arith.constant 2 : index
    %23 = memref.load %arg4[%c2_4] : memref<20xf32, #tpu.memory_space<smem>>
    %24 = vector.broadcast %23 : f32 to vector<16x128xf32>
    %25 = arith.addf %22, %24 : vector<16x128xf32>
    %cst_5 = arith.constant 0.000000e+00 : f32
    %26 = vector.broadcast %cst_5 : f32 to vector<16x128xf32>
    %27 = arith.maximumf %25, %26 : vector<16x128xf32>
    %c3 = arith.constant 3 : index
    %28 = memref.load %arg3[%c3] : memref<20xf32, #tpu.memory_space<smem>>
    %29 = vector.broadcast %28 : f32 to vector<16x128xf32>
    %30 = arith.mulf %3, %29 : vector<16x128xf32>
    %c3_6 = arith.constant 3 : index
    %31 = memref.load %arg4[%c3_6] : memref<20xf32, #tpu.memory_space<smem>>
    %32 = vector.broadcast %31 : f32 to vector<16x128xf32>
    %33 = arith.addf %30, %32 : vector<16x128xf32>
    %cst_7 = arith.constant 0.000000e+00 : f32
    %34 = vector.broadcast %cst_7 : f32 to vector<16x128xf32>
    %35 = arith.maximumf %33, %34 : vector<16x128xf32>
    %c4 = arith.constant 4 : index
    %36 = memref.load %arg3[%c4] : memref<20xf32, #tpu.memory_space<smem>>
    %37 = vector.broadcast %36 : f32 to vector<16x128xf32>
    %38 = arith.mulf %3, %37 : vector<16x128xf32>
    %c4_8 = arith.constant 4 : index
    %39 = memref.load %arg4[%c4_8] : memref<20xf32, #tpu.memory_space<smem>>
    %40 = vector.broadcast %39 : f32 to vector<16x128xf32>
    %41 = arith.addf %38, %40 : vector<16x128xf32>
    %cst_9 = arith.constant 0.000000e+00 : f32
    %42 = vector.broadcast %cst_9 : f32 to vector<16x128xf32>
    %43 = arith.maximumf %41, %42 : vector<16x128xf32>
    %c5 = arith.constant 5 : index
    %44 = memref.load %arg3[%c5] : memref<20xf32, #tpu.memory_space<smem>>
    %45 = vector.broadcast %44 : f32 to vector<16x128xf32>
    %46 = arith.mulf %3, %45 : vector<16x128xf32>
    %c5_10 = arith.constant 5 : index
    %47 = memref.load %arg4[%c5_10] : memref<20xf32, #tpu.memory_space<smem>>
    %48 = vector.broadcast %47 : f32 to vector<16x128xf32>
    %49 = arith.addf %46, %48 : vector<16x128xf32>
    %cst_11 = arith.constant 0.000000e+00 : f32
    %50 = vector.broadcast %cst_11 : f32 to vector<16x128xf32>
    %51 = arith.maximumf %49, %50 : vector<16x128xf32>
    %c6 = arith.constant 6 : index
    %52 = memref.load %arg3[%c6] : memref<20xf32, #tpu.memory_space<smem>>
    %53 = vector.broadcast %52 : f32 to vector<16x128xf32>
    %54 = arith.mulf %3, %53 : vector<16x128xf32>
    %c6_12 = arith.constant 6 : index
    %55 = memref.load %arg4[%c6_12] : memref<20xf32, #tpu.memory_space<smem>>
    %56 = vector.broadcast %55 : f32 to vector<16x128xf32>
    %57 = arith.addf %54, %56 : vector<16x128xf32>
    %cst_13 = arith.constant 0.000000e+00 : f32
    %58 = vector.broadcast %cst_13 : f32 to vector<16x128xf32>
    %59 = arith.maximumf %57, %58 : vector<16x128xf32>
    %c7 = arith.constant 7 : index
    %60 = memref.load %arg3[%c7] : memref<20xf32, #tpu.memory_space<smem>>
    %61 = vector.broadcast %60 : f32 to vector<16x128xf32>
    %62 = arith.mulf %3, %61 : vector<16x128xf32>
    %c7_14 = arith.constant 7 : index
    %63 = memref.load %arg4[%c7_14] : memref<20xf32, #tpu.memory_space<smem>>
    %64 = vector.broadcast %63 : f32 to vector<16x128xf32>
    %65 = arith.addf %62, %64 : vector<16x128xf32>
    %cst_15 = arith.constant 0.000000e+00 : f32
    %66 = vector.broadcast %cst_15 : f32 to vector<16x128xf32>
    %67 = arith.maximumf %65, %66 : vector<16x128xf32>
    %c8 = arith.constant 8 : index
    %68 = memref.load %arg3[%c8] : memref<20xf32, #tpu.memory_space<smem>>
    %69 = vector.broadcast %68 : f32 to vector<16x128xf32>
    %70 = arith.mulf %3, %69 : vector<16x128xf32>
    %c8_16 = arith.constant 8 : index
    %71 = memref.load %arg4[%c8_16] : memref<20xf32, #tpu.memory_space<smem>>
    %72 = vector.broadcast %71 : f32 to vector<16x128xf32>
    %73 = arith.addf %70, %72 : vector<16x128xf32>
    %cst_17 = arith.constant 0.000000e+00 : f32
    %74 = vector.broadcast %cst_17 : f32 to vector<16x128xf32>
    %75 = arith.maximumf %73, %74 : vector<16x128xf32>
    %c9 = arith.constant 9 : index
    %76 = memref.load %arg3[%c9] : memref<20xf32, #tpu.memory_space<smem>>
    %77 = vector.broadcast %76 : f32 to vector<16x128xf32>
    %78 = arith.mulf %3, %77 : vector<16x128xf32>
    %c9_18 = arith.constant 9 : index
    %79 = memref.load %arg4[%c9_18] : memref<20xf32, #tpu.memory_space<smem>>
    %80 = vector.broadcast %79 : f32 to vector<16x128xf32>
    %81 = arith.addf %78, %80 : vector<16x128xf32>
    %cst_19 = arith.constant 0.000000e+00 : f32
    %82 = vector.broadcast %cst_19 : f32 to vector<16x128xf32>
    %83 = arith.maximumf %81, %82 : vector<16x128xf32>
    %c10 = arith.constant 10 : index
    %84 = memref.load %arg3[%c10] : memref<20xf32, #tpu.memory_space<smem>>
    %85 = vector.broadcast %84 : f32 to vector<16x128xf32>
    %86 = arith.mulf %3, %85 : vector<16x128xf32>
    %c10_20 = arith.constant 10 : index
    %87 = memref.load %arg4[%c10_20] : memref<20xf32, #tpu.memory_space<smem>>
    %88 = vector.broadcast %87 : f32 to vector<16x128xf32>
    %89 = arith.addf %86, %88 : vector<16x128xf32>
    %cst_21 = arith.constant 0.000000e+00 : f32
    %90 = vector.broadcast %cst_21 : f32 to vector<16x128xf32>
    %91 = arith.maximumf %89, %90 : vector<16x128xf32>
    %c11 = arith.constant 11 : index
    %92 = memref.load %arg3[%c11] : memref<20xf32, #tpu.memory_space<smem>>
    %93 = vector.broadcast %92 : f32 to vector<16x128xf32>
    %94 = arith.mulf %3, %93 : vector<16x128xf32>
    %c11_22 = arith.constant 11 : index
    %95 = memref.load %arg4[%c11_22] : memref<20xf32, #tpu.memory_space<smem>>
    %96 = vector.broadcast %95 : f32 to vector<16x128xf32>
    %97 = arith.addf %94, %96 : vector<16x128xf32>
    %cst_23 = arith.constant 0.000000e+00 : f32
    %98 = vector.broadcast %cst_23 : f32 to vector<16x128xf32>
    %99 = arith.maximumf %97, %98 : vector<16x128xf32>
    %c12 = arith.constant 12 : index
    %100 = memref.load %arg3[%c12] : memref<20xf32, #tpu.memory_space<smem>>
    %101 = vector.broadcast %100 : f32 to vector<16x128xf32>
    %102 = arith.mulf %3, %101 : vector<16x128xf32>
    %c12_24 = arith.constant 12 : index
    %103 = memref.load %arg4[%c12_24] : memref<20xf32, #tpu.memory_space<smem>>
    %104 = vector.broadcast %103 : f32 to vector<16x128xf32>
    %105 = arith.addf %102, %104 : vector<16x128xf32>
    %cst_25 = arith.constant 0.000000e+00 : f32
    %106 = vector.broadcast %cst_25 : f32 to vector<16x128xf32>
    %107 = arith.maximumf %105, %106 : vector<16x128xf32>
    %c13 = arith.constant 13 : index
    %108 = memref.load %arg3[%c13] : memref<20xf32, #tpu.memory_space<smem>>
    %109 = vector.broadcast %108 : f32 to vector<16x128xf32>
    %110 = arith.mulf %3, %109 : vector<16x128xf32>
    %c13_26 = arith.constant 13 : index
    %111 = memref.load %arg4[%c13_26] : memref<20xf32, #tpu.memory_space<smem>>
    %112 = vector.broadcast %111 : f32 to vector<16x128xf32>
    %113 = arith.addf %110, %112 : vector<16x128xf32>
    %cst_27 = arith.constant 0.000000e+00 : f32
    %114 = vector.broadcast %cst_27 : f32 to vector<16x128xf32>
    %115 = arith.maximumf %113, %114 : vector<16x128xf32>
    %c14 = arith.constant 14 : index
    %116 = memref.load %arg3[%c14] : memref<20xf32, #tpu.memory_space<smem>>
    %117 = vector.broadcast %116 : f32 to vector<16x128xf32>
    %118 = arith.mulf %3, %117 : vector<16x128xf32>
    %c14_28 = arith.constant 14 : index
    %119 = memref.load %arg4[%c14_28] : memref<20xf32, #tpu.memory_space<smem>>
    %120 = vector.broadcast %119 : f32 to vector<16x128xf32>
    %121 = arith.addf %118, %120 : vector<16x128xf32>
    %cst_29 = arith.constant 0.000000e+00 : f32
    %122 = vector.broadcast %cst_29 : f32 to vector<16x128xf32>
    %123 = arith.maximumf %121, %122 : vector<16x128xf32>
    %c15 = arith.constant 15 : index
    %124 = memref.load %arg3[%c15] : memref<20xf32, #tpu.memory_space<smem>>
    %125 = vector.broadcast %124 : f32 to vector<16x128xf32>
    %126 = arith.mulf %3, %125 : vector<16x128xf32>
    %c15_30 = arith.constant 15 : index
    %127 = memref.load %arg4[%c15_30] : memref<20xf32, #tpu.memory_space<smem>>
    %128 = vector.broadcast %127 : f32 to vector<16x128xf32>
    %129 = arith.addf %126, %128 : vector<16x128xf32>
    %cst_31 = arith.constant 0.000000e+00 : f32
    %130 = vector.broadcast %cst_31 : f32 to vector<16x128xf32>
    %131 = arith.maximumf %129, %130 : vector<16x128xf32>
    %c16 = arith.constant 16 : index
    %132 = memref.load %arg3[%c16] : memref<20xf32, #tpu.memory_space<smem>>
    %133 = vector.broadcast %132 : f32 to vector<16x128xf32>
    %134 = arith.mulf %3, %133 : vector<16x128xf32>
    %c16_32 = arith.constant 16 : index
    %135 = memref.load %arg4[%c16_32] : memref<20xf32, #tpu.memory_space<smem>>
    %136 = vector.broadcast %135 : f32 to vector<16x128xf32>
    %137 = arith.addf %134, %136 : vector<16x128xf32>
    %cst_33 = arith.constant 0.000000e+00 : f32
    %138 = vector.broadcast %cst_33 : f32 to vector<16x128xf32>
    %139 = arith.maximumf %137, %138 : vector<16x128xf32>
    %c17 = arith.constant 17 : index
    %140 = memref.load %arg3[%c17] : memref<20xf32, #tpu.memory_space<smem>>
    %141 = vector.broadcast %140 : f32 to vector<16x128xf32>
    %142 = arith.mulf %3, %141 : vector<16x128xf32>
    %c17_34 = arith.constant 17 : index
    %143 = memref.load %arg4[%c17_34] : memref<20xf32, #tpu.memory_space<smem>>
    %144 = vector.broadcast %143 : f32 to vector<16x128xf32>
    %145 = arith.addf %142, %144 : vector<16x128xf32>
    %cst_35 = arith.constant 0.000000e+00 : f32
    %146 = vector.broadcast %cst_35 : f32 to vector<16x128xf32>
    %147 = arith.maximumf %145, %146 : vector<16x128xf32>
    %c18 = arith.constant 18 : index
    %148 = memref.load %arg3[%c18] : memref<20xf32, #tpu.memory_space<smem>>
    %149 = vector.broadcast %148 : f32 to vector<16x128xf32>
    %150 = arith.mulf %3, %149 : vector<16x128xf32>
    %c18_36 = arith.constant 18 : index
    %151 = memref.load %arg4[%c18_36] : memref<20xf32, #tpu.memory_space<smem>>
    %152 = vector.broadcast %151 : f32 to vector<16x128xf32>
    %153 = arith.addf %150, %152 : vector<16x128xf32>
    %cst_37 = arith.constant 0.000000e+00 : f32
    %154 = vector.broadcast %cst_37 : f32 to vector<16x128xf32>
    %155 = arith.maximumf %153, %154 : vector<16x128xf32>
    %c19 = arith.constant 19 : index
    %156 = memref.load %arg3[%c19] : memref<20xf32, #tpu.memory_space<smem>>
    %157 = vector.broadcast %156 : f32 to vector<16x128xf32>
    %158 = arith.mulf %3, %157 : vector<16x128xf32>
    %c19_38 = arith.constant 19 : index
    %159 = memref.load %arg4[%c19_38] : memref<20xf32, #tpu.memory_space<smem>>
    %160 = vector.broadcast %159 : f32 to vector<16x128xf32>
    %161 = arith.addf %158, %160 : vector<16x128xf32>
    %cst_39 = arith.constant 0.000000e+00 : f32
    %162 = vector.broadcast %cst_39 : f32 to vector<16x128xf32>
    %163 = arith.maximumf %161, %162 : vector<16x128xf32>
    %c0_40 = arith.constant 0 : index
    %c0_41 = arith.constant 0 : index
    %164 = memref.load %arg5[%c0_40, %c0_41] : memref<20x10xf32, #tpu.memory_space<smem>>
    %165 = vector.broadcast %164 : f32 to vector<16x128xf32>
    %166 = arith.mulf %11, %165 : vector<16x128xf32>
    %c1_42 = arith.constant 1 : index
    %c0_43 = arith.constant 0 : index
    %167 = memref.load %arg5[%c1_42, %c0_43] : memref<20x10xf32, #tpu.memory_space<smem>>
    %168 = vector.broadcast %167 : f32 to vector<16x128xf32>
    %169 = arith.mulf %19, %168 : vector<16x128xf32>
    %c2_44 = arith.constant 2 : index
    %c0_45 = arith.constant 0 : index
    %170 = memref.load %arg5[%c2_44, %c0_45] : memref<20x10xf32, #tpu.memory_space<smem>>
    %171 = vector.broadcast %170 : f32 to vector<16x128xf32>
    %172 = arith.mulf %27, %171 : vector<16x128xf32>
    %c3_46 = arith.constant 3 : index
    %c0_47 = arith.constant 0 : index
    %173 = memref.load %arg5[%c3_46, %c0_47] : memref<20x10xf32, #tpu.memory_space<smem>>
    %174 = vector.broadcast %173 : f32 to vector<16x128xf32>
    %175 = arith.mulf %35, %174 : vector<16x128xf32>
    %c4_48 = arith.constant 4 : index
    %c0_49 = arith.constant 0 : index
    %176 = memref.load %arg5[%c4_48, %c0_49] : memref<20x10xf32, #tpu.memory_space<smem>>
    %177 = vector.broadcast %176 : f32 to vector<16x128xf32>
    %178 = arith.mulf %43, %177 : vector<16x128xf32>
    %179 = arith.addf %166, %178 : vector<16x128xf32>
    %c5_50 = arith.constant 5 : index
    %c0_51 = arith.constant 0 : index
    %180 = memref.load %arg5[%c5_50, %c0_51] : memref<20x10xf32, #tpu.memory_space<smem>>
    %181 = vector.broadcast %180 : f32 to vector<16x128xf32>
    %182 = arith.mulf %51, %181 : vector<16x128xf32>
    %183 = arith.addf %169, %182 : vector<16x128xf32>
    %c6_52 = arith.constant 6 : index
    %c0_53 = arith.constant 0 : index
    %184 = memref.load %arg5[%c6_52, %c0_53] : memref<20x10xf32, #tpu.memory_space<smem>>
    %185 = vector.broadcast %184 : f32 to vector<16x128xf32>
    %186 = arith.mulf %59, %185 : vector<16x128xf32>
    %187 = arith.addf %172, %186 : vector<16x128xf32>
    %c7_54 = arith.constant 7 : index
    %c0_55 = arith.constant 0 : index
    %188 = memref.load %arg5[%c7_54, %c0_55] : memref<20x10xf32, #tpu.memory_space<smem>>
    %189 = vector.broadcast %188 : f32 to vector<16x128xf32>
    %190 = arith.mulf %67, %189 : vector<16x128xf32>
    %191 = arith.addf %175, %190 : vector<16x128xf32>
    %c8_56 = arith.constant 8 : index
    %c0_57 = arith.constant 0 : index
    %192 = memref.load %arg5[%c8_56, %c0_57] : memref<20x10xf32, #tpu.memory_space<smem>>
    %193 = vector.broadcast %192 : f32 to vector<16x128xf32>
    %194 = arith.mulf %75, %193 : vector<16x128xf32>
    %195 = arith.addf %179, %194 : vector<16x128xf32>
    %c9_58 = arith.constant 9 : index
    %c0_59 = arith.constant 0 : index
    %196 = memref.load %arg5[%c9_58, %c0_59] : memref<20x10xf32, #tpu.memory_space<smem>>
    %197 = vector.broadcast %196 : f32 to vector<16x128xf32>
    %198 = arith.mulf %83, %197 : vector<16x128xf32>
    %199 = arith.addf %183, %198 : vector<16x128xf32>
    %c10_60 = arith.constant 10 : index
    %c0_61 = arith.constant 0 : index
    %200 = memref.load %arg5[%c10_60, %c0_61] : memref<20x10xf32, #tpu.memory_space<smem>>
    %201 = vector.broadcast %200 : f32 to vector<16x128xf32>
    %202 = arith.mulf %91, %201 : vector<16x128xf32>
    %203 = arith.addf %187, %202 : vector<16x128xf32>
    %c11_62 = arith.constant 11 : index
    %c0_63 = arith.constant 0 : index
    %204 = memref.load %arg5[%c11_62, %c0_63] : memref<20x10xf32, #tpu.memory_space<smem>>
    %205 = vector.broadcast %204 : f32 to vector<16x128xf32>
    %206 = arith.mulf %99, %205 : vector<16x128xf32>
    %207 = arith.addf %191, %206 : vector<16x128xf32>
    %c12_64 = arith.constant 12 : index
    %c0_65 = arith.constant 0 : index
    %208 = memref.load %arg5[%c12_64, %c0_65] : memref<20x10xf32, #tpu.memory_space<smem>>
    %209 = vector.broadcast %208 : f32 to vector<16x128xf32>
    %210 = arith.mulf %107, %209 : vector<16x128xf32>
    %211 = arith.addf %195, %210 : vector<16x128xf32>
    %c13_66 = arith.constant 13 : index
    %c0_67 = arith.constant 0 : index
    %212 = memref.load %arg5[%c13_66, %c0_67] : memref<20x10xf32, #tpu.memory_space<smem>>
    %213 = vector.broadcast %212 : f32 to vector<16x128xf32>
    %214 = arith.mulf %115, %213 : vector<16x128xf32>
    %215 = arith.addf %199, %214 : vector<16x128xf32>
    %c14_68 = arith.constant 14 : index
    %c0_69 = arith.constant 0 : index
    %216 = memref.load %arg5[%c14_68, %c0_69] : memref<20x10xf32, #tpu.memory_space<smem>>
    %217 = vector.broadcast %216 : f32 to vector<16x128xf32>
    %218 = arith.mulf %123, %217 : vector<16x128xf32>
    %219 = arith.addf %203, %218 : vector<16x128xf32>
    %c15_70 = arith.constant 15 : index
    %c0_71 = arith.constant 0 : index
    %220 = memref.load %arg5[%c15_70, %c0_71] : memref<20x10xf32, #tpu.memory_space<smem>>
    %221 = vector.broadcast %220 : f32 to vector<16x128xf32>
    %222 = arith.mulf %131, %221 : vector<16x128xf32>
    %223 = arith.addf %207, %222 : vector<16x128xf32>
    %c16_72 = arith.constant 16 : index
    %c0_73 = arith.constant 0 : index
    %224 = memref.load %arg5[%c16_72, %c0_73] : memref<20x10xf32, #tpu.memory_space<smem>>
    %225 = vector.broadcast %224 : f32 to vector<16x128xf32>
    %226 = arith.mulf %139, %225 : vector<16x128xf32>
    %227 = arith.addf %211, %226 : vector<16x128xf32>
    %c17_74 = arith.constant 17 : index
    %c0_75 = arith.constant 0 : index
    %228 = memref.load %arg5[%c17_74, %c0_75] : memref<20x10xf32, #tpu.memory_space<smem>>
    %229 = vector.broadcast %228 : f32 to vector<16x128xf32>
    %230 = arith.mulf %147, %229 : vector<16x128xf32>
    %231 = arith.addf %215, %230 : vector<16x128xf32>
    %c18_76 = arith.constant 18 : index
    %c0_77 = arith.constant 0 : index
    %232 = memref.load %arg5[%c18_76, %c0_77] : memref<20x10xf32, #tpu.memory_space<smem>>
    %233 = vector.broadcast %232 : f32 to vector<16x128xf32>
    %234 = arith.mulf %155, %233 : vector<16x128xf32>
    %235 = arith.addf %219, %234 : vector<16x128xf32>
    %c19_78 = arith.constant 19 : index
    %c0_79 = arith.constant 0 : index
    %236 = memref.load %arg5[%c19_78, %c0_79] : memref<20x10xf32, #tpu.memory_space<smem>>
    %237 = vector.broadcast %236 : f32 to vector<16x128xf32>
    %238 = arith.mulf %163, %237 : vector<16x128xf32>
    %239 = arith.addf %223, %238 : vector<16x128xf32>
    %240 = arith.addf %227, %231 : vector<16x128xf32>
    %241 = arith.addf %235, %239 : vector<16x128xf32>
    %242 = arith.addf %240, %241 : vector<16x128xf32>
    %c0_80 = arith.constant 0 : index
    %243 = memref.load %arg6[%c0_80] : memref<10xf32, #tpu.memory_space<smem>>
    %244 = vector.broadcast %243 : f32 to vector<16x128xf32>
    %245 = arith.addf %242, %244 : vector<16x128xf32>
    %cst_81 = arith.constant 0.000000e+00 : f32
    %246 = vector.broadcast %cst_81 : f32 to vector<16x128xf32>
    %247 = arith.maximumf %245, %246 : vector<16x128xf32>
    %c0_82 = arith.constant 0 : index
    %248 = memref.load %arg7[%c0_82] : memref<10xf32, #tpu.memory_space<smem>>
    %249 = vector.broadcast %248 : f32 to vector<16x128xf32>
    %250 = arith.mulf %247, %249 : vector<16x128xf32>
    %c0_83 = arith.constant 0 : index
    %c1_84 = arith.constant 1 : index
    %251 = memref.load %arg5[%c0_83, %c1_84] : memref<20x10xf32, #tpu.memory_space<smem>>
    %252 = vector.broadcast %251 : f32 to vector<16x128xf32>
    %253 = arith.mulf %11, %252 : vector<16x128xf32>
    %c1_85 = arith.constant 1 : index
    %c1_86 = arith.constant 1 : index
    %254 = memref.load %arg5[%c1_85, %c1_86] : memref<20x10xf32, #tpu.memory_space<smem>>
    %255 = vector.broadcast %254 : f32 to vector<16x128xf32>
    %256 = arith.mulf %19, %255 : vector<16x128xf32>
    %c2_87 = arith.constant 2 : index
    %c1_88 = arith.constant 1 : index
    %257 = memref.load %arg5[%c2_87, %c1_88] : memref<20x10xf32, #tpu.memory_space<smem>>
    %258 = vector.broadcast %257 : f32 to vector<16x128xf32>
    %259 = arith.mulf %27, %258 : vector<16x128xf32>
    %c3_89 = arith.constant 3 : index
    %c1_90 = arith.constant 1 : index
    %260 = memref.load %arg5[%c3_89, %c1_90] : memref<20x10xf32, #tpu.memory_space<smem>>
    %261 = vector.broadcast %260 : f32 to vector<16x128xf32>
    %262 = arith.mulf %35, %261 : vector<16x128xf32>
    %c4_91 = arith.constant 4 : index
    %c1_92 = arith.constant 1 : index
    %263 = memref.load %arg5[%c4_91, %c1_92] : memref<20x10xf32, #tpu.memory_space<smem>>
    %264 = vector.broadcast %263 : f32 to vector<16x128xf32>
    %265 = arith.mulf %43, %264 : vector<16x128xf32>
    %266 = arith.addf %253, %265 : vector<16x128xf32>
    %c5_93 = arith.constant 5 : index
    %c1_94 = arith.constant 1 : index
    %267 = memref.load %arg5[%c5_93, %c1_94] : memref<20x10xf32, #tpu.memory_space<smem>>
    %268 = vector.broadcast %267 : f32 to vector<16x128xf32>
    %269 = arith.mulf %51, %268 : vector<16x128xf32>
    %270 = arith.addf %256, %269 : vector<16x128xf32>
    %c6_95 = arith.constant 6 : index
    %c1_96 = arith.constant 1 : index
    %271 = memref.load %arg5[%c6_95, %c1_96] : memref<20x10xf32, #tpu.memory_space<smem>>
    %272 = vector.broadcast %271 : f32 to vector<16x128xf32>
    %273 = arith.mulf %59, %272 : vector<16x128xf32>
    %274 = arith.addf %259, %273 : vector<16x128xf32>
    %c7_97 = arith.constant 7 : index
    %c1_98 = arith.constant 1 : index
    %275 = memref.load %arg5[%c7_97, %c1_98] : memref<20x10xf32, #tpu.memory_space<smem>>
    %276 = vector.broadcast %275 : f32 to vector<16x128xf32>
    %277 = arith.mulf %67, %276 : vector<16x128xf32>
    %278 = arith.addf %262, %277 : vector<16x128xf32>
    %c8_99 = arith.constant 8 : index
    %c1_100 = arith.constant 1 : index
    %279 = memref.load %arg5[%c8_99, %c1_100] : memref<20x10xf32, #tpu.memory_space<smem>>
    %280 = vector.broadcast %279 : f32 to vector<16x128xf32>
    %281 = arith.mulf %75, %280 : vector<16x128xf32>
    %282 = arith.addf %266, %281 : vector<16x128xf32>
    %c9_101 = arith.constant 9 : index
    %c1_102 = arith.constant 1 : index
    %283 = memref.load %arg5[%c9_101, %c1_102] : memref<20x10xf32, #tpu.memory_space<smem>>
    %284 = vector.broadcast %283 : f32 to vector<16x128xf32>
    %285 = arith.mulf %83, %284 : vector<16x128xf32>
    %286 = arith.addf %270, %285 : vector<16x128xf32>
    %c10_103 = arith.constant 10 : index
    %c1_104 = arith.constant 1 : index
    %287 = memref.load %arg5[%c10_103, %c1_104] : memref<20x10xf32, #tpu.memory_space<smem>>
    %288 = vector.broadcast %287 : f32 to vector<16x128xf32>
    %289 = arith.mulf %91, %288 : vector<16x128xf32>
    %290 = arith.addf %274, %289 : vector<16x128xf32>
    %c11_105 = arith.constant 11 : index
    %c1_106 = arith.constant 1 : index
    %291 = memref.load %arg5[%c11_105, %c1_106] : memref<20x10xf32, #tpu.memory_space<smem>>
    %292 = vector.broadcast %291 : f32 to vector<16x128xf32>
    %293 = arith.mulf %99, %292 : vector<16x128xf32>
    %294 = arith.addf %278, %293 : vector<16x128xf32>
    %c12_107 = arith.constant 12 : index
    %c1_108 = arith.constant 1 : index
    %295 = memref.load %arg5[%c12_107, %c1_108] : memref<20x10xf32, #tpu.memory_space<smem>>
    %296 = vector.broadcast %295 : f32 to vector<16x128xf32>
    %297 = arith.mulf %107, %296 : vector<16x128xf32>
    %298 = arith.addf %282, %297 : vector<16x128xf32>
    %c13_109 = arith.constant 13 : index
    %c1_110 = arith.constant 1 : index
    %299 = memref.load %arg5[%c13_109, %c1_110] : memref<20x10xf32, #tpu.memory_space<smem>>
    %300 = vector.broadcast %299 : f32 to vector<16x128xf32>
    %301 = arith.mulf %115, %300 : vector<16x128xf32>
    %302 = arith.addf %286, %301 : vector<16x128xf32>
    %c14_111 = arith.constant 14 : index
    %c1_112 = arith.constant 1 : index
    %303 = memref.load %arg5[%c14_111, %c1_112] : memref<20x10xf32, #tpu.memory_space<smem>>
    %304 = vector.broadcast %303 : f32 to vector<16x128xf32>
    %305 = arith.mulf %123, %304 : vector<16x128xf32>
    %306 = arith.addf %290, %305 : vector<16x128xf32>
    %c15_113 = arith.constant 15 : index
    %c1_114 = arith.constant 1 : index
    %307 = memref.load %arg5[%c15_113, %c1_114] : memref<20x10xf32, #tpu.memory_space<smem>>
    %308 = vector.broadcast %307 : f32 to vector<16x128xf32>
    %309 = arith.mulf %131, %308 : vector<16x128xf32>
    %310 = arith.addf %294, %309 : vector<16x128xf32>
    %c16_115 = arith.constant 16 : index
    %c1_116 = arith.constant 1 : index
    %311 = memref.load %arg5[%c16_115, %c1_116] : memref<20x10xf32, #tpu.memory_space<smem>>
    %312 = vector.broadcast %311 : f32 to vector<16x128xf32>
    %313 = arith.mulf %139, %312 : vector<16x128xf32>
    %314 = arith.addf %298, %313 : vector<16x128xf32>
    %c17_117 = arith.constant 17 : index
    %c1_118 = arith.constant 1 : index
    %315 = memref.load %arg5[%c17_117, %c1_118] : memref<20x10xf32, #tpu.memory_space<smem>>
    %316 = vector.broadcast %315 : f32 to vector<16x128xf32>
    %317 = arith.mulf %147, %316 : vector<16x128xf32>
    %318 = arith.addf %302, %317 : vector<16x128xf32>
    %c18_119 = arith.constant 18 : index
    %c1_120 = arith.constant 1 : index
    %319 = memref.load %arg5[%c18_119, %c1_120] : memref<20x10xf32, #tpu.memory_space<smem>>
    %320 = vector.broadcast %319 : f32 to vector<16x128xf32>
    %321 = arith.mulf %155, %320 : vector<16x128xf32>
    %322 = arith.addf %306, %321 : vector<16x128xf32>
    %c19_121 = arith.constant 19 : index
    %c1_122 = arith.constant 1 : index
    %323 = memref.load %arg5[%c19_121, %c1_122] : memref<20x10xf32, #tpu.memory_space<smem>>
    %324 = vector.broadcast %323 : f32 to vector<16x128xf32>
    %325 = arith.mulf %163, %324 : vector<16x128xf32>
    %326 = arith.addf %310, %325 : vector<16x128xf32>
    %327 = arith.addf %314, %318 : vector<16x128xf32>
    %328 = arith.addf %322, %326 : vector<16x128xf32>
    %329 = arith.addf %327, %328 : vector<16x128xf32>
    %c1_123 = arith.constant 1 : index
    %330 = memref.load %arg6[%c1_123] : memref<10xf32, #tpu.memory_space<smem>>
    %331 = vector.broadcast %330 : f32 to vector<16x128xf32>
    %332 = arith.addf %329, %331 : vector<16x128xf32>
    %cst_124 = arith.constant 0.000000e+00 : f32
    %333 = vector.broadcast %cst_124 : f32 to vector<16x128xf32>
    %334 = arith.maximumf %332, %333 : vector<16x128xf32>
    %c1_125 = arith.constant 1 : index
    %335 = memref.load %arg7[%c1_125] : memref<10xf32, #tpu.memory_space<smem>>
    %336 = vector.broadcast %335 : f32 to vector<16x128xf32>
    %337 = arith.mulf %334, %336 : vector<16x128xf32>
    %338 = arith.addf %250, %337 : vector<16x128xf32>
    %c0_126 = arith.constant 0 : index
    %c2_127 = arith.constant 2 : index
    %339 = memref.load %arg5[%c0_126, %c2_127] : memref<20x10xf32, #tpu.memory_space<smem>>
    %340 = vector.broadcast %339 : f32 to vector<16x128xf32>
    %341 = arith.mulf %11, %340 : vector<16x128xf32>
    %c1_128 = arith.constant 1 : index
    %c2_129 = arith.constant 2 : index
    %342 = memref.load %arg5[%c1_128, %c2_129] : memref<20x10xf32, #tpu.memory_space<smem>>
    %343 = vector.broadcast %342 : f32 to vector<16x128xf32>
    %344 = arith.mulf %19, %343 : vector<16x128xf32>
    %c2_130 = arith.constant 2 : index
    %c2_131 = arith.constant 2 : index
    %345 = memref.load %arg5[%c2_130, %c2_131] : memref<20x10xf32, #tpu.memory_space<smem>>
    %346 = vector.broadcast %345 : f32 to vector<16x128xf32>
    %347 = arith.mulf %27, %346 : vector<16x128xf32>
    %c3_132 = arith.constant 3 : index
    %c2_133 = arith.constant 2 : index
    %348 = memref.load %arg5[%c3_132, %c2_133] : memref<20x10xf32, #tpu.memory_space<smem>>
    %349 = vector.broadcast %348 : f32 to vector<16x128xf32>
    %350 = arith.mulf %35, %349 : vector<16x128xf32>
    %c4_134 = arith.constant 4 : index
    %c2_135 = arith.constant 2 : index
    %351 = memref.load %arg5[%c4_134, %c2_135] : memref<20x10xf32, #tpu.memory_space<smem>>
    %352 = vector.broadcast %351 : f32 to vector<16x128xf32>
    %353 = arith.mulf %43, %352 : vector<16x128xf32>
    %354 = arith.addf %341, %353 : vector<16x128xf32>
    %c5_136 = arith.constant 5 : index
    %c2_137 = arith.constant 2 : index
    %355 = memref.load %arg5[%c5_136, %c2_137] : memref<20x10xf32, #tpu.memory_space<smem>>
    %356 = vector.broadcast %355 : f32 to vector<16x128xf32>
    %357 = arith.mulf %51, %356 : vector<16x128xf32>
    %358 = arith.addf %344, %357 : vector<16x128xf32>
    %c6_138 = arith.constant 6 : index
    %c2_139 = arith.constant 2 : index
    %359 = memref.load %arg5[%c6_138, %c2_139] : memref<20x10xf32, #tpu.memory_space<smem>>
    %360 = vector.broadcast %359 : f32 to vector<16x128xf32>
    %361 = arith.mulf %59, %360 : vector<16x128xf32>
    %362 = arith.addf %347, %361 : vector<16x128xf32>
    %c7_140 = arith.constant 7 : index
    %c2_141 = arith.constant 2 : index
    %363 = memref.load %arg5[%c7_140, %c2_141] : memref<20x10xf32, #tpu.memory_space<smem>>
    %364 = vector.broadcast %363 : f32 to vector<16x128xf32>
    %365 = arith.mulf %67, %364 : vector<16x128xf32>
    %366 = arith.addf %350, %365 : vector<16x128xf32>
    %c8_142 = arith.constant 8 : index
    %c2_143 = arith.constant 2 : index
    %367 = memref.load %arg5[%c8_142, %c2_143] : memref<20x10xf32, #tpu.memory_space<smem>>
    %368 = vector.broadcast %367 : f32 to vector<16x128xf32>
    %369 = arith.mulf %75, %368 : vector<16x128xf32>
    %370 = arith.addf %354, %369 : vector<16x128xf32>
    %c9_144 = arith.constant 9 : index
    %c2_145 = arith.constant 2 : index
    %371 = memref.load %arg5[%c9_144, %c2_145] : memref<20x10xf32, #tpu.memory_space<smem>>
    %372 = vector.broadcast %371 : f32 to vector<16x128xf32>
    %373 = arith.mulf %83, %372 : vector<16x128xf32>
    %374 = arith.addf %358, %373 : vector<16x128xf32>
    %c10_146 = arith.constant 10 : index
    %c2_147 = arith.constant 2 : index
    %375 = memref.load %arg5[%c10_146, %c2_147] : memref<20x10xf32, #tpu.memory_space<smem>>
    %376 = vector.broadcast %375 : f32 to vector<16x128xf32>
    %377 = arith.mulf %91, %376 : vector<16x128xf32>
    %378 = arith.addf %362, %377 : vector<16x128xf32>
    %c11_148 = arith.constant 11 : index
    %c2_149 = arith.constant 2 : index
    %379 = memref.load %arg5[%c11_148, %c2_149] : memref<20x10xf32, #tpu.memory_space<smem>>
    %380 = vector.broadcast %379 : f32 to vector<16x128xf32>
    %381 = arith.mulf %99, %380 : vector<16x128xf32>
    %382 = arith.addf %366, %381 : vector<16x128xf32>
    %c12_150 = arith.constant 12 : index
    %c2_151 = arith.constant 2 : index
    %383 = memref.load %arg5[%c12_150, %c2_151] : memref<20x10xf32, #tpu.memory_space<smem>>
    %384 = vector.broadcast %383 : f32 to vector<16x128xf32>
    %385 = arith.mulf %107, %384 : vector<16x128xf32>
    %386 = arith.addf %370, %385 : vector<16x128xf32>
    %c13_152 = arith.constant 13 : index
    %c2_153 = arith.constant 2 : index
    %387 = memref.load %arg5[%c13_152, %c2_153] : memref<20x10xf32, #tpu.memory_space<smem>>
    %388 = vector.broadcast %387 : f32 to vector<16x128xf32>
    %389 = arith.mulf %115, %388 : vector<16x128xf32>
    %390 = arith.addf %374, %389 : vector<16x128xf32>
    %c14_154 = arith.constant 14 : index
    %c2_155 = arith.constant 2 : index
    %391 = memref.load %arg5[%c14_154, %c2_155] : memref<20x10xf32, #tpu.memory_space<smem>>
    %392 = vector.broadcast %391 : f32 to vector<16x128xf32>
    %393 = arith.mulf %123, %392 : vector<16x128xf32>
    %394 = arith.addf %378, %393 : vector<16x128xf32>
    %c15_156 = arith.constant 15 : index
    %c2_157 = arith.constant 2 : index
    %395 = memref.load %arg5[%c15_156, %c2_157] : memref<20x10xf32, #tpu.memory_space<smem>>
    %396 = vector.broadcast %395 : f32 to vector<16x128xf32>
    %397 = arith.mulf %131, %396 : vector<16x128xf32>
    %398 = arith.addf %382, %397 : vector<16x128xf32>
    %c16_158 = arith.constant 16 : index
    %c2_159 = arith.constant 2 : index
    %399 = memref.load %arg5[%c16_158, %c2_159] : memref<20x10xf32, #tpu.memory_space<smem>>
    %400 = vector.broadcast %399 : f32 to vector<16x128xf32>
    %401 = arith.mulf %139, %400 : vector<16x128xf32>
    %402 = arith.addf %386, %401 : vector<16x128xf32>
    %c17_160 = arith.constant 17 : index
    %c2_161 = arith.constant 2 : index
    %403 = memref.load %arg5[%c17_160, %c2_161] : memref<20x10xf32, #tpu.memory_space<smem>>
    %404 = vector.broadcast %403 : f32 to vector<16x128xf32>
    %405 = arith.mulf %147, %404 : vector<16x128xf32>
    %406 = arith.addf %390, %405 : vector<16x128xf32>
    %c18_162 = arith.constant 18 : index
    %c2_163 = arith.constant 2 : index
    %407 = memref.load %arg5[%c18_162, %c2_163] : memref<20x10xf32, #tpu.memory_space<smem>>
    %408 = vector.broadcast %407 : f32 to vector<16x128xf32>
    %409 = arith.mulf %155, %408 : vector<16x128xf32>
    %410 = arith.addf %394, %409 : vector<16x128xf32>
    %c19_164 = arith.constant 19 : index
    %c2_165 = arith.constant 2 : index
    %411 = memref.load %arg5[%c19_164, %c2_165] : memref<20x10xf32, #tpu.memory_space<smem>>
    %412 = vector.broadcast %411 : f32 to vector<16x128xf32>
    %413 = arith.mulf %163, %412 : vector<16x128xf32>
    %414 = arith.addf %398, %413 : vector<16x128xf32>
    %415 = arith.addf %402, %406 : vector<16x128xf32>
    %416 = arith.addf %410, %414 : vector<16x128xf32>
    %417 = arith.addf %415, %416 : vector<16x128xf32>
    %c2_166 = arith.constant 2 : index
    %418 = memref.load %arg6[%c2_166] : memref<10xf32, #tpu.memory_space<smem>>
    %419 = vector.broadcast %418 : f32 to vector<16x128xf32>
    %420 = arith.addf %417, %419 : vector<16x128xf32>
    %cst_167 = arith.constant 0.000000e+00 : f32
    %421 = vector.broadcast %cst_167 : f32 to vector<16x128xf32>
    %422 = arith.maximumf %420, %421 : vector<16x128xf32>
    %c2_168 = arith.constant 2 : index
    %423 = memref.load %arg7[%c2_168] : memref<10xf32, #tpu.memory_space<smem>>
    %424 = vector.broadcast %423 : f32 to vector<16x128xf32>
    %425 = arith.mulf %422, %424 : vector<16x128xf32>
    %426 = arith.addf %338, %425 : vector<16x128xf32>
    %c0_169 = arith.constant 0 : index
    %c3_170 = arith.constant 3 : index
    %427 = memref.load %arg5[%c0_169, %c3_170] : memref<20x10xf32, #tpu.memory_space<smem>>
    %428 = vector.broadcast %427 : f32 to vector<16x128xf32>
    %429 = arith.mulf %11, %428 : vector<16x128xf32>
    %c1_171 = arith.constant 1 : index
    %c3_172 = arith.constant 3 : index
    %430 = memref.load %arg5[%c1_171, %c3_172] : memref<20x10xf32, #tpu.memory_space<smem>>
    %431 = vector.broadcast %430 : f32 to vector<16x128xf32>
    %432 = arith.mulf %19, %431 : vector<16x128xf32>
    %c2_173 = arith.constant 2 : index
    %c3_174 = arith.constant 3 : index
    %433 = memref.load %arg5[%c2_173, %c3_174] : memref<20x10xf32, #tpu.memory_space<smem>>
    %434 = vector.broadcast %433 : f32 to vector<16x128xf32>
    %435 = arith.mulf %27, %434 : vector<16x128xf32>
    %c3_175 = arith.constant 3 : index
    %c3_176 = arith.constant 3 : index
    %436 = memref.load %arg5[%c3_175, %c3_176] : memref<20x10xf32, #tpu.memory_space<smem>>
    %437 = vector.broadcast %436 : f32 to vector<16x128xf32>
    %438 = arith.mulf %35, %437 : vector<16x128xf32>
    %c4_177 = arith.constant 4 : index
    %c3_178 = arith.constant 3 : index
    %439 = memref.load %arg5[%c4_177, %c3_178] : memref<20x10xf32, #tpu.memory_space<smem>>
    %440 = vector.broadcast %439 : f32 to vector<16x128xf32>
    %441 = arith.mulf %43, %440 : vector<16x128xf32>
    %442 = arith.addf %429, %441 : vector<16x128xf32>
    %c5_179 = arith.constant 5 : index
    %c3_180 = arith.constant 3 : index
    %443 = memref.load %arg5[%c5_179, %c3_180] : memref<20x10xf32, #tpu.memory_space<smem>>
    %444 = vector.broadcast %443 : f32 to vector<16x128xf32>
    %445 = arith.mulf %51, %444 : vector<16x128xf32>
    %446 = arith.addf %432, %445 : vector<16x128xf32>
    %c6_181 = arith.constant 6 : index
    %c3_182 = arith.constant 3 : index
    %447 = memref.load %arg5[%c6_181, %c3_182] : memref<20x10xf32, #tpu.memory_space<smem>>
    %448 = vector.broadcast %447 : f32 to vector<16x128xf32>
    %449 = arith.mulf %59, %448 : vector<16x128xf32>
    %450 = arith.addf %435, %449 : vector<16x128xf32>
    %c7_183 = arith.constant 7 : index
    %c3_184 = arith.constant 3 : index
    %451 = memref.load %arg5[%c7_183, %c3_184] : memref<20x10xf32, #tpu.memory_space<smem>>
    %452 = vector.broadcast %451 : f32 to vector<16x128xf32>
    %453 = arith.mulf %67, %452 : vector<16x128xf32>
    %454 = arith.addf %438, %453 : vector<16x128xf32>
    %c8_185 = arith.constant 8 : index
    %c3_186 = arith.constant 3 : index
    %455 = memref.load %arg5[%c8_185, %c3_186] : memref<20x10xf32, #tpu.memory_space<smem>>
    %456 = vector.broadcast %455 : f32 to vector<16x128xf32>
    %457 = arith.mulf %75, %456 : vector<16x128xf32>
    %458 = arith.addf %442, %457 : vector<16x128xf32>
    %c9_187 = arith.constant 9 : index
    %c3_188 = arith.constant 3 : index
    %459 = memref.load %arg5[%c9_187, %c3_188] : memref<20x10xf32, #tpu.memory_space<smem>>
    %460 = vector.broadcast %459 : f32 to vector<16x128xf32>
    %461 = arith.mulf %83, %460 : vector<16x128xf32>
    %462 = arith.addf %446, %461 : vector<16x128xf32>
    %c10_189 = arith.constant 10 : index
    %c3_190 = arith.constant 3 : index
    %463 = memref.load %arg5[%c10_189, %c3_190] : memref<20x10xf32, #tpu.memory_space<smem>>
    %464 = vector.broadcast %463 : f32 to vector<16x128xf32>
    %465 = arith.mulf %91, %464 : vector<16x128xf32>
    %466 = arith.addf %450, %465 : vector<16x128xf32>
    %c11_191 = arith.constant 11 : index
    %c3_192 = arith.constant 3 : index
    %467 = memref.load %arg5[%c11_191, %c3_192] : memref<20x10xf32, #tpu.memory_space<smem>>
    %468 = vector.broadcast %467 : f32 to vector<16x128xf32>
    %469 = arith.mulf %99, %468 : vector<16x128xf32>
    %470 = arith.addf %454, %469 : vector<16x128xf32>
    %c12_193 = arith.constant 12 : index
    %c3_194 = arith.constant 3 : index
    %471 = memref.load %arg5[%c12_193, %c3_194] : memref<20x10xf32, #tpu.memory_space<smem>>
    %472 = vector.broadcast %471 : f32 to vector<16x128xf32>
    %473 = arith.mulf %107, %472 : vector<16x128xf32>
    %474 = arith.addf %458, %473 : vector<16x128xf32>
    %c13_195 = arith.constant 13 : index
    %c3_196 = arith.constant 3 : index
    %475 = memref.load %arg5[%c13_195, %c3_196] : memref<20x10xf32, #tpu.memory_space<smem>>
    %476 = vector.broadcast %475 : f32 to vector<16x128xf32>
    %477 = arith.mulf %115, %476 : vector<16x128xf32>
    %478 = arith.addf %462, %477 : vector<16x128xf32>
    %c14_197 = arith.constant 14 : index
    %c3_198 = arith.constant 3 : index
    %479 = memref.load %arg5[%c14_197, %c3_198] : memref<20x10xf32, #tpu.memory_space<smem>>
    %480 = vector.broadcast %479 : f32 to vector<16x128xf32>
    %481 = arith.mulf %123, %480 : vector<16x128xf32>
    %482 = arith.addf %466, %481 : vector<16x128xf32>
    %c15_199 = arith.constant 15 : index
    %c3_200 = arith.constant 3 : index
    %483 = memref.load %arg5[%c15_199, %c3_200] : memref<20x10xf32, #tpu.memory_space<smem>>
    %484 = vector.broadcast %483 : f32 to vector<16x128xf32>
    %485 = arith.mulf %131, %484 : vector<16x128xf32>
    %486 = arith.addf %470, %485 : vector<16x128xf32>
    %c16_201 = arith.constant 16 : index
    %c3_202 = arith.constant 3 : index
    %487 = memref.load %arg5[%c16_201, %c3_202] : memref<20x10xf32, #tpu.memory_space<smem>>
    %488 = vector.broadcast %487 : f32 to vector<16x128xf32>
    %489 = arith.mulf %139, %488 : vector<16x128xf32>
    %490 = arith.addf %474, %489 : vector<16x128xf32>
    %c17_203 = arith.constant 17 : index
    %c3_204 = arith.constant 3 : index
    %491 = memref.load %arg5[%c17_203, %c3_204] : memref<20x10xf32, #tpu.memory_space<smem>>
    %492 = vector.broadcast %491 : f32 to vector<16x128xf32>
    %493 = arith.mulf %147, %492 : vector<16x128xf32>
    %494 = arith.addf %478, %493 : vector<16x128xf32>
    %c18_205 = arith.constant 18 : index
    %c3_206 = arith.constant 3 : index
    %495 = memref.load %arg5[%c18_205, %c3_206] : memref<20x10xf32, #tpu.memory_space<smem>>
    %496 = vector.broadcast %495 : f32 to vector<16x128xf32>
    %497 = arith.mulf %155, %496 : vector<16x128xf32>
    %498 = arith.addf %482, %497 : vector<16x128xf32>
    %c19_207 = arith.constant 19 : index
    %c3_208 = arith.constant 3 : index
    %499 = memref.load %arg5[%c19_207, %c3_208] : memref<20x10xf32, #tpu.memory_space<smem>>
    %500 = vector.broadcast %499 : f32 to vector<16x128xf32>
    %501 = arith.mulf %163, %500 : vector<16x128xf32>
    %502 = arith.addf %486, %501 : vector<16x128xf32>
    %503 = arith.addf %490, %494 : vector<16x128xf32>
    %504 = arith.addf %498, %502 : vector<16x128xf32>
    %505 = arith.addf %503, %504 : vector<16x128xf32>
    %c3_209 = arith.constant 3 : index
    %506 = memref.load %arg6[%c3_209] : memref<10xf32, #tpu.memory_space<smem>>
    %507 = vector.broadcast %506 : f32 to vector<16x128xf32>
    %508 = arith.addf %505, %507 : vector<16x128xf32>
    %cst_210 = arith.constant 0.000000e+00 : f32
    %509 = vector.broadcast %cst_210 : f32 to vector<16x128xf32>
    %510 = arith.maximumf %508, %509 : vector<16x128xf32>
    %c3_211 = arith.constant 3 : index
    %511 = memref.load %arg7[%c3_211] : memref<10xf32, #tpu.memory_space<smem>>
    %512 = vector.broadcast %511 : f32 to vector<16x128xf32>
    %513 = arith.mulf %510, %512 : vector<16x128xf32>
    %514 = arith.addf %426, %513 : vector<16x128xf32>
    %c0_212 = arith.constant 0 : index
    %c4_213 = arith.constant 4 : index
    %515 = memref.load %arg5[%c0_212, %c4_213] : memref<20x10xf32, #tpu.memory_space<smem>>
    %516 = vector.broadcast %515 : f32 to vector<16x128xf32>
    %517 = arith.mulf %11, %516 : vector<16x128xf32>
    %c1_214 = arith.constant 1 : index
    %c4_215 = arith.constant 4 : index
    %518 = memref.load %arg5[%c1_214, %c4_215] : memref<20x10xf32, #tpu.memory_space<smem>>
    %519 = vector.broadcast %518 : f32 to vector<16x128xf32>
    %520 = arith.mulf %19, %519 : vector<16x128xf32>
    %c2_216 = arith.constant 2 : index
    %c4_217 = arith.constant 4 : index
    %521 = memref.load %arg5[%c2_216, %c4_217] : memref<20x10xf32, #tpu.memory_space<smem>>
    %522 = vector.broadcast %521 : f32 to vector<16x128xf32>
    %523 = arith.mulf %27, %522 : vector<16x128xf32>
    %c3_218 = arith.constant 3 : index
    %c4_219 = arith.constant 4 : index
    %524 = memref.load %arg5[%c3_218, %c4_219] : memref<20x10xf32, #tpu.memory_space<smem>>
    %525 = vector.broadcast %524 : f32 to vector<16x128xf32>
    %526 = arith.mulf %35, %525 : vector<16x128xf32>
    %c4_220 = arith.constant 4 : index
    %c4_221 = arith.constant 4 : index
    %527 = memref.load %arg5[%c4_220, %c4_221] : memref<20x10xf32, #tpu.memory_space<smem>>
    %528 = vector.broadcast %527 : f32 to vector<16x128xf32>
    %529 = arith.mulf %43, %528 : vector<16x128xf32>
    %530 = arith.addf %517, %529 : vector<16x128xf32>
    %c5_222 = arith.constant 5 : index
    %c4_223 = arith.constant 4 : index
    %531 = memref.load %arg5[%c5_222, %c4_223] : memref<20x10xf32, #tpu.memory_space<smem>>
    %532 = vector.broadcast %531 : f32 to vector<16x128xf32>
    %533 = arith.mulf %51, %532 : vector<16x128xf32>
    %534 = arith.addf %520, %533 : vector<16x128xf32>
    %c6_224 = arith.constant 6 : index
    %c4_225 = arith.constant 4 : index
    %535 = memref.load %arg5[%c6_224, %c4_225] : memref<20x10xf32, #tpu.memory_space<smem>>
    %536 = vector.broadcast %535 : f32 to vector<16x128xf32>
    %537 = arith.mulf %59, %536 : vector<16x128xf32>
    %538 = arith.addf %523, %537 : vector<16x128xf32>
    %c7_226 = arith.constant 7 : index
    %c4_227 = arith.constant 4 : index
    %539 = memref.load %arg5[%c7_226, %c4_227] : memref<20x10xf32, #tpu.memory_space<smem>>
    %540 = vector.broadcast %539 : f32 to vector<16x128xf32>
    %541 = arith.mulf %67, %540 : vector<16x128xf32>
    %542 = arith.addf %526, %541 : vector<16x128xf32>
    %c8_228 = arith.constant 8 : index
    %c4_229 = arith.constant 4 : index
    %543 = memref.load %arg5[%c8_228, %c4_229] : memref<20x10xf32, #tpu.memory_space<smem>>
    %544 = vector.broadcast %543 : f32 to vector<16x128xf32>
    %545 = arith.mulf %75, %544 : vector<16x128xf32>
    %546 = arith.addf %530, %545 : vector<16x128xf32>
    %c9_230 = arith.constant 9 : index
    %c4_231 = arith.constant 4 : index
    %547 = memref.load %arg5[%c9_230, %c4_231] : memref<20x10xf32, #tpu.memory_space<smem>>
    %548 = vector.broadcast %547 : f32 to vector<16x128xf32>
    %549 = arith.mulf %83, %548 : vector<16x128xf32>
    %550 = arith.addf %534, %549 : vector<16x128xf32>
    %c10_232 = arith.constant 10 : index
    %c4_233 = arith.constant 4 : index
    %551 = memref.load %arg5[%c10_232, %c4_233] : memref<20x10xf32, #tpu.memory_space<smem>>
    %552 = vector.broadcast %551 : f32 to vector<16x128xf32>
    %553 = arith.mulf %91, %552 : vector<16x128xf32>
    %554 = arith.addf %538, %553 : vector<16x128xf32>
    %c11_234 = arith.constant 11 : index
    %c4_235 = arith.constant 4 : index
    %555 = memref.load %arg5[%c11_234, %c4_235] : memref<20x10xf32, #tpu.memory_space<smem>>
    %556 = vector.broadcast %555 : f32 to vector<16x128xf32>
    %557 = arith.mulf %99, %556 : vector<16x128xf32>
    %558 = arith.addf %542, %557 : vector<16x128xf32>
    %c12_236 = arith.constant 12 : index
    %c4_237 = arith.constant 4 : index
    %559 = memref.load %arg5[%c12_236, %c4_237] : memref<20x10xf32, #tpu.memory_space<smem>>
    %560 = vector.broadcast %559 : f32 to vector<16x128xf32>
    %561 = arith.mulf %107, %560 : vector<16x128xf32>
    %562 = arith.addf %546, %561 : vector<16x128xf32>
    %c13_238 = arith.constant 13 : index
    %c4_239 = arith.constant 4 : index
    %563 = memref.load %arg5[%c13_238, %c4_239] : memref<20x10xf32, #tpu.memory_space<smem>>
    %564 = vector.broadcast %563 : f32 to vector<16x128xf32>
    %565 = arith.mulf %115, %564 : vector<16x128xf32>
    %566 = arith.addf %550, %565 : vector<16x128xf32>
    %c14_240 = arith.constant 14 : index
    %c4_241 = arith.constant 4 : index
    %567 = memref.load %arg5[%c14_240, %c4_241] : memref<20x10xf32, #tpu.memory_space<smem>>
    %568 = vector.broadcast %567 : f32 to vector<16x128xf32>
    %569 = arith.mulf %123, %568 : vector<16x128xf32>
    %570 = arith.addf %554, %569 : vector<16x128xf32>
    %c15_242 = arith.constant 15 : index
    %c4_243 = arith.constant 4 : index
    %571 = memref.load %arg5[%c15_242, %c4_243] : memref<20x10xf32, #tpu.memory_space<smem>>
    %572 = vector.broadcast %571 : f32 to vector<16x128xf32>
    %573 = arith.mulf %131, %572 : vector<16x128xf32>
    %574 = arith.addf %558, %573 : vector<16x128xf32>
    %c16_244 = arith.constant 16 : index
    %c4_245 = arith.constant 4 : index
    %575 = memref.load %arg5[%c16_244, %c4_245] : memref<20x10xf32, #tpu.memory_space<smem>>
    %576 = vector.broadcast %575 : f32 to vector<16x128xf32>
    %577 = arith.mulf %139, %576 : vector<16x128xf32>
    %578 = arith.addf %562, %577 : vector<16x128xf32>
    %c17_246 = arith.constant 17 : index
    %c4_247 = arith.constant 4 : index
    %579 = memref.load %arg5[%c17_246, %c4_247] : memref<20x10xf32, #tpu.memory_space<smem>>
    %580 = vector.broadcast %579 : f32 to vector<16x128xf32>
    %581 = arith.mulf %147, %580 : vector<16x128xf32>
    %582 = arith.addf %566, %581 : vector<16x128xf32>
    %c18_248 = arith.constant 18 : index
    %c4_249 = arith.constant 4 : index
    %583 = memref.load %arg5[%c18_248, %c4_249] : memref<20x10xf32, #tpu.memory_space<smem>>
    %584 = vector.broadcast %583 : f32 to vector<16x128xf32>
    %585 = arith.mulf %155, %584 : vector<16x128xf32>
    %586 = arith.addf %570, %585 : vector<16x128xf32>
    %c19_250 = arith.constant 19 : index
    %c4_251 = arith.constant 4 : index
    %587 = memref.load %arg5[%c19_250, %c4_251] : memref<20x10xf32, #tpu.memory_space<smem>>
    %588 = vector.broadcast %587 : f32 to vector<16x128xf32>
    %589 = arith.mulf %163, %588 : vector<16x128xf32>
    %590 = arith.addf %574, %589 : vector<16x128xf32>
    %591 = arith.addf %578, %582 : vector<16x128xf32>
    %592 = arith.addf %586, %590 : vector<16x128xf32>
    %593 = arith.addf %591, %592 : vector<16x128xf32>
    %c4_252 = arith.constant 4 : index
    %594 = memref.load %arg6[%c4_252] : memref<10xf32, #tpu.memory_space<smem>>
    %595 = vector.broadcast %594 : f32 to vector<16x128xf32>
    %596 = arith.addf %593, %595 : vector<16x128xf32>
    %cst_253 = arith.constant 0.000000e+00 : f32
    %597 = vector.broadcast %cst_253 : f32 to vector<16x128xf32>
    %598 = arith.maximumf %596, %597 : vector<16x128xf32>
    %c4_254 = arith.constant 4 : index
    %599 = memref.load %arg7[%c4_254] : memref<10xf32, #tpu.memory_space<smem>>
    %600 = vector.broadcast %599 : f32 to vector<16x128xf32>
    %601 = arith.mulf %598, %600 : vector<16x128xf32>
    %602 = arith.addf %514, %601 : vector<16x128xf32>
    %c0_255 = arith.constant 0 : index
    %c5_256 = arith.constant 5 : index
    %603 = memref.load %arg5[%c0_255, %c5_256] : memref<20x10xf32, #tpu.memory_space<smem>>
    %604 = vector.broadcast %603 : f32 to vector<16x128xf32>
    %605 = arith.mulf %11, %604 : vector<16x128xf32>
    %c1_257 = arith.constant 1 : index
    %c5_258 = arith.constant 5 : index
    %606 = memref.load %arg5[%c1_257, %c5_258] : memref<20x10xf32, #tpu.memory_space<smem>>
    %607 = vector.broadcast %606 : f32 to vector<16x128xf32>
    %608 = arith.mulf %19, %607 : vector<16x128xf32>
    %c2_259 = arith.constant 2 : index
    %c5_260 = arith.constant 5 : index
    %609 = memref.load %arg5[%c2_259, %c5_260] : memref<20x10xf32, #tpu.memory_space<smem>>
    %610 = vector.broadcast %609 : f32 to vector<16x128xf32>
    %611 = arith.mulf %27, %610 : vector<16x128xf32>
    %c3_261 = arith.constant 3 : index
    %c5_262 = arith.constant 5 : index
    %612 = memref.load %arg5[%c3_261, %c5_262] : memref<20x10xf32, #tpu.memory_space<smem>>
    %613 = vector.broadcast %612 : f32 to vector<16x128xf32>
    %614 = arith.mulf %35, %613 : vector<16x128xf32>
    %c4_263 = arith.constant 4 : index
    %c5_264 = arith.constant 5 : index
    %615 = memref.load %arg5[%c4_263, %c5_264] : memref<20x10xf32, #tpu.memory_space<smem>>
    %616 = vector.broadcast %615 : f32 to vector<16x128xf32>
    %617 = arith.mulf %43, %616 : vector<16x128xf32>
    %618 = arith.addf %605, %617 : vector<16x128xf32>
    %c5_265 = arith.constant 5 : index
    %c5_266 = arith.constant 5 : index
    %619 = memref.load %arg5[%c5_265, %c5_266] : memref<20x10xf32, #tpu.memory_space<smem>>
    %620 = vector.broadcast %619 : f32 to vector<16x128xf32>
    %621 = arith.mulf %51, %620 : vector<16x128xf32>
    %622 = arith.addf %608, %621 : vector<16x128xf32>
    %c6_267 = arith.constant 6 : index
    %c5_268 = arith.constant 5 : index
    %623 = memref.load %arg5[%c6_267, %c5_268] : memref<20x10xf32, #tpu.memory_space<smem>>
    %624 = vector.broadcast %623 : f32 to vector<16x128xf32>
    %625 = arith.mulf %59, %624 : vector<16x128xf32>
    %626 = arith.addf %611, %625 : vector<16x128xf32>
    %c7_269 = arith.constant 7 : index
    %c5_270 = arith.constant 5 : index
    %627 = memref.load %arg5[%c7_269, %c5_270] : memref<20x10xf32, #tpu.memory_space<smem>>
    %628 = vector.broadcast %627 : f32 to vector<16x128xf32>
    %629 = arith.mulf %67, %628 : vector<16x128xf32>
    %630 = arith.addf %614, %629 : vector<16x128xf32>
    %c8_271 = arith.constant 8 : index
    %c5_272 = arith.constant 5 : index
    %631 = memref.load %arg5[%c8_271, %c5_272] : memref<20x10xf32, #tpu.memory_space<smem>>
    %632 = vector.broadcast %631 : f32 to vector<16x128xf32>
    %633 = arith.mulf %75, %632 : vector<16x128xf32>
    %634 = arith.addf %618, %633 : vector<16x128xf32>
    %c9_273 = arith.constant 9 : index
    %c5_274 = arith.constant 5 : index
    %635 = memref.load %arg5[%c9_273, %c5_274] : memref<20x10xf32, #tpu.memory_space<smem>>
    %636 = vector.broadcast %635 : f32 to vector<16x128xf32>
    %637 = arith.mulf %83, %636 : vector<16x128xf32>
    %638 = arith.addf %622, %637 : vector<16x128xf32>
    %c10_275 = arith.constant 10 : index
    %c5_276 = arith.constant 5 : index
    %639 = memref.load %arg5[%c10_275, %c5_276] : memref<20x10xf32, #tpu.memory_space<smem>>
    %640 = vector.broadcast %639 : f32 to vector<16x128xf32>
    %641 = arith.mulf %91, %640 : vector<16x128xf32>
    %642 = arith.addf %626, %641 : vector<16x128xf32>
    %c11_277 = arith.constant 11 : index
    %c5_278 = arith.constant 5 : index
    %643 = memref.load %arg5[%c11_277, %c5_278] : memref<20x10xf32, #tpu.memory_space<smem>>
    %644 = vector.broadcast %643 : f32 to vector<16x128xf32>
    %645 = arith.mulf %99, %644 : vector<16x128xf32>
    %646 = arith.addf %630, %645 : vector<16x128xf32>
    %c12_279 = arith.constant 12 : index
    %c5_280 = arith.constant 5 : index
    %647 = memref.load %arg5[%c12_279, %c5_280] : memref<20x10xf32, #tpu.memory_space<smem>>
    %648 = vector.broadcast %647 : f32 to vector<16x128xf32>
    %649 = arith.mulf %107, %648 : vector<16x128xf32>
    %650 = arith.addf %634, %649 : vector<16x128xf32>
    %c13_281 = arith.constant 13 : index
    %c5_282 = arith.constant 5 : index
    %651 = memref.load %arg5[%c13_281, %c5_282] : memref<20x10xf32, #tpu.memory_space<smem>>
    %652 = vector.broadcast %651 : f32 to vector<16x128xf32>
    %653 = arith.mulf %115, %652 : vector<16x128xf32>
    %654 = arith.addf %638, %653 : vector<16x128xf32>
    %c14_283 = arith.constant 14 : index
    %c5_284 = arith.constant 5 : index
    %655 = memref.load %arg5[%c14_283, %c5_284] : memref<20x10xf32, #tpu.memory_space<smem>>
    %656 = vector.broadcast %655 : f32 to vector<16x128xf32>
    %657 = arith.mulf %123, %656 : vector<16x128xf32>
    %658 = arith.addf %642, %657 : vector<16x128xf32>
    %c15_285 = arith.constant 15 : index
    %c5_286 = arith.constant 5 : index
    %659 = memref.load %arg5[%c15_285, %c5_286] : memref<20x10xf32, #tpu.memory_space<smem>>
    %660 = vector.broadcast %659 : f32 to vector<16x128xf32>
    %661 = arith.mulf %131, %660 : vector<16x128xf32>
    %662 = arith.addf %646, %661 : vector<16x128xf32>
    %c16_287 = arith.constant 16 : index
    %c5_288 = arith.constant 5 : index
    %663 = memref.load %arg5[%c16_287, %c5_288] : memref<20x10xf32, #tpu.memory_space<smem>>
    %664 = vector.broadcast %663 : f32 to vector<16x128xf32>
    %665 = arith.mulf %139, %664 : vector<16x128xf32>
    %666 = arith.addf %650, %665 : vector<16x128xf32>
    %c17_289 = arith.constant 17 : index
    %c5_290 = arith.constant 5 : index
    %667 = memref.load %arg5[%c17_289, %c5_290] : memref<20x10xf32, #tpu.memory_space<smem>>
    %668 = vector.broadcast %667 : f32 to vector<16x128xf32>
    %669 = arith.mulf %147, %668 : vector<16x128xf32>
    %670 = arith.addf %654, %669 : vector<16x128xf32>
    %c18_291 = arith.constant 18 : index
    %c5_292 = arith.constant 5 : index
    %671 = memref.load %arg5[%c18_291, %c5_292] : memref<20x10xf32, #tpu.memory_space<smem>>
    %672 = vector.broadcast %671 : f32 to vector<16x128xf32>
    %673 = arith.mulf %155, %672 : vector<16x128xf32>
    %674 = arith.addf %658, %673 : vector<16x128xf32>
    %c19_293 = arith.constant 19 : index
    %c5_294 = arith.constant 5 : index
    %675 = memref.load %arg5[%c19_293, %c5_294] : memref<20x10xf32, #tpu.memory_space<smem>>
    %676 = vector.broadcast %675 : f32 to vector<16x128xf32>
    %677 = arith.mulf %163, %676 : vector<16x128xf32>
    %678 = arith.addf %662, %677 : vector<16x128xf32>
    %679 = arith.addf %666, %670 : vector<16x128xf32>
    %680 = arith.addf %674, %678 : vector<16x128xf32>
    %681 = arith.addf %679, %680 : vector<16x128xf32>
    %c5_295 = arith.constant 5 : index
    %682 = memref.load %arg6[%c5_295] : memref<10xf32, #tpu.memory_space<smem>>
    %683 = vector.broadcast %682 : f32 to vector<16x128xf32>
    %684 = arith.addf %681, %683 : vector<16x128xf32>
    %cst_296 = arith.constant 0.000000e+00 : f32
    %685 = vector.broadcast %cst_296 : f32 to vector<16x128xf32>
    %686 = arith.maximumf %684, %685 : vector<16x128xf32>
    %c5_297 = arith.constant 5 : index
    %687 = memref.load %arg7[%c5_297] : memref<10xf32, #tpu.memory_space<smem>>
    %688 = vector.broadcast %687 : f32 to vector<16x128xf32>
    %689 = arith.mulf %686, %688 : vector<16x128xf32>
    %690 = arith.addf %602, %689 : vector<16x128xf32>
    %c0_298 = arith.constant 0 : index
    %c6_299 = arith.constant 6 : index
    %691 = memref.load %arg5[%c0_298, %c6_299] : memref<20x10xf32, #tpu.memory_space<smem>>
    %692 = vector.broadcast %691 : f32 to vector<16x128xf32>
    %693 = arith.mulf %11, %692 : vector<16x128xf32>
    %c1_300 = arith.constant 1 : index
    %c6_301 = arith.constant 6 : index
    %694 = memref.load %arg5[%c1_300, %c6_301] : memref<20x10xf32, #tpu.memory_space<smem>>
    %695 = vector.broadcast %694 : f32 to vector<16x128xf32>
    %696 = arith.mulf %19, %695 : vector<16x128xf32>
    %c2_302 = arith.constant 2 : index
    %c6_303 = arith.constant 6 : index
    %697 = memref.load %arg5[%c2_302, %c6_303] : memref<20x10xf32, #tpu.memory_space<smem>>
    %698 = vector.broadcast %697 : f32 to vector<16x128xf32>
    %699 = arith.mulf %27, %698 : vector<16x128xf32>
    %c3_304 = arith.constant 3 : index
    %c6_305 = arith.constant 6 : index
    %700 = memref.load %arg5[%c3_304, %c6_305] : memref<20x10xf32, #tpu.memory_space<smem>>
    %701 = vector.broadcast %700 : f32 to vector<16x128xf32>
    %702 = arith.mulf %35, %701 : vector<16x128xf32>
    %c4_306 = arith.constant 4 : index
    %c6_307 = arith.constant 6 : index
    %703 = memref.load %arg5[%c4_306, %c6_307] : memref<20x10xf32, #tpu.memory_space<smem>>
    %704 = vector.broadcast %703 : f32 to vector<16x128xf32>
    %705 = arith.mulf %43, %704 : vector<16x128xf32>
    %706 = arith.addf %693, %705 : vector<16x128xf32>
    %c5_308 = arith.constant 5 : index
    %c6_309 = arith.constant 6 : index
    %707 = memref.load %arg5[%c5_308, %c6_309] : memref<20x10xf32, #tpu.memory_space<smem>>
    %708 = vector.broadcast %707 : f32 to vector<16x128xf32>
    %709 = arith.mulf %51, %708 : vector<16x128xf32>
    %710 = arith.addf %696, %709 : vector<16x128xf32>
    %c6_310 = arith.constant 6 : index
    %c6_311 = arith.constant 6 : index
    %711 = memref.load %arg5[%c6_310, %c6_311] : memref<20x10xf32, #tpu.memory_space<smem>>
    %712 = vector.broadcast %711 : f32 to vector<16x128xf32>
    %713 = arith.mulf %59, %712 : vector<16x128xf32>
    %714 = arith.addf %699, %713 : vector<16x128xf32>
    %c7_312 = arith.constant 7 : index
    %c6_313 = arith.constant 6 : index
    %715 = memref.load %arg5[%c7_312, %c6_313] : memref<20x10xf32, #tpu.memory_space<smem>>
    %716 = vector.broadcast %715 : f32 to vector<16x128xf32>
    %717 = arith.mulf %67, %716 : vector<16x128xf32>
    %718 = arith.addf %702, %717 : vector<16x128xf32>
    %c8_314 = arith.constant 8 : index
    %c6_315 = arith.constant 6 : index
    %719 = memref.load %arg5[%c8_314, %c6_315] : memref<20x10xf32, #tpu.memory_space<smem>>
    %720 = vector.broadcast %719 : f32 to vector<16x128xf32>
    %721 = arith.mulf %75, %720 : vector<16x128xf32>
    %722 = arith.addf %706, %721 : vector<16x128xf32>
    %c9_316 = arith.constant 9 : index
    %c6_317 = arith.constant 6 : index
    %723 = memref.load %arg5[%c9_316, %c6_317] : memref<20x10xf32, #tpu.memory_space<smem>>
    %724 = vector.broadcast %723 : f32 to vector<16x128xf32>
    %725 = arith.mulf %83, %724 : vector<16x128xf32>
    %726 = arith.addf %710, %725 : vector<16x128xf32>
    %c10_318 = arith.constant 10 : index
    %c6_319 = arith.constant 6 : index
    %727 = memref.load %arg5[%c10_318, %c6_319] : memref<20x10xf32, #tpu.memory_space<smem>>
    %728 = vector.broadcast %727 : f32 to vector<16x128xf32>
    %729 = arith.mulf %91, %728 : vector<16x128xf32>
    %730 = arith.addf %714, %729 : vector<16x128xf32>
    %c11_320 = arith.constant 11 : index
    %c6_321 = arith.constant 6 : index
    %731 = memref.load %arg5[%c11_320, %c6_321] : memref<20x10xf32, #tpu.memory_space<smem>>
    %732 = vector.broadcast %731 : f32 to vector<16x128xf32>
    %733 = arith.mulf %99, %732 : vector<16x128xf32>
    %734 = arith.addf %718, %733 : vector<16x128xf32>
    %c12_322 = arith.constant 12 : index
    %c6_323 = arith.constant 6 : index
    %735 = memref.load %arg5[%c12_322, %c6_323] : memref<20x10xf32, #tpu.memory_space<smem>>
    %736 = vector.broadcast %735 : f32 to vector<16x128xf32>
    %737 = arith.mulf %107, %736 : vector<16x128xf32>
    %738 = arith.addf %722, %737 : vector<16x128xf32>
    %c13_324 = arith.constant 13 : index
    %c6_325 = arith.constant 6 : index
    %739 = memref.load %arg5[%c13_324, %c6_325] : memref<20x10xf32, #tpu.memory_space<smem>>
    %740 = vector.broadcast %739 : f32 to vector<16x128xf32>
    %741 = arith.mulf %115, %740 : vector<16x128xf32>
    %742 = arith.addf %726, %741 : vector<16x128xf32>
    %c14_326 = arith.constant 14 : index
    %c6_327 = arith.constant 6 : index
    %743 = memref.load %arg5[%c14_326, %c6_327] : memref<20x10xf32, #tpu.memory_space<smem>>
    %744 = vector.broadcast %743 : f32 to vector<16x128xf32>
    %745 = arith.mulf %123, %744 : vector<16x128xf32>
    %746 = arith.addf %730, %745 : vector<16x128xf32>
    %c15_328 = arith.constant 15 : index
    %c6_329 = arith.constant 6 : index
    %747 = memref.load %arg5[%c15_328, %c6_329] : memref<20x10xf32, #tpu.memory_space<smem>>
    %748 = vector.broadcast %747 : f32 to vector<16x128xf32>
    %749 = arith.mulf %131, %748 : vector<16x128xf32>
    %750 = arith.addf %734, %749 : vector<16x128xf32>
    %c16_330 = arith.constant 16 : index
    %c6_331 = arith.constant 6 : index
    %751 = memref.load %arg5[%c16_330, %c6_331] : memref<20x10xf32, #tpu.memory_space<smem>>
    %752 = vector.broadcast %751 : f32 to vector<16x128xf32>
    %753 = arith.mulf %139, %752 : vector<16x128xf32>
    %754 = arith.addf %738, %753 : vector<16x128xf32>
    %c17_332 = arith.constant 17 : index
    %c6_333 = arith.constant 6 : index
    %755 = memref.load %arg5[%c17_332, %c6_333] : memref<20x10xf32, #tpu.memory_space<smem>>
    %756 = vector.broadcast %755 : f32 to vector<16x128xf32>
    %757 = arith.mulf %147, %756 : vector<16x128xf32>
    %758 = arith.addf %742, %757 : vector<16x128xf32>
    %c18_334 = arith.constant 18 : index
    %c6_335 = arith.constant 6 : index
    %759 = memref.load %arg5[%c18_334, %c6_335] : memref<20x10xf32, #tpu.memory_space<smem>>
    %760 = vector.broadcast %759 : f32 to vector<16x128xf32>
    %761 = arith.mulf %155, %760 : vector<16x128xf32>
    %762 = arith.addf %746, %761 : vector<16x128xf32>
    %c19_336 = arith.constant 19 : index
    %c6_337 = arith.constant 6 : index
    %763 = memref.load %arg5[%c19_336, %c6_337] : memref<20x10xf32, #tpu.memory_space<smem>>
    %764 = vector.broadcast %763 : f32 to vector<16x128xf32>
    %765 = arith.mulf %163, %764 : vector<16x128xf32>
    %766 = arith.addf %750, %765 : vector<16x128xf32>
    %767 = arith.addf %754, %758 : vector<16x128xf32>
    %768 = arith.addf %762, %766 : vector<16x128xf32>
    %769 = arith.addf %767, %768 : vector<16x128xf32>
    %c6_338 = arith.constant 6 : index
    %770 = memref.load %arg6[%c6_338] : memref<10xf32, #tpu.memory_space<smem>>
    %771 = vector.broadcast %770 : f32 to vector<16x128xf32>
    %772 = arith.addf %769, %771 : vector<16x128xf32>
    %cst_339 = arith.constant 0.000000e+00 : f32
    %773 = vector.broadcast %cst_339 : f32 to vector<16x128xf32>
    %774 = arith.maximumf %772, %773 : vector<16x128xf32>
    %c6_340 = arith.constant 6 : index
    %775 = memref.load %arg7[%c6_340] : memref<10xf32, #tpu.memory_space<smem>>
    %776 = vector.broadcast %775 : f32 to vector<16x128xf32>
    %777 = arith.mulf %774, %776 : vector<16x128xf32>
    %778 = arith.addf %690, %777 : vector<16x128xf32>
    %c0_341 = arith.constant 0 : index
    %c7_342 = arith.constant 7 : index
    %779 = memref.load %arg5[%c0_341, %c7_342] : memref<20x10xf32, #tpu.memory_space<smem>>
    %780 = vector.broadcast %779 : f32 to vector<16x128xf32>
    %781 = arith.mulf %11, %780 : vector<16x128xf32>
    %c1_343 = arith.constant 1 : index
    %c7_344 = arith.constant 7 : index
    %782 = memref.load %arg5[%c1_343, %c7_344] : memref<20x10xf32, #tpu.memory_space<smem>>
    %783 = vector.broadcast %782 : f32 to vector<16x128xf32>
    %784 = arith.mulf %19, %783 : vector<16x128xf32>
    %c2_345 = arith.constant 2 : index
    %c7_346 = arith.constant 7 : index
    %785 = memref.load %arg5[%c2_345, %c7_346] : memref<20x10xf32, #tpu.memory_space<smem>>
    %786 = vector.broadcast %785 : f32 to vector<16x128xf32>
    %787 = arith.mulf %27, %786 : vector<16x128xf32>
    %c3_347 = arith.constant 3 : index
    %c7_348 = arith.constant 7 : index
    %788 = memref.load %arg5[%c3_347, %c7_348] : memref<20x10xf32, #tpu.memory_space<smem>>
    %789 = vector.broadcast %788 : f32 to vector<16x128xf32>
    %790 = arith.mulf %35, %789 : vector<16x128xf32>
    %c4_349 = arith.constant 4 : index
    %c7_350 = arith.constant 7 : index
    %791 = memref.load %arg5[%c4_349, %c7_350] : memref<20x10xf32, #tpu.memory_space<smem>>
    %792 = vector.broadcast %791 : f32 to vector<16x128xf32>
    %793 = arith.mulf %43, %792 : vector<16x128xf32>
    %794 = arith.addf %781, %793 : vector<16x128xf32>
    %c5_351 = arith.constant 5 : index
    %c7_352 = arith.constant 7 : index
    %795 = memref.load %arg5[%c5_351, %c7_352] : memref<20x10xf32, #tpu.memory_space<smem>>
    %796 = vector.broadcast %795 : f32 to vector<16x128xf32>
    %797 = arith.mulf %51, %796 : vector<16x128xf32>
    %798 = arith.addf %784, %797 : vector<16x128xf32>
    %c6_353 = arith.constant 6 : index
    %c7_354 = arith.constant 7 : index
    %799 = memref.load %arg5[%c6_353, %c7_354] : memref<20x10xf32, #tpu.memory_space<smem>>
    %800 = vector.broadcast %799 : f32 to vector<16x128xf32>
    %801 = arith.mulf %59, %800 : vector<16x128xf32>
    %802 = arith.addf %787, %801 : vector<16x128xf32>
    %c7_355 = arith.constant 7 : index
    %c7_356 = arith.constant 7 : index
    %803 = memref.load %arg5[%c7_355, %c7_356] : memref<20x10xf32, #tpu.memory_space<smem>>
    %804 = vector.broadcast %803 : f32 to vector<16x128xf32>
    %805 = arith.mulf %67, %804 : vector<16x128xf32>
    %806 = arith.addf %790, %805 : vector<16x128xf32>
    %c8_357 = arith.constant 8 : index
    %c7_358 = arith.constant 7 : index
    %807 = memref.load %arg5[%c8_357, %c7_358] : memref<20x10xf32, #tpu.memory_space<smem>>
    %808 = vector.broadcast %807 : f32 to vector<16x128xf32>
    %809 = arith.mulf %75, %808 : vector<16x128xf32>
    %810 = arith.addf %794, %809 : vector<16x128xf32>
    %c9_359 = arith.constant 9 : index
    %c7_360 = arith.constant 7 : index
    %811 = memref.load %arg5[%c9_359, %c7_360] : memref<20x10xf32, #tpu.memory_space<smem>>
    %812 = vector.broadcast %811 : f32 to vector<16x128xf32>
    %813 = arith.mulf %83, %812 : vector<16x128xf32>
    %814 = arith.addf %798, %813 : vector<16x128xf32>
    %c10_361 = arith.constant 10 : index
    %c7_362 = arith.constant 7 : index
    %815 = memref.load %arg5[%c10_361, %c7_362] : memref<20x10xf32, #tpu.memory_space<smem>>
    %816 = vector.broadcast %815 : f32 to vector<16x128xf32>
    %817 = arith.mulf %91, %816 : vector<16x128xf32>
    %818 = arith.addf %802, %817 : vector<16x128xf32>
    %c11_363 = arith.constant 11 : index
    %c7_364 = arith.constant 7 : index
    %819 = memref.load %arg5[%c11_363, %c7_364] : memref<20x10xf32, #tpu.memory_space<smem>>
    %820 = vector.broadcast %819 : f32 to vector<16x128xf32>
    %821 = arith.mulf %99, %820 : vector<16x128xf32>
    %822 = arith.addf %806, %821 : vector<16x128xf32>
    %c12_365 = arith.constant 12 : index
    %c7_366 = arith.constant 7 : index
    %823 = memref.load %arg5[%c12_365, %c7_366] : memref<20x10xf32, #tpu.memory_space<smem>>
    %824 = vector.broadcast %823 : f32 to vector<16x128xf32>
    %825 = arith.mulf %107, %824 : vector<16x128xf32>
    %826 = arith.addf %810, %825 : vector<16x128xf32>
    %c13_367 = arith.constant 13 : index
    %c7_368 = arith.constant 7 : index
    %827 = memref.load %arg5[%c13_367, %c7_368] : memref<20x10xf32, #tpu.memory_space<smem>>
    %828 = vector.broadcast %827 : f32 to vector<16x128xf32>
    %829 = arith.mulf %115, %828 : vector<16x128xf32>
    %830 = arith.addf %814, %829 : vector<16x128xf32>
    %c14_369 = arith.constant 14 : index
    %c7_370 = arith.constant 7 : index
    %831 = memref.load %arg5[%c14_369, %c7_370] : memref<20x10xf32, #tpu.memory_space<smem>>
    %832 = vector.broadcast %831 : f32 to vector<16x128xf32>
    %833 = arith.mulf %123, %832 : vector<16x128xf32>
    %834 = arith.addf %818, %833 : vector<16x128xf32>
    %c15_371 = arith.constant 15 : index
    %c7_372 = arith.constant 7 : index
    %835 = memref.load %arg5[%c15_371, %c7_372] : memref<20x10xf32, #tpu.memory_space<smem>>
    %836 = vector.broadcast %835 : f32 to vector<16x128xf32>
    %837 = arith.mulf %131, %836 : vector<16x128xf32>
    %838 = arith.addf %822, %837 : vector<16x128xf32>
    %c16_373 = arith.constant 16 : index
    %c7_374 = arith.constant 7 : index
    %839 = memref.load %arg5[%c16_373, %c7_374] : memref<20x10xf32, #tpu.memory_space<smem>>
    %840 = vector.broadcast %839 : f32 to vector<16x128xf32>
    %841 = arith.mulf %139, %840 : vector<16x128xf32>
    %842 = arith.addf %826, %841 : vector<16x128xf32>
    %c17_375 = arith.constant 17 : index
    %c7_376 = arith.constant 7 : index
    %843 = memref.load %arg5[%c17_375, %c7_376] : memref<20x10xf32, #tpu.memory_space<smem>>
    %844 = vector.broadcast %843 : f32 to vector<16x128xf32>
    %845 = arith.mulf %147, %844 : vector<16x128xf32>
    %846 = arith.addf %830, %845 : vector<16x128xf32>
    %c18_377 = arith.constant 18 : index
    %c7_378 = arith.constant 7 : index
    %847 = memref.load %arg5[%c18_377, %c7_378] : memref<20x10xf32, #tpu.memory_space<smem>>
    %848 = vector.broadcast %847 : f32 to vector<16x128xf32>
    %849 = arith.mulf %155, %848 : vector<16x128xf32>
    %850 = arith.addf %834, %849 : vector<16x128xf32>
    %c19_379 = arith.constant 19 : index
    %c7_380 = arith.constant 7 : index
    %851 = memref.load %arg5[%c19_379, %c7_380] : memref<20x10xf32, #tpu.memory_space<smem>>
    %852 = vector.broadcast %851 : f32 to vector<16x128xf32>
    %853 = arith.mulf %163, %852 : vector<16x128xf32>
    %854 = arith.addf %838, %853 : vector<16x128xf32>
    %855 = arith.addf %842, %846 : vector<16x128xf32>
    %856 = arith.addf %850, %854 : vector<16x128xf32>
    %857 = arith.addf %855, %856 : vector<16x128xf32>
    %c7_381 = arith.constant 7 : index
    %858 = memref.load %arg6[%c7_381] : memref<10xf32, #tpu.memory_space<smem>>
    %859 = vector.broadcast %858 : f32 to vector<16x128xf32>
    %860 = arith.addf %857, %859 : vector<16x128xf32>
    %cst_382 = arith.constant 0.000000e+00 : f32
    %861 = vector.broadcast %cst_382 : f32 to vector<16x128xf32>
    %862 = arith.maximumf %860, %861 : vector<16x128xf32>
    %c7_383 = arith.constant 7 : index
    %863 = memref.load %arg7[%c7_383] : memref<10xf32, #tpu.memory_space<smem>>
    %864 = vector.broadcast %863 : f32 to vector<16x128xf32>
    %865 = arith.mulf %862, %864 : vector<16x128xf32>
    %866 = arith.addf %778, %865 : vector<16x128xf32>
    %c0_384 = arith.constant 0 : index
    %c8_385 = arith.constant 8 : index
    %867 = memref.load %arg5[%c0_384, %c8_385] : memref<20x10xf32, #tpu.memory_space<smem>>
    %868 = vector.broadcast %867 : f32 to vector<16x128xf32>
    %869 = arith.mulf %11, %868 : vector<16x128xf32>
    %c1_386 = arith.constant 1 : index
    %c8_387 = arith.constant 8 : index
    %870 = memref.load %arg5[%c1_386, %c8_387] : memref<20x10xf32, #tpu.memory_space<smem>>
    %871 = vector.broadcast %870 : f32 to vector<16x128xf32>
    %872 = arith.mulf %19, %871 : vector<16x128xf32>
    %c2_388 = arith.constant 2 : index
    %c8_389 = arith.constant 8 : index
    %873 = memref.load %arg5[%c2_388, %c8_389] : memref<20x10xf32, #tpu.memory_space<smem>>
    %874 = vector.broadcast %873 : f32 to vector<16x128xf32>
    %875 = arith.mulf %27, %874 : vector<16x128xf32>
    %c3_390 = arith.constant 3 : index
    %c8_391 = arith.constant 8 : index
    %876 = memref.load %arg5[%c3_390, %c8_391] : memref<20x10xf32, #tpu.memory_space<smem>>
    %877 = vector.broadcast %876 : f32 to vector<16x128xf32>
    %878 = arith.mulf %35, %877 : vector<16x128xf32>
    %c4_392 = arith.constant 4 : index
    %c8_393 = arith.constant 8 : index
    %879 = memref.load %arg5[%c4_392, %c8_393] : memref<20x10xf32, #tpu.memory_space<smem>>
    %880 = vector.broadcast %879 : f32 to vector<16x128xf32>
    %881 = arith.mulf %43, %880 : vector<16x128xf32>
    %882 = arith.addf %869, %881 : vector<16x128xf32>
    %c5_394 = arith.constant 5 : index
    %c8_395 = arith.constant 8 : index
    %883 = memref.load %arg5[%c5_394, %c8_395] : memref<20x10xf32, #tpu.memory_space<smem>>
    %884 = vector.broadcast %883 : f32 to vector<16x128xf32>
    %885 = arith.mulf %51, %884 : vector<16x128xf32>
    %886 = arith.addf %872, %885 : vector<16x128xf32>
    %c6_396 = arith.constant 6 : index
    %c8_397 = arith.constant 8 : index
    %887 = memref.load %arg5[%c6_396, %c8_397] : memref<20x10xf32, #tpu.memory_space<smem>>
    %888 = vector.broadcast %887 : f32 to vector<16x128xf32>
    %889 = arith.mulf %59, %888 : vector<16x128xf32>
    %890 = arith.addf %875, %889 : vector<16x128xf32>
    %c7_398 = arith.constant 7 : index
    %c8_399 = arith.constant 8 : index
    %891 = memref.load %arg5[%c7_398, %c8_399] : memref<20x10xf32, #tpu.memory_space<smem>>
    %892 = vector.broadcast %891 : f32 to vector<16x128xf32>
    %893 = arith.mulf %67, %892 : vector<16x128xf32>
    %894 = arith.addf %878, %893 : vector<16x128xf32>
    %c8_400 = arith.constant 8 : index
    %c8_401 = arith.constant 8 : index
    %895 = memref.load %arg5[%c8_400, %c8_401] : memref<20x10xf32, #tpu.memory_space<smem>>
    %896 = vector.broadcast %895 : f32 to vector<16x128xf32>
    %897 = arith.mulf %75, %896 : vector<16x128xf32>
    %898 = arith.addf %882, %897 : vector<16x128xf32>
    %c9_402 = arith.constant 9 : index
    %c8_403 = arith.constant 8 : index
    %899 = memref.load %arg5[%c9_402, %c8_403] : memref<20x10xf32, #tpu.memory_space<smem>>
    %900 = vector.broadcast %899 : f32 to vector<16x128xf32>
    %901 = arith.mulf %83, %900 : vector<16x128xf32>
    %902 = arith.addf %886, %901 : vector<16x128xf32>
    %c10_404 = arith.constant 10 : index
    %c8_405 = arith.constant 8 : index
    %903 = memref.load %arg5[%c10_404, %c8_405] : memref<20x10xf32, #tpu.memory_space<smem>>
    %904 = vector.broadcast %903 : f32 to vector<16x128xf32>
    %905 = arith.mulf %91, %904 : vector<16x128xf32>
    %906 = arith.addf %890, %905 : vector<16x128xf32>
    %c11_406 = arith.constant 11 : index
    %c8_407 = arith.constant 8 : index
    %907 = memref.load %arg5[%c11_406, %c8_407] : memref<20x10xf32, #tpu.memory_space<smem>>
    %908 = vector.broadcast %907 : f32 to vector<16x128xf32>
    %909 = arith.mulf %99, %908 : vector<16x128xf32>
    %910 = arith.addf %894, %909 : vector<16x128xf32>
    %c12_408 = arith.constant 12 : index
    %c8_409 = arith.constant 8 : index
    %911 = memref.load %arg5[%c12_408, %c8_409] : memref<20x10xf32, #tpu.memory_space<smem>>
    %912 = vector.broadcast %911 : f32 to vector<16x128xf32>
    %913 = arith.mulf %107, %912 : vector<16x128xf32>
    %914 = arith.addf %898, %913 : vector<16x128xf32>
    %c13_410 = arith.constant 13 : index
    %c8_411 = arith.constant 8 : index
    %915 = memref.load %arg5[%c13_410, %c8_411] : memref<20x10xf32, #tpu.memory_space<smem>>
    %916 = vector.broadcast %915 : f32 to vector<16x128xf32>
    %917 = arith.mulf %115, %916 : vector<16x128xf32>
    %918 = arith.addf %902, %917 : vector<16x128xf32>
    %c14_412 = arith.constant 14 : index
    %c8_413 = arith.constant 8 : index
    %919 = memref.load %arg5[%c14_412, %c8_413] : memref<20x10xf32, #tpu.memory_space<smem>>
    %920 = vector.broadcast %919 : f32 to vector<16x128xf32>
    %921 = arith.mulf %123, %920 : vector<16x128xf32>
    %922 = arith.addf %906, %921 : vector<16x128xf32>
    %c15_414 = arith.constant 15 : index
    %c8_415 = arith.constant 8 : index
    %923 = memref.load %arg5[%c15_414, %c8_415] : memref<20x10xf32, #tpu.memory_space<smem>>
    %924 = vector.broadcast %923 : f32 to vector<16x128xf32>
    %925 = arith.mulf %131, %924 : vector<16x128xf32>
    %926 = arith.addf %910, %925 : vector<16x128xf32>
    %c16_416 = arith.constant 16 : index
    %c8_417 = arith.constant 8 : index
    %927 = memref.load %arg5[%c16_416, %c8_417] : memref<20x10xf32, #tpu.memory_space<smem>>
    %928 = vector.broadcast %927 : f32 to vector<16x128xf32>
    %929 = arith.mulf %139, %928 : vector<16x128xf32>
    %930 = arith.addf %914, %929 : vector<16x128xf32>
    %c17_418 = arith.constant 17 : index
    %c8_419 = arith.constant 8 : index
    %931 = memref.load %arg5[%c17_418, %c8_419] : memref<20x10xf32, #tpu.memory_space<smem>>
    %932 = vector.broadcast %931 : f32 to vector<16x128xf32>
    %933 = arith.mulf %147, %932 : vector<16x128xf32>
    %934 = arith.addf %918, %933 : vector<16x128xf32>
    %c18_420 = arith.constant 18 : index
    %c8_421 = arith.constant 8 : index
    %935 = memref.load %arg5[%c18_420, %c8_421] : memref<20x10xf32, #tpu.memory_space<smem>>
    %936 = vector.broadcast %935 : f32 to vector<16x128xf32>
    %937 = arith.mulf %155, %936 : vector<16x128xf32>
    %938 = arith.addf %922, %937 : vector<16x128xf32>
    %c19_422 = arith.constant 19 : index
    %c8_423 = arith.constant 8 : index
    %939 = memref.load %arg5[%c19_422, %c8_423] : memref<20x10xf32, #tpu.memory_space<smem>>
    %940 = vector.broadcast %939 : f32 to vector<16x128xf32>
    %941 = arith.mulf %163, %940 : vector<16x128xf32>
    %942 = arith.addf %926, %941 : vector<16x128xf32>
    %943 = arith.addf %930, %934 : vector<16x128xf32>
    %944 = arith.addf %938, %942 : vector<16x128xf32>
    %945 = arith.addf %943, %944 : vector<16x128xf32>
    %c8_424 = arith.constant 8 : index
    %946 = memref.load %arg6[%c8_424] : memref<10xf32, #tpu.memory_space<smem>>
    %947 = vector.broadcast %946 : f32 to vector<16x128xf32>
    %948 = arith.addf %945, %947 : vector<16x128xf32>
    %cst_425 = arith.constant 0.000000e+00 : f32
    %949 = vector.broadcast %cst_425 : f32 to vector<16x128xf32>
    %950 = arith.maximumf %948, %949 : vector<16x128xf32>
    %c8_426 = arith.constant 8 : index
    %951 = memref.load %arg7[%c8_426] : memref<10xf32, #tpu.memory_space<smem>>
    %952 = vector.broadcast %951 : f32 to vector<16x128xf32>
    %953 = arith.mulf %950, %952 : vector<16x128xf32>
    %954 = arith.addf %866, %953 : vector<16x128xf32>
    %c0_427 = arith.constant 0 : index
    %c9_428 = arith.constant 9 : index
    %955 = memref.load %arg5[%c0_427, %c9_428] : memref<20x10xf32, #tpu.memory_space<smem>>
    %956 = vector.broadcast %955 : f32 to vector<16x128xf32>
    %957 = arith.mulf %11, %956 : vector<16x128xf32>
    %c1_429 = arith.constant 1 : index
    %c9_430 = arith.constant 9 : index
    %958 = memref.load %arg5[%c1_429, %c9_430] : memref<20x10xf32, #tpu.memory_space<smem>>
    %959 = vector.broadcast %958 : f32 to vector<16x128xf32>
    %960 = arith.mulf %19, %959 : vector<16x128xf32>
    %c2_431 = arith.constant 2 : index
    %c9_432 = arith.constant 9 : index
    %961 = memref.load %arg5[%c2_431, %c9_432] : memref<20x10xf32, #tpu.memory_space<smem>>
    %962 = vector.broadcast %961 : f32 to vector<16x128xf32>
    %963 = arith.mulf %27, %962 : vector<16x128xf32>
    %c3_433 = arith.constant 3 : index
    %c9_434 = arith.constant 9 : index
    %964 = memref.load %arg5[%c3_433, %c9_434] : memref<20x10xf32, #tpu.memory_space<smem>>
    %965 = vector.broadcast %964 : f32 to vector<16x128xf32>
    %966 = arith.mulf %35, %965 : vector<16x128xf32>
    %c4_435 = arith.constant 4 : index
    %c9_436 = arith.constant 9 : index
    %967 = memref.load %arg5[%c4_435, %c9_436] : memref<20x10xf32, #tpu.memory_space<smem>>
    %968 = vector.broadcast %967 : f32 to vector<16x128xf32>
    %969 = arith.mulf %43, %968 : vector<16x128xf32>
    %970 = arith.addf %957, %969 : vector<16x128xf32>
    %c5_437 = arith.constant 5 : index
    %c9_438 = arith.constant 9 : index
    %971 = memref.load %arg5[%c5_437, %c9_438] : memref<20x10xf32, #tpu.memory_space<smem>>
    %972 = vector.broadcast %971 : f32 to vector<16x128xf32>
    %973 = arith.mulf %51, %972 : vector<16x128xf32>
    %974 = arith.addf %960, %973 : vector<16x128xf32>
    %c6_439 = arith.constant 6 : index
    %c9_440 = arith.constant 9 : index
    %975 = memref.load %arg5[%c6_439, %c9_440] : memref<20x10xf32, #tpu.memory_space<smem>>
    %976 = vector.broadcast %975 : f32 to vector<16x128xf32>
    %977 = arith.mulf %59, %976 : vector<16x128xf32>
    %978 = arith.addf %963, %977 : vector<16x128xf32>
    %c7_441 = arith.constant 7 : index
    %c9_442 = arith.constant 9 : index
    %979 = memref.load %arg5[%c7_441, %c9_442] : memref<20x10xf32, #tpu.memory_space<smem>>
    %980 = vector.broadcast %979 : f32 to vector<16x128xf32>
    %981 = arith.mulf %67, %980 : vector<16x128xf32>
    %982 = arith.addf %966, %981 : vector<16x128xf32>
    %c8_443 = arith.constant 8 : index
    %c9_444 = arith.constant 9 : index
    %983 = memref.load %arg5[%c8_443, %c9_444] : memref<20x10xf32, #tpu.memory_space<smem>>
    %984 = vector.broadcast %983 : f32 to vector<16x128xf32>
    %985 = arith.mulf %75, %984 : vector<16x128xf32>
    %986 = arith.addf %970, %985 : vector<16x128xf32>
    %c9_445 = arith.constant 9 : index
    %c9_446 = arith.constant 9 : index
    %987 = memref.load %arg5[%c9_445, %c9_446] : memref<20x10xf32, #tpu.memory_space<smem>>
    %988 = vector.broadcast %987 : f32 to vector<16x128xf32>
    %989 = arith.mulf %83, %988 : vector<16x128xf32>
    %990 = arith.addf %974, %989 : vector<16x128xf32>
    %c10_447 = arith.constant 10 : index
    %c9_448 = arith.constant 9 : index
    %991 = memref.load %arg5[%c10_447, %c9_448] : memref<20x10xf32, #tpu.memory_space<smem>>
    %992 = vector.broadcast %991 : f32 to vector<16x128xf32>
    %993 = arith.mulf %91, %992 : vector<16x128xf32>
    %994 = arith.addf %978, %993 : vector<16x128xf32>
    %c11_449 = arith.constant 11 : index
    %c9_450 = arith.constant 9 : index
    %995 = memref.load %arg5[%c11_449, %c9_450] : memref<20x10xf32, #tpu.memory_space<smem>>
    %996 = vector.broadcast %995 : f32 to vector<16x128xf32>
    %997 = arith.mulf %99, %996 : vector<16x128xf32>
    %998 = arith.addf %982, %997 : vector<16x128xf32>
    %c12_451 = arith.constant 12 : index
    %c9_452 = arith.constant 9 : index
    %999 = memref.load %arg5[%c12_451, %c9_452] : memref<20x10xf32, #tpu.memory_space<smem>>
    %1000 = vector.broadcast %999 : f32 to vector<16x128xf32>
    %1001 = arith.mulf %107, %1000 : vector<16x128xf32>
    %1002 = arith.addf %986, %1001 : vector<16x128xf32>
    %c13_453 = arith.constant 13 : index
    %c9_454 = arith.constant 9 : index
    %1003 = memref.load %arg5[%c13_453, %c9_454] : memref<20x10xf32, #tpu.memory_space<smem>>
    %1004 = vector.broadcast %1003 : f32 to vector<16x128xf32>
    %1005 = arith.mulf %115, %1004 : vector<16x128xf32>
    %1006 = arith.addf %990, %1005 : vector<16x128xf32>
    %c14_455 = arith.constant 14 : index
    %c9_456 = arith.constant 9 : index
    %1007 = memref.load %arg5[%c14_455, %c9_456] : memref<20x10xf32, #tpu.memory_space<smem>>
    %1008 = vector.broadcast %1007 : f32 to vector<16x128xf32>
    %1009 = arith.mulf %123, %1008 : vector<16x128xf32>
    %1010 = arith.addf %994, %1009 : vector<16x128xf32>
    %c15_457 = arith.constant 15 : index
    %c9_458 = arith.constant 9 : index
    %1011 = memref.load %arg5[%c15_457, %c9_458] : memref<20x10xf32, #tpu.memory_space<smem>>
    %1012 = vector.broadcast %1011 : f32 to vector<16x128xf32>
    %1013 = arith.mulf %131, %1012 : vector<16x128xf32>
    %1014 = arith.addf %998, %1013 : vector<16x128xf32>
    %c16_459 = arith.constant 16 : index
    %c9_460 = arith.constant 9 : index
    %1015 = memref.load %arg5[%c16_459, %c9_460] : memref<20x10xf32, #tpu.memory_space<smem>>
    %1016 = vector.broadcast %1015 : f32 to vector<16x128xf32>
    %1017 = arith.mulf %139, %1016 : vector<16x128xf32>
    %1018 = arith.addf %1002, %1017 : vector<16x128xf32>
    %c17_461 = arith.constant 17 : index
    %c9_462 = arith.constant 9 : index
    %1019 = memref.load %arg5[%c17_461, %c9_462] : memref<20x10xf32, #tpu.memory_space<smem>>
    %1020 = vector.broadcast %1019 : f32 to vector<16x128xf32>
    %1021 = arith.mulf %147, %1020 : vector<16x128xf32>
    %1022 = arith.addf %1006, %1021 : vector<16x128xf32>
    %c18_463 = arith.constant 18 : index
    %c9_464 = arith.constant 9 : index
    %1023 = memref.load %arg5[%c18_463, %c9_464] : memref<20x10xf32, #tpu.memory_space<smem>>
    %1024 = vector.broadcast %1023 : f32 to vector<16x128xf32>
    %1025 = arith.mulf %155, %1024 : vector<16x128xf32>
    %1026 = arith.addf %1010, %1025 : vector<16x128xf32>
    %c19_465 = arith.constant 19 : index
    %c9_466 = arith.constant 9 : index
    %1027 = memref.load %arg5[%c19_465, %c9_466] : memref<20x10xf32, #tpu.memory_space<smem>>
    %1028 = vector.broadcast %1027 : f32 to vector<16x128xf32>
    %1029 = arith.mulf %163, %1028 : vector<16x128xf32>
    %1030 = arith.addf %1014, %1029 : vector<16x128xf32>
    %1031 = arith.addf %1018, %1022 : vector<16x128xf32>
    %1032 = arith.addf %1026, %1030 : vector<16x128xf32>
    %1033 = arith.addf %1031, %1032 : vector<16x128xf32>
    %c9_467 = arith.constant 9 : index
    %1034 = memref.load %arg6[%c9_467] : memref<10xf32, #tpu.memory_space<smem>>
    %1035 = vector.broadcast %1034 : f32 to vector<16x128xf32>
    %1036 = arith.addf %1033, %1035 : vector<16x128xf32>
    %cst_468 = arith.constant 0.000000e+00 : f32
    %1037 = vector.broadcast %cst_468 : f32 to vector<16x128xf32>
    %1038 = arith.maximumf %1036, %1037 : vector<16x128xf32>
    %c9_469 = arith.constant 9 : index
    %1039 = memref.load %arg7[%c9_469] : memref<10xf32, #tpu.memory_space<smem>>
    %1040 = vector.broadcast %1039 : f32 to vector<16x128xf32>
    %1041 = arith.mulf %1038, %1040 : vector<16x128xf32>
    %1042 = arith.addf %954, %1041 : vector<16x128xf32>
    %c0_470 = arith.constant 0 : index
    %1043 = memref.load %arg8[%c0_470] : memref<1xf32, #tpu.memory_space<smem>>
    %1044 = vector.broadcast %1043 : f32 to vector<16x128xf32>
    %1045 = arith.addf %1042, %1044 : vector<16x128xf32>
    %c0_471 = arith.constant 0 : index
    %1046 = memref.load %arg9[%c0_471] : memref<20xf32, #tpu.memory_space<smem>>
    %1047 = vector.broadcast %1046 : f32 to vector<16x128xf32>
    %1048 = arith.mulf %3, %1047 : vector<16x128xf32>
    %c0_472 = arith.constant 0 : index
    %1049 = memref.load %arg10[%c0_472] : memref<20xf32, #tpu.memory_space<smem>>
    %1050 = vector.broadcast %1049 : f32 to vector<16x128xf32>
    %1051 = arith.addf %1048, %1050 : vector<16x128xf32>
    %cst_473 = arith.constant 0.000000e+00 : f32
    %1052 = vector.broadcast %cst_473 : f32 to vector<16x128xf32>
    %1053 = arith.maximumf %1051, %1052 : vector<16x128xf32>
    %c1_474 = arith.constant 1 : index
    %1054 = memref.load %arg9[%c1_474] : memref<20xf32, #tpu.memory_space<smem>>
    %1055 = vector.broadcast %1054 : f32 to vector<16x128xf32>
    %1056 = arith.mulf %3, %1055 : vector<16x128xf32>
    %c1_475 = arith.constant 1 : index
    %1057 = memref.load %arg10[%c1_475] : memref<20xf32, #tpu.memory_space<smem>>
    %1058 = vector.broadcast %1057 : f32 to vector<16x128xf32>
    %1059 = arith.addf %1056, %1058 : vector<16x128xf32>
    %cst_476 = arith.constant 0.000000e+00 : f32
    %1060 = vector.broadcast %cst_476 : f32 to vector<16x128xf32>
    %1061 = arith.maximumf %1059, %1060 : vector<16x128xf32>
    %c2_477 = arith.constant 2 : index
    %1062 = memref.load %arg9[%c2_477] : memref<20xf32, #tpu.memory_space<smem>>
    %1063 = vector.broadcast %1062 : f32 to vector<16x128xf32>
    %1064 = arith.mulf %3, %1063 : vector<16x128xf32>
    %c2_478 = arith.constant 2 : index
    %1065 = memref.load %arg10[%c2_478] : memref<20xf32, #tpu.memory_space<smem>>
    %1066 = vector.broadcast %1065 : f32 to vector<16x128xf32>
    %1067 = arith.addf %1064, %1066 : vector<16x128xf32>
    %cst_479 = arith.constant 0.000000e+00 : f32
    %1068 = vector.broadcast %cst_479 : f32 to vector<16x128xf32>
    %1069 = arith.maximumf %1067, %1068 : vector<16x128xf32>
    %c3_480 = arith.constant 3 : index
    %1070 = memref.load %arg9[%c3_480] : memref<20xf32, #tpu.memory_space<smem>>
    %1071 = vector.broadcast %1070 : f32 to vector<16x128xf32>
    %1072 = arith.mulf %3, %1071 : vector<16x128xf32>
    %c3_481 = arith.constant 3 : index
    %1073 = memref.load %arg10[%c3_481] : memref<20xf32, #tpu.memory_space<smem>>
    %1074 = vector.broadcast %1073 : f32 to vector<16x128xf32>
    %1075 = arith.addf %1072, %1074 : vector<16x128xf32>
    %cst_482 = arith.constant 0.000000e+00 : f32
    %1076 = vector.broadcast %cst_482 : f32 to vector<16x128xf32>
    %1077 = arith.maximumf %1075, %1076 : vector<16x128xf32>
    %c4_483 = arith.constant 4 : index
    %1078 = memref.load %arg9[%c4_483] : memref<20xf32, #tpu.memory_space<smem>>
    %1079 = vector.broadcast %1078 : f32 to vector<16x128xf32>
    %1080 = arith.mulf %3, %1079 : vector<16x128xf32>
    %c4_484 = arith.constant 4 : index
    %1081 = memref.load %arg10[%c4_484] : memref<20xf32, #tpu.memory_space<smem>>
    %1082 = vector.broadcast %1081 : f32 to vector<16x128xf32>
    %1083 = arith.addf %1080, %1082 : vector<16x128xf32>
    %cst_485 = arith.constant 0.000000e+00 : f32
    %1084 = vector.broadcast %cst_485 : f32 to vector<16x128xf32>
    %1085 = arith.maximumf %1083, %1084 : vector<16x128xf32>
    %c5_486 = arith.constant 5 : index
    %1086 = memref.load %arg9[%c5_486] : memref<20xf32, #tpu.memory_space<smem>>
    %1087 = vector.broadcast %1086 : f32 to vector<16x128xf32>
    %1088 = arith.mulf %3, %1087 : vector<16x128xf32>
    %c5_487 = arith.constant 5 : index
    %1089 = memref.load %arg10[%c5_487] : memref<20xf32, #tpu.memory_space<smem>>
    %1090 = vector.broadcast %1089 : f32 to vector<16x128xf32>
    %1091 = arith.addf %1088, %1090 : vector<16x128xf32>
    %cst_488 = arith.constant 0.000000e+00 : f32
    %1092 = vector.broadcast %cst_488 : f32 to vector<16x128xf32>
    %1093 = arith.maximumf %1091, %1092 : vector<16x128xf32>
    %c6_489 = arith.constant 6 : index
    %1094 = memref.load %arg9[%c6_489] : memref<20xf32, #tpu.memory_space<smem>>
    %1095 = vector.broadcast %1094 : f32 to vector<16x128xf32>
    %1096 = arith.mulf %3, %1095 : vector<16x128xf32>
    %c6_490 = arith.constant 6 : index
    %1097 = memref.load %arg10[%c6_490] : memref<20xf32, #tpu.memory_space<smem>>
    %1098 = vector.broadcast %1097 : f32 to vector<16x128xf32>
    %1099 = arith.addf %1096, %1098 : vector<16x128xf32>
    %cst_491 = arith.constant 0.000000e+00 : f32
    %1100 = vector.broadcast %cst_491 : f32 to vector<16x128xf32>
    %1101 = arith.maximumf %1099, %1100 : vector<16x128xf32>
    %c7_492 = arith.constant 7 : index
    %1102 = memref.load %arg9[%c7_492] : memref<20xf32, #tpu.memory_space<smem>>
    %1103 = vector.broadcast %1102 : f32 to vector<16x128xf32>
    %1104 = arith.mulf %3, %1103 : vector<16x128xf32>
    %c7_493 = arith.constant 7 : index
    %1105 = memref.load %arg10[%c7_493] : memref<20xf32, #tpu.memory_space<smem>>
    %1106 = vector.broadcast %1105 : f32 to vector<16x128xf32>
    %1107 = arith.addf %1104, %1106 : vector<16x128xf32>
    %cst_494 = arith.constant 0.000000e+00 : f32
    %1108 = vector.broadcast %cst_494 : f32 to vector<16x128xf32>
    %1109 = arith.maximumf %1107, %1108 : vector<16x128xf32>
    %c8_495 = arith.constant 8 : index
    %1110 = memref.load %arg9[%c8_495] : memref<20xf32, #tpu.memory_space<smem>>
    %1111 = vector.broadcast %1110 : f32 to vector<16x128xf32>
    %1112 = arith.mulf %3, %1111 : vector<16x128xf32>
    %c8_496 = arith.constant 8 : index
    %1113 = memref.load %arg10[%c8_496] : memref<20xf32, #tpu.memory_space<smem>>
    %1114 = vector.broadcast %1113 : f32 to vector<16x128xf32>
    %1115 = arith.addf %1112, %1114 : vector<16x128xf32>
    %cst_497 = arith.constant 0.000000e+00 : f32
    %1116 = vector.broadcast %cst_497 : f32 to vector<16x128xf32>
    %1117 = arith.maximumf %1115, %1116 : vector<16x128xf32>
    %c9_498 = arith.constant 9 : index
    %1118 = memref.load %arg9[%c9_498] : memref<20xf32, #tpu.memory_space<smem>>
    %1119 = vector.broadcast %1118 : f32 to vector<16x128xf32>
    %1120 = arith.mulf %3, %1119 : vector<16x128xf32>
    %c9_499 = arith.constant 9 : index
    %1121 = memref.load %arg10[%c9_499] : memref<20xf32, #tpu.memory_space<smem>>
    %1122 = vector.broadcast %1121 : f32 to vector<16x128xf32>
    %1123 = arith.addf %1120, %1122 : vector<16x128xf32>
    %cst_500 = arith.constant 0.000000e+00 : f32
    %1124 = vector.broadcast %cst_500 : f32 to vector<16x128xf32>
    %1125 = arith.maximumf %1123, %1124 : vector<16x128xf32>
    %c10_501 = arith.constant 10 : index
    %1126 = memref.load %arg9[%c10_501] : memref<20xf32, #tpu.memory_space<smem>>
    %1127 = vector.broadcast %1126 : f32 to vector<16x128xf32>
    %1128 = arith.mulf %3, %1127 : vector<16x128xf32>
    %c10_502 = arith.constant 10 : index
    %1129 = memref.load %arg10[%c10_502] : memref<20xf32, #tpu.memory_space<smem>>
    %1130 = vector.broadcast %1129 : f32 to vector<16x128xf32>
    %1131 = arith.addf %1128, %1130 : vector<16x128xf32>
    %cst_503 = arith.constant 0.000000e+00 : f32
    %1132 = vector.broadcast %cst_503 : f32 to vector<16x128xf32>
    %1133 = arith.maximumf %1131, %1132 : vector<16x128xf32>
    %c11_504 = arith.constant 11 : index
    %1134 = memref.load %arg9[%c11_504] : memref<20xf32, #tpu.memory_space<smem>>
    %1135 = vector.broadcast %1134 : f32 to vector<16x128xf32>
    %1136 = arith.mulf %3, %1135 : vector<16x128xf32>
    %c11_505 = arith.constant 11 : index
    %1137 = memref.load %arg10[%c11_505] : memref<20xf32, #tpu.memory_space<smem>>
    %1138 = vector.broadcast %1137 : f32 to vector<16x128xf32>
    %1139 = arith.addf %1136, %1138 : vector<16x128xf32>
    %cst_506 = arith.constant 0.000000e+00 : f32
    %1140 = vector.broadcast %cst_506 : f32 to vector<16x128xf32>
    %1141 = arith.maximumf %1139, %1140 : vector<16x128xf32>
    %c12_507 = arith.constant 12 : index
    %1142 = memref.load %arg9[%c12_507] : memref<20xf32, #tpu.memory_space<smem>>
    %1143 = vector.broadcast %1142 : f32 to vector<16x128xf32>
    %1144 = arith.mulf %3, %1143 : vector<16x128xf32>
    %c12_508 = arith.constant 12 : index
    %1145 = memref.load %arg10[%c12_508] : memref<20xf32, #tpu.memory_space<smem>>
    %1146 = vector.broadcast %1145 : f32 to vector<16x128xf32>
    %1147 = arith.addf %1144, %1146 : vector<16x128xf32>
    %cst_509 = arith.constant 0.000000e+00 : f32
    %1148 = vector.broadcast %cst_509 : f32 to vector<16x128xf32>
    %1149 = arith.maximumf %1147, %1148 : vector<16x128xf32>
    %c13_510 = arith.constant 13 : index
    %1150 = memref.load %arg9[%c13_510] : memref<20xf32, #tpu.memory_space<smem>>
    %1151 = vector.broadcast %1150 : f32 to vector<16x128xf32>
    %1152 = arith.mulf %3, %1151 : vector<16x128xf32>
    %c13_511 = arith.constant 13 : index
    %1153 = memref.load %arg10[%c13_511] : memref<20xf32, #tpu.memory_space<smem>>
    %1154 = vector.broadcast %1153 : f32 to vector<16x128xf32>
    %1155 = arith.addf %1152, %1154 : vector<16x128xf32>
    %cst_512 = arith.constant 0.000000e+00 : f32
    %1156 = vector.broadcast %cst_512 : f32 to vector<16x128xf32>
    %1157 = arith.maximumf %1155, %1156 : vector<16x128xf32>
    %c14_513 = arith.constant 14 : index
    %1158 = memref.load %arg9[%c14_513] : memref<20xf32, #tpu.memory_space<smem>>
    %1159 = vector.broadcast %1158 : f32 to vector<16x128xf32>
    %1160 = arith.mulf %3, %1159 : vector<16x128xf32>
    %c14_514 = arith.constant 14 : index
    %1161 = memref.load %arg10[%c14_514] : memref<20xf32, #tpu.memory_space<smem>>
    %1162 = vector.broadcast %1161 : f32 to vector<16x128xf32>
    %1163 = arith.addf %1160, %1162 : vector<16x128xf32>
    %cst_515 = arith.constant 0.000000e+00 : f32
    %1164 = vector.broadcast %cst_515 : f32 to vector<16x128xf32>
    %1165 = arith.maximumf %1163, %1164 : vector<16x128xf32>
    %c15_516 = arith.constant 15 : index
    %1166 = memref.load %arg9[%c15_516] : memref<20xf32, #tpu.memory_space<smem>>
    %1167 = vector.broadcast %1166 : f32 to vector<16x128xf32>
    %1168 = arith.mulf %3, %1167 : vector<16x128xf32>
    %c15_517 = arith.constant 15 : index
    %1169 = memref.load %arg10[%c15_517] : memref<20xf32, #tpu.memory_space<smem>>
    %1170 = vector.broadcast %1169 : f32 to vector<16x128xf32>
    %1171 = arith.addf %1168, %1170 : vector<16x128xf32>
    %cst_518 = arith.constant 0.000000e+00 : f32
    %1172 = vector.broadcast %cst_518 : f32 to vector<16x128xf32>
    %1173 = arith.maximumf %1171, %1172 : vector<16x128xf32>
    %c16_519 = arith.constant 16 : index
    %1174 = memref.load %arg9[%c16_519] : memref<20xf32, #tpu.memory_space<smem>>
    %1175 = vector.broadcast %1174 : f32 to vector<16x128xf32>
    %1176 = arith.mulf %3, %1175 : vector<16x128xf32>
    %c16_520 = arith.constant 16 : index
    %1177 = memref.load %arg10[%c16_520] : memref<20xf32, #tpu.memory_space<smem>>
    %1178 = vector.broadcast %1177 : f32 to vector<16x128xf32>
    %1179 = arith.addf %1176, %1178 : vector<16x128xf32>
    %cst_521 = arith.constant 0.000000e+00 : f32
    %1180 = vector.broadcast %cst_521 : f32 to vector<16x128xf32>
    %1181 = arith.maximumf %1179, %1180 : vector<16x128xf32>
    %c17_522 = arith.constant 17 : index
    %1182 = memref.load %arg9[%c17_522] : memref<20xf32, #tpu.memory_space<smem>>
    %1183 = vector.broadcast %1182 : f32 to vector<16x128xf32>
    %1184 = arith.mulf %3, %1183 : vector<16x128xf32>
    %c17_523 = arith.constant 17 : index
    %1185 = memref.load %arg10[%c17_523] : memref<20xf32, #tpu.memory_space<smem>>
    %1186 = vector.broadcast %1185 : f32 to vector<16x128xf32>
    %1187 = arith.addf %1184, %1186 : vector<16x128xf32>
    %cst_524 = arith.constant 0.000000e+00 : f32
    %1188 = vector.broadcast %cst_524 : f32 to vector<16x128xf32>
    %1189 = arith.maximumf %1187, %1188 : vector<16x128xf32>
    %c18_525 = arith.constant 18 : index
    %1190 = memref.load %arg9[%c18_525] : memref<20xf32, #tpu.memory_space<smem>>
    %1191 = vector.broadcast %1190 : f32 to vector<16x128xf32>
    %1192 = arith.mulf %3, %1191 : vector<16x128xf32>
    %c18_526 = arith.constant 18 : index
    %1193 = memref.load %arg10[%c18_526] : memref<20xf32, #tpu.memory_space<smem>>
    %1194 = vector.broadcast %1193 : f32 to vector<16x128xf32>
    %1195 = arith.addf %1192, %1194 : vector<16x128xf32>
    %cst_527 = arith.constant 0.000000e+00 : f32
    %1196 = vector.broadcast %cst_527 : f32 to vector<16x128xf32>
    %1197 = arith.maximumf %1195, %1196 : vector<16x128xf32>
    %c19_528 = arith.constant 19 : index
    %1198 = memref.load %arg9[%c19_528] : memref<20xf32, #tpu.memory_space<smem>>
    %1199 = vector.broadcast %1198 : f32 to vector<16x128xf32>
    %1200 = arith.mulf %3, %1199 : vector<16x128xf32>
    %c19_529 = arith.constant 19 : index
    %1201 = memref.load %arg10[%c19_529] : memref<20xf32, #tpu.memory_space<smem>>
    %1202 = vector.broadcast %1201 : f32 to vector<16x128xf32>
    %1203 = arith.addf %1200, %1202 : vector<16x128xf32>
    %cst_530 = arith.constant 0.000000e+00 : f32
    %1204 = vector.broadcast %cst_530 : f32 to vector<16x128xf32>
    %1205 = arith.maximumf %1203, %1204 : vector<16x128xf32>
    %c0_531 = arith.constant 0 : index
    %c0_532 = arith.constant 0 : index
    %1206 = memref.load %arg11[%c0_531, %c0_532] : memref<20x10xf32, #tpu.memory_space<smem>>
    %1207 = vector.broadcast %1206 : f32 to vector<16x128xf32>
    %1208 = arith.mulf %1053, %1207 : vector<16x128xf32>
    %c1_533 = arith.constant 1 : index
    %c0_534 = arith.constant 0 : index
    %1209 = memref.load %arg11[%c1_533, %c0_534] : memref<20x10xf32, #tpu.memory_space<smem>>
    %1210 = vector.broadcast %1209 : f32 to vector<16x128xf32>
    %1211 = arith.mulf %1061, %1210 : vector<16x128xf32>
    %c2_535 = arith.constant 2 : index
    %c0_536 = arith.constant 0 : index
    %1212 = memref.load %arg11[%c2_535, %c0_536] : memref<20x10xf32, #tpu.memory_space<smem>>
    %1213 = vector.broadcast %1212 : f32 to vector<16x128xf32>
    %1214 = arith.mulf %1069, %1213 : vector<16x128xf32>
    %c3_537 = arith.constant 3 : index
    %c0_538 = arith.constant 0 : index
    %1215 = memref.load %arg11[%c3_537, %c0_538] : memref<20x10xf32, #tpu.memory_space<smem>>
    %1216 = vector.broadcast %1215 : f32 to vector<16x128xf32>
    %1217 = arith.mulf %1077, %1216 : vector<16x128xf32>
    %c4_539 = arith.constant 4 : index
    %c0_540 = arith.constant 0 : index
    %1218 = memref.load %arg11[%c4_539, %c0_540] : memref<20x10xf32, #tpu.memory_space<smem>>
    %1219 = vector.broadcast %1218 : f32 to vector<16x128xf32>
    %1220 = arith.mulf %1085, %1219 : vector<16x128xf32>
    %1221 = arith.addf %1208, %1220 : vector<16x128xf32>
    %c5_541 = arith.constant 5 : index
    %c0_542 = arith.constant 0 : index
    %1222 = memref.load %arg11[%c5_541, %c0_542] : memref<20x10xf32, #tpu.memory_space<smem>>
    %1223 = vector.broadcast %1222 : f32 to vector<16x128xf32>
    %1224 = arith.mulf %1093, %1223 : vector<16x128xf32>
    %1225 = arith.addf %1211, %1224 : vector<16x128xf32>
    %c6_543 = arith.constant 6 : index
    %c0_544 = arith.constant 0 : index
    %1226 = memref.load %arg11[%c6_543, %c0_544] : memref<20x10xf32, #tpu.memory_space<smem>>
    %1227 = vector.broadcast %1226 : f32 to vector<16x128xf32>
    %1228 = arith.mulf %1101, %1227 : vector<16x128xf32>
    %1229 = arith.addf %1214, %1228 : vector<16x128xf32>
    %c7_545 = arith.constant 7 : index
    %c0_546 = arith.constant 0 : index
    %1230 = memref.load %arg11[%c7_545, %c0_546] : memref<20x10xf32, #tpu.memory_space<smem>>
    %1231 = vector.broadcast %1230 : f32 to vector<16x128xf32>
    %1232 = arith.mulf %1109, %1231 : vector<16x128xf32>
    %1233 = arith.addf %1217, %1232 : vector<16x128xf32>
    %c8_547 = arith.constant 8 : index
    %c0_548 = arith.constant 0 : index
    %1234 = memref.load %arg11[%c8_547, %c0_548] : memref<20x10xf32, #tpu.memory_space<smem>>
    %1235 = vector.broadcast %1234 : f32 to vector<16x128xf32>
    %1236 = arith.mulf %1117, %1235 : vector<16x128xf32>
    %1237 = arith.addf %1221, %1236 : vector<16x128xf32>
    %c9_549 = arith.constant 9 : index
    %c0_550 = arith.constant 0 : index
    %1238 = memref.load %arg11[%c9_549, %c0_550] : memref<20x10xf32, #tpu.memory_space<smem>>
    %1239 = vector.broadcast %1238 : f32 to vector<16x128xf32>
    %1240 = arith.mulf %1125, %1239 : vector<16x128xf32>
    %1241 = arith.addf %1225, %1240 : vector<16x128xf32>
    %c10_551 = arith.constant 10 : index
    %c0_552 = arith.constant 0 : index
    %1242 = memref.load %arg11[%c10_551, %c0_552] : memref<20x10xf32, #tpu.memory_space<smem>>
    %1243 = vector.broadcast %1242 : f32 to vector<16x128xf32>
    %1244 = arith.mulf %1133, %1243 : vector<16x128xf32>
    %1245 = arith.addf %1229, %1244 : vector<16x128xf32>
    %c11_553 = arith.constant 11 : index
    %c0_554 = arith.constant 0 : index
    %1246 = memref.load %arg11[%c11_553, %c0_554] : memref<20x10xf32, #tpu.memory_space<smem>>
    %1247 = vector.broadcast %1246 : f32 to vector<16x128xf32>
    %1248 = arith.mulf %1141, %1247 : vector<16x128xf32>
    %1249 = arith.addf %1233, %1248 : vector<16x128xf32>
    %c12_555 = arith.constant 12 : index
    %c0_556 = arith.constant 0 : index
    %1250 = memref.load %arg11[%c12_555, %c0_556] : memref<20x10xf32, #tpu.memory_space<smem>>
    %1251 = vector.broadcast %1250 : f32 to vector<16x128xf32>
    %1252 = arith.mulf %1149, %1251 : vector<16x128xf32>
    %1253 = arith.addf %1237, %1252 : vector<16x128xf32>
    %c13_557 = arith.constant 13 : index
    %c0_558 = arith.constant 0 : index
    %1254 = memref.load %arg11[%c13_557, %c0_558] : memref<20x10xf32, #tpu.memory_space<smem>>
    %1255 = vector.broadcast %1254 : f32 to vector<16x128xf32>
    %1256 = arith.mulf %1157, %1255 : vector<16x128xf32>
    %1257 = arith.addf %1241, %1256 : vector<16x128xf32>
    %c14_559 = arith.constant 14 : index
    %c0_560 = arith.constant 0 : index
    %1258 = memref.load %arg11[%c14_559, %c0_560] : memref<20x10xf32, #tpu.memory_space<smem>>
    %1259 = vector.broadcast %1258 : f32 to vector<16x128xf32>
    %1260 = arith.mulf %1165, %1259 : vector<16x128xf32>
    %1261 = arith.addf %1245, %1260 : vector<16x128xf32>
    %c15_561 = arith.constant 15 : index
    %c0_562 = arith.constant 0 : index
    %1262 = memref.load %arg11[%c15_561, %c0_562] : memref<20x10xf32, #tpu.memory_space<smem>>
    %1263 = vector.broadcast %1262 : f32 to vector<16x128xf32>
    %1264 = arith.mulf %1173, %1263 : vector<16x128xf32>
    %1265 = arith.addf %1249, %1264 : vector<16x128xf32>
    %c16_563 = arith.constant 16 : index
    %c0_564 = arith.constant 0 : index
    %1266 = memref.load %arg11[%c16_563, %c0_564] : memref<20x10xf32, #tpu.memory_space<smem>>
    %1267 = vector.broadcast %1266 : f32 to vector<16x128xf32>
    %1268 = arith.mulf %1181, %1267 : vector<16x128xf32>
    %1269 = arith.addf %1253, %1268 : vector<16x128xf32>
    %c17_565 = arith.constant 17 : index
    %c0_566 = arith.constant 0 : index
    %1270 = memref.load %arg11[%c17_565, %c0_566] : memref<20x10xf32, #tpu.memory_space<smem>>
    %1271 = vector.broadcast %1270 : f32 to vector<16x128xf32>
    %1272 = arith.mulf %1189, %1271 : vector<16x128xf32>
    %1273 = arith.addf %1257, %1272 : vector<16x128xf32>
    %c18_567 = arith.constant 18 : index
    %c0_568 = arith.constant 0 : index
    %1274 = memref.load %arg11[%c18_567, %c0_568] : memref<20x10xf32, #tpu.memory_space<smem>>
    %1275 = vector.broadcast %1274 : f32 to vector<16x128xf32>
    %1276 = arith.mulf %1197, %1275 : vector<16x128xf32>
    %1277 = arith.addf %1261, %1276 : vector<16x128xf32>
    %c19_569 = arith.constant 19 : index
    %c0_570 = arith.constant 0 : index
    %1278 = memref.load %arg11[%c19_569, %c0_570] : memref<20x10xf32, #tpu.memory_space<smem>>
    %1279 = vector.broadcast %1278 : f32 to vector<16x128xf32>
    %1280 = arith.mulf %1205, %1279 : vector<16x128xf32>
    %1281 = arith.addf %1265, %1280 : vector<16x128xf32>
    %1282 = arith.addf %1269, %1273 : vector<16x128xf32>
    %1283 = arith.addf %1277, %1281 : vector<16x128xf32>
    %1284 = arith.addf %1282, %1283 : vector<16x128xf32>
    %c0_571 = arith.constant 0 : index
    %1285 = memref.load %arg12[%c0_571] : memref<10xf32, #tpu.memory_space<smem>>
    %1286 = vector.broadcast %1285 : f32 to vector<16x128xf32>
    %1287 = arith.addf %1284, %1286 : vector<16x128xf32>
    %cst_572 = arith.constant 0.000000e+00 : f32
    %1288 = vector.broadcast %cst_572 : f32 to vector<16x128xf32>
    %1289 = arith.maximumf %1287, %1288 : vector<16x128xf32>
    %c0_573 = arith.constant 0 : index
    %1290 = memref.load %arg13[%c0_573] : memref<10xf32, #tpu.memory_space<smem>>
    %1291 = vector.broadcast %1290 : f32 to vector<16x128xf32>
    %1292 = arith.mulf %1289, %1291 : vector<16x128xf32>
    %c0_574 = arith.constant 0 : index
    %c1_575 = arith.constant 1 : index
    %1293 = memref.load %arg11[%c0_574, %c1_575] : memref<20x10xf32, #tpu.memory_space<smem>>
    %1294 = vector.broadcast %1293 : f32 to vector<16x128xf32>
    %1295 = arith.mulf %1053, %1294 : vector<16x128xf32>
    %c1_576 = arith.constant 1 : index
    %c1_577 = arith.constant 1 : index
    %1296 = memref.load %arg11[%c1_576, %c1_577] : memref<20x10xf32, #tpu.memory_space<smem>>
    %1297 = vector.broadcast %1296 : f32 to vector<16x128xf32>
    %1298 = arith.mulf %1061, %1297 : vector<16x128xf32>
    %c2_578 = arith.constant 2 : index
    %c1_579 = arith.constant 1 : index
    %1299 = memref.load %arg11[%c2_578, %c1_579] : memref<20x10xf32, #tpu.memory_space<smem>>
    %1300 = vector.broadcast %1299 : f32 to vector<16x128xf32>
    %1301 = arith.mulf %1069, %1300 : vector<16x128xf32>
    %c3_580 = arith.constant 3 : index
    %c1_581 = arith.constant 1 : index
    %1302 = memref.load %arg11[%c3_580, %c1_581] : memref<20x10xf32, #tpu.memory_space<smem>>
    %1303 = vector.broadcast %1302 : f32 to vector<16x128xf32>
    %1304 = arith.mulf %1077, %1303 : vector<16x128xf32>
    %c4_582 = arith.constant 4 : index
    %c1_583 = arith.constant 1 : index
    %1305 = memref.load %arg11[%c4_582, %c1_583] : memref<20x10xf32, #tpu.memory_space<smem>>
    %1306 = vector.broadcast %1305 : f32 to vector<16x128xf32>
    %1307 = arith.mulf %1085, %1306 : vector<16x128xf32>
    %1308 = arith.addf %1295, %1307 : vector<16x128xf32>
    %c5_584 = arith.constant 5 : index
    %c1_585 = arith.constant 1 : index
    %1309 = memref.load %arg11[%c5_584, %c1_585] : memref<20x10xf32, #tpu.memory_space<smem>>
    %1310 = vector.broadcast %1309 : f32 to vector<16x128xf32>
    %1311 = arith.mulf %1093, %1310 : vector<16x128xf32>
    %1312 = arith.addf %1298, %1311 : vector<16x128xf32>
    %c6_586 = arith.constant 6 : index
    %c1_587 = arith.constant 1 : index
    %1313 = memref.load %arg11[%c6_586, %c1_587] : memref<20x10xf32, #tpu.memory_space<smem>>
    %1314 = vector.broadcast %1313 : f32 to vector<16x128xf32>
    %1315 = arith.mulf %1101, %1314 : vector<16x128xf32>
    %1316 = arith.addf %1301, %1315 : vector<16x128xf32>
    %c7_588 = arith.constant 7 : index
    %c1_589 = arith.constant 1 : index
    %1317 = memref.load %arg11[%c7_588, %c1_589] : memref<20x10xf32, #tpu.memory_space<smem>>
    %1318 = vector.broadcast %1317 : f32 to vector<16x128xf32>
    %1319 = arith.mulf %1109, %1318 : vector<16x128xf32>
    %1320 = arith.addf %1304, %1319 : vector<16x128xf32>
    %c8_590 = arith.constant 8 : index
    %c1_591 = arith.constant 1 : index
    %1321 = memref.load %arg11[%c8_590, %c1_591] : memref<20x10xf32, #tpu.memory_space<smem>>
    %1322 = vector.broadcast %1321 : f32 to vector<16x128xf32>
    %1323 = arith.mulf %1117, %1322 : vector<16x128xf32>
    %1324 = arith.addf %1308, %1323 : vector<16x128xf32>
    %c9_592 = arith.constant 9 : index
    %c1_593 = arith.constant 1 : index
    %1325 = memref.load %arg11[%c9_592, %c1_593] : memref<20x10xf32, #tpu.memory_space<smem>>
    %1326 = vector.broadcast %1325 : f32 to vector<16x128xf32>
    %1327 = arith.mulf %1125, %1326 : vector<16x128xf32>
    %1328 = arith.addf %1312, %1327 : vector<16x128xf32>
    %c10_594 = arith.constant 10 : index
    %c1_595 = arith.constant 1 : index
    %1329 = memref.load %arg11[%c10_594, %c1_595] : memref<20x10xf32, #tpu.memory_space<smem>>
    %1330 = vector.broadcast %1329 : f32 to vector<16x128xf32>
    %1331 = arith.mulf %1133, %1330 : vector<16x128xf32>
    %1332 = arith.addf %1316, %1331 : vector<16x128xf32>
    %c11_596 = arith.constant 11 : index
    %c1_597 = arith.constant 1 : index
    %1333 = memref.load %arg11[%c11_596, %c1_597] : memref<20x10xf32, #tpu.memory_space<smem>>
    %1334 = vector.broadcast %1333 : f32 to vector<16x128xf32>
    %1335 = arith.mulf %1141, %1334 : vector<16x128xf32>
    %1336 = arith.addf %1320, %1335 : vector<16x128xf32>
    %c12_598 = arith.constant 12 : index
    %c1_599 = arith.constant 1 : index
    %1337 = memref.load %arg11[%c12_598, %c1_599] : memref<20x10xf32, #tpu.memory_space<smem>>
    %1338 = vector.broadcast %1337 : f32 to vector<16x128xf32>
    %1339 = arith.mulf %1149, %1338 : vector<16x128xf32>
    %1340 = arith.addf %1324, %1339 : vector<16x128xf32>
    %c13_600 = arith.constant 13 : index
    %c1_601 = arith.constant 1 : index
    %1341 = memref.load %arg11[%c13_600, %c1_601] : memref<20x10xf32, #tpu.memory_space<smem>>
    %1342 = vector.broadcast %1341 : f32 to vector<16x128xf32>
    %1343 = arith.mulf %1157, %1342 : vector<16x128xf32>
    %1344 = arith.addf %1328, %1343 : vector<16x128xf32>
    %c14_602 = arith.constant 14 : index
    %c1_603 = arith.constant 1 : index
    %1345 = memref.load %arg11[%c14_602, %c1_603] : memref<20x10xf32, #tpu.memory_space<smem>>
    %1346 = vector.broadcast %1345 : f32 to vector<16x128xf32>
    %1347 = arith.mulf %1165, %1346 : vector<16x128xf32>
    %1348 = arith.addf %1332, %1347 : vector<16x128xf32>
    %c15_604 = arith.constant 15 : index
    %c1_605 = arith.constant 1 : index
    %1349 = memref.load %arg11[%c15_604, %c1_605] : memref<20x10xf32, #tpu.memory_space<smem>>
    %1350 = vector.broadcast %1349 : f32 to vector<16x128xf32>
    %1351 = arith.mulf %1173, %1350 : vector<16x128xf32>
    %1352 = arith.addf %1336, %1351 : vector<16x128xf32>
    %c16_606 = arith.constant 16 : index
    %c1_607 = arith.constant 1 : index
    %1353 = memref.load %arg11[%c16_606, %c1_607] : memref<20x10xf32, #tpu.memory_space<smem>>
    %1354 = vector.broadcast %1353 : f32 to vector<16x128xf32>
    %1355 = arith.mulf %1181, %1354 : vector<16x128xf32>
    %1356 = arith.addf %1340, %1355 : vector<16x128xf32>
    %c17_608 = arith.constant 17 : index
    %c1_609 = arith.constant 1 : index
    %1357 = memref.load %arg11[%c17_608, %c1_609] : memref<20x10xf32, #tpu.memory_space<smem>>
    %1358 = vector.broadcast %1357 : f32 to vector<16x128xf32>
    %1359 = arith.mulf %1189, %1358 : vector<16x128xf32>
    %1360 = arith.addf %1344, %1359 : vector<16x128xf32>
    %c18_610 = arith.constant 18 : index
    %c1_611 = arith.constant 1 : index
    %1361 = memref.load %arg11[%c18_610, %c1_611] : memref<20x10xf32, #tpu.memory_space<smem>>
    %1362 = vector.broadcast %1361 : f32 to vector<16x128xf32>
    %1363 = arith.mulf %1197, %1362 : vector<16x128xf32>
    %1364 = arith.addf %1348, %1363 : vector<16x128xf32>
    %c19_612 = arith.constant 19 : index
    %c1_613 = arith.constant 1 : index
    %1365 = memref.load %arg11[%c19_612, %c1_613] : memref<20x10xf32, #tpu.memory_space<smem>>
    %1366 = vector.broadcast %1365 : f32 to vector<16x128xf32>
    %1367 = arith.mulf %1205, %1366 : vector<16x128xf32>
    %1368 = arith.addf %1352, %1367 : vector<16x128xf32>
    %1369 = arith.addf %1356, %1360 : vector<16x128xf32>
    %1370 = arith.addf %1364, %1368 : vector<16x128xf32>
    %1371 = arith.addf %1369, %1370 : vector<16x128xf32>
    %c1_614 = arith.constant 1 : index
    %1372 = memref.load %arg12[%c1_614] : memref<10xf32, #tpu.memory_space<smem>>
    %1373 = vector.broadcast %1372 : f32 to vector<16x128xf32>
    %1374 = arith.addf %1371, %1373 : vector<16x128xf32>
    %cst_615 = arith.constant 0.000000e+00 : f32
    %1375 = vector.broadcast %cst_615 : f32 to vector<16x128xf32>
    %1376 = arith.maximumf %1374, %1375 : vector<16x128xf32>
    %c1_616 = arith.constant 1 : index
    %1377 = memref.load %arg13[%c1_616] : memref<10xf32, #tpu.memory_space<smem>>
    %1378 = vector.broadcast %1377 : f32 to vector<16x128xf32>
    %1379 = arith.mulf %1376, %1378 : vector<16x128xf32>
    %1380 = arith.addf %1292, %1379 : vector<16x128xf32>
    %c0_617 = arith.constant 0 : index
    %c2_618 = arith.constant 2 : index
    %1381 = memref.load %arg11[%c0_617, %c2_618] : memref<20x10xf32, #tpu.memory_space<smem>>
    %1382 = vector.broadcast %1381 : f32 to vector<16x128xf32>
    %1383 = arith.mulf %1053, %1382 : vector<16x128xf32>
    %c1_619 = arith.constant 1 : index
    %c2_620 = arith.constant 2 : index
    %1384 = memref.load %arg11[%c1_619, %c2_620] : memref<20x10xf32, #tpu.memory_space<smem>>
    %1385 = vector.broadcast %1384 : f32 to vector<16x128xf32>
    %1386 = arith.mulf %1061, %1385 : vector<16x128xf32>
    %c2_621 = arith.constant 2 : index
    %c2_622 = arith.constant 2 : index
    %1387 = memref.load %arg11[%c2_621, %c2_622] : memref<20x10xf32, #tpu.memory_space<smem>>
    %1388 = vector.broadcast %1387 : f32 to vector<16x128xf32>
    %1389 = arith.mulf %1069, %1388 : vector<16x128xf32>
    %c3_623 = arith.constant 3 : index
    %c2_624 = arith.constant 2 : index
    %1390 = memref.load %arg11[%c3_623, %c2_624] : memref<20x10xf32, #tpu.memory_space<smem>>
    %1391 = vector.broadcast %1390 : f32 to vector<16x128xf32>
    %1392 = arith.mulf %1077, %1391 : vector<16x128xf32>
    %c4_625 = arith.constant 4 : index
    %c2_626 = arith.constant 2 : index
    %1393 = memref.load %arg11[%c4_625, %c2_626] : memref<20x10xf32, #tpu.memory_space<smem>>
    %1394 = vector.broadcast %1393 : f32 to vector<16x128xf32>
    %1395 = arith.mulf %1085, %1394 : vector<16x128xf32>
    %1396 = arith.addf %1383, %1395 : vector<16x128xf32>
    %c5_627 = arith.constant 5 : index
    %c2_628 = arith.constant 2 : index
    %1397 = memref.load %arg11[%c5_627, %c2_628] : memref<20x10xf32, #tpu.memory_space<smem>>
    %1398 = vector.broadcast %1397 : f32 to vector<16x128xf32>
    %1399 = arith.mulf %1093, %1398 : vector<16x128xf32>
    %1400 = arith.addf %1386, %1399 : vector<16x128xf32>
    %c6_629 = arith.constant 6 : index
    %c2_630 = arith.constant 2 : index
    %1401 = memref.load %arg11[%c6_629, %c2_630] : memref<20x10xf32, #tpu.memory_space<smem>>
    %1402 = vector.broadcast %1401 : f32 to vector<16x128xf32>
    %1403 = arith.mulf %1101, %1402 : vector<16x128xf32>
    %1404 = arith.addf %1389, %1403 : vector<16x128xf32>
    %c7_631 = arith.constant 7 : index
    %c2_632 = arith.constant 2 : index
    %1405 = memref.load %arg11[%c7_631, %c2_632] : memref<20x10xf32, #tpu.memory_space<smem>>
    %1406 = vector.broadcast %1405 : f32 to vector<16x128xf32>
    %1407 = arith.mulf %1109, %1406 : vector<16x128xf32>
    %1408 = arith.addf %1392, %1407 : vector<16x128xf32>
    %c8_633 = arith.constant 8 : index
    %c2_634 = arith.constant 2 : index
    %1409 = memref.load %arg11[%c8_633, %c2_634] : memref<20x10xf32, #tpu.memory_space<smem>>
    %1410 = vector.broadcast %1409 : f32 to vector<16x128xf32>
    %1411 = arith.mulf %1117, %1410 : vector<16x128xf32>
    %1412 = arith.addf %1396, %1411 : vector<16x128xf32>
    %c9_635 = arith.constant 9 : index
    %c2_636 = arith.constant 2 : index
    %1413 = memref.load %arg11[%c9_635, %c2_636] : memref<20x10xf32, #tpu.memory_space<smem>>
    %1414 = vector.broadcast %1413 : f32 to vector<16x128xf32>
    %1415 = arith.mulf %1125, %1414 : vector<16x128xf32>
    %1416 = arith.addf %1400, %1415 : vector<16x128xf32>
    %c10_637 = arith.constant 10 : index
    %c2_638 = arith.constant 2 : index
    %1417 = memref.load %arg11[%c10_637, %c2_638] : memref<20x10xf32, #tpu.memory_space<smem>>
    %1418 = vector.broadcast %1417 : f32 to vector<16x128xf32>
    %1419 = arith.mulf %1133, %1418 : vector<16x128xf32>
    %1420 = arith.addf %1404, %1419 : vector<16x128xf32>
    %c11_639 = arith.constant 11 : index
    %c2_640 = arith.constant 2 : index
    %1421 = memref.load %arg11[%c11_639, %c2_640] : memref<20x10xf32, #tpu.memory_space<smem>>
    %1422 = vector.broadcast %1421 : f32 to vector<16x128xf32>
    %1423 = arith.mulf %1141, %1422 : vector<16x128xf32>
    %1424 = arith.addf %1408, %1423 : vector<16x128xf32>
    %c12_641 = arith.constant 12 : index
    %c2_642 = arith.constant 2 : index
    %1425 = memref.load %arg11[%c12_641, %c2_642] : memref<20x10xf32, #tpu.memory_space<smem>>
    %1426 = vector.broadcast %1425 : f32 to vector<16x128xf32>
    %1427 = arith.mulf %1149, %1426 : vector<16x128xf32>
    %1428 = arith.addf %1412, %1427 : vector<16x128xf32>
    %c13_643 = arith.constant 13 : index
    %c2_644 = arith.constant 2 : index
    %1429 = memref.load %arg11[%c13_643, %c2_644] : memref<20x10xf32, #tpu.memory_space<smem>>
    %1430 = vector.broadcast %1429 : f32 to vector<16x128xf32>
    %1431 = arith.mulf %1157, %1430 : vector<16x128xf32>
    %1432 = arith.addf %1416, %1431 : vector<16x128xf32>
    %c14_645 = arith.constant 14 : index
    %c2_646 = arith.constant 2 : index
    %1433 = memref.load %arg11[%c14_645, %c2_646] : memref<20x10xf32, #tpu.memory_space<smem>>
    %1434 = vector.broadcast %1433 : f32 to vector<16x128xf32>
    %1435 = arith.mulf %1165, %1434 : vector<16x128xf32>
    %1436 = arith.addf %1420, %1435 : vector<16x128xf32>
    %c15_647 = arith.constant 15 : index
    %c2_648 = arith.constant 2 : index
    %1437 = memref.load %arg11[%c15_647, %c2_648] : memref<20x10xf32, #tpu.memory_space<smem>>
    %1438 = vector.broadcast %1437 : f32 to vector<16x128xf32>
    %1439 = arith.mulf %1173, %1438 : vector<16x128xf32>
    %1440 = arith.addf %1424, %1439 : vector<16x128xf32>
    %c16_649 = arith.constant 16 : index
    %c2_650 = arith.constant 2 : index
    %1441 = memref.load %arg11[%c16_649, %c2_650] : memref<20x10xf32, #tpu.memory_space<smem>>
    %1442 = vector.broadcast %1441 : f32 to vector<16x128xf32>
    %1443 = arith.mulf %1181, %1442 : vector<16x128xf32>
    %1444 = arith.addf %1428, %1443 : vector<16x128xf32>
    %c17_651 = arith.constant 17 : index
    %c2_652 = arith.constant 2 : index
    %1445 = memref.load %arg11[%c17_651, %c2_652] : memref<20x10xf32, #tpu.memory_space<smem>>
    %1446 = vector.broadcast %1445 : f32 to vector<16x128xf32>
    %1447 = arith.mulf %1189, %1446 : vector<16x128xf32>
    %1448 = arith.addf %1432, %1447 : vector<16x128xf32>
    %c18_653 = arith.constant 18 : index
    %c2_654 = arith.constant 2 : index
    %1449 = memref.load %arg11[%c18_653, %c2_654] : memref<20x10xf32, #tpu.memory_space<smem>>
    %1450 = vector.broadcast %1449 : f32 to vector<16x128xf32>
    %1451 = arith.mulf %1197, %1450 : vector<16x128xf32>
    %1452 = arith.addf %1436, %1451 : vector<16x128xf32>
    %c19_655 = arith.constant 19 : index
    %c2_656 = arith.constant 2 : index
    %1453 = memref.load %arg11[%c19_655, %c2_656] : memref<20x10xf32, #tpu.memory_space<smem>>
    %1454 = vector.broadcast %1453 : f32 to vector<16x128xf32>
    %1455 = arith.mulf %1205, %1454 : vector<16x128xf32>
    %1456 = arith.addf %1440, %1455 : vector<16x128xf32>
    %1457 = arith.addf %1444, %1448 : vector<16x128xf32>
    %1458 = arith.addf %1452, %1456 : vector<16x128xf32>
    %1459 = arith.addf %1457, %1458 : vector<16x128xf32>
    %c2_657 = arith.constant 2 : index
    %1460 = memref.load %arg12[%c2_657] : memref<10xf32, #tpu.memory_space<smem>>
    %1461 = vector.broadcast %1460 : f32 to vector<16x128xf32>
    %1462 = arith.addf %1459, %1461 : vector<16x128xf32>
    %cst_658 = arith.constant 0.000000e+00 : f32
    %1463 = vector.broadcast %cst_658 : f32 to vector<16x128xf32>
    %1464 = arith.maximumf %1462, %1463 : vector<16x128xf32>
    %c2_659 = arith.constant 2 : index
    %1465 = memref.load %arg13[%c2_659] : memref<10xf32, #tpu.memory_space<smem>>
    %1466 = vector.broadcast %1465 : f32 to vector<16x128xf32>
    %1467 = arith.mulf %1464, %1466 : vector<16x128xf32>
    %1468 = arith.addf %1380, %1467 : vector<16x128xf32>
    %c0_660 = arith.constant 0 : index
    %c3_661 = arith.constant 3 : index
    %1469 = memref.load %arg11[%c0_660, %c3_661] : memref<20x10xf32, #tpu.memory_space<smem>>
    %1470 = vector.broadcast %1469 : f32 to vector<16x128xf32>
    %1471 = arith.mulf %1053, %1470 : vector<16x128xf32>
    %c1_662 = arith.constant 1 : index
    %c3_663 = arith.constant 3 : index
    %1472 = memref.load %arg11[%c1_662, %c3_663] : memref<20x10xf32, #tpu.memory_space<smem>>
    %1473 = vector.broadcast %1472 : f32 to vector<16x128xf32>
    %1474 = arith.mulf %1061, %1473 : vector<16x128xf32>
    %c2_664 = arith.constant 2 : index
    %c3_665 = arith.constant 3 : index
    %1475 = memref.load %arg11[%c2_664, %c3_665] : memref<20x10xf32, #tpu.memory_space<smem>>
    %1476 = vector.broadcast %1475 : f32 to vector<16x128xf32>
    %1477 = arith.mulf %1069, %1476 : vector<16x128xf32>
    %c3_666 = arith.constant 3 : index
    %c3_667 = arith.constant 3 : index
    %1478 = memref.load %arg11[%c3_666, %c3_667] : memref<20x10xf32, #tpu.memory_space<smem>>
    %1479 = vector.broadcast %1478 : f32 to vector<16x128xf32>
    %1480 = arith.mulf %1077, %1479 : vector<16x128xf32>
    %c4_668 = arith.constant 4 : index
    %c3_669 = arith.constant 3 : index
    %1481 = memref.load %arg11[%c4_668, %c3_669] : memref<20x10xf32, #tpu.memory_space<smem>>
    %1482 = vector.broadcast %1481 : f32 to vector<16x128xf32>
    %1483 = arith.mulf %1085, %1482 : vector<16x128xf32>
    %1484 = arith.addf %1471, %1483 : vector<16x128xf32>
    %c5_670 = arith.constant 5 : index
    %c3_671 = arith.constant 3 : index
    %1485 = memref.load %arg11[%c5_670, %c3_671] : memref<20x10xf32, #tpu.memory_space<smem>>
    %1486 = vector.broadcast %1485 : f32 to vector<16x128xf32>
    %1487 = arith.mulf %1093, %1486 : vector<16x128xf32>
    %1488 = arith.addf %1474, %1487 : vector<16x128xf32>
    %c6_672 = arith.constant 6 : index
    %c3_673 = arith.constant 3 : index
    %1489 = memref.load %arg11[%c6_672, %c3_673] : memref<20x10xf32, #tpu.memory_space<smem>>
    %1490 = vector.broadcast %1489 : f32 to vector<16x128xf32>
    %1491 = arith.mulf %1101, %1490 : vector<16x128xf32>
    %1492 = arith.addf %1477, %1491 : vector<16x128xf32>
    %c7_674 = arith.constant 7 : index
    %c3_675 = arith.constant 3 : index
    %1493 = memref.load %arg11[%c7_674, %c3_675] : memref<20x10xf32, #tpu.memory_space<smem>>
    %1494 = vector.broadcast %1493 : f32 to vector<16x128xf32>
    %1495 = arith.mulf %1109, %1494 : vector<16x128xf32>
    %1496 = arith.addf %1480, %1495 : vector<16x128xf32>
    %c8_676 = arith.constant 8 : index
    %c3_677 = arith.constant 3 : index
    %1497 = memref.load %arg11[%c8_676, %c3_677] : memref<20x10xf32, #tpu.memory_space<smem>>
    %1498 = vector.broadcast %1497 : f32 to vector<16x128xf32>
    %1499 = arith.mulf %1117, %1498 : vector<16x128xf32>
    %1500 = arith.addf %1484, %1499 : vector<16x128xf32>
    %c9_678 = arith.constant 9 : index
    %c3_679 = arith.constant 3 : index
    %1501 = memref.load %arg11[%c9_678, %c3_679] : memref<20x10xf32, #tpu.memory_space<smem>>
    %1502 = vector.broadcast %1501 : f32 to vector<16x128xf32>
    %1503 = arith.mulf %1125, %1502 : vector<16x128xf32>
    %1504 = arith.addf %1488, %1503 : vector<16x128xf32>
    %c10_680 = arith.constant 10 : index
    %c3_681 = arith.constant 3 : index
    %1505 = memref.load %arg11[%c10_680, %c3_681] : memref<20x10xf32, #tpu.memory_space<smem>>
    %1506 = vector.broadcast %1505 : f32 to vector<16x128xf32>
    %1507 = arith.mulf %1133, %1506 : vector<16x128xf32>
    %1508 = arith.addf %1492, %1507 : vector<16x128xf32>
    %c11_682 = arith.constant 11 : index
    %c3_683 = arith.constant 3 : index
    %1509 = memref.load %arg11[%c11_682, %c3_683] : memref<20x10xf32, #tpu.memory_space<smem>>
    %1510 = vector.broadcast %1509 : f32 to vector<16x128xf32>
    %1511 = arith.mulf %1141, %1510 : vector<16x128xf32>
    %1512 = arith.addf %1496, %1511 : vector<16x128xf32>
    %c12_684 = arith.constant 12 : index
    %c3_685 = arith.constant 3 : index
    %1513 = memref.load %arg11[%c12_684, %c3_685] : memref<20x10xf32, #tpu.memory_space<smem>>
    %1514 = vector.broadcast %1513 : f32 to vector<16x128xf32>
    %1515 = arith.mulf %1149, %1514 : vector<16x128xf32>
    %1516 = arith.addf %1500, %1515 : vector<16x128xf32>
    %c13_686 = arith.constant 13 : index
    %c3_687 = arith.constant 3 : index
    %1517 = memref.load %arg11[%c13_686, %c3_687] : memref<20x10xf32, #tpu.memory_space<smem>>
    %1518 = vector.broadcast %1517 : f32 to vector<16x128xf32>
    %1519 = arith.mulf %1157, %1518 : vector<16x128xf32>
    %1520 = arith.addf %1504, %1519 : vector<16x128xf32>
    %c14_688 = arith.constant 14 : index
    %c3_689 = arith.constant 3 : index
    %1521 = memref.load %arg11[%c14_688, %c3_689] : memref<20x10xf32, #tpu.memory_space<smem>>
    %1522 = vector.broadcast %1521 : f32 to vector<16x128xf32>
    %1523 = arith.mulf %1165, %1522 : vector<16x128xf32>
    %1524 = arith.addf %1508, %1523 : vector<16x128xf32>
    %c15_690 = arith.constant 15 : index
    %c3_691 = arith.constant 3 : index
    %1525 = memref.load %arg11[%c15_690, %c3_691] : memref<20x10xf32, #tpu.memory_space<smem>>
    %1526 = vector.broadcast %1525 : f32 to vector<16x128xf32>
    %1527 = arith.mulf %1173, %1526 : vector<16x128xf32>
    %1528 = arith.addf %1512, %1527 : vector<16x128xf32>
    %c16_692 = arith.constant 16 : index
    %c3_693 = arith.constant 3 : index
    %1529 = memref.load %arg11[%c16_692, %c3_693] : memref<20x10xf32, #tpu.memory_space<smem>>
    %1530 = vector.broadcast %1529 : f32 to vector<16x128xf32>
    %1531 = arith.mulf %1181, %1530 : vector<16x128xf32>
    %1532 = arith.addf %1516, %1531 : vector<16x128xf32>
    %c17_694 = arith.constant 17 : index
    %c3_695 = arith.constant 3 : index
    %1533 = memref.load %arg11[%c17_694, %c3_695] : memref<20x10xf32, #tpu.memory_space<smem>>
    %1534 = vector.broadcast %1533 : f32 to vector<16x128xf32>
    %1535 = arith.mulf %1189, %1534 : vector<16x128xf32>
    %1536 = arith.addf %1520, %1535 : vector<16x128xf32>
    %c18_696 = arith.constant 18 : index
    %c3_697 = arith.constant 3 : index
    %1537 = memref.load %arg11[%c18_696, %c3_697] : memref<20x10xf32, #tpu.memory_space<smem>>
    %1538 = vector.broadcast %1537 : f32 to vector<16x128xf32>
    %1539 = arith.mulf %1197, %1538 : vector<16x128xf32>
    %1540 = arith.addf %1524, %1539 : vector<16x128xf32>
    %c19_698 = arith.constant 19 : index
    %c3_699 = arith.constant 3 : index
    %1541 = memref.load %arg11[%c19_698, %c3_699] : memref<20x10xf32, #tpu.memory_space<smem>>
    %1542 = vector.broadcast %1541 : f32 to vector<16x128xf32>
    %1543 = arith.mulf %1205, %1542 : vector<16x128xf32>
    %1544 = arith.addf %1528, %1543 : vector<16x128xf32>
    %1545 = arith.addf %1532, %1536 : vector<16x128xf32>
    %1546 = arith.addf %1540, %1544 : vector<16x128xf32>
    %1547 = arith.addf %1545, %1546 : vector<16x128xf32>
    %c3_700 = arith.constant 3 : index
    %1548 = memref.load %arg12[%c3_700] : memref<10xf32, #tpu.memory_space<smem>>
    %1549 = vector.broadcast %1548 : f32 to vector<16x128xf32>
    %1550 = arith.addf %1547, %1549 : vector<16x128xf32>
    %cst_701 = arith.constant 0.000000e+00 : f32
    %1551 = vector.broadcast %cst_701 : f32 to vector<16x128xf32>
    %1552 = arith.maximumf %1550, %1551 : vector<16x128xf32>
    %c3_702 = arith.constant 3 : index
    %1553 = memref.load %arg13[%c3_702] : memref<10xf32, #tpu.memory_space<smem>>
    %1554 = vector.broadcast %1553 : f32 to vector<16x128xf32>
    %1555 = arith.mulf %1552, %1554 : vector<16x128xf32>
    %1556 = arith.addf %1468, %1555 : vector<16x128xf32>
    %c0_703 = arith.constant 0 : index
    %c4_704 = arith.constant 4 : index
    %1557 = memref.load %arg11[%c0_703, %c4_704] : memref<20x10xf32, #tpu.memory_space<smem>>
    %1558 = vector.broadcast %1557 : f32 to vector<16x128xf32>
    %1559 = arith.mulf %1053, %1558 : vector<16x128xf32>
    %c1_705 = arith.constant 1 : index
    %c4_706 = arith.constant 4 : index
    %1560 = memref.load %arg11[%c1_705, %c4_706] : memref<20x10xf32, #tpu.memory_space<smem>>
    %1561 = vector.broadcast %1560 : f32 to vector<16x128xf32>
    %1562 = arith.mulf %1061, %1561 : vector<16x128xf32>
    %c2_707 = arith.constant 2 : index
    %c4_708 = arith.constant 4 : index
    %1563 = memref.load %arg11[%c2_707, %c4_708] : memref<20x10xf32, #tpu.memory_space<smem>>
    %1564 = vector.broadcast %1563 : f32 to vector<16x128xf32>
    %1565 = arith.mulf %1069, %1564 : vector<16x128xf32>
    %c3_709 = arith.constant 3 : index
    %c4_710 = arith.constant 4 : index
    %1566 = memref.load %arg11[%c3_709, %c4_710] : memref<20x10xf32, #tpu.memory_space<smem>>
    %1567 = vector.broadcast %1566 : f32 to vector<16x128xf32>
    %1568 = arith.mulf %1077, %1567 : vector<16x128xf32>
    %c4_711 = arith.constant 4 : index
    %c4_712 = arith.constant 4 : index
    %1569 = memref.load %arg11[%c4_711, %c4_712] : memref<20x10xf32, #tpu.memory_space<smem>>
    %1570 = vector.broadcast %1569 : f32 to vector<16x128xf32>
    %1571 = arith.mulf %1085, %1570 : vector<16x128xf32>
    %1572 = arith.addf %1559, %1571 : vector<16x128xf32>
    %c5_713 = arith.constant 5 : index
    %c4_714 = arith.constant 4 : index
    %1573 = memref.load %arg11[%c5_713, %c4_714] : memref<20x10xf32, #tpu.memory_space<smem>>
    %1574 = vector.broadcast %1573 : f32 to vector<16x128xf32>
    %1575 = arith.mulf %1093, %1574 : vector<16x128xf32>
    %1576 = arith.addf %1562, %1575 : vector<16x128xf32>
    %c6_715 = arith.constant 6 : index
    %c4_716 = arith.constant 4 : index
    %1577 = memref.load %arg11[%c6_715, %c4_716] : memref<20x10xf32, #tpu.memory_space<smem>>
    %1578 = vector.broadcast %1577 : f32 to vector<16x128xf32>
    %1579 = arith.mulf %1101, %1578 : vector<16x128xf32>
    %1580 = arith.addf %1565, %1579 : vector<16x128xf32>
    %c7_717 = arith.constant 7 : index
    %c4_718 = arith.constant 4 : index
    %1581 = memref.load %arg11[%c7_717, %c4_718] : memref<20x10xf32, #tpu.memory_space<smem>>
    %1582 = vector.broadcast %1581 : f32 to vector<16x128xf32>
    %1583 = arith.mulf %1109, %1582 : vector<16x128xf32>
    %1584 = arith.addf %1568, %1583 : vector<16x128xf32>
    %c8_719 = arith.constant 8 : index
    %c4_720 = arith.constant 4 : index
    %1585 = memref.load %arg11[%c8_719, %c4_720] : memref<20x10xf32, #tpu.memory_space<smem>>
    %1586 = vector.broadcast %1585 : f32 to vector<16x128xf32>
    %1587 = arith.mulf %1117, %1586 : vector<16x128xf32>
    %1588 = arith.addf %1572, %1587 : vector<16x128xf32>
    %c9_721 = arith.constant 9 : index
    %c4_722 = arith.constant 4 : index
    %1589 = memref.load %arg11[%c9_721, %c4_722] : memref<20x10xf32, #tpu.memory_space<smem>>
    %1590 = vector.broadcast %1589 : f32 to vector<16x128xf32>
    %1591 = arith.mulf %1125, %1590 : vector<16x128xf32>
    %1592 = arith.addf %1576, %1591 : vector<16x128xf32>
    %c10_723 = arith.constant 10 : index
    %c4_724 = arith.constant 4 : index
    %1593 = memref.load %arg11[%c10_723, %c4_724] : memref<20x10xf32, #tpu.memory_space<smem>>
    %1594 = vector.broadcast %1593 : f32 to vector<16x128xf32>
    %1595 = arith.mulf %1133, %1594 : vector<16x128xf32>
    %1596 = arith.addf %1580, %1595 : vector<16x128xf32>
    %c11_725 = arith.constant 11 : index
    %c4_726 = arith.constant 4 : index
    %1597 = memref.load %arg11[%c11_725, %c4_726] : memref<20x10xf32, #tpu.memory_space<smem>>
    %1598 = vector.broadcast %1597 : f32 to vector<16x128xf32>
    %1599 = arith.mulf %1141, %1598 : vector<16x128xf32>
    %1600 = arith.addf %1584, %1599 : vector<16x128xf32>
    %c12_727 = arith.constant 12 : index
    %c4_728 = arith.constant 4 : index
    %1601 = memref.load %arg11[%c12_727, %c4_728] : memref<20x10xf32, #tpu.memory_space<smem>>
    %1602 = vector.broadcast %1601 : f32 to vector<16x128xf32>
    %1603 = arith.mulf %1149, %1602 : vector<16x128xf32>
    %1604 = arith.addf %1588, %1603 : vector<16x128xf32>
    %c13_729 = arith.constant 13 : index
    %c4_730 = arith.constant 4 : index
    %1605 = memref.load %arg11[%c13_729, %c4_730] : memref<20x10xf32, #tpu.memory_space<smem>>
    %1606 = vector.broadcast %1605 : f32 to vector<16x128xf32>
    %1607 = arith.mulf %1157, %1606 : vector<16x128xf32>
    %1608 = arith.addf %1592, %1607 : vector<16x128xf32>
    %c14_731 = arith.constant 14 : index
    %c4_732 = arith.constant 4 : index
    %1609 = memref.load %arg11[%c14_731, %c4_732] : memref<20x10xf32, #tpu.memory_space<smem>>
    %1610 = vector.broadcast %1609 : f32 to vector<16x128xf32>
    %1611 = arith.mulf %1165, %1610 : vector<16x128xf32>
    %1612 = arith.addf %1596, %1611 : vector<16x128xf32>
    %c15_733 = arith.constant 15 : index
    %c4_734 = arith.constant 4 : index
    %1613 = memref.load %arg11[%c15_733, %c4_734] : memref<20x10xf32, #tpu.memory_space<smem>>
    %1614 = vector.broadcast %1613 : f32 to vector<16x128xf32>
    %1615 = arith.mulf %1173, %1614 : vector<16x128xf32>
    %1616 = arith.addf %1600, %1615 : vector<16x128xf32>
    %c16_735 = arith.constant 16 : index
    %c4_736 = arith.constant 4 : index
    %1617 = memref.load %arg11[%c16_735, %c4_736] : memref<20x10xf32, #tpu.memory_space<smem>>
    %1618 = vector.broadcast %1617 : f32 to vector<16x128xf32>
    %1619 = arith.mulf %1181, %1618 : vector<16x128xf32>
    %1620 = arith.addf %1604, %1619 : vector<16x128xf32>
    %c17_737 = arith.constant 17 : index
    %c4_738 = arith.constant 4 : index
    %1621 = memref.load %arg11[%c17_737, %c4_738] : memref<20x10xf32, #tpu.memory_space<smem>>
    %1622 = vector.broadcast %1621 : f32 to vector<16x128xf32>
    %1623 = arith.mulf %1189, %1622 : vector<16x128xf32>
    %1624 = arith.addf %1608, %1623 : vector<16x128xf32>
    %c18_739 = arith.constant 18 : index
    %c4_740 = arith.constant 4 : index
    %1625 = memref.load %arg11[%c18_739, %c4_740] : memref<20x10xf32, #tpu.memory_space<smem>>
    %1626 = vector.broadcast %1625 : f32 to vector<16x128xf32>
    %1627 = arith.mulf %1197, %1626 : vector<16x128xf32>
    %1628 = arith.addf %1612, %1627 : vector<16x128xf32>
    %c19_741 = arith.constant 19 : index
    %c4_742 = arith.constant 4 : index
    %1629 = memref.load %arg11[%c19_741, %c4_742] : memref<20x10xf32, #tpu.memory_space<smem>>
    %1630 = vector.broadcast %1629 : f32 to vector<16x128xf32>
    %1631 = arith.mulf %1205, %1630 : vector<16x128xf32>
    %1632 = arith.addf %1616, %1631 : vector<16x128xf32>
    %1633 = arith.addf %1620, %1624 : vector<16x128xf32>
    %1634 = arith.addf %1628, %1632 : vector<16x128xf32>
    %1635 = arith.addf %1633, %1634 : vector<16x128xf32>
    %c4_743 = arith.constant 4 : index
    %1636 = memref.load %arg12[%c4_743] : memref<10xf32, #tpu.memory_space<smem>>
    %1637 = vector.broadcast %1636 : f32 to vector<16x128xf32>
    %1638 = arith.addf %1635, %1637 : vector<16x128xf32>
    %cst_744 = arith.constant 0.000000e+00 : f32
    %1639 = vector.broadcast %cst_744 : f32 to vector<16x128xf32>
    %1640 = arith.maximumf %1638, %1639 : vector<16x128xf32>
    %c4_745 = arith.constant 4 : index
    %1641 = memref.load %arg13[%c4_745] : memref<10xf32, #tpu.memory_space<smem>>
    %1642 = vector.broadcast %1641 : f32 to vector<16x128xf32>
    %1643 = arith.mulf %1640, %1642 : vector<16x128xf32>
    %1644 = arith.addf %1556, %1643 : vector<16x128xf32>
    %c0_746 = arith.constant 0 : index
    %c5_747 = arith.constant 5 : index
    %1645 = memref.load %arg11[%c0_746, %c5_747] : memref<20x10xf32, #tpu.memory_space<smem>>
    %1646 = vector.broadcast %1645 : f32 to vector<16x128xf32>
    %1647 = arith.mulf %1053, %1646 : vector<16x128xf32>
    %c1_748 = arith.constant 1 : index
    %c5_749 = arith.constant 5 : index
    %1648 = memref.load %arg11[%c1_748, %c5_749] : memref<20x10xf32, #tpu.memory_space<smem>>
    %1649 = vector.broadcast %1648 : f32 to vector<16x128xf32>
    %1650 = arith.mulf %1061, %1649 : vector<16x128xf32>
    %c2_750 = arith.constant 2 : index
    %c5_751 = arith.constant 5 : index
    %1651 = memref.load %arg11[%c2_750, %c5_751] : memref<20x10xf32, #tpu.memory_space<smem>>
    %1652 = vector.broadcast %1651 : f32 to vector<16x128xf32>
    %1653 = arith.mulf %1069, %1652 : vector<16x128xf32>
    %c3_752 = arith.constant 3 : index
    %c5_753 = arith.constant 5 : index
    %1654 = memref.load %arg11[%c3_752, %c5_753] : memref<20x10xf32, #tpu.memory_space<smem>>
    %1655 = vector.broadcast %1654 : f32 to vector<16x128xf32>
    %1656 = arith.mulf %1077, %1655 : vector<16x128xf32>
    %c4_754 = arith.constant 4 : index
    %c5_755 = arith.constant 5 : index
    %1657 = memref.load %arg11[%c4_754, %c5_755] : memref<20x10xf32, #tpu.memory_space<smem>>
    %1658 = vector.broadcast %1657 : f32 to vector<16x128xf32>
    %1659 = arith.mulf %1085, %1658 : vector<16x128xf32>
    %1660 = arith.addf %1647, %1659 : vector<16x128xf32>
    %c5_756 = arith.constant 5 : index
    %c5_757 = arith.constant 5 : index
    %1661 = memref.load %arg11[%c5_756, %c5_757] : memref<20x10xf32, #tpu.memory_space<smem>>
    %1662 = vector.broadcast %1661 : f32 to vector<16x128xf32>
    %1663 = arith.mulf %1093, %1662 : vector<16x128xf32>
    %1664 = arith.addf %1650, %1663 : vector<16x128xf32>
    %c6_758 = arith.constant 6 : index
    %c5_759 = arith.constant 5 : index
    %1665 = memref.load %arg11[%c6_758, %c5_759] : memref<20x10xf32, #tpu.memory_space<smem>>
    %1666 = vector.broadcast %1665 : f32 to vector<16x128xf32>
    %1667 = arith.mulf %1101, %1666 : vector<16x128xf32>
    %1668 = arith.addf %1653, %1667 : vector<16x128xf32>
    %c7_760 = arith.constant 7 : index
    %c5_761 = arith.constant 5 : index
    %1669 = memref.load %arg11[%c7_760, %c5_761] : memref<20x10xf32, #tpu.memory_space<smem>>
    %1670 = vector.broadcast %1669 : f32 to vector<16x128xf32>
    %1671 = arith.mulf %1109, %1670 : vector<16x128xf32>
    %1672 = arith.addf %1656, %1671 : vector<16x128xf32>
    %c8_762 = arith.constant 8 : index
    %c5_763 = arith.constant 5 : index
    %1673 = memref.load %arg11[%c8_762, %c5_763] : memref<20x10xf32, #tpu.memory_space<smem>>
    %1674 = vector.broadcast %1673 : f32 to vector<16x128xf32>
    %1675 = arith.mulf %1117, %1674 : vector<16x128xf32>
    %1676 = arith.addf %1660, %1675 : vector<16x128xf32>
    %c9_764 = arith.constant 9 : index
    %c5_765 = arith.constant 5 : index
    %1677 = memref.load %arg11[%c9_764, %c5_765] : memref<20x10xf32, #tpu.memory_space<smem>>
    %1678 = vector.broadcast %1677 : f32 to vector<16x128xf32>
    %1679 = arith.mulf %1125, %1678 : vector<16x128xf32>
    %1680 = arith.addf %1664, %1679 : vector<16x128xf32>
    %c10_766 = arith.constant 10 : index
    %c5_767 = arith.constant 5 : index
    %1681 = memref.load %arg11[%c10_766, %c5_767] : memref<20x10xf32, #tpu.memory_space<smem>>
    %1682 = vector.broadcast %1681 : f32 to vector<16x128xf32>
    %1683 = arith.mulf %1133, %1682 : vector<16x128xf32>
    %1684 = arith.addf %1668, %1683 : vector<16x128xf32>
    %c11_768 = arith.constant 11 : index
    %c5_769 = arith.constant 5 : index
    %1685 = memref.load %arg11[%c11_768, %c5_769] : memref<20x10xf32, #tpu.memory_space<smem>>
    %1686 = vector.broadcast %1685 : f32 to vector<16x128xf32>
    %1687 = arith.mulf %1141, %1686 : vector<16x128xf32>
    %1688 = arith.addf %1672, %1687 : vector<16x128xf32>
    %c12_770 = arith.constant 12 : index
    %c5_771 = arith.constant 5 : index
    %1689 = memref.load %arg11[%c12_770, %c5_771] : memref<20x10xf32, #tpu.memory_space<smem>>
    %1690 = vector.broadcast %1689 : f32 to vector<16x128xf32>
    %1691 = arith.mulf %1149, %1690 : vector<16x128xf32>
    %1692 = arith.addf %1676, %1691 : vector<16x128xf32>
    %c13_772 = arith.constant 13 : index
    %c5_773 = arith.constant 5 : index
    %1693 = memref.load %arg11[%c13_772, %c5_773] : memref<20x10xf32, #tpu.memory_space<smem>>
    %1694 = vector.broadcast %1693 : f32 to vector<16x128xf32>
    %1695 = arith.mulf %1157, %1694 : vector<16x128xf32>
    %1696 = arith.addf %1680, %1695 : vector<16x128xf32>
    %c14_774 = arith.constant 14 : index
    %c5_775 = arith.constant 5 : index
    %1697 = memref.load %arg11[%c14_774, %c5_775] : memref<20x10xf32, #tpu.memory_space<smem>>
    %1698 = vector.broadcast %1697 : f32 to vector<16x128xf32>
    %1699 = arith.mulf %1165, %1698 : vector<16x128xf32>
    %1700 = arith.addf %1684, %1699 : vector<16x128xf32>
    %c15_776 = arith.constant 15 : index
    %c5_777 = arith.constant 5 : index
    %1701 = memref.load %arg11[%c15_776, %c5_777] : memref<20x10xf32, #tpu.memory_space<smem>>
    %1702 = vector.broadcast %1701 : f32 to vector<16x128xf32>
    %1703 = arith.mulf %1173, %1702 : vector<16x128xf32>
    %1704 = arith.addf %1688, %1703 : vector<16x128xf32>
    %c16_778 = arith.constant 16 : index
    %c5_779 = arith.constant 5 : index
    %1705 = memref.load %arg11[%c16_778, %c5_779] : memref<20x10xf32, #tpu.memory_space<smem>>
    %1706 = vector.broadcast %1705 : f32 to vector<16x128xf32>
    %1707 = arith.mulf %1181, %1706 : vector<16x128xf32>
    %1708 = arith.addf %1692, %1707 : vector<16x128xf32>
    %c17_780 = arith.constant 17 : index
    %c5_781 = arith.constant 5 : index
    %1709 = memref.load %arg11[%c17_780, %c5_781] : memref<20x10xf32, #tpu.memory_space<smem>>
    %1710 = vector.broadcast %1709 : f32 to vector<16x128xf32>
    %1711 = arith.mulf %1189, %1710 : vector<16x128xf32>
    %1712 = arith.addf %1696, %1711 : vector<16x128xf32>
    %c18_782 = arith.constant 18 : index
    %c5_783 = arith.constant 5 : index
    %1713 = memref.load %arg11[%c18_782, %c5_783] : memref<20x10xf32, #tpu.memory_space<smem>>
    %1714 = vector.broadcast %1713 : f32 to vector<16x128xf32>
    %1715 = arith.mulf %1197, %1714 : vector<16x128xf32>
    %1716 = arith.addf %1700, %1715 : vector<16x128xf32>
    %c19_784 = arith.constant 19 : index
    %c5_785 = arith.constant 5 : index
    %1717 = memref.load %arg11[%c19_784, %c5_785] : memref<20x10xf32, #tpu.memory_space<smem>>
    %1718 = vector.broadcast %1717 : f32 to vector<16x128xf32>
    %1719 = arith.mulf %1205, %1718 : vector<16x128xf32>
    %1720 = arith.addf %1704, %1719 : vector<16x128xf32>
    %1721 = arith.addf %1708, %1712 : vector<16x128xf32>
    %1722 = arith.addf %1716, %1720 : vector<16x128xf32>
    %1723 = arith.addf %1721, %1722 : vector<16x128xf32>
    %c5_786 = arith.constant 5 : index
    %1724 = memref.load %arg12[%c5_786] : memref<10xf32, #tpu.memory_space<smem>>
    %1725 = vector.broadcast %1724 : f32 to vector<16x128xf32>
    %1726 = arith.addf %1723, %1725 : vector<16x128xf32>
    %cst_787 = arith.constant 0.000000e+00 : f32
    %1727 = vector.broadcast %cst_787 : f32 to vector<16x128xf32>
    %1728 = arith.maximumf %1726, %1727 : vector<16x128xf32>
    %c5_788 = arith.constant 5 : index
    %1729 = memref.load %arg13[%c5_788] : memref<10xf32, #tpu.memory_space<smem>>
    %1730 = vector.broadcast %1729 : f32 to vector<16x128xf32>
    %1731 = arith.mulf %1728, %1730 : vector<16x128xf32>
    %1732 = arith.addf %1644, %1731 : vector<16x128xf32>
    %c0_789 = arith.constant 0 : index
    %c6_790 = arith.constant 6 : index
    %1733 = memref.load %arg11[%c0_789, %c6_790] : memref<20x10xf32, #tpu.memory_space<smem>>
    %1734 = vector.broadcast %1733 : f32 to vector<16x128xf32>
    %1735 = arith.mulf %1053, %1734 : vector<16x128xf32>
    %c1_791 = arith.constant 1 : index
    %c6_792 = arith.constant 6 : index
    %1736 = memref.load %arg11[%c1_791, %c6_792] : memref<20x10xf32, #tpu.memory_space<smem>>
    %1737 = vector.broadcast %1736 : f32 to vector<16x128xf32>
    %1738 = arith.mulf %1061, %1737 : vector<16x128xf32>
    %c2_793 = arith.constant 2 : index
    %c6_794 = arith.constant 6 : index
    %1739 = memref.load %arg11[%c2_793, %c6_794] : memref<20x10xf32, #tpu.memory_space<smem>>
    %1740 = vector.broadcast %1739 : f32 to vector<16x128xf32>
    %1741 = arith.mulf %1069, %1740 : vector<16x128xf32>
    %c3_795 = arith.constant 3 : index
    %c6_796 = arith.constant 6 : index
    %1742 = memref.load %arg11[%c3_795, %c6_796] : memref<20x10xf32, #tpu.memory_space<smem>>
    %1743 = vector.broadcast %1742 : f32 to vector<16x128xf32>
    %1744 = arith.mulf %1077, %1743 : vector<16x128xf32>
    %c4_797 = arith.constant 4 : index
    %c6_798 = arith.constant 6 : index
    %1745 = memref.load %arg11[%c4_797, %c6_798] : memref<20x10xf32, #tpu.memory_space<smem>>
    %1746 = vector.broadcast %1745 : f32 to vector<16x128xf32>
    %1747 = arith.mulf %1085, %1746 : vector<16x128xf32>
    %1748 = arith.addf %1735, %1747 : vector<16x128xf32>
    %c5_799 = arith.constant 5 : index
    %c6_800 = arith.constant 6 : index
    %1749 = memref.load %arg11[%c5_799, %c6_800] : memref<20x10xf32, #tpu.memory_space<smem>>
    %1750 = vector.broadcast %1749 : f32 to vector<16x128xf32>
    %1751 = arith.mulf %1093, %1750 : vector<16x128xf32>
    %1752 = arith.addf %1738, %1751 : vector<16x128xf32>
    %c6_801 = arith.constant 6 : index
    %c6_802 = arith.constant 6 : index
    %1753 = memref.load %arg11[%c6_801, %c6_802] : memref<20x10xf32, #tpu.memory_space<smem>>
    %1754 = vector.broadcast %1753 : f32 to vector<16x128xf32>
    %1755 = arith.mulf %1101, %1754 : vector<16x128xf32>
    %1756 = arith.addf %1741, %1755 : vector<16x128xf32>
    %c7_803 = arith.constant 7 : index
    %c6_804 = arith.constant 6 : index
    %1757 = memref.load %arg11[%c7_803, %c6_804] : memref<20x10xf32, #tpu.memory_space<smem>>
    %1758 = vector.broadcast %1757 : f32 to vector<16x128xf32>
    %1759 = arith.mulf %1109, %1758 : vector<16x128xf32>
    %1760 = arith.addf %1744, %1759 : vector<16x128xf32>
    %c8_805 = arith.constant 8 : index
    %c6_806 = arith.constant 6 : index
    %1761 = memref.load %arg11[%c8_805, %c6_806] : memref<20x10xf32, #tpu.memory_space<smem>>
    %1762 = vector.broadcast %1761 : f32 to vector<16x128xf32>
    %1763 = arith.mulf %1117, %1762 : vector<16x128xf32>
    %1764 = arith.addf %1748, %1763 : vector<16x128xf32>
    %c9_807 = arith.constant 9 : index
    %c6_808 = arith.constant 6 : index
    %1765 = memref.load %arg11[%c9_807, %c6_808] : memref<20x10xf32, #tpu.memory_space<smem>>
    %1766 = vector.broadcast %1765 : f32 to vector<16x128xf32>
    %1767 = arith.mulf %1125, %1766 : vector<16x128xf32>
    %1768 = arith.addf %1752, %1767 : vector<16x128xf32>
    %c10_809 = arith.constant 10 : index
    %c6_810 = arith.constant 6 : index
    %1769 = memref.load %arg11[%c10_809, %c6_810] : memref<20x10xf32, #tpu.memory_space<smem>>
    %1770 = vector.broadcast %1769 : f32 to vector<16x128xf32>
    %1771 = arith.mulf %1133, %1770 : vector<16x128xf32>
    %1772 = arith.addf %1756, %1771 : vector<16x128xf32>
    %c11_811 = arith.constant 11 : index
    %c6_812 = arith.constant 6 : index
    %1773 = memref.load %arg11[%c11_811, %c6_812] : memref<20x10xf32, #tpu.memory_space<smem>>
    %1774 = vector.broadcast %1773 : f32 to vector<16x128xf32>
    %1775 = arith.mulf %1141, %1774 : vector<16x128xf32>
    %1776 = arith.addf %1760, %1775 : vector<16x128xf32>
    %c12_813 = arith.constant 12 : index
    %c6_814 = arith.constant 6 : index
    %1777 = memref.load %arg11[%c12_813, %c6_814] : memref<20x10xf32, #tpu.memory_space<smem>>
    %1778 = vector.broadcast %1777 : f32 to vector<16x128xf32>
    %1779 = arith.mulf %1149, %1778 : vector<16x128xf32>
    %1780 = arith.addf %1764, %1779 : vector<16x128xf32>
    %c13_815 = arith.constant 13 : index
    %c6_816 = arith.constant 6 : index
    %1781 = memref.load %arg11[%c13_815, %c6_816] : memref<20x10xf32, #tpu.memory_space<smem>>
    %1782 = vector.broadcast %1781 : f32 to vector<16x128xf32>
    %1783 = arith.mulf %1157, %1782 : vector<16x128xf32>
    %1784 = arith.addf %1768, %1783 : vector<16x128xf32>
    %c14_817 = arith.constant 14 : index
    %c6_818 = arith.constant 6 : index
    %1785 = memref.load %arg11[%c14_817, %c6_818] : memref<20x10xf32, #tpu.memory_space<smem>>
    %1786 = vector.broadcast %1785 : f32 to vector<16x128xf32>
    %1787 = arith.mulf %1165, %1786 : vector<16x128xf32>
    %1788 = arith.addf %1772, %1787 : vector<16x128xf32>
    %c15_819 = arith.constant 15 : index
    %c6_820 = arith.constant 6 : index
    %1789 = memref.load %arg11[%c15_819, %c6_820] : memref<20x10xf32, #tpu.memory_space<smem>>
    %1790 = vector.broadcast %1789 : f32 to vector<16x128xf32>
    %1791 = arith.mulf %1173, %1790 : vector<16x128xf32>
    %1792 = arith.addf %1776, %1791 : vector<16x128xf32>
    %c16_821 = arith.constant 16 : index
    %c6_822 = arith.constant 6 : index
    %1793 = memref.load %arg11[%c16_821, %c6_822] : memref<20x10xf32, #tpu.memory_space<smem>>
    %1794 = vector.broadcast %1793 : f32 to vector<16x128xf32>
    %1795 = arith.mulf %1181, %1794 : vector<16x128xf32>
    %1796 = arith.addf %1780, %1795 : vector<16x128xf32>
    %c17_823 = arith.constant 17 : index
    %c6_824 = arith.constant 6 : index
    %1797 = memref.load %arg11[%c17_823, %c6_824] : memref<20x10xf32, #tpu.memory_space<smem>>
    %1798 = vector.broadcast %1797 : f32 to vector<16x128xf32>
    %1799 = arith.mulf %1189, %1798 : vector<16x128xf32>
    %1800 = arith.addf %1784, %1799 : vector<16x128xf32>
    %c18_825 = arith.constant 18 : index
    %c6_826 = arith.constant 6 : index
    %1801 = memref.load %arg11[%c18_825, %c6_826] : memref<20x10xf32, #tpu.memory_space<smem>>
    %1802 = vector.broadcast %1801 : f32 to vector<16x128xf32>
    %1803 = arith.mulf %1197, %1802 : vector<16x128xf32>
    %1804 = arith.addf %1788, %1803 : vector<16x128xf32>
    %c19_827 = arith.constant 19 : index
    %c6_828 = arith.constant 6 : index
    %1805 = memref.load %arg11[%c19_827, %c6_828] : memref<20x10xf32, #tpu.memory_space<smem>>
    %1806 = vector.broadcast %1805 : f32 to vector<16x128xf32>
    %1807 = arith.mulf %1205, %1806 : vector<16x128xf32>
    %1808 = arith.addf %1792, %1807 : vector<16x128xf32>
    %1809 = arith.addf %1796, %1800 : vector<16x128xf32>
    %1810 = arith.addf %1804, %1808 : vector<16x128xf32>
    %1811 = arith.addf %1809, %1810 : vector<16x128xf32>
    %c6_829 = arith.constant 6 : index
    %1812 = memref.load %arg12[%c6_829] : memref<10xf32, #tpu.memory_space<smem>>
    %1813 = vector.broadcast %1812 : f32 to vector<16x128xf32>
    %1814 = arith.addf %1811, %1813 : vector<16x128xf32>
    %cst_830 = arith.constant 0.000000e+00 : f32
    %1815 = vector.broadcast %cst_830 : f32 to vector<16x128xf32>
    %1816 = arith.maximumf %1814, %1815 : vector<16x128xf32>
    %c6_831 = arith.constant 6 : index
    %1817 = memref.load %arg13[%c6_831] : memref<10xf32, #tpu.memory_space<smem>>
    %1818 = vector.broadcast %1817 : f32 to vector<16x128xf32>
    %1819 = arith.mulf %1816, %1818 : vector<16x128xf32>
    %1820 = arith.addf %1732, %1819 : vector<16x128xf32>
    %c0_832 = arith.constant 0 : index
    %c7_833 = arith.constant 7 : index
    %1821 = memref.load %arg11[%c0_832, %c7_833] : memref<20x10xf32, #tpu.memory_space<smem>>
    %1822 = vector.broadcast %1821 : f32 to vector<16x128xf32>
    %1823 = arith.mulf %1053, %1822 : vector<16x128xf32>
    %c1_834 = arith.constant 1 : index
    %c7_835 = arith.constant 7 : index
    %1824 = memref.load %arg11[%c1_834, %c7_835] : memref<20x10xf32, #tpu.memory_space<smem>>
    %1825 = vector.broadcast %1824 : f32 to vector<16x128xf32>
    %1826 = arith.mulf %1061, %1825 : vector<16x128xf32>
    %c2_836 = arith.constant 2 : index
    %c7_837 = arith.constant 7 : index
    %1827 = memref.load %arg11[%c2_836, %c7_837] : memref<20x10xf32, #tpu.memory_space<smem>>
    %1828 = vector.broadcast %1827 : f32 to vector<16x128xf32>
    %1829 = arith.mulf %1069, %1828 : vector<16x128xf32>
    %c3_838 = arith.constant 3 : index
    %c7_839 = arith.constant 7 : index
    %1830 = memref.load %arg11[%c3_838, %c7_839] : memref<20x10xf32, #tpu.memory_space<smem>>
    %1831 = vector.broadcast %1830 : f32 to vector<16x128xf32>
    %1832 = arith.mulf %1077, %1831 : vector<16x128xf32>
    %c4_840 = arith.constant 4 : index
    %c7_841 = arith.constant 7 : index
    %1833 = memref.load %arg11[%c4_840, %c7_841] : memref<20x10xf32, #tpu.memory_space<smem>>
    %1834 = vector.broadcast %1833 : f32 to vector<16x128xf32>
    %1835 = arith.mulf %1085, %1834 : vector<16x128xf32>
    %1836 = arith.addf %1823, %1835 : vector<16x128xf32>
    %c5_842 = arith.constant 5 : index
    %c7_843 = arith.constant 7 : index
    %1837 = memref.load %arg11[%c5_842, %c7_843] : memref<20x10xf32, #tpu.memory_space<smem>>
    %1838 = vector.broadcast %1837 : f32 to vector<16x128xf32>
    %1839 = arith.mulf %1093, %1838 : vector<16x128xf32>
    %1840 = arith.addf %1826, %1839 : vector<16x128xf32>
    %c6_844 = arith.constant 6 : index
    %c7_845 = arith.constant 7 : index
    %1841 = memref.load %arg11[%c6_844, %c7_845] : memref<20x10xf32, #tpu.memory_space<smem>>
    %1842 = vector.broadcast %1841 : f32 to vector<16x128xf32>
    %1843 = arith.mulf %1101, %1842 : vector<16x128xf32>
    %1844 = arith.addf %1829, %1843 : vector<16x128xf32>
    %c7_846 = arith.constant 7 : index
    %c7_847 = arith.constant 7 : index
    %1845 = memref.load %arg11[%c7_846, %c7_847] : memref<20x10xf32, #tpu.memory_space<smem>>
    %1846 = vector.broadcast %1845 : f32 to vector<16x128xf32>
    %1847 = arith.mulf %1109, %1846 : vector<16x128xf32>
    %1848 = arith.addf %1832, %1847 : vector<16x128xf32>
    %c8_848 = arith.constant 8 : index
    %c7_849 = arith.constant 7 : index
    %1849 = memref.load %arg11[%c8_848, %c7_849] : memref<20x10xf32, #tpu.memory_space<smem>>
    %1850 = vector.broadcast %1849 : f32 to vector<16x128xf32>
    %1851 = arith.mulf %1117, %1850 : vector<16x128xf32>
    %1852 = arith.addf %1836, %1851 : vector<16x128xf32>
    %c9_850 = arith.constant 9 : index
    %c7_851 = arith.constant 7 : index
    %1853 = memref.load %arg11[%c9_850, %c7_851] : memref<20x10xf32, #tpu.memory_space<smem>>
    %1854 = vector.broadcast %1853 : f32 to vector<16x128xf32>
    %1855 = arith.mulf %1125, %1854 : vector<16x128xf32>
    %1856 = arith.addf %1840, %1855 : vector<16x128xf32>
    %c10_852 = arith.constant 10 : index
    %c7_853 = arith.constant 7 : index
    %1857 = memref.load %arg11[%c10_852, %c7_853] : memref<20x10xf32, #tpu.memory_space<smem>>
    %1858 = vector.broadcast %1857 : f32 to vector<16x128xf32>
    %1859 = arith.mulf %1133, %1858 : vector<16x128xf32>
    %1860 = arith.addf %1844, %1859 : vector<16x128xf32>
    %c11_854 = arith.constant 11 : index
    %c7_855 = arith.constant 7 : index
    %1861 = memref.load %arg11[%c11_854, %c7_855] : memref<20x10xf32, #tpu.memory_space<smem>>
    %1862 = vector.broadcast %1861 : f32 to vector<16x128xf32>
    %1863 = arith.mulf %1141, %1862 : vector<16x128xf32>
    %1864 = arith.addf %1848, %1863 : vector<16x128xf32>
    %c12_856 = arith.constant 12 : index
    %c7_857 = arith.constant 7 : index
    %1865 = memref.load %arg11[%c12_856, %c7_857] : memref<20x10xf32, #tpu.memory_space<smem>>
    %1866 = vector.broadcast %1865 : f32 to vector<16x128xf32>
    %1867 = arith.mulf %1149, %1866 : vector<16x128xf32>
    %1868 = arith.addf %1852, %1867 : vector<16x128xf32>
    %c13_858 = arith.constant 13 : index
    %c7_859 = arith.constant 7 : index
    %1869 = memref.load %arg11[%c13_858, %c7_859] : memref<20x10xf32, #tpu.memory_space<smem>>
    %1870 = vector.broadcast %1869 : f32 to vector<16x128xf32>
    %1871 = arith.mulf %1157, %1870 : vector<16x128xf32>
    %1872 = arith.addf %1856, %1871 : vector<16x128xf32>
    %c14_860 = arith.constant 14 : index
    %c7_861 = arith.constant 7 : index
    %1873 = memref.load %arg11[%c14_860, %c7_861] : memref<20x10xf32, #tpu.memory_space<smem>>
    %1874 = vector.broadcast %1873 : f32 to vector<16x128xf32>
    %1875 = arith.mulf %1165, %1874 : vector<16x128xf32>
    %1876 = arith.addf %1860, %1875 : vector<16x128xf32>
    %c15_862 = arith.constant 15 : index
    %c7_863 = arith.constant 7 : index
    %1877 = memref.load %arg11[%c15_862, %c7_863] : memref<20x10xf32, #tpu.memory_space<smem>>
    %1878 = vector.broadcast %1877 : f32 to vector<16x128xf32>
    %1879 = arith.mulf %1173, %1878 : vector<16x128xf32>
    %1880 = arith.addf %1864, %1879 : vector<16x128xf32>
    %c16_864 = arith.constant 16 : index
    %c7_865 = arith.constant 7 : index
    %1881 = memref.load %arg11[%c16_864, %c7_865] : memref<20x10xf32, #tpu.memory_space<smem>>
    %1882 = vector.broadcast %1881 : f32 to vector<16x128xf32>
    %1883 = arith.mulf %1181, %1882 : vector<16x128xf32>
    %1884 = arith.addf %1868, %1883 : vector<16x128xf32>
    %c17_866 = arith.constant 17 : index
    %c7_867 = arith.constant 7 : index
    %1885 = memref.load %arg11[%c17_866, %c7_867] : memref<20x10xf32, #tpu.memory_space<smem>>
    %1886 = vector.broadcast %1885 : f32 to vector<16x128xf32>
    %1887 = arith.mulf %1189, %1886 : vector<16x128xf32>
    %1888 = arith.addf %1872, %1887 : vector<16x128xf32>
    %c18_868 = arith.constant 18 : index
    %c7_869 = arith.constant 7 : index
    %1889 = memref.load %arg11[%c18_868, %c7_869] : memref<20x10xf32, #tpu.memory_space<smem>>
    %1890 = vector.broadcast %1889 : f32 to vector<16x128xf32>
    %1891 = arith.mulf %1197, %1890 : vector<16x128xf32>
    %1892 = arith.addf %1876, %1891 : vector<16x128xf32>
    %c19_870 = arith.constant 19 : index
    %c7_871 = arith.constant 7 : index
    %1893 = memref.load %arg11[%c19_870, %c7_871] : memref<20x10xf32, #tpu.memory_space<smem>>
    %1894 = vector.broadcast %1893 : f32 to vector<16x128xf32>
    %1895 = arith.mulf %1205, %1894 : vector<16x128xf32>
    %1896 = arith.addf %1880, %1895 : vector<16x128xf32>
    %1897 = arith.addf %1884, %1888 : vector<16x128xf32>
    %1898 = arith.addf %1892, %1896 : vector<16x128xf32>
    %1899 = arith.addf %1897, %1898 : vector<16x128xf32>
    %c7_872 = arith.constant 7 : index
    %1900 = memref.load %arg12[%c7_872] : memref<10xf32, #tpu.memory_space<smem>>
    %1901 = vector.broadcast %1900 : f32 to vector<16x128xf32>
    %1902 = arith.addf %1899, %1901 : vector<16x128xf32>
    %cst_873 = arith.constant 0.000000e+00 : f32
    %1903 = vector.broadcast %cst_873 : f32 to vector<16x128xf32>
    %1904 = arith.maximumf %1902, %1903 : vector<16x128xf32>
    %c7_874 = arith.constant 7 : index
    %1905 = memref.load %arg13[%c7_874] : memref<10xf32, #tpu.memory_space<smem>>
    %1906 = vector.broadcast %1905 : f32 to vector<16x128xf32>
    %1907 = arith.mulf %1904, %1906 : vector<16x128xf32>
    %1908 = arith.addf %1820, %1907 : vector<16x128xf32>
    %c0_875 = arith.constant 0 : index
    %c8_876 = arith.constant 8 : index
    %1909 = memref.load %arg11[%c0_875, %c8_876] : memref<20x10xf32, #tpu.memory_space<smem>>
    %1910 = vector.broadcast %1909 : f32 to vector<16x128xf32>
    %1911 = arith.mulf %1053, %1910 : vector<16x128xf32>
    %c1_877 = arith.constant 1 : index
    %c8_878 = arith.constant 8 : index
    %1912 = memref.load %arg11[%c1_877, %c8_878] : memref<20x10xf32, #tpu.memory_space<smem>>
    %1913 = vector.broadcast %1912 : f32 to vector<16x128xf32>
    %1914 = arith.mulf %1061, %1913 : vector<16x128xf32>
    %c2_879 = arith.constant 2 : index
    %c8_880 = arith.constant 8 : index
    %1915 = memref.load %arg11[%c2_879, %c8_880] : memref<20x10xf32, #tpu.memory_space<smem>>
    %1916 = vector.broadcast %1915 : f32 to vector<16x128xf32>
    %1917 = arith.mulf %1069, %1916 : vector<16x128xf32>
    %c3_881 = arith.constant 3 : index
    %c8_882 = arith.constant 8 : index
    %1918 = memref.load %arg11[%c3_881, %c8_882] : memref<20x10xf32, #tpu.memory_space<smem>>
    %1919 = vector.broadcast %1918 : f32 to vector<16x128xf32>
    %1920 = arith.mulf %1077, %1919 : vector<16x128xf32>
    %c4_883 = arith.constant 4 : index
    %c8_884 = arith.constant 8 : index
    %1921 = memref.load %arg11[%c4_883, %c8_884] : memref<20x10xf32, #tpu.memory_space<smem>>
    %1922 = vector.broadcast %1921 : f32 to vector<16x128xf32>
    %1923 = arith.mulf %1085, %1922 : vector<16x128xf32>
    %1924 = arith.addf %1911, %1923 : vector<16x128xf32>
    %c5_885 = arith.constant 5 : index
    %c8_886 = arith.constant 8 : index
    %1925 = memref.load %arg11[%c5_885, %c8_886] : memref<20x10xf32, #tpu.memory_space<smem>>
    %1926 = vector.broadcast %1925 : f32 to vector<16x128xf32>
    %1927 = arith.mulf %1093, %1926 : vector<16x128xf32>
    %1928 = arith.addf %1914, %1927 : vector<16x128xf32>
    %c6_887 = arith.constant 6 : index
    %c8_888 = arith.constant 8 : index
    %1929 = memref.load %arg11[%c6_887, %c8_888] : memref<20x10xf32, #tpu.memory_space<smem>>
    %1930 = vector.broadcast %1929 : f32 to vector<16x128xf32>
    %1931 = arith.mulf %1101, %1930 : vector<16x128xf32>
    %1932 = arith.addf %1917, %1931 : vector<16x128xf32>
    %c7_889 = arith.constant 7 : index
    %c8_890 = arith.constant 8 : index
    %1933 = memref.load %arg11[%c7_889, %c8_890] : memref<20x10xf32, #tpu.memory_space<smem>>
    %1934 = vector.broadcast %1933 : f32 to vector<16x128xf32>
    %1935 = arith.mulf %1109, %1934 : vector<16x128xf32>
    %1936 = arith.addf %1920, %1935 : vector<16x128xf32>
    %c8_891 = arith.constant 8 : index
    %c8_892 = arith.constant 8 : index
    %1937 = memref.load %arg11[%c8_891, %c8_892] : memref<20x10xf32, #tpu.memory_space<smem>>
    %1938 = vector.broadcast %1937 : f32 to vector<16x128xf32>
    %1939 = arith.mulf %1117, %1938 : vector<16x128xf32>
    %1940 = arith.addf %1924, %1939 : vector<16x128xf32>
    %c9_893 = arith.constant 9 : index
    %c8_894 = arith.constant 8 : index
    %1941 = memref.load %arg11[%c9_893, %c8_894] : memref<20x10xf32, #tpu.memory_space<smem>>
    %1942 = vector.broadcast %1941 : f32 to vector<16x128xf32>
    %1943 = arith.mulf %1125, %1942 : vector<16x128xf32>
    %1944 = arith.addf %1928, %1943 : vector<16x128xf32>
    %c10_895 = arith.constant 10 : index
    %c8_896 = arith.constant 8 : index
    %1945 = memref.load %arg11[%c10_895, %c8_896] : memref<20x10xf32, #tpu.memory_space<smem>>
    %1946 = vector.broadcast %1945 : f32 to vector<16x128xf32>
    %1947 = arith.mulf %1133, %1946 : vector<16x128xf32>
    %1948 = arith.addf %1932, %1947 : vector<16x128xf32>
    %c11_897 = arith.constant 11 : index
    %c8_898 = arith.constant 8 : index
    %1949 = memref.load %arg11[%c11_897, %c8_898] : memref<20x10xf32, #tpu.memory_space<smem>>
    %1950 = vector.broadcast %1949 : f32 to vector<16x128xf32>
    %1951 = arith.mulf %1141, %1950 : vector<16x128xf32>
    %1952 = arith.addf %1936, %1951 : vector<16x128xf32>
    %c12_899 = arith.constant 12 : index
    %c8_900 = arith.constant 8 : index
    %1953 = memref.load %arg11[%c12_899, %c8_900] : memref<20x10xf32, #tpu.memory_space<smem>>
    %1954 = vector.broadcast %1953 : f32 to vector<16x128xf32>
    %1955 = arith.mulf %1149, %1954 : vector<16x128xf32>
    %1956 = arith.addf %1940, %1955 : vector<16x128xf32>
    %c13_901 = arith.constant 13 : index
    %c8_902 = arith.constant 8 : index
    %1957 = memref.load %arg11[%c13_901, %c8_902] : memref<20x10xf32, #tpu.memory_space<smem>>
    %1958 = vector.broadcast %1957 : f32 to vector<16x128xf32>
    %1959 = arith.mulf %1157, %1958 : vector<16x128xf32>
    %1960 = arith.addf %1944, %1959 : vector<16x128xf32>
    %c14_903 = arith.constant 14 : index
    %c8_904 = arith.constant 8 : index
    %1961 = memref.load %arg11[%c14_903, %c8_904] : memref<20x10xf32, #tpu.memory_space<smem>>
    %1962 = vector.broadcast %1961 : f32 to vector<16x128xf32>
    %1963 = arith.mulf %1165, %1962 : vector<16x128xf32>
    %1964 = arith.addf %1948, %1963 : vector<16x128xf32>
    %c15_905 = arith.constant 15 : index
    %c8_906 = arith.constant 8 : index
    %1965 = memref.load %arg11[%c15_905, %c8_906] : memref<20x10xf32, #tpu.memory_space<smem>>
    %1966 = vector.broadcast %1965 : f32 to vector<16x128xf32>
    %1967 = arith.mulf %1173, %1966 : vector<16x128xf32>
    %1968 = arith.addf %1952, %1967 : vector<16x128xf32>
    %c16_907 = arith.constant 16 : index
    %c8_908 = arith.constant 8 : index
    %1969 = memref.load %arg11[%c16_907, %c8_908] : memref<20x10xf32, #tpu.memory_space<smem>>
    %1970 = vector.broadcast %1969 : f32 to vector<16x128xf32>
    %1971 = arith.mulf %1181, %1970 : vector<16x128xf32>
    %1972 = arith.addf %1956, %1971 : vector<16x128xf32>
    %c17_909 = arith.constant 17 : index
    %c8_910 = arith.constant 8 : index
    %1973 = memref.load %arg11[%c17_909, %c8_910] : memref<20x10xf32, #tpu.memory_space<smem>>
    %1974 = vector.broadcast %1973 : f32 to vector<16x128xf32>
    %1975 = arith.mulf %1189, %1974 : vector<16x128xf32>
    %1976 = arith.addf %1960, %1975 : vector<16x128xf32>
    %c18_911 = arith.constant 18 : index
    %c8_912 = arith.constant 8 : index
    %1977 = memref.load %arg11[%c18_911, %c8_912] : memref<20x10xf32, #tpu.memory_space<smem>>
    %1978 = vector.broadcast %1977 : f32 to vector<16x128xf32>
    %1979 = arith.mulf %1197, %1978 : vector<16x128xf32>
    %1980 = arith.addf %1964, %1979 : vector<16x128xf32>
    %c19_913 = arith.constant 19 : index
    %c8_914 = arith.constant 8 : index
    %1981 = memref.load %arg11[%c19_913, %c8_914] : memref<20x10xf32, #tpu.memory_space<smem>>
    %1982 = vector.broadcast %1981 : f32 to vector<16x128xf32>
    %1983 = arith.mulf %1205, %1982 : vector<16x128xf32>
    %1984 = arith.addf %1968, %1983 : vector<16x128xf32>
    %1985 = arith.addf %1972, %1976 : vector<16x128xf32>
    %1986 = arith.addf %1980, %1984 : vector<16x128xf32>
    %1987 = arith.addf %1985, %1986 : vector<16x128xf32>
    %c8_915 = arith.constant 8 : index
    %1988 = memref.load %arg12[%c8_915] : memref<10xf32, #tpu.memory_space<smem>>
    %1989 = vector.broadcast %1988 : f32 to vector<16x128xf32>
    %1990 = arith.addf %1987, %1989 : vector<16x128xf32>
    %cst_916 = arith.constant 0.000000e+00 : f32
    %1991 = vector.broadcast %cst_916 : f32 to vector<16x128xf32>
    %1992 = arith.maximumf %1990, %1991 : vector<16x128xf32>
    %c8_917 = arith.constant 8 : index
    %1993 = memref.load %arg13[%c8_917] : memref<10xf32, #tpu.memory_space<smem>>
    %1994 = vector.broadcast %1993 : f32 to vector<16x128xf32>
    %1995 = arith.mulf %1992, %1994 : vector<16x128xf32>
    %1996 = arith.addf %1908, %1995 : vector<16x128xf32>
    %c0_918 = arith.constant 0 : index
    %c9_919 = arith.constant 9 : index
    %1997 = memref.load %arg11[%c0_918, %c9_919] : memref<20x10xf32, #tpu.memory_space<smem>>
    %1998 = vector.broadcast %1997 : f32 to vector<16x128xf32>
    %1999 = arith.mulf %1053, %1998 : vector<16x128xf32>
    %c1_920 = arith.constant 1 : index
    %c9_921 = arith.constant 9 : index
    %2000 = memref.load %arg11[%c1_920, %c9_921] : memref<20x10xf32, #tpu.memory_space<smem>>
    %2001 = vector.broadcast %2000 : f32 to vector<16x128xf32>
    %2002 = arith.mulf %1061, %2001 : vector<16x128xf32>
    %c2_922 = arith.constant 2 : index
    %c9_923 = arith.constant 9 : index
    %2003 = memref.load %arg11[%c2_922, %c9_923] : memref<20x10xf32, #tpu.memory_space<smem>>
    %2004 = vector.broadcast %2003 : f32 to vector<16x128xf32>
    %2005 = arith.mulf %1069, %2004 : vector<16x128xf32>
    %c3_924 = arith.constant 3 : index
    %c9_925 = arith.constant 9 : index
    %2006 = memref.load %arg11[%c3_924, %c9_925] : memref<20x10xf32, #tpu.memory_space<smem>>
    %2007 = vector.broadcast %2006 : f32 to vector<16x128xf32>
    %2008 = arith.mulf %1077, %2007 : vector<16x128xf32>
    %c4_926 = arith.constant 4 : index
    %c9_927 = arith.constant 9 : index
    %2009 = memref.load %arg11[%c4_926, %c9_927] : memref<20x10xf32, #tpu.memory_space<smem>>
    %2010 = vector.broadcast %2009 : f32 to vector<16x128xf32>
    %2011 = arith.mulf %1085, %2010 : vector<16x128xf32>
    %2012 = arith.addf %1999, %2011 : vector<16x128xf32>
    %c5_928 = arith.constant 5 : index
    %c9_929 = arith.constant 9 : index
    %2013 = memref.load %arg11[%c5_928, %c9_929] : memref<20x10xf32, #tpu.memory_space<smem>>
    %2014 = vector.broadcast %2013 : f32 to vector<16x128xf32>
    %2015 = arith.mulf %1093, %2014 : vector<16x128xf32>
    %2016 = arith.addf %2002, %2015 : vector<16x128xf32>
    %c6_930 = arith.constant 6 : index
    %c9_931 = arith.constant 9 : index
    %2017 = memref.load %arg11[%c6_930, %c9_931] : memref<20x10xf32, #tpu.memory_space<smem>>
    %2018 = vector.broadcast %2017 : f32 to vector<16x128xf32>
    %2019 = arith.mulf %1101, %2018 : vector<16x128xf32>
    %2020 = arith.addf %2005, %2019 : vector<16x128xf32>
    %c7_932 = arith.constant 7 : index
    %c9_933 = arith.constant 9 : index
    %2021 = memref.load %arg11[%c7_932, %c9_933] : memref<20x10xf32, #tpu.memory_space<smem>>
    %2022 = vector.broadcast %2021 : f32 to vector<16x128xf32>
    %2023 = arith.mulf %1109, %2022 : vector<16x128xf32>
    %2024 = arith.addf %2008, %2023 : vector<16x128xf32>
    %c8_934 = arith.constant 8 : index
    %c9_935 = arith.constant 9 : index
    %2025 = memref.load %arg11[%c8_934, %c9_935] : memref<20x10xf32, #tpu.memory_space<smem>>
    %2026 = vector.broadcast %2025 : f32 to vector<16x128xf32>
    %2027 = arith.mulf %1117, %2026 : vector<16x128xf32>
    %2028 = arith.addf %2012, %2027 : vector<16x128xf32>
    %c9_936 = arith.constant 9 : index
    %c9_937 = arith.constant 9 : index
    %2029 = memref.load %arg11[%c9_936, %c9_937] : memref<20x10xf32, #tpu.memory_space<smem>>
    %2030 = vector.broadcast %2029 : f32 to vector<16x128xf32>
    %2031 = arith.mulf %1125, %2030 : vector<16x128xf32>
    %2032 = arith.addf %2016, %2031 : vector<16x128xf32>
    %c10_938 = arith.constant 10 : index
    %c9_939 = arith.constant 9 : index
    %2033 = memref.load %arg11[%c10_938, %c9_939] : memref<20x10xf32, #tpu.memory_space<smem>>
    %2034 = vector.broadcast %2033 : f32 to vector<16x128xf32>
    %2035 = arith.mulf %1133, %2034 : vector<16x128xf32>
    %2036 = arith.addf %2020, %2035 : vector<16x128xf32>
    %c11_940 = arith.constant 11 : index
    %c9_941 = arith.constant 9 : index
    %2037 = memref.load %arg11[%c11_940, %c9_941] : memref<20x10xf32, #tpu.memory_space<smem>>
    %2038 = vector.broadcast %2037 : f32 to vector<16x128xf32>
    %2039 = arith.mulf %1141, %2038 : vector<16x128xf32>
    %2040 = arith.addf %2024, %2039 : vector<16x128xf32>
    %c12_942 = arith.constant 12 : index
    %c9_943 = arith.constant 9 : index
    %2041 = memref.load %arg11[%c12_942, %c9_943] : memref<20x10xf32, #tpu.memory_space<smem>>
    %2042 = vector.broadcast %2041 : f32 to vector<16x128xf32>
    %2043 = arith.mulf %1149, %2042 : vector<16x128xf32>
    %2044 = arith.addf %2028, %2043 : vector<16x128xf32>
    %c13_944 = arith.constant 13 : index
    %c9_945 = arith.constant 9 : index
    %2045 = memref.load %arg11[%c13_944, %c9_945] : memref<20x10xf32, #tpu.memory_space<smem>>
    %2046 = vector.broadcast %2045 : f32 to vector<16x128xf32>
    %2047 = arith.mulf %1157, %2046 : vector<16x128xf32>
    %2048 = arith.addf %2032, %2047 : vector<16x128xf32>
    %c14_946 = arith.constant 14 : index
    %c9_947 = arith.constant 9 : index
    %2049 = memref.load %arg11[%c14_946, %c9_947] : memref<20x10xf32, #tpu.memory_space<smem>>
    %2050 = vector.broadcast %2049 : f32 to vector<16x128xf32>
    %2051 = arith.mulf %1165, %2050 : vector<16x128xf32>
    %2052 = arith.addf %2036, %2051 : vector<16x128xf32>
    %c15_948 = arith.constant 15 : index
    %c9_949 = arith.constant 9 : index
    %2053 = memref.load %arg11[%c15_948, %c9_949] : memref<20x10xf32, #tpu.memory_space<smem>>
    %2054 = vector.broadcast %2053 : f32 to vector<16x128xf32>
    %2055 = arith.mulf %1173, %2054 : vector<16x128xf32>
    %2056 = arith.addf %2040, %2055 : vector<16x128xf32>
    %c16_950 = arith.constant 16 : index
    %c9_951 = arith.constant 9 : index
    %2057 = memref.load %arg11[%c16_950, %c9_951] : memref<20x10xf32, #tpu.memory_space<smem>>
    %2058 = vector.broadcast %2057 : f32 to vector<16x128xf32>
    %2059 = arith.mulf %1181, %2058 : vector<16x128xf32>
    %2060 = arith.addf %2044, %2059 : vector<16x128xf32>
    %c17_952 = arith.constant 17 : index
    %c9_953 = arith.constant 9 : index
    %2061 = memref.load %arg11[%c17_952, %c9_953] : memref<20x10xf32, #tpu.memory_space<smem>>
    %2062 = vector.broadcast %2061 : f32 to vector<16x128xf32>
    %2063 = arith.mulf %1189, %2062 : vector<16x128xf32>
    %2064 = arith.addf %2048, %2063 : vector<16x128xf32>
    %c18_954 = arith.constant 18 : index
    %c9_955 = arith.constant 9 : index
    %2065 = memref.load %arg11[%c18_954, %c9_955] : memref<20x10xf32, #tpu.memory_space<smem>>
    %2066 = vector.broadcast %2065 : f32 to vector<16x128xf32>
    %2067 = arith.mulf %1197, %2066 : vector<16x128xf32>
    %2068 = arith.addf %2052, %2067 : vector<16x128xf32>
    %c19_956 = arith.constant 19 : index
    %c9_957 = arith.constant 9 : index
    %2069 = memref.load %arg11[%c19_956, %c9_957] : memref<20x10xf32, #tpu.memory_space<smem>>
    %2070 = vector.broadcast %2069 : f32 to vector<16x128xf32>
    %2071 = arith.mulf %1205, %2070 : vector<16x128xf32>
    %2072 = arith.addf %2056, %2071 : vector<16x128xf32>
    %2073 = arith.addf %2060, %2064 : vector<16x128xf32>
    %2074 = arith.addf %2068, %2072 : vector<16x128xf32>
    %2075 = arith.addf %2073, %2074 : vector<16x128xf32>
    %c9_958 = arith.constant 9 : index
    %2076 = memref.load %arg12[%c9_958] : memref<10xf32, #tpu.memory_space<smem>>
    %2077 = vector.broadcast %2076 : f32 to vector<16x128xf32>
    %2078 = arith.addf %2075, %2077 : vector<16x128xf32>
    %cst_959 = arith.constant 0.000000e+00 : f32
    %2079 = vector.broadcast %cst_959 : f32 to vector<16x128xf32>
    %2080 = arith.maximumf %2078, %2079 : vector<16x128xf32>
    %c9_960 = arith.constant 9 : index
    %2081 = memref.load %arg13[%c9_960] : memref<10xf32, #tpu.memory_space<smem>>
    %2082 = vector.broadcast %2081 : f32 to vector<16x128xf32>
    %2083 = arith.mulf %2080, %2082 : vector<16x128xf32>
    %2084 = arith.addf %1996, %2083 : vector<16x128xf32>
    %c0_961 = arith.constant 0 : index
    %2085 = memref.load %arg14[%c0_961] : memref<1xf32, #tpu.memory_space<smem>>
    %2086 = vector.broadcast %2085 : f32 to vector<16x128xf32>
    %2087 = arith.addf %2084, %2086 : vector<16x128xf32>
    %2088 = arith.index_cast %1 : i32 to index
    %c0_962 = arith.constant 0 : index
    %2089 = vector.load %arg2[%2088, %c0_962] : memref<16x128xf32, #tpu.memory_space<vmem>>, vector<16x128xf32>
    %cst_963 = arith.constant 5.000000e-01 : f32
    %2090 = vector.broadcast %cst_963 : f32 to vector<16x128xf32>
    %2091 = arith.mulf %2090, %2087 : vector<16x128xf32>
    %2092 = math.exp %2091 : vector<16x128xf32>
    %cst_964 = arith.constant 9.99999974E-6 : f32
    %2093 = vector.broadcast %cst_964 : f32 to vector<16x128xf32>
    %2094 = arith.addf %2092, %2093 : vector<16x128xf32>
    %2095 = arith.mulf %2094, %2089 : vector<16x128xf32>
    %2096 = arith.addf %1045, %2095 : vector<16x128xf32>
    %2097 = arith.index_cast %1 : i32 to index
    %c0_965 = arith.constant 0 : index
    %2098 = vector.load %arg15[%2097, %c0_965] : memref<16x128xf32, #tpu.memory_space<vmem>>, vector<16x128xf32>
    tpu.vector_store %arg15[%2097, %c0_965], %2096 {strides = array<i32>} : memref<16x128xf32, #tpu.memory_space<vmem>>, vector<16x128xf32>,
    %2099 = arith.index_cast %1 : i32 to index
    %c0_966 = arith.constant 0 : index
    %2100 = vector.load %arg16[%2099, %c0_966] : memref<16x128xf32, #tpu.memory_space<vmem>>, vector<16x128xf32>
    tpu.vector_store %arg16[%2099, %c0_966], %1045 {strides = array<i32>} : memref<16x128xf32, #tpu.memory_space<vmem>>, vector<16x128xf32>,
    %2101 = arith.index_cast %1 : i32 to index
    %c0_967 = arith.constant 0 : index
    %2102 = vector.load %arg17[%2101, %c0_967] : memref<16x128xf32, #tpu.memory_space<vmem>>, vector<16x128xf32>
    tpu.vector_store %arg17[%2101, %c0_967], %2087 {strides = array<i32>} : memref<16x128xf32, #tpu.memory_space<vmem>>, vector<16x128xf32>,
    %c1_i32 = arith.constant 1 : i32
    return
  }
  func.func @transform_0(%arg0: i32) -> (i32, i32) {
    %c0_i32 = arith.constant 0 : i32
    %c0_i32_0 = arith.constant 0 : i32
    return %arg0, %c0_i32 : i32, i32
  }
  func.func @transform_1(%arg0: i32) -> (i32, i32) {
    %c0_i32 = arith.constant 0 : i32
    %c0_i32_0 = arith.constant 0 : i32
    return %arg0, %c0_i32 : i32, i32
  }
  func.func @transform_2(%arg0: i32) -> i32 {
    %c0_i32 = arith.constant 0 : i32
    %c0_i32_0 = arith.constant 0 : i32
    return %c0_i32 : i32
  }
  func.func @transform_3(%arg0: i32) -> i32 {
    %c0_i32 = arith.constant 0 : i32
    %c0_i32_0 = arith.constant 0 : i32
    return %c0_i32 : i32
  }
  func.func @transform_4(%arg0: i32) -> (i32, i32) {
    %c0_i32 = arith.constant 0 : i32
    %c0_i32_0 = arith.constant 0 : i32
    %c0_i32_1 = arith.constant 0 : i32
    return %c0_i32, %c0_i32_0 : i32, i32
  }
  func.func @transform_5(%arg0: i32) -> i32 {
    %c0_i32 = arith.constant 0 : i32
    %c0_i32_0 = arith.constant 0 : i32
    return %c0_i32 : i32
  }
  func.func @transform_6(%arg0: i32) -> i32 {
    %c0_i32 = arith.constant 0 : i32
    %c0_i32_0 = arith.constant 0 : i32
    return %c0_i32 : i32
  }
  func.func @transform_7(%arg0: i32) -> i32 {
    %c0_i32 = arith.constant 0 : i32
    %c0_i32_0 = arith.constant 0 : i32
    return %c0_i32 : i32
  }
  func.func @transform_8(%arg0: i32) -> i32 {
    %c0_i32 = arith.constant 0 : i32
    %c0_i32_0 = arith.constant 0 : i32
    return %c0_i32 : i32
  }
  func.func @transform_9(%arg0: i32) -> i32 {
    %c0_i32 = arith.constant 0 : i32
    %c0_i32_0 = arith.constant 0 : i32
    return %c0_i32 : i32
  }
  func.func @transform_10(%arg0: i32) -> (i32, i32) {
    %c0_i32 = arith.constant 0 : i32
    %c0_i32_0 = arith.constant 0 : i32
    %c0_i32_1 = arith.constant 0 : i32
    return %c0_i32, %c0_i32_0 : i32, i32
  }
  func.func @transform_11(%arg0: i32) -> i32 {
    %c0_i32 = arith.constant 0 : i32
    %c0_i32_0 = arith.constant 0 : i32
    return %c0_i32 : i32
  }
  func.func @transform_12(%arg0: i32) -> i32 {
    %c0_i32 = arith.constant 0 : i32
    %c0_i32_0 = arith.constant 0 : i32
    return %c0_i32 : i32
  }
  func.func @transform_13(%arg0: i32) -> i32 {
    %c0_i32 = arith.constant 0 : i32
    %c0_i32_0 = arith.constant 0 : i32
    return %c0_i32 : i32
  }
  func.func @transform_14(%arg0: i32) -> (i32, i32) {
    %c0_i32 = arith.constant 0 : i32
    %c0_i32_0 = arith.constant 0 : i32
    return %arg0, %c0_i32 : i32, i32
  }
  func.func @transform_15(%arg0: i32) -> (i32, i32) {
    %c0_i32 = arith.constant 0 : i32
    %c0_i32_0 = arith.constant 0 : i32
    return %arg0, %c0_i32 : i32, i32
  }
  func.func @transform_16(%arg0: i32) -> (i32, i32) {
    %c0_i32 = arith.constant 0 : i32
    %c0_i32_0 = arith.constant 0 : i32
    return %arg0, %c0_i32 : i32, i32
  }
}

</mosaic_0001>

<bundles_post_ra>
// kernel: tpu_custom_call.1
= control target key start
LH: loop header
LB: loop body
LE: loop exit
PB: predicated region body
PF: predicated region fallthrough
CT: control target
= control target key end

     0   :  { %s8067_s0 = inlined_call_operand.vmem [shape: f32[16,128], index: 0, kind: input, shape index: {}]   ;;  %s8068_s1 = inlined_call_operand.vmem [shape: f32[16,128], index: 1, kind: input, shape index: {}]   ;;  %s8069_s2 = inlined_call_operand.vmem [shape: f32[20], index: 2, kind: input, shape index: {}]   ;;  %s8070_s3 = inlined_call_operand.vmem [shape: f32[20], index: 3, kind: input, shape index: {}]   ;;  %s8071_s4 = inlined_call_operand.vmem [shape: f32[20,10], index: 4, kind: input, shape index: {}]   ;;  %s8072_s5 = inlined_call_operand.vmem [shape: f32[10], index: 5, kind: input, shape index: {}]   ;;  %s8073_s6 = inlined_call_operand.vmem [shape: f32[10], index: 6, kind: input, shape index: {}]   ;;  %s8074_s7 = inlined_call_operand.<no memory space> [shape: f32[1], index: 7, kind: input, shape index: {}]   ;;  %s8075_s8 = inlined_call_operand.vmem [shape: f32[20], index: 8, kind: input, shape index: {}]   ;;  %s8076_s9 = inlined_call_operand.vmem [shape: f32[20], index: 9, kind: input, shape index: {}]   ;;  %s8077_s10 = inlined_call_operand.vmem [shape: f32[20,10], index: 10, kind: input, shape index: {}]   ;;  %s8078_s11 = inlined_call_operand.vmem [shape: f32[10], index: 11, kind: input, shape index: {}]   ;;  %s8079_s12 = inlined_call_operand.vmem [shape: f32[10], index: 12, kind: input, shape index: {}]   ;;  %s8080_s13 = inlined_call_operand.<no memory space> [shape: f32[1], index: 13, kind: input, shape index: {}]   ;;  %s8081_s14 = inlined_call_operand.hbm [shape: f32[16,128], index: 14, kind: output, shape index: {0}]   ;;  %s8082_s15 = inlined_call_operand.hbm [shape: f32[16,128], index: 15, kind: output, shape index: {1}]   ;;  %s8083_s16 = inlined_call_operand.hbm [shape: f32[16,128], index: 16, kind: output, shape index: {2}]  }
   0x1   :  { %8604 = sst [smem:[#allocation201_spill]] %s8067_s0 }
   0x2   :  { %8605 = sst [smem:[#allocation202_spill]] %s8068_s1 }
   0x3   :  { %8606 = sst [smem:[#allocation203_spill]] %s8074_s7 }
   0x4   :  { %8607 = sst [smem:[#allocation204_spill]] %s8080_s13 }
   0x5   :  { %8608 = sst [smem:[#allocation205_spill]] %s8081_s14 }
   0x6   :  { %8609 = sst [smem:[#allocation206_spill]] %s8082_s15 }
   0x7   :  { %8610 = sst [smem:[#allocation207_spill]] %s8083_s16 }
   0x8   :  { %24 = vsyncpa [#allocation6], 0 }
   0x9   :  { %25 = vsyncpa [#allocation8], 0 }
   0xa   :  { %26 = vsyncpa [#allocation11], 0 }
   0xb   :  { %27 = vsyncpa [#allocation14], 0 }
   0xc   :  { %28 = vsyncpa [#allocation17], 0 }
   0xd   :  { %29 = vsyncpa [#allocation20], 0 }
   0xe   :  { %30 = vsyncpa [#allocation5], 0  ;;  %s52_s23 = sshll.u32 %s8070_s3, 4  ;;  %s53_s23 = int_to_ptr.vmem [resolvable:$true] %s52_s23 }
   0xf   :  { %31 = vsyncpa [#allocation23], 0  ;;  %s74_s26 = sshll.u32 %s8072_s5, 4  ;;  %s3785_s27 = scalar_lea.vmem %s53_s23, 16  ;;  %s75_s26 = int_to_ptr.vmem [resolvable:$true] %s74_s26 }
  0x10   :  { %p3786_p0 = scmp.ne.s32.totalorder %s53_s23, %s3785_s27  ;;  %p3790_p1 = scmp.lt.s32.totalorder %s53_s23, %s53_s23 }
  0x11   :  { %p3791_p2 = scmp.lt.s32.totalorder %s3785_s27, %s3785_s27 }
  0x13   :  { %p3792_p3 = por %p3791_p2, %p3790_p1 }
  0x15   :  { %p3793_p4 = pnand %p3792_p3, %p3786_p0 }
  0x17   :  { %3796 = shalt.err (!%p3793_p4)
}
  0x18   :  { %s3981_s28 = smov [#allocation7]   ;;  %s3797_s29 = scalar_lea.vmem %s75_s26, 16 }
  0x19   :  { %55 = dma.vmem_to_smem %s53_s23, 16, %s3981_s28, [#allocation8]  }
  0x1a   :  { %p3798_p5 = scmp.ne.s32.totalorder %s75_s26, %s3797_s29  ;;  %p3802_p6 = scmp.lt.s32.totalorder %s75_s26, %s75_s26 }
  0x1b   :  { %p3803_p7 = scmp.lt.s32.totalorder %s3797_s29, %s3797_s29 }
  0x1d   :  { %p3804_p8 = por %p3803_p7, %p3802_p6 }
  0x1f   :  { %p3805_p9 = pnand %p3804_p8, %p3798_p5 }
  0x21   :  { %3808 = shalt.err (!%p3805_p9)
}
  0x22   :  { %s3982_s3 = smov [#allocation10]   ;;  %s96_s0 = sshll.u32 %s8075_s8, 4  ;;  %s97_s0 = int_to_ptr.vmem [resolvable:$true] %s96_s0 }
  0x23   :  { %77 = dma.vmem_to_smem %s75_s26, 16, %s3982_s3, [#allocation11]  }
  0x24   :  { %s3809_s17 = scalar_lea.vmem %s97_s0, 16  ;;  %p3814_p11 = scmp.lt.s32.totalorder %s97_s0, %s97_s0 }
  0x25   :  { %p3810_p10 = scmp.ne.s32.totalorder %s97_s0, %s3809_s17  ;;  %p3815_p12 = scmp.lt.s32.totalorder %s3809_s17, %s3809_s17 }
  0x27   :  { %p3816_p13 = por %p3815_p12, %p3814_p11 }
  0x29   :  { %p3817_p0 = pnand %p3816_p13, %p3810_p10 }
  0x2b   :  { %3820 = shalt.err (!%p3817_p0)
}
  0x2c   :  { %s3983_s18 = smov [#allocation13]   ;;  %s115_s21 = sshll.u32 %s8077_s10, 4  ;;  %s116_s21 = int_to_ptr.vmem [resolvable:$true] %s115_s21 }
  0x2d   :  { %99 = dma.vmem_to_smem %s97_s0, 16, %s3983_s18, [#allocation14]  }
  0x2e   :  { %s3821_s22 = scalar_lea.vmem %s116_s21, 384  ;;  %p3826_p2 = scmp.lt.s32.totalorder %s116_s21, %s116_s21 }
  0x2f   :  { %p3822_p1 = scmp.ne.s32.totalorder %s116_s21, %s3821_s22  ;;  %p3827_p3 = scmp.lt.s32.totalorder %s3821_s22, %s3821_s22 }
  0x31   :  { %p3828_p4 = por %p3827_p3, %p3826_p2 }
  0x33   :  { %p3829_p5 = pnand %p3828_p4, %p3822_p1 }
  0x35   :  { %3832 = shalt.err (!%p3829_p5)
}
  0x36   :  { %s3984_s8 = smov [#allocation16]   ;;  %s8085_s23 = smov 128  }
  0x37   :  { %s8087_s24 = smov 8   ;;  %s42_s27 = sshll.u32 %s8069_s2, 4  ;;  %s43_s27 = int_to_ptr.vmem [resolvable:$true] %s42_s27 }
  0x38   :  { %121 = dma.vmem_to_smem %s116_s21, 384, %s3984_s8, [#allocation17], %s8085_s23, %s8085_s23, %s8087_s24  }
  0x39   :  { %s61_s29 = sshll.u32 %s8071_s4, 4  ;;  %s3833_s3 = scalar_lea.vmem %s43_s27, 16  ;;  %s62_s29 = int_to_ptr.vmem [resolvable:$true] %s61_s29 }
  0x3a   :  { %p3834_p6 = scmp.ne.s32.totalorder %s43_s27, %s3833_s3  ;;  %p3838_p7 = scmp.lt.s32.totalorder %s43_s27, %s43_s27 }
  0x3b   :  { %p3839_p8 = scmp.lt.s32.totalorder %s3833_s3, %s3833_s3 }
  0x3d   :  { %p3840_p9 = por %p3839_p8, %p3838_p7 }
  0x3f   :  { %p3841_p10 = pnand %p3840_p9, %p3834_p6 }
  0x41   :  { %3844 = shalt.err (!%p3841_p10)
}
  0x42   :  { %s3987_s5 = smov [#allocation4]   ;;  %s3845_s30 = scalar_lea.vmem %s62_s29, 384 }
  0x43   :  { %45 = dma.vmem_to_smem %s43_s27, 16, %s3987_s5, [#allocation6]  }
  0x44   :  { %p3846_p11 = scmp.ne.s32.totalorder %s62_s29, %s3845_s30  ;;  %p3850_p12 = scmp.lt.s32.totalorder %s62_s29, %s62_s29 }
  0x45   :  { %p3851_p13 = scmp.lt.s32.totalorder %s3845_s30, %s3845_s30 }
  0x47   :  { %p3852_p0 = por %p3851_p13, %p3850_p12 }
  0x49   :  { %p3853_p1 = pnand %p3852_p0, %p3846_p11 }
  0x4b   :  { %3856 = shalt.err (!%p3853_p1)
}
  0x4c   :  { %s3988_s2 = smov [#allocation9]   ;;  %s84_s17 = sshll.u32 %s8073_s6, 4  ;;  %s85_s17 = int_to_ptr.vmem [resolvable:$true] %s84_s17 }
  0x4d   :  { %67 = dma.vmem_to_smem %s62_s29, 384, %s3988_s2, [#allocation8], %s8085_s23, %s8085_s23, %s8087_s24  }
  0x4e   :  { %s106_s20 = sshll.u32 %s8076_s9, 4  ;;  %s3857_s21 = scalar_lea.vmem %s85_s17, 16  ;;  %s107_s20 = int_to_ptr.vmem [resolvable:$true] %s106_s20 }
  0x4f   :  { %p3858_p2 = scmp.ne.s32.totalorder %s85_s17, %s3857_s21  ;;  %p3862_p3 = scmp.lt.s32.totalorder %s85_s17, %s85_s17 }
  0x50   :  { %p3863_p4 = scmp.lt.s32.totalorder %s3857_s21, %s3857_s21 }
  0x52   :  { %p3864_p5 = por %p3863_p4, %p3862_p3 }
  0x54   :  { %p3865_p6 = pnand %p3864_p5, %p3858_p2 }
  0x56   :  { %3868 = shalt.err (!%p3865_p6)
}
  0x57   :  { %s3989_s22 = smov [#allocation12]   ;;  %s3869_s8 = scalar_lea.vmem %s107_s20, 16 }
  0x58   :  { %87 = dma.vmem_to_smem %s85_s17, 16, %s3989_s22, [#allocation11]  }
  0x59   :  { %p3870_p7 = scmp.ne.s32.totalorder %s107_s20, %s3869_s8  ;;  %p3874_p8 = scmp.lt.s32.totalorder %s107_s20, %s107_s20 }
  0x5a   :  { %p3875_p9 = scmp.lt.s32.totalorder %s3869_s8, %s3869_s8 }
  0x5c   :  { %p3876_p10 = por %p3875_p9, %p3874_p8 }
  0x5e   :  { %p3877_p11 = pnand %p3876_p10, %p3870_p7 }
  0x60   :  { %3880 = shalt.err (!%p3877_p11)
}
  0x61   :  { %s3990_s6 = smov [#allocation15]   ;;  %s128_s26 = sshll.u32 %s8078_s11, 4  ;;  %s129_s26 = int_to_ptr.vmem [resolvable:$true] %s128_s26 }
  0x62   :  { %109 = dma.vmem_to_smem %s107_s20, 16, %s3990_s6, [#allocation14]  }
  0x63   :  { %s138_s28 = sshll.u32 %s8079_s12, 4  ;;  %s3881_s29 = scalar_lea.vmem %s129_s26, 16  ;;  %s139_s28 = int_to_ptr.vmem [resolvable:$true] %s138_s28 }
  0x64   :  { %p3882_p12 = scmp.ne.s32.totalorder %s129_s26, %s3881_s29  ;;  %p3886_p13 = scmp.lt.s32.totalorder %s129_s26, %s129_s26 }
  0x65   :  { %p3887_p0 = scmp.lt.s32.totalorder %s3881_s29, %s3881_s29 }
  0x67   :  { %p3888_p1 = por %p3887_p0, %p3886_p13 }
  0x69   :  { %p3889_p2 = pnand %p3888_p1, %p3882_p12 }
  0x6b   :  { %3892 = shalt.err (!%p3889_p2)
}
  0x6c   :  { %s3991_s3 = smov [#allocation18]   ;;  %s3893_s5 = scalar_lea.vmem %s139_s28, 16 }
  0x6d   :  { %131 = dma.vmem_to_smem %s129_s26, 16, %s3991_s3, [#allocation17]  }
  0x6e   :  { %p3894_p3 = scmp.ne.s32.totalorder %s139_s28, %s3893_s5  ;;  %p3898_p4 = scmp.lt.s32.totalorder %s139_s28, %s139_s28 }
  0x6f   :  { %p3899_p5 = scmp.lt.s32.totalorder %s3893_s5, %s3893_s5 }
  0x71   :  { %p3900_p6 = por %p3899_p5, %p3898_p4 }
  0x73   :  { %p3901_p7 = pnand %p3900_p6, %p3894_p3 }
  0x75   :  { %3904 = shalt.err (!%p3901_p7)
}
  0x76   :  { %s3992_s11 = smov [#allocation19]  }
  0x77   :  { %141 = dma.vmem_to_smem %s139_s28, 16, %s3992_s11, [#allocation20]  }
  0x78   :  { %3965 = dma.done.wait [#allocation6], 16  }
  0x79   :  { %3966 = vsyncadd [#allocation6], 4294967280 }
  0x7a   :  { %3967 = dma.done.wait [#allocation8], 400  }
  0x7b   :  { %3968 = vsyncadd [#allocation8], 4294966896 }
  0x7c   :  { %3969 = dma.done.wait [#allocation11], 32  }
  0x7d   :  { %3970 = vsyncadd [#allocation11], 4294967264 }
  0x7e   :  { %3971 = dma.done.wait [#allocation14], 32  }
  0x7f   :  { %3972 = vsyncadd [#allocation14], 4294967264 }
  0x80   :  { %3973 = dma.done.wait [#allocation17], 400  }
  0x81   :  { %3974 = vsyncadd [#allocation17], 4294966896 }
  0x82   :  { %3975 = dma.done.wait [#allocation20], 16  }
  0x83   :  { %3976 = vsyncadd [#allocation20], 4294967280 }
  0x84   :  { %174 = sfence }
  0x85   :  { %s4117_s12 = sld [smem:[#allocation4]] }
  0x86   :  { %s4119_s30 = sld [smem:[#allocation7]] }
  0x87   :  { %s4121_s2 = sld [smem:[#allocation4 + $0x1]] }
  0x88   :  { %s4123_s4 = sld [smem:[#allocation7 + $0x1]] }
  0x89   :  { %s4125_s0 = sld [smem:[#allocation4 + $0x2]] }
  0x8a   :  { %s4127_s17 = sld [smem:[#allocation7 + $0x2]] }
  0x8b   :  { %8611 = sst [smem:[#allocation33_spill]] %s4117_s12  ;;  %v178_v0 = vstv %s4117_s12 }
  0x8c   :  { %8612 = sst [smem:[#allocation34_spill]] %s4119_s30  ;;  %v182_v3 = vstv %s4119_s30 }
  0x8d   :  { %8613 = sst [smem:[#allocation35_spill]] %s4121_s2  ;;  %v188_v4 = vstv %s4121_s2 }
  0x8e   :  { %8614 = sst [smem:[#allocation36_spill]] %s4123_s4  ;;  %v192_v11 = vstv %s4123_s4 }
  0x8f   :  { %8615 = sst [smem:[#allocation37_spill]] %s4125_s0  ;;  %v198_v5 = vstv %s4125_s0 }
  0x90   :  { %8616 = sst [smem:[#allocation38_spill]] %s4127_s17  ;;  %v202_v15 = vstv %s4127_s17 }
  0x91   :  { %s4129_s18 = sld [smem:[#allocation4 + $0x3]] }
  0x92   :  { %s4131_s19 = sld [smem:[#allocation7 + $0x3]] }
  0x93   :  { %s4133_s20 = sld [smem:[#allocation4 + $0x4]] }
  0x94   :  { %s4135_s21 = sld [smem:[#allocation7 + $0x4]] }
  0x95   :  { %s4137_s22 = sld [smem:[#allocation4 + $0x5]] }
  0x96   :  { %s4139_s8 = sld [smem:[#allocation7 + $0x5]] }
  0x97   :  { %8617 = sst [smem:[#allocation39_spill]] %s4129_s18  ;;  %v208_v6 = vstv %s4129_s18 }
  0x98   :  { %8618 = sst [smem:[#allocation40_spill]] %s4131_s19  ;;  %v212_v16 = vstv %s4131_s19 }
  0x99   :  { %8619 = sst [smem:[#allocation41_spill]] %s4133_s20  ;;  %v218_v7 = vstv %s4133_s20 }
  0x9a   :  { %8620 = sst [smem:[#allocation42_spill]] %s4135_s21  ;;  %v222_v17 = vstv %s4135_s21 }
  0x9b   :  { %8621 = sst [smem:[#allocation43_spill]] %s4137_s22  ;;  %v228_v8 = vstv %s4137_s22 }
  0x9c   :  { %8622 = sst [smem:[#allocation44_spill]] %s4139_s8  ;;  %v232_v19 = vstv %s4139_s8 }
  0x9d   :  { %s4141_s6 = sld [smem:[#allocation4 + $0x6]] }
  0x9e   :  { %s4143_s9 = sld [smem:[#allocation7 + $0x6]] }
  0x9f   :  { %s4145_s25 = sld [smem:[#allocation4 + $0x7]] }
  0xa0   :  { %s4147_s26 = sld [smem:[#allocation7 + $0x7]] }
  0xa1   :  { %s4149_s27 = sld [smem:[#allocation4 + $0x8]] }
  0xa2   :  { %s4151_s10 = sld [smem:[#allocation7 + $0x8]] }
  0xa3   :  { %8623 = sst [smem:[#allocation45_spill]] %s4141_s6  ;;  %v238_v20 = vstv %s4141_s6 }
  0xa4   :  { %s4153_s28 = sld [smem:[#allocation4 + $0x9]]  ;;  %v242_v31 = vstv %s4143_s9 }
  0xa5   :  { %8624 = sst [smem:[#allocation46_spill]] %s4145_s25  ;;  %v248_v26 = vstv %s4145_s25 }
  0xa6   :  { %s4155_s29 = sld [smem:[#allocation7 + $0x9]]  ;;  %v252_v36 = vstv %s4147_s26 }
  0xa7   :  { %s4157_s3 = sld [smem:[#allocation4 + $0xa]]  ;;  %v258_v29 = vstv %s4149_s27 }
  0xa8   :  { %s4159_s5 = sld [smem:[#allocation7 + $0xa]]  ;;  %v262_v40 = vstv %s4151_s10 }
  0xa9   :  { %s4161_s11 = sld [smem:[#allocation4 + $0xb]] }
  0xaa   :  { %8625 = sst [smem:[#allocation47_spill]] %s4153_s28  ;;  %v268_v30 = vstv %s4153_s28 }
  0xab   :  { %s4163_s23 = sld [smem:[#allocation7 + $0xb]] }
  0xac   :  { %8626 = sst [smem:[#allocation48_spill]] %s4155_s29 }
  0xad   :  { %s4165_s24 = sld [smem:[#allocation4 + $0xc]]  ;;  %v278_v32 = vstv %s4157_s3 }
  0xae   :  { %8627 = sst [smem:[#allocation49_spill]] %s4159_s5 }
  0xaf   :  { %8628 = sst [smem:[#allocation50_spill]] %s4161_s11  ;;  %v8145_v33 = vstv %s4161_s11 }
  0xb0   :  { %s4167_s14 = sld [smem:[#allocation7 + $0xc]] }
  0xb1   :  { %8629 = sst [smem:[#allocation51_spill]] %s4163_s23 }
  0xb2   :  { %s4169_s1 = sld [smem:[#allocation4 + $0xd]] }
  0xb3   :  { %8630 = sst [smem:[#allocation52_spill]] %s4165_s24  ;;  %v8144_v34 = vstv %s4165_s24 }
  0xb4   :  { %s4171_s16 = sld [smem:[#allocation7 + $0xd]] }
  0xb5   :  { %s4174_s13 = sld [smem:[#allocation4 + $0xe]] }
  0xb6   :  { %8631 = sst [smem:[#allocation53_spill]] %s4167_s14  ;;  %v8136_v48 = vstv %s4167_s14 }
  0xb7   :  { %s4176_s15 = sld [smem:[#allocation7 + $0xe]] }
  0xb8   :  { %8632 = sst [smem:[#allocation54_spill]] %s4169_s1  ;;  %v8140_v37 = vstv %s4169_s1 }
  0xb9   :  { %s8636_s5 = sld [smem:[#allocation201_spill]] }
  0xba   :  { %8633 = sst [smem:[#allocation55_spill]] %s4171_s16 }
  0xbb   :  { %8634 = sst [smem:[#allocation56_spill]] %s4174_s13  ;;  %v8131_v38 = vstv %s4174_s13 }
  0xbc   :  { %s4183_s29 = sld [smem:[#allocation4 + $0xf]] }
  0xbd   :  { %8635 = sst [smem:[#allocation57_spill]] %s4176_s15 }
  0xbe   :  { %s4188_s16 = sld [smem:[#allocation7 + $0xf]] }
  0xbf   :  { %v4181_v1 = vld [vmem:[%s8636_s5] sm:$0xff]  ;;  %s4192_s15 = sld [smem:[#allocation4 + $0x10]] }
  0xc0   :  { %v179_v2 = vmul.f32 %v178_v0, %v4181_v1  ;;  %s4197_s7 = sld [smem:[#allocation7 + $0x10]]  ;;  %v189_v10 = vmul.f32 %v188_v4, %v4181_v1  ;;  %v199_v12 = vmul.f32 %v198_v5, %v4181_v1  ;;  %v209_v13 = vmul.f32 %v208_v6, %v4181_v1 }
  0xc1   :  { %s4200_s23 = sld [smem:[#allocation4 + $0x11]]  ;;  %v219_v14 = vmul.f32 %v218_v7, %v4181_v1  ;;  %v229_v18 = vmul.f32 %v228_v8, %v4181_v1  ;;  %v239_v28 = vmul.f32 %v238_v20, %v4181_v1  ;;  %v249_v35 = vmul.f32 %v248_v26, %v4181_v1 }
  0xc2   :  { %8637 = sst [smem:[#allocation58_spill]] %s4183_s29  ;;  %v183_v9 = vadd.f32 %v182_v3, %v179_v2  ;;  %v193_v22 = vadd.f32 %v192_v11, %v189_v10  ;;  %v203_v23 = vadd.f32 %v202_v15, %v199_v12  ;;  %v213_v24 = vadd.f32 %v212_v16, %v209_v13 }
  0xc3   :  { %s4207_s5 = sld [smem:[#allocation7 + $0x11]]  ;;  %v223_v25 = vadd.f32 %v222_v17, %v219_v14  ;;  %v233_v27 = vadd.f32 %v232_v19, %v229_v18  ;;  %v259_v39 = vmul.f32 %v258_v29, %v4181_v1  ;;  %v269_v41 = vmul.f32 %v268_v30, %v4181_v1 }
  0xc4   :  { %8638 = sst [smem:[#allocation59_spill]] %s4188_s16  ;;  %v4233_v21 = vmax.f32 %v183_v9, 0.0  ;;  %v279_v43 = vmul.f32 %v278_v32, %v4181_v1  ;;  %v289_v45 = vmul.f32 %v8145_v33, %v4181_v1  ;;  %v299_v46 = vmul.f32 %v8144_v34, %v4181_v1 }
  0xc5   :  { %s4219_s30 = sld [smem:[#allocation4 + $0x12]]  ;;  %v309_v49 = vmul.f32 %v8140_v37, %v4181_v1  ;;  %v319_v50 = vmul.f32 %v8131_v38, %v4181_v1  ;;  %v243_v51 = vadd.f32 %v242_v31, %v239_v28  ;;  %v253_v52 = vadd.f32 %v252_v36, %v249_v35 }
  0xc6   :  { %s4227_s18 = sld [smem:[#allocation7 + $0x12]]  ;;  %v4311_v55 = vmax.f32 %v193_v22, 0.0  ;;  %v263_v56 = vadd.f32 %v262_v40, %v259_v39  ;;  %v8130_v58 = vstv %s4183_s29  ;;  %v4320_v59 = vmax.f32 %v203_v23, 0.0 }
  0xc7   :  { %8639 = sst [smem:[#allocation60_spill]] %s4200_s23  ;;  %v303_v62 = vadd.f32 %v8136_v48, %v299_v46  ;;  %v4330_v63 = vmax.f32 %v213_v24, 0.0  ;;  %v4332_v2 = vmax.f32 %v223_v25, 0.0  ;;  %v4340_v12 = vmax.f32 %v233_v27, 0.0 }
  0xc8   :  { %s4231_s20 = sld [smem:[#allocation4 + $0x13]]  ;;  %v4342_v13 = vmax.f32 %v243_v51, 0.0  ;;  %v4344_v14 = vmax.f32 %v253_v52, 0.0  ;;  %v329_v18 = vmul.f32 %v8130_v58, %v4181_v1  ;;  %v4351_v22 = vmax.f32 %v263_v56, 0.0 }
  0xc9   :  { %s4237_s0 = sld [smem:[#allocation7 + $0x13]]  ;;  %v8125_v24 = vstv %s4188_s16  ;;  %v8124_v25 = vstv %s4192_s15  ;;  %v4363_v35 = vmax.f32 %v303_v62, 0.0  ;;  %v8123_v39 = vstv %s4200_s23 }
  0xca   :  { %s4246_s22 = sld [smem:[#allocation9]]  ;;  %v8181_v56 = vstv %s4197_s7 }
  0xcb   :  { %s8641_s17 = sld [smem:[#allocation48_spill]]  ;;  %v8141_v62 = vstv %s4219_s30 }
  0xcc   :  { %s4255_s19 = sld [smem:[#allocation9 + $0x80]] }
  0xcd   :  { %s8642_s21 = sld [smem:[#allocation49_spill]] }
  0xce   :  { %s4261_s8 = sld [smem:[#allocation9 + $0x100]] }
  0xcf   :  { %s8644_s6 = sld [smem:[#allocation51_spill]] }
  0xd0   :  { %8640 = sst [smem:[#allocation61_spill]] %s4246_s22 }
  0xd1   :  { %s4269_s4 = sld [smem:[#allocation9 + $0x180]]  ;;  %v272_v42 = vstv %s8641_s17 }
  0xd2   :  { %s8646_s2 = sld [smem:[#allocation55_spill]]  ;;  %v273_v57 = vadd.f32 %v272_v42, %v269_v41  ;;  %v8129_v46 = vstv %s4255_s19 }
  0xd3   :  { %s8647_s25 = sld [smem:[#allocation57_spill]]  ;;  %v8184_v44 = vstv %s8642_s21 }
  0xd4   :  { %8643 = sst [smem:[#allocation49_spill]] %s4261_s8  ;;  %v283_v60 = vadd.f32 %v8184_v44, %v279_v43  ;;  %v4353_v23 = vmax.f32 %v273_v57, 0.0  ;;  %v349_v57 = vmul.f32 %v8123_v39, %v4181_v1 }
  0xd5   :  { %s4279_s12 = sld [smem:[#allocation9 + $0x200]]  ;;  %v8143_v47 = vstv %s8644_s6 }
  0xd6   :  { %s4291_s28 = sld [smem:[#allocation9 + $0x280]]  ;;  %v293_v61 = vadd.f32 %v8143_v47, %v289_v45  ;;  %v4359_v27 = vmax.f32 %v283_v60, 0.0  ;;  %v8128_v45 = vstv %s4246_s22  ;;  %v8138_v60 = vstv %s4261_s8 }
  0xd7   :  { %8645 = sst [smem:[#allocation62_spill]] %s4269_s4  ;;  %v8148_v39 = vstv %s4269_s4 }
  0xd8   :  { %s4301_s11 = sld [smem:[#allocation9 + $0x300]]  ;;  %v8135_v53 = vstv %s8646_s2  ;;  %v4361_v28 = vmax.f32 %v293_v61, 0.0  ;;  %v391_v37 = vmul.f32 %v8148_v39, %v4330_v63 }
  0xd9   :  { %v8126_v54 = vstv %s8647_s25  ;;  %s4309_s24 = sld [smem:[#allocation9 + $0x380]]  ;;  %v313_v9 = vadd.f32 %v8135_v53, %v309_v49  ;;  %v333_v49 = vadd.f32 %v8125_v24, %v329_v18  ;;  %v383_v18 = vmul.f32 %v8129_v46, %v4311_v55 }
  0xda   :  { %s4318_s13 = sld [smem:[#allocation9 + $0x400]]  ;;  %v323_v10 = vadd.f32 %v8126_v54, %v319_v50  ;;  %v339_v50 = vmul.f32 %v8124_v25, %v4181_v1  ;;  %v387_v46 = vmul.f32 %v8138_v60, %v4320_v59 }
  0xdb   :  { %8648 = sst [smem:[#allocation63_spill]] %s4279_s12  ;;  %v4368_v41 = vmax.f32 %v313_v9, 0.0  ;;  %v8133_v51 = vstv %s4279_s12  ;;  %v8147_v9 = vstv %s4231_s20 }
  0xdc   :  { %8649 = sst [smem:[#allocation64_spill]] %s4291_s28  ;;  %v4370_v43 = vmax.f32 %v323_v10, 0.0  ;;  %v8134_v52 = vstv %s4291_s28  ;;  %v379_v10 = vmul.f32 %v8128_v45, %v4233_v21  ;;  %v395_v25 = vmul.f32 %v8133_v51, %v4332_v2 }
  0xdd   :  { %s4328_s1 = sld [smem:[#allocation9 + $0x480]]  ;;  %v401_v24 = vmul.f32 %v8134_v52, %v4340_v12  ;;  %v8156_v45 = vstv %s4207_s5  ;;  %v359_v51 = vmul.f32 %v8141_v62, %v4181_v1  ;;  %v8158_v52 = vstv %s4227_s18 }
  0xde   :  { %8650 = sst [smem:[#allocation65_spill]] %s4301_s11  ;;  %v8139_v61 = vstv %s4301_s11  ;;  %v369_v60 = vmul.f32 %v8147_v9, %v4181_v1  ;;  %v397_v47 = vadd.f32 %v395_v25, %v379_v10  ;;  %v353_v10 = vadd.f32 %v8156_v45, %v349_v57 }
  0xdf   :  { %8651 = sst [smem:[#allocation66_spill]] %s4309_s24  ;;  %v8149_v54 = vstv %s4309_s24  ;;  %v407_v58 = vmul.f32 %v8139_v61, %v4342_v13  ;;  %v8179_v61 = vstv %s4237_s0  ;;  %v403_v34 = vadd.f32 %v401_v24, %v383_v18 }
  0xe0   :  { %8652 = sst [smem:[#allocation67_spill]] %s4318_s13  ;;  %v8151_v38 = vstv %s4318_s13  ;;  %v413_v62 = vmul.f32 %v8149_v54, %v4344_v14  ;;  %v343_v24 = vadd.f32 %v8181_v56, %v339_v50  ;;  %v373_v50 = vadd.f32 %v8179_v61, %v369_v60 }
  0xe1   :  { %s4338_s17 = sld [smem:[#allocation9 + $0x500]]  ;;  %v419_v33 = vmul.f32 %v8151_v38, %v4351_v22  ;;  %v409_v9 = vadd.f32 %v407_v58, %v387_v46  ;;  %v4466_v58 = vmax.f32 %v333_v49, 0.0  ;;  %v363_v46 = vadd.f32 %v8158_v52, %v359_v51 }
  0xe2   :  { %s4349_s14 = sld [smem:[#allocation9 + $0x580]]  ;;  %v4491_v60 = vmax.f32 %v343_v24, 0.0 }
  0xe3   :  { %8653 = sst [smem:[#allocation68_spill]] %s4328_s1  ;;  %v8154_v53 = vstv %s4328_s1  ;;  %v421_v57 = vadd.f32 %v419_v33, %v397_v47  ;;  %v4493_v33 = vmax.f32 %v353_v10, 0.0  ;;  %v4505_v24 = vmax.f32 %v363_v46, 0.0 }
  0xe4   :  { %s4357_s25 = sld [smem:[#allocation9 + $0x600]]  ;;  %v425_v39 = vmul.f32 %v8154_v53, %v4353_v23  ;;  %v4507_v10 = vmax.f32 %v373_v50, 0.0 }
  0xe5   :  { %s4366_s29 = sld [smem:[#allocation9 + $0x680]] }
  0xe6   :  { %s4374_s2 = sld [smem:[#allocation9 + $0x700]]  ;;  %v427_v51 = vadd.f32 %v425_v39, %v403_v34 }
  0xe7   :  { %8654 = sst [smem:[#allocation69_spill]] %s4338_s17  ;;  %v8153_v48 = vstv %s4338_s17 }
  0xe8   :  { %8655 = sst [smem:[#allocation70_spill]] %s4349_s14  ;;  %v8176_v1 = vstv %s4349_s14  ;;  %v431_v54 = vmul.f32 %v8153_v48, %v4359_v27  ;;  %v415_v48 = vadd.f32 %v413_v62, %v391_v37 }
  0xe9   :  { %s4383_s6 = sld [smem:[#allocation9 + $0x780]]  ;;  %v437_v53 = vmul.f32 %v8176_v1, %v4361_v28 }
  0xea   :  { %8656 = sst [smem:[#allocation71_spill]] %s4357_s25  ;;  %v8175_v25 = vstv %s4357_s25  ;;  %v433_v52 = vadd.f32 %v431_v54, %v409_v9 }
  0xeb   :  { %8657 = sst [smem:[#allocation72_spill]] %s4366_s29  ;;  %v8163_v18 = vstv %s4366_s29  ;;  %v443_v45 = vmul.f32 %v8175_v25, %v4363_v35  ;;  %v439_v34 = vadd.f32 %v437_v53, %v415_v48 }
  0xec   :  { %8658 = sst [smem:[#allocation73_spill]] %s4374_s2  ;;  %v8162_v38 = vstv %s4374_s2  ;;  %v449_v37 = vmul.f32 %v8163_v18, %v4368_v41 }
  0xed   :  { %s4391_s16 = sld [smem:[#allocation9 + $0x800]]  ;;  %v455_v62 = vmul.f32 %v8162_v38, %v4370_v43  ;;  %v445_v38 = vadd.f32 %v443_v45, %v421_v57 }
  0xee   :  { %s4401_s23 = sld [smem:[#allocation9 + $0x880]]  ;;  %v451_v48 = vadd.f32 %v449_v37, %v427_v51 }
  0xef   :  { %8659 = sst [smem:[#allocation74_spill]] %s4383_s6  ;;  %v8165_v49 = vstv %s4383_s6  ;;  %v457_v53 = vadd.f32 %v455_v62, %v433_v52 }
  0xf0   :  { %s4411_s22 = sld [smem:[#allocation9 + $0x900]]  ;;  %v461_v54 = vmul.f32 %v8165_v49, %v4466_v58 }
  0xf1   :  { %s4421_s12 = sld [smem:[#allocation9 + $0x980]] }
  0xf2   :  { %s4429_s28 = sld [smem:[#allocation10]]  ;;  %v463_v52 = vadd.f32 %v461_v54, %v439_v34 }
  0xf3   :  { %s4441_s11 = sld [smem:[#allocation12]]  ;;  %v8170_v39 = vstv %s4391_s16 }
  0xf4   :  { %8660 = sst [smem:[#allocation75_spill]] %s4401_s23  ;;  %v467_v45 = vmul.f32 %v8170_v39, %v4491_v60  ;;  %v8187_v50 = vstv %s4401_s23 }
  0xf5   :  { %s4447_s8 = sld [smem:[#allocation9 + $0x1]] }
  0xf6   :  { %8661 = sst [smem:[#allocation76_spill]] %s4411_s22  ;;  %v8190_v39 = vstv %s4411_s22 }
  0xf7   :  { %8662 = sst [smem:[#allocation77_spill]] %s4421_s12 }
  0xf8   :  { %8663 = sst [smem:[#allocation78_spill]] %s4429_s28 }
  0xf9   :  { %8664 = sst [smem:[#allocation79_spill]] %s4441_s11 }
  0xfa   :  { %s4456_s24 = sld [smem:[#allocation9 + $0x81]] }
  0xfb   :  { %8665 = sst [smem:[#allocation80_spill]] %s4447_s8  ;;  %v8168_v47 = vstv %s4447_s8 }
  0xfc   :  { %s4464_s13 = sld [smem:[#allocation9 + $0x101]]  ;;  %v507_v49 = vmul.f32 %v8168_v47, %v4233_v21 }
  0xfd   :  { %s4473_s17 = sld [smem:[#allocation9 + $0x181]] }
  0xfe   :  { %s4481_s1 = sld [smem:[#allocation9 + $0x201]] }
  0xff   :  { %s4489_s14 = sld [smem:[#allocation9 + $0x281]] }
 0x100   :  { %8666 = sst [smem:[#allocation81_spill]] %s4456_s24  ;;  %v8171_v9 = vstv %s4456_s24 }
 0x101   :  { %s4496_s25 = sld [smem:[#allocation9 + $0x301]]  ;;  %v511_v57 = vmul.f32 %v8171_v9, %v4311_v55 }
 0x102   :  { %8667 = sst [smem:[#allocation82_spill]] %s4464_s13  ;;  %v8173_v18 = vstv %s4464_s13 }
 0x103   :  { %8668 = sst [smem:[#allocation83_spill]] %s4473_s17  ;;  %v8178_v46 = vstv %s4473_s17  ;;  %v515_v37 = vmul.f32 %v8173_v18, %v4320_v59  ;;  %v8192_v18 = vstv %s4421_s12 }
 0x104   :  { %8669 = sst [smem:[#allocation84_spill]] %s4481_s1  ;;  %v8174_v51 = vstv %s4481_s1  ;;  %v519_v9 = vmul.f32 %v8178_v46, %v4330_v63  ;;  %v473_v46 = vmul.f32 %v8187_v50, %v4493_v33 }
 0x105   :  { %8670 = sst [smem:[#allocation85_spill]] %s4489_s14  ;;  %v523_v62 = vmul.f32 %v8174_v51, %v4332_v2  ;;  %v8180_v47 = vstv %s4489_s14 }
 0x106   :  { %s4503_s2 = sld [smem:[#allocation9 + $0x381]]  ;;  %v529_v34 = vmul.f32 %v8180_v47, %v4340_v12 }
 0x107   :  { %8671 = sst [smem:[#allocation86_spill]] %s4496_s25  ;;  %v8183_v54 = vstv %s4496_s25  ;;  %v525_v51 = vadd.f32 %v523_v62, %v507_v49  ;;  %v479_v49 = vmul.f32 %v8190_v39, %v4505_v24 }
 0x108   :  { %s4510_s29 = sld [smem:[#allocation9 + $0x401]]  ;;  %v535_v25 = vmul.f32 %v8183_v54, %v4342_v13  ;;  %v531_v61 = vadd.f32 %v529_v34, %v511_v57  ;;  %v485_v57 = vmul.f32 %v8192_v18, %v4507_v10  ;;  %v475_v18 = vadd.f32 %v473_v46, %v451_v48 }
 0x109   :  { %s4516_s6 = sld [smem:[#allocation9 + $0x481]] }
 0x10a   :  { %s4526_s4 = sld [smem:[#allocation9 + $0x501]]  ;;  %v537_v62 = vadd.f32 %v535_v25, %v515_v37  ;;  %v469_v25 = vadd.f32 %v467_v45, %v445_v38  ;;  %v481_v38 = vadd.f32 %v479_v49, %v457_v53  ;;  %v487_v48 = vadd.f32 %v485_v57, %v463_v52 }
 0x10b   :  { %s4535_s8 = sld [smem:[#allocation9 + $0x581]] }
 0x10c   :  { %8672 = sst [smem:[#allocation87_spill]] %s4503_s2  ;;  %v8186_v1 = vstv %s4503_s2 }
 0x10d   :  { %s4545_s13 = sld [smem:[#allocation9 + $0x601]]  ;;  %v541_v47 = vmul.f32 %v8186_v1, %v4344_v14 }
 0x10e   :  { %8673 = sst [smem:[#allocation88_spill]] %s4510_s29  ;;  %v8189_v56 = vstv %s4510_s29 }
 0x10f   :  { %8674 = sst [smem:[#allocation89_spill]] %s4516_s6  ;;  %v547_v54 = vmul.f32 %v8189_v56, %v4351_v22  ;;  %v8193_v44 = vstv %s4516_s6  ;;  %v543_v34 = vadd.f32 %v541_v47, %v519_v9 }
 0x110   :  { %8675 = sst [smem:[#allocation90_spill]] %s4526_s4  ;;  %v553_v1 = vmul.f32 %v8193_v44, %v4353_v23  ;;  %v8369_v50 = vstv %s4526_s4 }
 0x111   :  { %8676 = sst [smem:[#allocation91_spill]] %s4535_s8  ;;  %v549_v37 = vadd.f32 %v547_v54, %v525_v51  ;;  %v559_v56 = vmul.f32 %v8369_v50, %v4359_v27  ;;  %v8349_v39 = vstv %s4535_s8 }
 0x112   :  { %s4552_s1 = sld [smem:[#allocation9 + $0x681]]  ;;  %v555_v47 = vadd.f32 %v553_v1, %v531_v61  ;;  %v565_v9 = vmul.f32 %v8349_v39, %v4361_v28 }
 0x113   :  { %8677 = sst [smem:[#allocation92_spill]] %s4545_s13  ;;  %v8346_v44 = vstv %s4545_s13  ;;  %v561_v45 = vadd.f32 %v559_v56, %v537_v62 }
 0x114   :  { %s4561_s14 = sld [smem:[#allocation9 + $0x701]]  ;;  %v571_v51 = vmul.f32 %v8346_v44, %v4363_v35  ;;  %v567_v61 = vadd.f32 %v565_v9, %v543_v34  ;;  %v489_v34 = vadd.f32 %v475_v18, %v469_v25 }
 0x115   :  { %s4570_s25 = sld [smem:[#allocation9 + $0x781]] }
 0x116   :  { %s4579_s2 = sld [smem:[#allocation9 + $0x801]]  ;;  %v573_v53 = vadd.f32 %v571_v51, %v549_v37 }
 0x117   :  { %s4585_s29 = sld [smem:[#allocation9 + $0x881]] }
 0x118   :  { %8678 = sst [smem:[#allocation93_spill]] %s4552_s1  ;;  %v8201_v54 = vstv %s4552_s1 }
 0x119   :  { %s4591_s6 = sld [smem:[#allocation9 + $0x901]]  ;;  %v577_v1 = vmul.f32 %v8201_v54, %v4368_v41 }
 0x11a   :  { %8679 = sst [smem:[#allocation94_spill]] %s4561_s14  ;;  %v8200_v46 = vstv %s4561_s14 }
 0x11b   :  { %8680 = sst [smem:[#allocation95_spill]] %s4570_s25  ;;  %v583_v56 = vmul.f32 %v8200_v46, %v4370_v43  ;;  %v8203_v49 = vstv %s4570_s25  ;;  %v579_v62 = vadd.f32 %v577_v1, %v555_v47  ;;  %v491_v46 = vadd.f32 %v487_v48, %v481_v38 }
 0x11c   :  { %8681 = sst [smem:[#allocation96_spill]] %s4579_s2  ;;  %v589_v52 = vmul.f32 %v8203_v49, %v4466_v58  ;;  %v8235_v57 = vstv %s4579_s2 }
 0x11d   :  { %8682 = sst [smem:[#allocation97_spill]] %s4585_s29  ;;  %v585_v9 = vadd.f32 %v583_v56, %v561_v45  ;;  %v595_v37 = vmul.f32 %v8235_v57, %v4491_v60  ;;  %v8226_v51 = vstv %s4585_s29 }
 0x11e   :  { %s4597_s4 = sld [smem:[#allocation9 + $0x981]]  ;;  %v591_v54 = vadd.f32 %v589_v52, %v567_v61  ;;  %v601_v47 = vmul.f32 %v8226_v51, %v4493_v33  ;;  %v493_v61 = vadd.f32 %v491_v46, %v489_v34 }
 0x11f   :  { %8683 = sst [smem:[#allocation98_spill]] %s4591_s6  ;;  %v8223_v1 = vstv %s4591_s6  ;;  %v597_v49 = vadd.f32 %v595_v37, %v573_v53 }
 0x120   :  { %s4603_s8 = sld [smem:[#allocation10 + $0x1]]  ;;  %v607_v18 = vmul.f32 %v8223_v1, %v4505_v24  ;;  %v603_v45 = vadd.f32 %v601_v47, %v579_v62  ;;  %v8382_v62 = vstv %s4429_s28 }
 0x121   :  { %s4609_s13 = sld [smem:[#allocation12 + $0x1]]  ;;  %v497_v34 = vadd.f32 %v8382_v62, %v493_v61 }
 0x122   :  { %s4615_s1 = sld [smem:[#allocation9 + $0x2]]  ;;  %v609_v48 = vadd.f32 %v607_v18, %v585_v9  ;;  %v617_v56 = vadd.f32 %v603_v45, %v597_v49 }
 0x123   :  { %s4621_s14 = sld [smem:[#allocation9 + $0x82]] }
 0x124   :  { %8684 = sst [smem:[#allocation99_spill]] %s4597_s4  ;;  %v8218_v25 = vstv %s4597_s4 }
 0x125   :  { %s4627_s25 = sld [smem:[#allocation9 + $0x102]]  ;;  %v613_v38 = vmul.f32 %v8218_v25, %v4507_v10 }
 0x126   :  { %8685 = sst [smem:[#allocation100_spill]] %s4603_s8 }
 0x127   :  { %8686 = sst [smem:[#allocation101_spill]] %s4609_s13  ;;  %v615_v53 = vadd.f32 %v613_v38, %v591_v54  ;;  %v8220_v54 = vstv %s4603_s8 }
 0x128   :  { %8687 = sst [smem:[#allocation102_spill]] %s4615_s1  ;;  %v8212_v52 = vstv %s4615_s1 }
 0x129   :  { %8688 = sst [smem:[#allocation103_spill]] %s4621_s14  ;;  %v8214_v37 = vstv %s4621_s14  ;;  %v619_v47 = vadd.f32 %v615_v53, %v609_v48  ;;  %v637_v46 = vmul.f32 %v8212_v52, %v4233_v21 }
 0x12a   :  { %s4633_s2 = sld [smem:[#allocation9 + $0x182]]  ;;  %v641_v45 = vmul.f32 %v8214_v37, %v4311_v55 }
 0x12b   :  { %8689 = sst [smem:[#allocation104_spill]] %s4627_s25  ;;  %v8216_v9 = vstv %s4627_s25  ;;  %v621_v18 = vadd.f32 %v619_v47, %v617_v56 }
 0x12c   :  { %s4638_s29 = sld [smem:[#allocation9 + $0x202]]  ;;  %v645_v48 = vmul.f32 %v8216_v9, %v4320_v59  ;;  %v8380_v9 = vstv %s4441_s11 }
 0x12d   :  { %s4640_s17 = sld [smem:[#allocation9 + $0x282]]  ;;  %v625_v61 = vadd.f32 %v8220_v54, %v621_v18  ;;  %v499_v54 = vmax.f32 %v497_v34, 0.0  ;;  %v8345_v34 = vstv %s4609_s13 }
 0x12e   :  { %s4643_s6 = sld [smem:[#allocation9 + $0x302]] }
 0x12f   :  { %s4647_s4 = sld [smem:[#allocation9 + $0x382]] }
 0x130   :  { %8690 = sst [smem:[#allocation105_spill]] %s4633_s2  ;;  %v8221_v49 = vstv %s4633_s2 }
 0x131   :  { %s4650_s24 = sld [smem:[#allocation9 + $0x402]]  ;;  %v649_v56 = vmul.f32 %v8221_v49, %v4330_v63 }
 0x132   :  { %8691 = sst [smem:[#allocation106_spill]] %s4638_s29  ;;  %v8217_v38 = vstv %s4638_s29 }
 0x133   :  { %8692 = sst [smem:[#allocation107_spill]] %s4640_s17  ;;  %v653_v53 = vmul.f32 %v8217_v38, %v4332_v2  ;;  %v8222_v52 = vstv %s4640_s17 }
 0x134   :  { %8693 = sst [smem:[#allocation108_spill]] %s4643_s6  ;;  %v659_v47 = vmul.f32 %v8222_v52, %v4340_v12  ;;  %v8225_v37 = vstv %s4643_s6 }
 0x135   :  { %8694 = sst [smem:[#allocation109_spill]] %s4647_s4  ;;  %v655_v38 = vadd.f32 %v653_v53, %v637_v46  ;;  %v665_v25 = vmul.f32 %v8225_v37, %v4342_v13  ;;  %v8228_v18 = vstv %s4647_s4  ;;  %v627_v46 = vmax.f32 %v625_v61, 0.0 }
 0x136   :  { %s4657_s12 = sld [smem:[#allocation9 + $0x482]]  ;;  %v661_v49 = vadd.f32 %v659_v47, %v641_v45  ;;  %v671_v52 = vmul.f32 %v8228_v18, %v4344_v14 }
 0x137   :  { %8695 = sst [smem:[#allocation110_spill]] %s4650_s24  ;;  %v8231_v1 = vstv %s4650_s24  ;;  %v667_v53 = vadd.f32 %v665_v25, %v645_v48 }
 0x138   :  { %s4665_s22 = sld [smem:[#allocation9 + $0x502]]  ;;  %v677_v37 = vmul.f32 %v8231_v1, %v4351_v22  ;;  %v673_v45 = vadd.f32 %v671_v52, %v649_v56  ;;  %v503_v1 = vmul.f32 %v8380_v9, %v499_v54 }
 0x139   :  { %s4674_s1 = sld [smem:[#allocation9 + $0x582]] }
 0x13a   :  { %s4685_s25 = sld [smem:[#allocation9 + $0x602]]  ;;  %v679_v25 = vadd.f32 %v677_v37, %v655_v38  ;;  %v631_v37 = vmul.f32 %v8345_v34, %v627_v46 }
 0x13b   :  { %s4692_s8 = sld [smem:[#allocation9 + $0x682]] }
 0x13c   :  { %8696 = sst [smem:[#allocation111_spill]] %s4657_s12  ;;  %v8232_v51 = vstv %s4657_s12 }
 0x13d   :  { %s4698_s17 = sld [smem:[#allocation9 + $0x702]]  ;;  %v683_v47 = vmul.f32 %v8232_v51, %v4353_v23 }
 0x13e   :  { %8697 = sst [smem:[#allocation112_spill]] %s4665_s22  ;;  %v8234_v18 = vstv %s4665_s22 }
 0x13f   :  { %8698 = sst [smem:[#allocation113_spill]] %s4674_s1  ;;  %v689_v48 = vmul.f32 %v8234_v18, %v4359_v27  ;;  %v8238_v61 = vstv %s4674_s1  ;;  %v685_v52 = vadd.f32 %v683_v47, %v661_v49 }
 0x140   :  { %8699 = sst [smem:[#allocation114_spill]] %s4685_s25  ;;  %v695_v56 = vmul.f32 %v8238_v61, %v4361_v28  ;;  %v8256_v51 = vstv %s4685_s25 }
 0x141   :  { %8700 = sst [smem:[#allocation115_spill]] %s4692_s8  ;;  %v691_v38 = vadd.f32 %v689_v48, %v667_v53  ;;  %v701_v18 = vmul.f32 %v8256_v51, %v4363_v35  ;;  %v8243_v57 = vstv %s4692_s8 }
 0x142   :  { %s4704_s6 = sld [smem:[#allocation9 + $0x782]]  ;;  %v697_v54 = vadd.f32 %v695_v56, %v673_v45  ;;  %v707_v49 = vmul.f32 %v8243_v57, %v4368_v41  ;;  %v4753_v57 = vadd.f32 %v631_v37, %v503_v1 }
 0x143   :  { %8701 = sst [smem:[#allocation116_spill]] %s4698_s17  ;;  %v8244_v47 = vstv %s4698_s17  ;;  %v703_v61 = vadd.f32 %v701_v18, %v679_v25 }
 0x144   :  { %s4711_s4 = sld [smem:[#allocation9 + $0x802]]  ;;  %v713_v46 = vmul.f32 %v8244_v47, %v4370_v43  ;;  %v709_v48 = vadd.f32 %v707_v49, %v685_v52 }
 0x145   :  { %s4717_s24 = sld [smem:[#allocation9 + $0x882]] }
 0x146   :  { %s4725_s12 = sld [smem:[#allocation9 + $0x902]]  ;;  %v715_v18 = vadd.f32 %v713_v46, %v691_v38 }
 0x147   :  { %s4733_s22 = sld [smem:[#allocation9 + $0x982]] }
 0x148   :  { %8702 = sst [smem:[#allocation117_spill]] %s4704_s6  ;;  %v8254_v53 = vstv %s4704_s6 }
 0x149   :  { %s4739_s1 = sld [smem:[#allocation10 + $0x2]]  ;;  %v719_v45 = vmul.f32 %v8254_v53, %v4466_v58 }
 0x14a   :  { %8703 = sst [smem:[#allocation118_spill]] %s4711_s4  ;;  %v8253_v56 = vstv %s4711_s4 }
 0x14b   :  { %8704 = sst [smem:[#allocation119_spill]] %s4717_s24  ;;  %v725_v25 = vmul.f32 %v8253_v56, %v4491_v60  ;;  %v8255_v47 = vstv %s4717_s24  ;;  %v721_v49 = vadd.f32 %v719_v45, %v697_v54 }
 0x14c   :  { %8705 = sst [smem:[#allocation120_spill]] %s4725_s12  ;;  %v731_v1 = vmul.f32 %v8255_v47, %v4493_v33  ;;  %v8258_v37 = vstv %s4725_s12 }
 0x14d   :  { %8706 = sst [smem:[#allocation121_spill]] %s4733_s22  ;;  %v727_v46 = vadd.f32 %v725_v25, %v703_v61  ;;  %v737_v56 = vmul.f32 %v8258_v37, %v4505_v24  ;;  %v8257_v53 = vstv %s4733_s22 }
 0x14e   :  { %s4745_s13 = sld [smem:[#allocation12 + $0x2]]  ;;  %v733_v45 = vadd.f32 %v731_v1, %v709_v48  ;;  %v743_v47 = vmul.f32 %v8257_v53, %v4507_v10 }
 0x14f   :  { %8707 = sst [smem:[#allocation122_spill]] %s4739_s1  ;;  %v8266_v51 = vstv %s4739_s1  ;;  %v739_v61 = vadd.f32 %v737_v56, %v715_v18 }
 0x150   :  { %s4751_s8 = sld [smem:[#allocation9 + $0x3]]  ;;  %v745_v1 = vadd.f32 %v743_v47, %v721_v49  ;;  %v747_v53 = vadd.f32 %v733_v45, %v727_v46 }
 0x151   :  { %s4759_s17 = sld [smem:[#allocation9 + $0x83]] }
 0x152   :  { %s8712_s14 = sld [smem:[#allocation201_spill]]  ;;  %v749_v47 = vadd.f32 %v745_v1, %v739_v61 }
 0x153   :  { %s4770_s4 = sld [smem:[#allocation9 + $0x103]] }
 0x154   :  { %8709 = sst [smem:[#allocation33_spill]] %s4745_s13  ;;  %v8278_v25 = vstv %s4745_s13  ;;  %v751_v61 = vadd.f32 %v749_v47, %v747_v53 }
 0x155   :  { %s4779_s2 = sld [smem:[#allocation9 + $0x183]] }
 0x156   :  { %8710 = sst [smem:[#allocation123_spill]] %s4751_s8  ;;  %v8339_v37 = vstv %s4751_s8 }
 0x157   :  { %s4788_s6 = sld [smem:[#allocation9 + $0x203]]  ;;  %v767_v56 = vmul.f32 %v8339_v37, %v4233_v21  ;;  %v8337_v18 = vstv %s4759_s17 }
 0x158   :  { %v4764_v52 = vld [vmem:[%s8712_s14 + $0x8] sm:$0xff]  ;;  %s4793_s14 = sld [smem:[#allocation9 + $0x283]]  ;;  %v771_v49 = vmul.f32 %v8337_v18, %v4311_v55  ;;  %v8791_v18 = vstv %s4207_s5 }
 0x159   :  { %8715 = sst [smem:[#allocation35_spill]] %s4770_s4  ;;  %v180_v38 = vmul.f32 %v178_v0, %v4764_v52  ;;  %v190_v54 = vmul.f32 %v188_v4, %v4764_v52  ;;  %v200_v48 = vmul.f32 %v198_v5, %v4764_v52  ;;  %v210_v46 = vmul.f32 %v208_v6, %v4764_v52 }
 0x15a   :  { %s4801_s11 = sld [smem:[#allocation9 + $0x303]]  ;;  %v230_v53 = vmul.f32 %v228_v8, %v4764_v52 }
 0x15b   :  { %v184_v0 = vadd.f32 %v182_v3, %v180_v38  ;;  %v194_v4 = vadd.f32 %v192_v11, %v190_v54  ;;  %s4809_s28 = sld [smem:[#allocation9 + $0x383]]  ;;  %v204_v5 = vadd.f32 %v202_v15, %v200_v48  ;;  %v8263_v38 = vstv %s4770_s4 }
 0x15c   :  { %s4819_s8 = sld [smem:[#allocation9 + $0x403]]  ;;  %v775_v54 = vmul.f32 %v8263_v38, %v4320_v59  ;;  %v8336_v15 = vstv %s4779_s2  ;;  %v214_v48 = vadd.f32 %v212_v16, %v210_v46 }
 0x15d   :  { %v4803_v3 = vmax.f32 %v184_v0, 0.0  ;;  %v4811_v11 = vmax.f32 %v194_v4, 0.0  ;;  %s4828_s25 = sld [smem:[#allocation9 + $0x483]]  ;;  %v4830_v45 = vmax.f32 %v204_v5, 0.0  ;;  %v220_v0 = vmul.f32 %v218_v7, %v4764_v52 }
 0x15e   :  { %v779_v4 = vmul.f32 %v8336_v15, %v4330_v63  ;;  %v8265_v6 = vstv %s4788_s6  ;;  %s4839_s29 = sld [smem:[#allocation9 + $0x503]]  ;;  %v8267_v38 = vstv %s4793_s14  ;;  %v755_v5 = vadd.f32 %v8266_v51, %v751_v61 }
 0x15f   :  { %v783_v1 = vmul.f32 %v8265_v6, %v4332_v2  ;;  %s4847_s4 = sld [smem:[#allocation9 + $0x583]]  ;;  %v224_v7 = vadd.f32 %v222_v17, %v220_v0  ;;  %v789_v47 = vmul.f32 %v8267_v38, %v4340_v12  ;;  %v4862_v46 = vmax.f32 %v214_v48, 0.0 }
 0x160   :  { %8719 = sst [smem:[#allocation34_spill]] %s4801_s11  ;;  %v8268_v16 = vstv %s4801_s11  ;;  %v757_v61 = vmax.f32 %v755_v5, 0.0 }
 0x161   :  { %8721 = sst [smem:[#allocation36_spill]] %s4809_s28  ;;  %v785_v6 = vadd.f32 %v783_v1, %v767_v56  ;;  %v795_v17 = vmul.f32 %v8268_v16, %v4342_v13  ;;  %v8270_v8 = vstv %s4809_s28  ;;  %v4870_v0 = vmax.f32 %v224_v7, 0.0 }
 0x162   :  { %s4860_s22 = sld [smem:[#allocation9 + $0x603]]  ;;  %v791_v51 = vadd.f32 %v789_v47, %v771_v49  ;;  %v801_v48 = vmul.f32 %v8270_v8, %v4344_v14  ;;  %v8273_v38 = vstv %s4819_s8  ;;  %v234_v7 = vadd.f32 %v232_v19, %v230_v53 }
 0x163   :  { %8725 = sst [smem:[#allocation37_spill]] %s4828_s25  ;;  %v797_v56 = vadd.f32 %v795_v17, %v775_v54  ;;  %v807_v1 = vmul.f32 %v8273_v38, %v4351_v22  ;;  %v8330_v16 = vstv %s4828_s25  ;;  %v761_v49 = vmul.f32 %v8278_v25, %v757_v61 }
 0x164   :  { %8726 = sst [smem:[#allocation38_spill]] %s4839_s29  ;;  %v803_v5 = vadd.f32 %v801_v48, %v779_v4  ;;  %v813_v47 = vmul.f32 %v8330_v16, %v4353_v23  ;;  %v8302_v8 = vstv %s4839_s29  ;;  %v4900_v19 = vmax.f32 %v234_v7, 0.0 }
 0x165   :  { %8727 = sst [smem:[#allocation39_spill]] %s4847_s4  ;;  %v809_v54 = vadd.f32 %v807_v1, %v785_v6  ;;  %v819_v17 = vmul.f32 %v8302_v8, %v4359_v27  ;;  %v8301_v38 = vstv %s4847_s4  ;;  %v4903_v4 = vadd.f32 %v761_v49, %v4753_v57 }
 0x166   :  { %s4868_s24 = sld [smem:[#allocation9 + $0x683]]  ;;  %v815_v53 = vadd.f32 %v813_v47, %v791_v51  ;;  %v825_v6 = vmul.f32 %v8301_v38, %v4361_v28  ;;  %v240_v57 = vmul.f32 %v238_v20, %v4764_v52 }
 0x167   :  { %s4876_s12 = sld [smem:[#allocation9 + $0x703]]  ;;  %v821_v48 = vadd.f32 %v819_v17, %v797_v56  ;;  %v250_v56 = vmul.f32 %v248_v26, %v4764_v52 }
 0x168   :  { %s4882_s1 = sld [smem:[#allocation9 + $0x783]]  ;;  %v8279_v61 = vstv %s4860_s22  ;;  %v827_v51 = vadd.f32 %v825_v6, %v803_v5  ;;  %v244_v20 = vadd.f32 %v242_v31, %v240_v57 }
 0x169   :  { %s4892_s11 = sld [smem:[#allocation9 + $0x803]]  ;;  %v831_v1 = vmul.f32 %v8279_v61, %v4363_v35  ;;  %v254_v26 = vadd.f32 %v252_v36, %v250_v56 }
 0x16a   :  { %s4898_s23 = sld [smem:[#allocation9 + $0x883]]  ;;  %v4951_v31 = vmax.f32 %v244_v20, 0.0 }
 0x16b   :  { %s4909_s29 = sld [smem:[#allocation9 + $0x903]]  ;;  %v833_v17 = vadd.f32 %v831_v1, %v809_v54  ;;  %v4959_v36 = vmax.f32 %v254_v26, 0.0 }
 0x16c   :  { %v8280_v7 = vstv %s4868_s24  ;;  %s4915_s25 = sld [smem:[#allocation9 + $0x983]] }
 0x16d   :  { %8729 = sst [smem:[#allocation41_spill]] %s4876_s12  ;;  %v837_v49 = vmul.f32 %v8280_v7, %v4368_v41  ;;  %v8281_v47 = vstv %s4876_s12 }
 0x16e   :  { %8730 = sst [smem:[#allocation40_spill]] %s4882_s1  ;;  %v843_v25 = vmul.f32 %v8281_v47, %v4370_v43  ;;  %v8299_v61 = vstv %s4882_s1 }
 0x16f   :  { %8732 = sst [smem:[#allocation42_spill]] %s4892_s11  ;;  %v839_v5 = vadd.f32 %v837_v49, %v815_v53  ;;  %v849_v6 = vmul.f32 %v8299_v61, %v4466_v58  ;;  %v8298_v7 = vstv %s4892_s11 }
 0x170   :  { %8733 = sst [smem:[#allocation43_spill]] %s4898_s23  ;;  %v845_v54 = vadd.f32 %v843_v25, %v821_v48  ;;  %v855_v1 = vmul.f32 %v8298_v7, %v4491_v60  ;;  %v8288_v47 = vstv %s4898_s23 }
 0x171   :  { %8735 = sst [smem:[#allocation44_spill]] %s4909_s29  ;;  %v851_v53 = vadd.f32 %v849_v6, %v827_v51  ;;  %v861_v57 = vmul.f32 %v8288_v47, %v4493_v33  ;;  %v8286_v49 = vstv %s4909_s29  ;;  %v260_v51 = vmul.f32 %v258_v29, %v4764_v52 }
 0x172   :  { %8736 = sst [smem:[#allocation45_spill]] %s4915_s25  ;;  %v857_v25 = vadd.f32 %v855_v1, %v833_v17  ;;  %v867_v48 = vmul.f32 %v8286_v49, %v4505_v24  ;;  %v8287_v56 = vstv %s4915_s25  ;;  %v270_v17 = vmul.f32 %v268_v30, %v4764_v52 }
 0x173   :  { %s4924_s4 = sld [smem:[#allocation10 + $0x3]]  ;;  %v863_v20 = vadd.f32 %v861_v57, %v839_v5  ;;  %v873_v6 = vmul.f32 %v8287_v56, %v4507_v10  ;;  %v264_v29 = vadd.f32 %v262_v40, %v260_v51  ;;  %v280_v5 = vmul.f32 %v278_v32, %v4764_v52 }
 0x174   :  { %s4933_s28 = sld [smem:[#allocation12 + $0x3]]  ;;  %v869_v1 = vadd.f32 %v867_v48, %v845_v54  ;;  %v274_v30 = vadd.f32 %v272_v42, %v270_v17  ;;  %v8749_v32 = vstv %s8642_s21 }
 0x175   :  { %s4941_s13 = sld [smem:[#allocation9 + $0x4]]  ;;  %v875_v57 = vadd.f32 %v873_v6, %v851_v53  ;;  %v877_v56 = vadd.f32 %v863_v20, %v857_v25  ;;  %v4998_v40 = vmax.f32 %v264_v29, 0.0  ;;  %v284_v53 = vadd.f32 %v8749_v32, %v280_v5 }
 0x176   :  { %s4949_s9 = sld [smem:[#allocation9 + $0x84]]  ;;  %v5008_v20 = vmax.f32 %v274_v30, 0.0 }
 0x177   :  { %s4957_s26 = sld [smem:[#allocation9 + $0x104]]  ;;  %v879_v25 = vadd.f32 %v875_v57, %v869_v1  ;;  %v5016_v1 = vmax.f32 %v284_v53, 0.0 }
 0x178   :  { %s4965_s11 = sld [smem:[#allocation9 + $0x184]] }
 0x179   :  { %8737 = sst [smem:[#allocation46_spill]] %s4924_s4  ;;  %v8303_v26 = vstv %s4924_s4  ;;  %v881_v57 = vadd.f32 %v879_v25, %v877_v56 }
 0x17a   :  { %8738 = sst [smem:[#allocation124_spill]] %s4933_s28  ;;  %v8313_v49 = vstv %s4933_s28 }
 0x17b   :  { %8739 = sst [smem:[#allocation125_spill]] %s4941_s13  ;;  %v8296_v47 = vstv %s4941_s13  ;;  %v885_v7 = vadd.f32 %v8303_v26, %v881_v57 }
 0x17c   :  { %8740 = sst [smem:[#allocation126_spill]] %s4949_s9  ;;  %v897_v54 = vmul.f32 %v8296_v47, %v4233_v21  ;;  %v8295_v48 = vstv %s4949_s9 }
 0x17d   :  { %8742 = sst [smem:[#allocation47_spill]] %s4957_s26  ;;  %v901_v51 = vmul.f32 %v8295_v48, %v4311_v55  ;;  %v8294_v42 = vstv %s4957_s26 }
 0x17e   :  { %s4974_s1 = sld [smem:[#allocation9 + $0x204]]  ;;  %v905_v6 = vmul.f32 %v8294_v42, %v4320_v59  ;;  %v8297_v17 = vstv %s4965_s11 }
 0x17f   :  { %s4980_s27 = sld [smem:[#allocation9 + $0x284]]  ;;  %v909_v30 = vmul.f32 %v8297_v17, %v4330_v63 }
 0x180   :  { %s4988_s25 = sld [smem:[#allocation9 + $0x304]] }
 0x181   :  { %s8747_s12 = sld [smem:[#allocation50_spill]] }
 0x182   :  { %s4996_s10 = sld [smem:[#allocation9 + $0x384]] }
 0x183   :  { %s8750_s3 = sld [smem:[#allocation52_spill]] }
 0x184   :  { %8744 = sst [smem:[#allocation48_spill]] %s4974_s1  ;;  %v8300_v32 = vstv %s4974_s1 }
 0x185   :  { %8745 = sst [smem:[#allocation127_spill]] %s4980_s27  ;;  %v913_v53 = vmul.f32 %v8300_v32, %v4332_v2  ;;  %v8304_v47 = vstv %s4980_s27 }
 0x186   :  { %8746 = sst [smem:[#allocation128_spill]] %s4988_s25  ;;  %v919_v61 = vmul.f32 %v8304_v47, %v4340_v12 }
 0x187   :  { %s8751_s23 = sld [smem:[#allocation51_spill]]  ;;  %v8755_v29 = vstv %s8747_s12  ;;  %v915_v8 = vadd.f32 %v913_v53, %v897_v54 }
 0x188   :  { %8748 = sst [smem:[#allocation50_spill]] %s4996_s10  ;;  %v290_v5 = vmul.f32 %v8755_v29, %v4764_v52  ;;  %v921_v26 = vadd.f32 %v919_v61, %v901_v51 }
 0x189   :  { %s5006_s13 = sld [smem:[#allocation9 + $0x404]]  ;;  %v8758_v42 = vstv %s8750_s3 }
 0x18a   :  { %s8753_s29 = sld [smem:[#allocation54_spill]]  ;;  %v300_v48 = vmul.f32 %v8758_v42, %v4764_v52  ;;  %v8328_v42 = vstv %s4988_s25 }
 0x18b   :  { %s5014_s21 = sld [smem:[#allocation9 + $0x484]] }
 0x18c   :  { %s8756_s9 = sld [smem:[#allocation53_spill]] }
 0x18d   :  { %s5025_s26 = sld [smem:[#allocation9 + $0x504]]  ;;  %v8760_v29 = vstv %s8751_s23 }
 0x18e   :  { %s5034_s12 = sld [smem:[#allocation9 + $0x584]]  ;;  %v294_v56 = vadd.f32 %v8760_v29, %v290_v5  ;;  %v925_v5 = vmul.f32 %v8328_v42, %v4342_v13  ;;  %v8306_v29 = vstv %s4996_s10 }
 0x18f   :  { %8752 = sst [smem:[#allocation52_spill]] %s5006_s13  ;;  %v931_v47 = vmul.f32 %v8306_v29, %v4344_v14 }
 0x190   :  { %v8761_v25 = vstv %s8753_s29  ;;  %s5047_s3 = sld [smem:[#allocation9 + $0x604]]  ;;  %v5057_v57 = vmax.f32 %v294_v56, 0.0  ;;  %v927_v54 = vadd.f32 %v925_v5, %v905_v6 }
 0x191   :  { %8754 = sst [smem:[#allocation51_spill]] %s5014_s21  ;;  %v310_v17 = vmul.f32 %v8761_v25, %v4764_v52  ;;  %v887_v25 = vmax.f32 %v885_v7, 0.0  ;;  %v8327_v53 = vstv %s5014_s21  ;;  %v933_v51 = vadd.f32 %v931_v47, %v909_v30 }
 0x192   :  { %v8763_v32 = vstv %s8756_s9  ;;  %s5055_s29 = sld [smem:[#allocation9 + $0x684]]  ;;  %v943_v56 = vmul.f32 %v8327_v53, %v4353_v23 }
 0x193   :  { %8757 = sst [smem:[#allocation54_spill]] %s5025_s26  ;;  %v304_v38 = vadd.f32 %v8763_v32, %v300_v48  ;;  %v8308_v48 = vstv %s5006_s13  ;;  %v891_v61 = vmul.f32 %v8313_v49, %v887_v25  ;;  %v8314_v29 = vstv %s5025_s26 }
 0x194   :  { %8759 = sst [smem:[#allocation53_spill]] %s5034_s12  ;;  %v937_v32 = vmul.f32 %v8308_v48, %v4351_v22  ;;  %v949_v5 = vmul.f32 %v8314_v29, %v4359_v27  ;;  %v8321_v48 = vstv %s5034_s12  ;;  %v945_v30 = vadd.f32 %v943_v56, %v921_v26 }
 0x195   :  { %s8765_s9 = sld [smem:[#allocation55_spill]]  ;;  %v5071_v7 = vmax.f32 %v304_v38, 0.0  ;;  %v5090_v47 = vadd.f32 %v891_v61, %v4903_v4 }
 0x196   :  { %8762 = sst [smem:[#allocation129_spill]] %s5047_s3  ;;  %v939_v6 = vadd.f32 %v937_v32, %v915_v8  ;;  %v955_v8 = vmul.f32 %v8321_v48, %v4361_v28  ;;  %v8317_v32 = vstv %s5047_s3  ;;  %v951_v49 = vadd.f32 %v949_v5, %v927_v54 }
 0x197   :  { %s5063_s23 = sld [smem:[#allocation9 + $0x704]]  ;;  %v961_v29 = vmul.f32 %v8317_v32, %v4363_v35 }
 0x198   :  { %8764 = sst [smem:[#allocation130_spill]] %s5055_s29  ;;  %v957_v26 = vadd.f32 %v955_v8, %v933_v51 }
 0x199   :  { %s5069_s4 = sld [smem:[#allocation9 + $0x784]] }
 0x19a   :  { %s5079_s10 = sld [smem:[#allocation9 + $0x804]] }
 0x19b   :  { %s5085_s13 = sld [smem:[#allocation9 + $0x884]]  ;;  %v8767_v38 = vstv %s8765_s9 }
 0x19c   :  { %s8768_s28 = sld [smem:[#allocation56_spill]]  ;;  %v314_v25 = vadd.f32 %v8767_v38, %v310_v17  ;;  %v8320_v17 = vstv %s5055_s29  ;;  %v963_v38 = vadd.f32 %v961_v29, %v939_v6 }
 0x19d   :  { %8766 = sst [smem:[#allocation55_spill]] %s5063_s23  ;;  %v967_v61 = vmul.f32 %v8320_v17, %v4368_v41  ;;  %v8325_v56 = vstv %s5063_s23 }
 0x19e   :  { %s8769_s26 = sld [smem:[#allocation58_spill]]  ;;  %v5104_v4 = vmax.f32 %v314_v25, 0.0  ;;  %v973_v32 = vmul.f32 %v8325_v56, %v4370_v43 }
 0x19f   :  { %s5096_s21 = sld [smem:[#allocation9 + $0x904]]  ;;  %v8326_v25 = vstv %s5069_s4  ;;  %v969_v17 = vadd.f32 %v967_v61, %v945_v30 }
 0x1a0   :  { %s5102_s9 = sld [smem:[#allocation9 + $0x984]]  ;;  %v979_v48 = vmul.f32 %v8326_v25, %v4466_v58  ;;  %v975_v6 = vadd.f32 %v973_v32, %v951_v49 }
 0x1a1   :  { %s5110_s12 = sld [smem:[#allocation10 + $0x4]] }
 0x1a2   :  { %v8773_v54 = vstv %s8768_s28  ;;  %s8774_s3 = sld [smem:[#allocation57_spill]]  ;;  %v981_v25 = vadd.f32 %v979_v48, %v957_v26 }
 0x1a3   :  { %v320_v5 = vmul.f32 %v8773_v54, %v4764_v52  ;;  %s5119_s25 = sld [smem:[#allocation12 + $0x4]]  ;;  %v8329_v54 = vstv %s5079_s10 }
 0x1a4   :  { %v8776_v51 = vstv %s8769_s26  ;;  %s8777_s29 = sld [smem:[#allocation59_spill]]  ;;  %v985_v56 = vmul.f32 %v8329_v54, %v4491_v60 }
 0x1a5   :  { %8770 = sst [smem:[#allocation56_spill]] %s5096_s21  ;;  %v330_v8 = vmul.f32 %v8776_v51, %v4764_v52  ;;  %v8334_v51 = vstv %s5085_s13  ;;  %v8333_v42 = vstv %s5096_s21 }
 0x1a6   :  { %8771 = sst [smem:[#allocation58_spill]] %s5102_s9  ;;  %v991_v53 = vmul.f32 %v8334_v51, %v4493_v33  ;;  %v987_v29 = vadd.f32 %v985_v56, %v963_v38  ;;  %v997_v54 = vmul.f32 %v8333_v42, %v4505_v24  ;;  %v8332_v16 = vstv %s5102_s9 }
 0x1a7   :  { %8772 = sst [smem:[#allocation131_spill]] %s5110_s12 }
 0x1a8   :  { %s5128_s28 = sld [smem:[#allocation9 + $0x5]]  ;;  %v8779_v30 = vstv %s8774_s3  ;;  %v993_v26 = vadd.f32 %v991_v53, %v969_v17  ;;  %v999_v38 = vadd.f32 %v997_v54, %v975_v6  ;;  %v8788_v54 = vstv %s4219_s30 }
 0x1a9   :  { %8775 = sst [smem:[#allocation57_spill]] %s5119_s25  ;;  %v324_v61 = vadd.f32 %v8779_v30, %v320_v5  ;;  %v1003_v5 = vmul.f32 %v8332_v16, %v4507_v10  ;;  %v8347_v30 = vstv %s5110_s12  ;;  %v360_v6 = vmul.f32 %v8788_v54, %v4764_v52 }
 0x1aa   :  { %s8778_s1 = sld [smem:[#allocation203_spill]]  ;;  %v8780_v49 = vstv %s8777_s29  ;;  %v1007_v42 = vadd.f32 %v993_v26, %v987_v29  ;;  %v8793_v54 = vstv %s4227_s18 }
 0x1ab   :  { %s5137_s26 = sld [smem:[#allocation9 + $0x85]]  ;;  %v334_v32 = vadd.f32 %v8780_v49, %v330_v8  ;;  %v5155_v48 = vmax.f32 %v324_v61, 0.0  ;;  %v8355_v8 = vstv %s5119_s25  ;;  %v8785_v61 = vstv %s4192_s15 }
 0x1ac   :  { %s5145_s27 = sld [smem:[#allocation9 + $0x105]]  ;;  %v340_v53 = vmul.f32 %v8785_v61, %v4764_v52  ;;  %v1005_v16 = vadd.f32 %v1003_v5, %v981_v25  ;;  %v8790_v61 = vstv %s4197_s7 }
 0x1ad   :  { %s8781_s23 = sld [smem:[#allocation60_spill]]  ;;  %v5163_v56 = vmax.f32 %v334_v32, 0.0 }
 0x1ae   :  { %s5153_s3 = sld [smem:[#allocation9 + $0x185]]  ;;  %v8338_v51 = vstv %s5128_s28  ;;  %v1009_v29 = vadd.f32 %v1005_v16, %v999_v38 }
 0x1af   :  { %s5161_s29 = sld [smem:[#allocation9 + $0x205]]  ;;  %8783 = vst [vmem:[#allocation132_spill] sm:$0xff] %v5163_v56  ;;  %v1027_v32 = vmul.f32 %v8338_v51, %v4233_v21  ;;  %v364_v51 = vadd.f32 %v8793_v54, %v360_v6 }
 0x1b0   :  { %s5166_s21 = sld [smem:[#allocation9 + $0x285]]  ;;  %v1011_v38 = vadd.f32 %v1009_v29, %v1007_v42  ;;  %v8798_v42 = vstv %s4231_s20 }
 0x1b1   :  { %s5175_s9 = sld [smem:[#allocation9 + $0x305]]  ;;  %v8342_v15 = vstv %s5137_s26 }
 0x1b2   :  { %s5184_s15 = sld [smem:[#allocation9 + $0x385]]  ;;  %v1031_v26 = vmul.f32 %v8342_v15, %v4311_v55  ;;  %v8341_v5 = vstv %s5145_s27 }
 0x1b3   :  { %v8786_v17 = vstv %s8781_s23  ;;  %s5194_s30 = sld [smem:[#allocation9 + $0x405]]  ;;  %v1035_v37 = vmul.f32 %v8341_v5, %v4320_v59  ;;  %v1015_v5 = vadd.f32 %v8347_v30, %v1011_v38  ;;  %v8803_v38 = vstv %s4237_s0 }
 0x1b4   :  { %v350_v49 = vmul.f32 %v8786_v17, %v4764_v52  ;;  %v344_v17 = vadd.f32 %v8790_v61, %v340_v53  ;;  %s8794_s23 = sld [smem:[#allocation61_spill]]  ;;  %v8340_v53 = vstv %s5153_s3  ;;  %v5214_v61 = vmax.f32 %v364_v51, 0.0 }
 0x1b5   :  { %8782 = sst [smem:[#allocation59_spill]] %s5161_s29  ;;  %v8344_v6 = vstv %s5161_s29  ;;  %v1017_v30 = vmax.f32 %v1015_v5, 0.0 }
 0x1b6   :  { %8784 = sst [smem:[#allocation60_spill]] %s5166_s21  ;;  %v354_v25 = vadd.f32 %v8791_v18, %v350_v49  ;;  %v5204_v18 = vmax.f32 %v344_v17, 0.0  ;;  %v1039_v49 = vmul.f32 %v8340_v53, %v4330_v63  ;;  %v1043_v54 = vmul.f32 %v8344_v6, %v4332_v2 }
 0x1b7   :  { %8787 = sst [smem:[#allocation133_spill]] %s5175_s9  ;;  %v8348_v17 = vstv %s5166_s21  ;;  %v8350_v15 = vstv %s5175_s9  ;;  %v8801_v6 = vstv %s4255_s19 }
 0x1b8   :  { %8789 = sst [smem:[#allocation134_spill]] %s5184_s15  ;;  %v5206_v16 = vmax.f32 %v354_v25, 0.0  ;;  %v370_v25 = vmul.f32 %v8798_v42, %v4764_v52  ;;  %v1049_v51 = vmul.f32 %v8348_v17, %v4340_v12  ;;  %v384_v34 = vmul.f32 %v8801_v6, %v4811_v11 }
 0x1b9   :  { %8792 = sst [smem:[#allocation135_spill]] %s5194_s30  ;;  %v1045_v44 = vadd.f32 %v1043_v54, %v1027_v32  ;;  %v1055_v52 = vmul.f32 %v8350_v15, %v4342_v13  ;;  %v8364_v42 = vstv %s5184_s15  ;;  %v8363_v6 = vstv %s5194_s30 }
 0x1ba   :  { %s5202_s5 = sld [smem:[#allocation9 + $0x485]]  ;;  %v8799_v29 = vstv %s8794_s23  ;;  %v1051_v17 = vadd.f32 %v1049_v51, %v1031_v26  ;;  %v1061_v39 = vmul.f32 %v8364_v42, %v4344_v14  ;;  %v1067_v54 = vmul.f32 %v8363_v6, %v4351_v22 }
 0x1bb   :  { %s5212_s18 = sld [smem:[#allocation9 + $0x505]]  ;;  %v380_v53 = vmul.f32 %v8799_v29, %v4803_v3  ;;  %v374_v29 = vadd.f32 %v8803_v38, %v370_v25  ;;  %v1057_v32 = vadd.f32 %v1055_v52, %v1035_v37  ;;  %v1021_v26 = vmul.f32 %v8355_v8, %v1017_v30 }
 0x1bc   :  { %s5220_s7 = sld [smem:[#allocation9 + $0x585]]  ;;  %v1063_v25 = vadd.f32 %v1061_v39, %v1039_v49  ;;  %v1069_v37 = vadd.f32 %v1067_v54, %v1045_v44 }
 0x1bd   :  { %s5234_s29 = sld [smem:[#allocation9 + $0x605]]  ;;  %v5259_v5 = vmax.f32 %v374_v29, 0.0  ;;  %v5279_v49 = vadd.f32 %v1021_v26, %v5090_v47 }
 0x1be   :  { %s5243_s20 = sld [smem:[#allocation9 + $0x685]] }
 0x1bf   :  { %s8804_s19 = sld [smem:[#allocation49_spill]] }
 0x1c0   :  { %8795 = sst [smem:[#allocation61_spill]] %s5202_s5  ;;  %v8359_v15 = vstv %s5202_s5 }
 0x1c1   :  { %8796 = sst [smem:[#allocation136_spill]] %s5212_s18  ;;  %v1073_v51 = vmul.f32 %v8359_v15, %v4353_v23  ;;  %v8358_v38 = vstv %s5212_s18 }
 0x1c2   :  { %8797 = sst [smem:[#allocation137_spill]] %s5220_s7  ;;  %v1079_v52 = vmul.f32 %v8358_v38, %v4359_v27  ;;  %v8360_v29 = vstv %s5220_s7 }
 0x1c3   :  { %8800 = sst [smem:[#allocation138_spill]] %s5234_s29  ;;  %v1075_v8 = vadd.f32 %v1073_v51, %v1051_v17  ;;  %v1085_v44 = vmul.f32 %v8360_v29, %v4361_v28  ;;  %v8362_v54 = vstv %s5234_s29 }
 0x1c4   :  { %8802 = sst [smem:[#allocation139_spill]] %s5243_s20  ;;  %v1081_v38 = vadd.f32 %v1079_v52, %v1057_v32  ;;  %v1091_v15 = vmul.f32 %v8362_v54, %v4363_v35 }
 0x1c5   :  { %s5251_s23 = sld [smem:[#allocation9 + $0x705]]  ;;  %v8810_v30 = vstv %s8804_s19  ;;  %v1087_v26 = vadd.f32 %v1085_v44, %v1063_v25 }
 0x1c6   :  { %s5257_s0 = sld [smem:[#allocation9 + $0x785]]  ;;  %v388_v39 = vmul.f32 %v8810_v30, %v4830_v45  ;;  %v8366_v30 = vstv %s5243_s20  ;;  %v1093_v54 = vadd.f32 %v1091_v15, %v1069_v37 }
 0x1c7   :  { %s8807_s12 = sld [smem:[#allocation62_spill]]  ;;  %v1097_v51 = vmul.f32 %v8366_v30, %v4368_v41 }
 0x1c8   :  { %s5267_s15 = sld [smem:[#allocation9 + $0x805]] }
 0x1c9   :  { %s5273_s30 = sld [smem:[#allocation9 + $0x885]] }
 0x1ca   :  { %s8811_s25 = sld [smem:[#allocation63_spill]] }
 0x1cb   :  { %8805 = sst [smem:[#allocation49_spill]] %s5251_s23  ;;  %v8368_v29 = vstv %s5251_s23 }
 0x1cc   :  { %8806 = sst [smem:[#allocation140_spill]] %s5257_s0  ;;  %v1103_v6 = vmul.f32 %v8368_v29, %v4370_v43  ;;  %v8370_v42 = vstv %s5257_s0 }
 0x1cd   :  { %s8812_s18 = sld [smem:[#allocation64_spill]]  ;;  %v8815_v47 = vstv %s8807_s12  ;;  %v1109_v30 = vmul.f32 %v8370_v42, %v4466_v58 }
 0x1ce   :  { %8808 = sst [smem:[#allocation62_spill]] %s5267_s15  ;;  %v392_v17 = vmul.f32 %v8815_v47, %v4862_v46  ;;  %v1099_v47 = vadd.f32 %v1097_v51, %v1075_v8  ;;  %v1105_v37 = vadd.f32 %v1103_v6, %v1081_v38 }
 0x1cf   :  { %8809 = sst [smem:[#allocation141_spill]] %s5273_s30  ;;  %v8376_v50 = vstv %s5273_s30  ;;  %v1111_v51 = vadd.f32 %v1109_v30, %v1087_v26 }
 0x1d0   :  { %s5285_s5 = sld [smem:[#allocation9 + $0x905]]  ;;  %v8817_v32 = vstv %s8811_s25 }
 0x1d1   :  { %s5291_s19 = sld [smem:[#allocation9 + $0x985]]  ;;  %v396_v52 = vmul.f32 %v8817_v32, %v4870_v0  ;;  %v8373_v32 = vstv %s5267_s15 }
 0x1d2   :  { %s5300_s7 = sld [smem:[#allocation10 + $0x5]]  ;;  %v1115_v29 = vmul.f32 %v8373_v32, %v4491_v60 }
 0x1d3   :  { %s5309_s12 = sld [smem:[#allocation12 + $0x5]]  ;;  %v8819_v25 = vstv %s8812_s18  ;;  %v398_v15 = vadd.f32 %v396_v52, %v380_v53 }
 0x1d4   :  { %s8820_s20 = sld [smem:[#allocation65_spill]]  ;;  %v402_v44 = vmul.f32 %v8819_v25, %v4900_v19  ;;  %v1121_v25 = vmul.f32 %v8376_v50, %v4493_v33  ;;  %v1117_v38 = vadd.f32 %v1115_v29, %v1093_v54 }
 0x1d5   :  { %s5318_s25 = sld [smem:[#allocation9 + $0x6]] }
 0x1d6   :  { %8813 = sst [smem:[#allocation63_spill]] %s5285_s5  ;;  %v404_v8 = vadd.f32 %v402_v44, %v384_v34  ;;  %v8379_v42 = vstv %s5285_s5  ;;  %v1123_v26 = vadd.f32 %v1121_v25, %v1099_v47 }
 0x1d7   :  { %8814 = sst [smem:[#allocation64_spill]] %s5291_s19  ;;  %v1127_v52 = vmul.f32 %v8379_v42, %v4505_v24  ;;  %v8381_v32 = vstv %s5291_s19 }
 0x1d8   :  { %8816 = sst [smem:[#allocation142_spill]] %s5300_s7  ;;  %v1133_v44 = vmul.f32 %v8381_v32, %v4507_v10  ;;  %v8393_v50 = vstv %s5300_s7  ;;  %v1137_v25 = vadd.f32 %v1123_v26, %v1117_v38 }
 0x1d9   :  { %8818 = sst [smem:[#allocation143_spill]] %s5309_s12  ;;  %v1129_v54 = vadd.f32 %v1127_v52, %v1105_v37 }
 0x1da   :  { %s8822_s23 = sld [smem:[#allocation66_spill]]  ;;  %v8825_v53 = vstv %s8820_s20  ;;  %v1135_v47 = vadd.f32 %v1133_v44, %v1111_v51 }
 0x1db   :  { %8821 = sst [smem:[#allocation65_spill]] %s5318_s25  ;;  %v408_v6 = vmul.f32 %v8825_v53, %v4951_v31  ;;  %v8389_v32 = vstv %s5318_s25 }
 0x1dc   :  { %s5324_s18 = sld [smem:[#allocation9 + $0x86]]  ;;  %v1157_v37 = vmul.f32 %v8389_v32, %v4233_v21  ;;  %v1139_v52 = vadd.f32 %v1135_v47, %v1129_v54 }
 0x1dd   :  { %s5330_s0 = sld [smem:[#allocation9 + $0x106]]  ;;  %v410_v29 = vadd.f32 %v408_v6, %v388_v39 }
 0x1de   :  { %s8826_s29 = sld [smem:[#allocation67_spill]]  ;;  %v1141_v47 = vadd.f32 %v1139_v52, %v1137_v25 }
 0x1df   :  { %s5339_s15 = sld [smem:[#allocation9 + $0x186]] }
 0x1e0   :  { %v8828_v34 = vstv %s8822_s23  ;;  %s8829_s30 = sld [smem:[#allocation68_spill]]  ;;  %v1145_v52 = vadd.f32 %v8393_v50, %v1141_v47 }
 0x1e1   :  { %v414_v30 = vmul.f32 %v8828_v34, %v4959_v36  ;;  %s5348_s20 = sld [smem:[#allocation9 + $0x206]] }
 0x1e2   :  { %8823 = sst [smem:[#allocation66_spill]] %s5324_s18  ;;  %v8388_v6 = vstv %s5324_s18 }
 0x1e3   :  { %8824 = sst [smem:[#allocation144_spill]] %s5330_s0  ;;  %v416_v42 = vadd.f32 %v414_v30, %v392_v17  ;;  %v1161_v30 = vmul.f32 %v8388_v6, %v4311_v55 }
 0x1e4   :  { %s8831_s9 = sld [smem:[#allocation69_spill]]  ;;  %v8833_v34 = vstv %s8826_s29 }
 0x1e5   :  { %8827 = sst [smem:[#allocation67_spill]] %s5339_s15  ;;  %v420_v9 = vmul.f32 %v8833_v34, %v4998_v40 }
 0x1e6   :  { %s5351_s5 = sld [smem:[#allocation9 + $0x286]]  ;;  %v8835_v62 = vstv %s8829_s30 }
 0x1e7   :  { %8830 = sst [smem:[#allocation68_spill]] %s5348_s20  ;;  %v426_v39 = vmul.f32 %v8835_v62, %v5008_v20  ;;  %v422_v17 = vadd.f32 %v420_v9, %v398_v15  ;;  %v8387_v62 = vstv %s5330_s0  ;;  %v8392_v9 = vstv %s5339_s15 }
 0x1e8   :  { %s5357_s23 = sld [smem:[#allocation9 + $0x306]]  ;;  %v1165_v44 = vmul.f32 %v8387_v62, %v4320_v59 }
 0x1e9   :  { %s8836_s19 = sld [smem:[#allocation70_spill]]  ;;  %v428_v26 = vadd.f32 %v426_v39, %v404_v8  ;;  %v8391_v8 = vstv %s5348_s20 }
 0x1ea   :  { %s5366_s21 = sld [smem:[#allocation9 + $0x386]]  ;;  %v8838_v51 = vstv %s8831_s9  ;;  %v1173_v6 = vmul.f32 %v8391_v8, %v4332_v2 }
 0x1eb   :  { %s8839_s29 = sld [smem:[#allocation71_spill]]  ;;  %v432_v38 = vmul.f32 %v8838_v51, %v5016_v1  ;;  %v1169_v51 = vmul.f32 %v8392_v9, %v4330_v63 }
 0x1ec   :  { %8832 = sst [smem:[#allocation69_spill]] %s5351_s5  ;;  %v8394_v32 = vstv %s5351_s5  ;;  %v1175_v9 = vadd.f32 %v1173_v6, %v1157_v37 }
 0x1ed   :  { %s5375_s30 = sld [smem:[#allocation9 + $0x406]]  ;;  %v434_v15 = vadd.f32 %v432_v38, %v410_v29 }
 0x1ee   :  { %8834 = sst [smem:[#allocation145_spill]] %s5357_s23 }
 0x1ef   :  { %s8841_s25 = sld [smem:[#allocation72_spill]]  ;;  %v8843_v54 = vstv %s8836_s19 }
 0x1f0   :  { %8837 = sst [smem:[#allocation70_spill]] %s5366_s21  ;;  %v438_v34 = vmul.f32 %v8843_v54, %v5057_v57  ;;  %v1179_v54 = vmul.f32 %v8394_v32, %v4340_v12 }
 0x1f1   :  { %s5381_s9 = sld [smem:[#allocation9 + $0x486]]  ;;  %v8845_v39 = vstv %s8839_s29 }
 0x1f2   :  { %s5390_s18 = sld [smem:[#allocation9 + $0x506]]  ;;  %v444_v62 = vmul.f32 %v8845_v39, %v5071_v7  ;;  %v440_v29 = vadd.f32 %v438_v34, %v416_v42  ;;  %v8433_v39 = vstv %s5357_s23  ;;  %v8400_v34 = vstv %s5366_s21 }
 0x1f3   :  { %8840 = sst [smem:[#allocation71_spill]] %s5375_s30  ;;  %v1185_v42 = vmul.f32 %v8433_v39, %v4342_v13  ;;  %v1181_v50 = vadd.f32 %v1179_v54, %v1161_v30  ;;  %v1191_v32 = vmul.f32 %v8400_v34, %v4344_v14  ;;  %v8399_v53 = vstv %s5375_s30 }
 0x1f4   :  { %s5399_s0 = sld [smem:[#allocation9 + $0x586]]  ;;  %v446_v8 = vadd.f32 %v444_v62, %v422_v17  ;;  %v1197_v6 = vmul.f32 %v8399_v53, %v4351_v22  ;;  %v8854_v30 = vstv %s5309_s12 }
 0x1f5   :  { %v8847_v25 = vstv %s8841_s25  ;;  %s5410_s19 = sld [smem:[#allocation9 + $0x606]]  ;;  %v1187_v37 = vadd.f32 %v1185_v42, %v1165_v44 }
 0x1f6   :  { %v450_v38 = vmul.f32 %v8847_v25, %v5104_v4  ;;  %s8849_s29 = sld [smem:[#allocation73_spill]]  ;;  %v1147_v25 = vmax.f32 %v1145_v52, 0.0  ;;  %v1193_v52 = vadd.f32 %v1191_v32, %v1169_v51  ;;  %v1199_v42 = vadd.f32 %v1197_v6, %v1175_v9 }
 0x1f7   :  { %8842 = sst [smem:[#allocation72_spill]] %s5381_s9  ;;  %v8431_v17 = vstv %s5381_s9 }
 0x1f8   :  { %8844 = sst [smem:[#allocation146_spill]] %s5390_s18  ;;  %v452_v47 = vadd.f32 %v450_v38, %v428_v26  ;;  %v1151_v38 = vmul.f32 %v8854_v30, %v1147_v25  ;;  %v1203_v54 = vmul.f32 %v8431_v17, %v4353_v23  ;;  %v8402_v44 = vstv %s5390_s18 }
 0x1f9   :  { %s5416_s25 = sld [smem:[#allocation9 + $0x686]]  ;;  %v1209_v53 = vmul.f32 %v8402_v44, %v4359_v27 }
 0x1fa   :  { %8846 = sst [smem:[#allocation147_spill]] %s5399_s0  ;;  %v8409_v34 = vstv %s5399_s0  ;;  %v5448_v32 = vadd.f32 %v1151_v38, %v5279_v49  ;;  %v1205_v51 = vadd.f32 %v1203_v54, %v1181_v50 }
 0x1fb   :  { %8848 = sst [smem:[#allocation148_spill]] %s5410_s19  ;;  %v8406_v9 = vstv %s5410_s19  ;;  %v1211_v6 = vadd.f32 %v1209_v53, %v1187_v37  ;;  %v8862_v53 = vstv %s4391_s16 }
 0x1fc   :  { %s5422_s7 = sld [smem:[#allocation9 + $0x706]]  ;;  %v8853_v62 = vstv %s8849_s29  ;;  %v1221_v30 = vmul.f32 %v8406_v9, %v4363_v35  ;;  %v468_v37 = vmul.f32 %v8862_v53, %v5204_v18 }
 0x1fd   :  { %s5428_s23 = sld [smem:[#allocation9 + $0x786]]  ;;  %v456_v26 = vmul.f32 %v8853_v62, %v5155_v48  ;;  %v1215_v62 = vmul.f32 %v8409_v34, %v4361_v28 }
 0x1fe   :  { %s8855_s21 = sld [smem:[#allocation74_spill]]  ;;  %v1223_v54 = vadd.f32 %v1221_v30, %v1199_v42  ;;  %v470_v42 = vadd.f32 %v468_v37, %v446_v8 }
 0x1ff   :  { %8850 = sst [smem:[#allocation73_spill]] %s5416_s25  ;;  %v458_v25 = vadd.f32 %v456_v26, %v434_v15  ;;  %v8408_v44 = vstv %s5416_s25  ;;  %v1217_v50 = vadd.f32 %v1215_v62, %v1193_v52 }
 0x200   :  { %s5439_s30 = sld [smem:[#allocation9 + $0x806]]  ;;  %v1227_v26 = vmul.f32 %v8408_v44, %v4368_v41 }
 0x201   :  { %s5445_s29 = sld [smem:[#allocation9 + $0x886]] }
 0x202   :  { %8851 = sst [smem:[#allocation149_spill]] %s5422_s7  ;;  %v8410_v38 = vstv %s5422_s7  ;;  %v1229_v62 = vadd.f32 %v1227_v26, %v1205_v51 }
 0x203   :  { %8852 = sst [smem:[#allocation150_spill]] %s5428_s23  ;;  %v1233_v9 = vmul.f32 %v8410_v38, %v4370_v43 }
 0x204   :  { %s5454_s12 = sld [smem:[#allocation9 + $0x906]]  ;;  %v8860_v49 = vstv %s8855_s21 }
 0x205   :  { %s5460_s18 = sld [smem:[#allocation9 + $0x986]]  ;;  %v462_v15 = vmul.f32 %v8860_v49, %v5163_v56  ;;  %v8412_v49 = vstv %s5428_s23  ;;  %v1235_v30 = vadd.f32 %v1233_v9, %v1211_v6 }
 0x206   :  { %8856 = sst [smem:[#allocation74_spill]] %s5439_s30  ;;  %v1239_v44 = vmul.f32 %v8412_v49, %v4466_v58  ;;  %v8415_v34 = vstv %s5439_s30 }
 0x207   :  { %8857 = sst [smem:[#allocation151_spill]] %s5445_s29  ;;  %v464_v52 = vadd.f32 %v462_v15, %v440_v29  ;;  %v1245_v53 = vmul.f32 %v8415_v34, %v4491_v60  ;;  %v8417_v38 = vstv %s5445_s29 }
 0x208   :  { %s5469_s0 = sld [smem:[#allocation10 + $0x6]]  ;;  %v1241_v15 = vadd.f32 %v1239_v44, %v1217_v50  ;;  %v1251_v26 = vmul.f32 %v8417_v38, %v4493_v33 }
 0x209   :  { %s8863_s19 = sld [smem:[#allocation75_spill]]  ;;  %v1247_v6 = vadd.f32 %v1245_v53, %v1223_v54 }
 0x20a   :  { %8858 = sst [smem:[#allocation152_spill]] %s5454_s12  ;;  %v8420_v49 = vstv %s5454_s12  ;;  %v1253_v50 = vadd.f32 %v1251_v26, %v1229_v62 }
 0x20b   :  { %8859 = sst [smem:[#allocation153_spill]] %s5460_s18  ;;  %v1257_v37 = vmul.f32 %v8420_v49, %v4505_v24  ;;  %v8422_v34 = vstv %s5460_s18 }
 0x20c   :  { %s5478_s21 = sld [smem:[#allocation12 + $0x6]]  ;;  %v1267_v26 = vadd.f32 %v1253_v50, %v1247_v6 }
 0x20d   :  { %s8865_s25 = sld [smem:[#allocation76_spill]]  ;;  %v1259_v53 = vadd.f32 %v1257_v37, %v1235_v30 }
 0x20e   :  { %8861 = sst [smem:[#allocation154_spill]] %s5469_s0  ;;  %v8435_v38 = vstv %s5469_s0 }
 0x20f   :  { %s5484_s16 = sld [smem:[#allocation9 + $0x7]]  ;;  %v8868_v29 = vstv %s8863_s19 }
 0x210   :  { %s5490_s7 = sld [smem:[#allocation9 + $0x87]]  ;;  %v474_v51 = vmul.f32 %v8868_v29, %v5206_v16  ;;  %v1263_v29 = vmul.f32 %v8422_v34, %v4507_v10 }
 0x211   :  { %s8869_s23 = sld [smem:[#allocation77_spill]] }
 0x212   :  { %8864 = sst [smem:[#allocation75_spill]] %s5478_s21  ;;  %v476_v44 = vadd.f32 %v474_v51, %v452_v47  ;;  %v1265_v51 = vadd.f32 %v1263_v29, %v1241_v15 }
 0x213   :  { %s5499_s9 = sld [smem:[#allocation9 + $0x107]]  ;;  %v8871_v8 = vstv %s8865_s25 }
 0x214   :  { %v480_v9 = vmul.f32 %v8871_v8, %v5214_v61  ;;  %s5508_s19 = sld [smem:[#allocation9 + $0x187]]  ;;  %v490_v62 = vadd.f32 %v476_v44, %v470_v42  ;;  %v1269_v6 = vadd.f32 %v1265_v51, %v1259_v53 }
 0x215   :  { %8866 = sst [smem:[#allocation76_spill]] %s5484_s16  ;;  %v8428_v34 = vstv %s5484_s16 }
 0x216   :  { %8867 = sst [smem:[#allocation155_spill]] %s5490_s7  ;;  %v482_v54 = vadd.f32 %v480_v9, %v458_v25  ;;  %v1287_v9 = vmul.f32 %v8428_v34, %v4233_v21  ;;  %v8427_v37 = vstv %s5490_s7 }
 0x217   :  { %s8873_s30 = sld [smem:[#allocation80_spill]]  ;;  %v8877_v49 = vstv %s8869_s23  ;;  %v1291_v44 = vmul.f32 %v8427_v37, %v4311_v55  ;;  %v1271_v37 = vadd.f32 %v1269_v6, %v1267_v26 }
 0x218   :  { %s5514_s29 = sld [smem:[#allocation9 + $0x207]]  ;;  %v486_v47 = vmul.f32 %v8877_v49, %v5259_v5 }
 0x219   :  { %8870 = sst [smem:[#allocation77_spill]] %s5499_s9  ;;  %v8429_v50 = vstv %s5499_s9 }
 0x21a   :  { %8872 = sst [smem:[#allocation156_spill]] %s5508_s19  ;;  %v488_v49 = vadd.f32 %v486_v47, %v464_v52  ;;  %v1295_v52 = vmul.f32 %v8429_v50, %v4320_v59  ;;  %v8432_v47 = vstv %s5508_s19 }
 0x21b   :  { %s8875_s25 = sld [smem:[#allocation81_spill]] }
 0x21c   :  { %s5517_s12 = sld [smem:[#allocation9 + $0x287]]  ;;  %v492_v53 = vadd.f32 %v488_v49, %v482_v54 }
 0x21d   :  { %s8878_s5 = sld [smem:[#allocation82_spill]]  ;;  %v8880_v25 = vstv %s8873_s30 }
 0x21e   :  { %8874 = sst [smem:[#allocation80_spill]] %s5514_s29  ;;  %v508_v30 = vmul.f32 %v8880_v25, %v4803_v3  ;;  %v8434_v34 = vstv %s5514_s29  ;;  %v494_v26 = vadd.f32 %v492_v53, %v490_v62 }
 0x21f   :  { %s5523_s18 = sld [smem:[#allocation9 + $0x307]]  ;;  %v1303_v54 = vmul.f32 %v8434_v34, %v4332_v2 }
 0x220   :  { %s8881_s20 = sld [smem:[#allocation83_spill]] }
 0x221   :  { %s5532_s23 = sld [smem:[#allocation9 + $0x387]]  ;;  %v8883_v42 = vstv %s8875_s25  ;;  %v1305_v8 = vadd.f32 %v1303_v54, %v1287_v9 }
 0x222   :  { %8876 = sst [smem:[#allocation81_spill]] %s5517_s12  ;;  %v512_v15 = vmul.f32 %v8883_v42, %v4811_v11  ;;  %v8436_v49 = vstv %s5517_s12 }
 0x223   :  { %s8884_s15 = sld [smem:[#allocation84_spill]]  ;;  %v8886_v29 = vstv %s8878_s5  ;;  %v1309_v39 = vmul.f32 %v8436_v49, %v4340_v12 }
 0x224   :  { %s5541_s30 = sld [smem:[#allocation9 + $0x407]]  ;;  %v5546_v25 = vmul.f32 %v8886_v29, %v4830_v45  ;;  %v1299_v29 = vmul.f32 %v8432_v47, %v4330_v63  ;;  %v1275_v47 = vadd.f32 %v8435_v38, %v1271_v37 }
 0x225   :  { %8879 = sst [smem:[#allocation82_spill]] %s5523_s18  ;;  %v1311_v49 = vadd.f32 %v1309_v39, %v1291_v44 }
 0x226   :  { %s8887_s16 = sld [smem:[#allocation85_spill]]  ;;  %v8889_v51 = vstv %s8881_s20  ;;  %v1277_v38 = vmax.f32 %v1275_v47, 0.0 }
 0x227   :  { %8882 = sst [smem:[#allocation83_spill]] %s5532_s23  ;;  %v5557_v42 = vmul.f32 %v8889_v51, %v4862_v46  ;;  %v8440_v53 = vstv %s5532_s23 }
 0x228   :  { %s5552_s25 = sld [smem:[#allocation9 + $0x487]] }
 0x229   :  { %s5563_s5 = sld [smem:[#allocation9 + $0x507]]  ;;  %v8891_v50 = vstv %s8884_s15 }
 0x22a   :  { %8885 = sst [smem:[#allocation84_spill]] %s5541_s30  ;;  %v524_v17 = vmul.f32 %v8891_v50, %v4870_v0  ;;  %v8439_v50 = vstv %s5523_s18 }
 0x22b   :  { %s8892_s9 = sld [smem:[#allocation78_spill]]  ;;  %v1315_v62 = vmul.f32 %v8439_v50, %v4342_v13 }
 0x22c   :  { %s5572_s20 = sld [smem:[#allocation9 + $0x587]]  ;;  %v8894_v6 = vstv %s8887_s16  ;;  %v5585_v34 = vadd.f32 %v524_v17, %v508_v30  ;;  %v1321_v17 = vmul.f32 %v8440_v53, %v4344_v14  ;;  %v8442_v30 = vstv %s5541_s30 }
 0x22d   :  { %v530_v51 = vmul.f32 %v8894_v6, %v4900_v19  ;;  %s5583_s15 = sld [smem:[#allocation9 + $0x607]]  ;;  %v1317_v9 = vadd.f32 %v1315_v62, %v1295_v52  ;;  %v1327_v54 = vmul.f32 %v8442_v30, %v4351_v22 }
 0x22e   :  { %8888 = sst [smem:[#allocation85_spill]] %s5552_s25  ;;  %v8467_v50 = vstv %s5552_s25  ;;  %v1323_v44 = vadd.f32 %v1321_v17, %v1299_v29 }
 0x22f   :  { %8890 = sst [smem:[#allocation157_spill]] %s5563_s5  ;;  %v8447_v53 = vstv %s5563_s5  ;;  %v1329_v52 = vadd.f32 %v1327_v54, %v1305_v8 }
 0x230   :  { %s5591_s16 = sld [smem:[#allocation9 + $0x687]]  ;;  %v1339_v62 = vmul.f32 %v8447_v53, %v4359_v27 }
 0x231   :  { %v8897_v37 = vstv %s8892_s9  ;;  %s8898_s0 = sld [smem:[#allocation79_spill]] }
 0x232   :  { %8893 = sst [smem:[#allocation78_spill]] %s5572_s20  ;;  %v498_v6 = vadd.f32 %v8897_v37, %v494_v26  ;;  %v8901_v26 = vstv %s5478_s21  ;;  %v1333_v37 = vmul.f32 %v8467_v50, %v4353_v23  ;;  %v8450_v30 = vstv %s5572_s20 }
 0x233   :  { %8895 = sst [smem:[#allocation158_spill]] %s5583_s15  ;;  %v1281_v39 = vmul.f32 %v8901_v26, %v1277_v38  ;;  %v1345_v8 = vmul.f32 %v8450_v30, %v4361_v28  ;;  %v8449_v54 = vstv %s5583_s15  ;;  %v1341_v26 = vadd.f32 %v1339_v62, %v1317_v9 }
 0x234   :  { %s5599_s12 = sld [smem:[#allocation9 + $0x707]]  ;;  %v500_v47 = vmax.f32 %v498_v6, 0.0  ;;  %v1335_v17 = vadd.f32 %v1333_v37, %v1311_v49  ;;  %v1351_v53 = vmul.f32 %v8449_v54, %v4363_v35 }
 0x235   :  { %s5605_s9 = sld [smem:[#allocation9 + $0x787]]  ;;  %v5626_v29 = vadd.f32 %v1281_v39, %v5448_v32  ;;  %v532_v32 = vadd.f32 %v530_v51, %v512_v15  ;;  %v1347_v39 = vadd.f32 %v1345_v8, %v1323_v44 }
 0x236   :  { %8896 = sst [smem:[#allocation159_spill]] %s5591_s16 }
 0x237   :  { %s5613_s23 = sld [smem:[#allocation9 + $0x807]]  ;;  %v8904_v6 = vstv %s8898_s0 }
 0x238   :  { %s5619_s30 = sld [smem:[#allocation9 + $0x887]]  ;;  %v5623_v38 = vmul.f32 %v8904_v6, %v500_v47  ;;  %v8455_v47 = vstv %s5591_s16  ;;  %v1353_v6 = vadd.f32 %v1351_v53, %v1329_v52 }
 0x239   :  { %s8905_s21 = sld [smem:[#allocation86_spill]]  ;;  %v1357_v49 = vmul.f32 %v8455_v47, %v4368_v41 }
 0x23a   :  { %8899 = sst [smem:[#allocation79_spill]] %s5599_s12  ;;  %v8454_v37 = vstv %s5599_s12 }
 0x23b   :  { %8900 = sst [smem:[#allocation160_spill]] %s5605_s9  ;;  %v1363_v54 = vmul.f32 %v8454_v37, %v4370_v43  ;;  %v8456_v30 = vstv %s5605_s9  ;;  %v1359_v44 = vadd.f32 %v1357_v49, %v1335_v17 }
 0x23c   :  { %s8906_s5 = sld [smem:[#allocation87_spill]]  ;;  %v1369_v8 = vmul.f32 %v8456_v30, %v4466_v58 }
 0x23d   :  { %8902 = sst [smem:[#allocation161_spill]] %s5613_s23  ;;  %v1365_v52 = vadd.f32 %v1363_v54, %v1341_v26 }
 0x23e   :  { %8903 = sst [smem:[#allocation162_spill]] %s5619_s30  ;;  %v8462_v47 = vstv %s5619_s30  ;;  %v1371_v49 = vadd.f32 %v1369_v8, %v1347_v39 }
 0x23f   :  { %s5632_s25 = sld [smem:[#allocation9 + $0x907]]  ;;  %v8910_v9 = vstv %s8905_s21 }
 0x240   :  { %s5638_s0 = sld [smem:[#allocation9 + $0x987]]  ;;  %v536_v62 = vmul.f32 %v8910_v9, %v4951_v31  ;;  %v8459_v9 = vstv %s5613_s23 }
 0x241   :  { %s5644_s20 = sld [smem:[#allocation10 + $0x7]]  ;;  %v1375_v37 = vmul.f32 %v8459_v9, %v4491_v60 }
 0x242   :  { %s5653_s15 = sld [smem:[#allocation12 + $0x7]]  ;;  %v8912_v15 = vstv %s8906_s5  ;;  %v538_v53 = vadd.f32 %v536_v62, %v5546_v25 }
 0x243   :  { %s8913_s16 = sld [smem:[#allocation88_spill]]  ;;  %v542_v51 = vmul.f32 %v8912_v15, %v4959_v36  ;;  %v1381_v15 = vmul.f32 %v8462_v47, %v4493_v33  ;;  %v1377_v26 = vadd.f32 %v1375_v37, %v1353_v6 }
 0x244   :  { %s5662_s21 = sld [smem:[#allocation9 + $0x8]] }
 0x245   :  { %8907 = sst [smem:[#allocation86_spill]] %s5632_s25  ;;  %v544_v17 = vadd.f32 %v542_v51, %v5557_v42  ;;  %v8465_v30 = vstv %s5632_s25  ;;  %v1383_v51 = vadd.f32 %v1381_v15, %v1359_v44 }
 0x246   :  { %8908 = sst [smem:[#allocation87_spill]] %s5638_s0  ;;  %v1387_v62 = vmul.f32 %v8465_v30, %v4505_v24  ;;  %v8466_v9 = vstv %s5638_s0 }
 0x247   :  { %8909 = sst [smem:[#allocation163_spill]] %s5644_s20  ;;  %v1393_v8 = vmul.f32 %v8466_v9, %v4507_v10  ;;  %v1397_v9 = vadd.f32 %v1383_v51, %v1377_v26 }
 0x248   :  { %8911 = sst [smem:[#allocation164_spill]] %s5653_s15  ;;  %v1389_v6 = vadd.f32 %v1387_v62, %v1365_v52 }
 0x249   :  { %s8915_s12 = sld [smem:[#allocation89_spill]]  ;;  %v8918_v25 = vstv %s8913_s16  ;;  %v1395_v15 = vadd.f32 %v1393_v8, %v1371_v49 }
 0x24a   :  { %8914 = sst [smem:[#allocation88_spill]] %s5662_s21  ;;  %v548_v54 = vmul.f32 %v8918_v25, %v4998_v40  ;;  %v8474_v50 = vstv %s5662_s21 }
 0x24b   :  { %s5669_s5 = sld [smem:[#allocation9 + $0x88]]  ;;  %v1417_v52 = vmul.f32 %v8474_v50, %v4233_v21  ;;  %v1399_v62 = vadd.f32 %v1395_v15, %v1389_v6 }
 0x24c   :  { %s5676_s9 = sld [smem:[#allocation9 + $0x108]]  ;;  %v550_v37 = vadd.f32 %v548_v54, %v5585_v34 }
 0x24d   :  { %s8919_s18 = sld [smem:[#allocation90_spill]]  ;;  %v1401_v15 = vadd.f32 %v1399_v62, %v1397_v9  ;;  %v8941_v62 = vstv %s5644_s20 }
 0x24e   :  { %s5685_s23 = sld [smem:[#allocation9 + $0x188]] }
 0x24f   :  { %v8921_v42 = vstv %s8915_s12  ;;  %s8922_s30 = sld [smem:[#allocation91_spill]] }
 0x250   :  { %v554_v39 = vmul.f32 %v8921_v42, %v5008_v20  ;;  %s5694_s16 = sld [smem:[#allocation9 + $0x208]] }
 0x251   :  { %8916 = sst [smem:[#allocation89_spill]] %s5669_s5  ;;  %v8473_v54 = vstv %s5669_s5 }
 0x252   :  { %8917 = sst [smem:[#allocation165_spill]] %s5676_s9  ;;  %v556_v30 = vadd.f32 %v554_v39, %v532_v32  ;;  %v1421_v39 = vmul.f32 %v8473_v54, %v4311_v55 }
 0x253   :  { %s8924_s25 = sld [smem:[#allocation92_spill]]  ;;  %v8926_v42 = vstv %s8919_s18 }
 0x254   :  { %8920 = sst [smem:[#allocation90_spill]] %s5685_s23  ;;  %v560_v44 = vmul.f32 %v8926_v42, %v5016_v1 }
 0x255   :  { %s5698_s29 = sld [smem:[#allocation9 + $0x288]]  ;;  %v8928_v47 = vstv %s8922_s30 }
 0x256   :  { %8923 = sst [smem:[#allocation91_spill]] %s5694_s16  ;;  %v566_v34 = vmul.f32 %v8928_v47, %v5057_v57  ;;  %v562_v32 = vadd.f32 %v560_v44, %v538_v53  ;;  %v8472_v47 = vstv %s5676_s9  ;;  %v8476_v53 = vstv %s5685_s23 }
 0x257   :  { %s5704_s12 = sld [smem:[#allocation9 + $0x308]]  ;;  %v1425_v8 = vmul.f32 %v8472_v47, %v4320_v59 }
 0x258   :  { %s8929_s0 = sld [smem:[#allocation93_spill]]  ;;  %v568_v51 = vadd.f32 %v566_v34, %v544_v17  ;;  %v8477_v17 = vstv %s5694_s16 }
 0x259   :  { %s5713_s19 = sld [smem:[#allocation9 + $0x388]]  ;;  %v8931_v49 = vstv %s8924_s25  ;;  %v1433_v54 = vmul.f32 %v8477_v17, %v4332_v2 }
 0x25a   :  { %s8932_s18 = sld [smem:[#allocation94_spill]]  ;;  %v572_v26 = vmul.f32 %v8931_v49, %v5071_v7  ;;  %v1429_v49 = vmul.f32 %v8476_v53, %v4330_v63 }
 0x25b   :  { %8925 = sst [smem:[#allocation92_spill]] %s5698_s29  ;;  %v8478_v50 = vstv %s5698_s29  ;;  %v1435_v25 = vadd.f32 %v1433_v54, %v1417_v52 }
 0x25c   :  { %s5722_s30 = sld [smem:[#allocation9 + $0x408]]  ;;  %v574_v42 = vadd.f32 %v572_v26, %v550_v37  ;;  %v1439_v53 = vmul.f32 %v8478_v50, %v4340_v12 }
 0x25d   :  { %8927 = sst [smem:[#allocation166_spill]] %s5704_s12 }
 0x25e   :  { %s8934_s21 = sld [smem:[#allocation95_spill]]  ;;  %v8936_v6 = vstv %s8929_s0 }
 0x25f   :  { %8930 = sst [smem:[#allocation93_spill]] %s5713_s19  ;;  %v578_v44 = vmul.f32 %v8936_v6, %v5104_v4  ;;  %v1405_v6 = vadd.f32 %v8941_v62, %v1401_v15  ;;  %v1441_v62 = vadd.f32 %v1439_v53, %v1421_v39  ;;  %v8948_v39 = vstv %s5653_s15 }
 0x260   :  { %s5728_s25 = sld [smem:[#allocation9 + $0x488]]  ;;  %v8938_v34 = vstv %s8932_s18 }
 0x261   :  { %s5737_s5 = sld [smem:[#allocation9 + $0x508]]  ;;  %v584_v47 = vmul.f32 %v8938_v34, %v5155_v48  ;;  %v580_v9 = vadd.f32 %v578_v44, %v556_v30  ;;  %v1444_v34 = vstv %s5704_s12  ;;  %v8486_v44 = vstv %s5713_s19 }
 0x262   :  { %8933 = sst [smem:[#allocation94_spill]] %s5722_s30  ;;  %v1445_v30 = vmul.f32 %v1444_v34, %v4342_v13  ;;  %v1451_v50 = vmul.f32 %v8486_v44, %v4344_v14 }
 0x263   :  { %s5746_s9 = sld [smem:[#allocation9 + $0x588]]  ;;  %v586_v17 = vadd.f32 %v584_v47, %v562_v32 }
 0x264   :  { %v8940_v37 = vstv %s8934_s21  ;;  %s5757_s0 = sld [smem:[#allocation9 + $0x608]]  ;;  %v1447_v52 = vadd.f32 %v1445_v30, %v1425_v8 }
 0x265   :  { %v590_v26 = vmul.f32 %v8940_v37, %v5163_v56  ;;  %s8943_s18 = sld [smem:[#allocation96_spill]]  ;;  %v1407_v37 = vmax.f32 %v1405_v6, 0.0  ;;  %v8485_v56 = vstv %s5722_s30 }
 0x266   :  { %8935 = sst [smem:[#allocation95_spill]] %s5728_s25  ;;  %v1457_v54 = vmul.f32 %v8485_v56, %v4351_v22  ;;  %v1462_v32 = vstv %s5728_s25 }
 0x267   :  { %8937 = sst [smem:[#allocation167_spill]] %s5737_s5  ;;  %v592_v15 = vadd.f32 %v590_v26, %v568_v51  ;;  %v1411_v53 = vmul.f32 %v8948_v39, %v1407_v37  ;;  %v1453_v26 = vadd.f32 %v1451_v50, %v1429_v49  ;;  %v1463_v6 = vmul.f32 %v1462_v32, %v4353_v23 }
 0x268   :  { %s5763_s21 = sld [smem:[#allocation9 + $0x688]]  ;;  %v8489_v8 = vstv %s5737_s5  ;;  %v1459_v30 = vadd.f32 %v1457_v54, %v1435_v25 }
 0x269   :  { %8939 = sst [smem:[#allocation168_spill]] %s5746_s9  ;;  %v1469_v56 = vmul.f32 %v8489_v8, %v4359_v27  ;;  %v8495_v44 = vstv %s5746_s9  ;;  %v5795_v50 = vadd.f32 %v1411_v53, %v5626_v29  ;;  %v1465_v49 = vadd.f32 %v1463_v6, %v1441_v62 }
 0x26a   :  { %8942 = sst [smem:[#allocation169_spill]] %s5757_s0  ;;  %v8493_v25 = vstv %s5757_s0 }
 0x26b   :  { %s5769_s20 = sld [smem:[#allocation9 + $0x708]]  ;;  %v8947_v47 = vstv %s8943_s18  ;;  %v1471_v54 = vadd.f32 %v1469_v56, %v1447_v52  ;;  %v1481_v39 = vmul.f32 %v8493_v25, %v4363_v35 }
 0x26c   :  { %s5775_s12 = sld [smem:[#allocation9 + $0x788]]  ;;  %v596_v51 = vmul.f32 %v8947_v47, %v5204_v18  ;;  %v1475_v47 = vmul.f32 %v8495_v44, %v4361_v28 }
 0x26d   :  { %s8949_s19 = sld [smem:[#allocation97_spill]]  ;;  %v1483_v6 = vadd.f32 %v1481_v39, %v1459_v30 }
 0x26e   :  { %8944 = sst [smem:[#allocation96_spill]] %s5763_s21  ;;  %v598_v37 = vadd.f32 %v596_v51, %v574_v42  ;;  %v8494_v8 = vstv %s5763_s21  ;;  %v1477_v62 = vadd.f32 %v1475_v47, %v1453_v26 }
 0x26f   :  { %s5786_s30 = sld [smem:[#allocation9 + $0x808]]  ;;  %v1487_v51 = vmul.f32 %v8494_v8, %v4368_v41 }
 0x270   :  { %s5792_s18 = sld [smem:[#allocation9 + $0x888]] }
 0x271   :  { %8945 = sst [smem:[#allocation170_spill]] %s5769_s20  ;;  %v8496_v53 = vstv %s5769_s20  ;;  %v1489_v47 = vadd.f32 %v1487_v51, %v1465_v49 }
 0x272   :  { %8946 = sst [smem:[#allocation171_spill]] %s5775_s12  ;;  %v1493_v25 = vmul.f32 %v8496_v53, %v4370_v43 }
 0x273   :  { %s8952_s15 = sld [smem:[#allocation98_spill]]  ;;  %v8955_v29 = vstv %s8949_s19 }
 0x274   :  { %s5801_s25 = sld [smem:[#allocation9 + $0x908]]  ;;  %v602_v42 = vmul.f32 %v8955_v29, %v5206_v16  ;;  %v8499_v29 = vstv %s5775_s12  ;;  %v1495_v30 = vadd.f32 %v1493_v25, %v1471_v54 }
 0x275   :  { %8950 = sst [smem:[#allocation97_spill]] %s5786_s30  ;;  %v1499_v8 = vmul.f32 %v8499_v29, %v4466_v58  ;;  %v8517_v44 = vstv %s5786_s30 }
 0x276   :  { %8951 = sst [smem:[#allocation172_spill]] %s5792_s18  ;;  %v604_v26 = vadd.f32 %v602_v42, %v580_v9  ;;  %v1505_v39 = vmul.f32 %v8517_v44, %v4491_v60  ;;  %v8503_v53 = vstv %s5792_s18 }
 0x277   :  { %s5807_s5 = sld [smem:[#allocation9 + $0x988]]  ;;  %v1501_v42 = vadd.f32 %v1499_v8, %v1477_v62  ;;  %v1511_v51 = vmul.f32 %v8503_v53, %v4493_v33 }
 0x278   :  { %s5816_s9 = sld [smem:[#allocation10 + $0x8]]  ;;  %v1507_v25 = vadd.f32 %v1505_v39, %v1483_v6 }
 0x279   :  { %v8957_v56 = vstv %s8952_s15  ;;  %s8958_s0 = sld [smem:[#allocation99_spill]]  ;;  %v1513_v8 = vadd.f32 %v1511_v51, %v1489_v47 }
 0x27a   :  { %8953 = sst [smem:[#allocation98_spill]] %s5801_s25  ;;  %v608_v52 = vmul.f32 %v8957_v56, %v5214_v61  ;;  %v8509_v29 = vstv %s5801_s25 }
 0x27b   :  { %s5825_s19 = sld [smem:[#allocation12 + $0x8]]  ;;  %v1517_v54 = vmul.f32 %v8509_v29, %v4505_v24 }
 0x27c   :  { %s5831_s15 = sld [smem:[#allocation9 + $0x9]]  ;;  %v610_v56 = vadd.f32 %v608_v52, %v586_v17  ;;  %v618_v17 = vadd.f32 %v604_v26, %v598_v37 }
 0x27d   :  { %8954 = sst [smem:[#allocation173_spill]] %s5807_s5  ;;  %v8508_v52 = vstv %s5807_s5  ;;  %v1519_v26 = vadd.f32 %v1517_v54, %v1495_v30 }
 0x27e   :  { %8956 = sst [smem:[#allocation174_spill]] %s5816_s9  ;;  %v1523_v62 = vmul.f32 %v8508_v52, %v4507_v10  ;;  %v8519_v53 = vstv %s5816_s9  ;;  %v1527_v52 = vadd.f32 %v1513_v8, %v1507_v25 }
 0x27f   :  { %s5837_s20 = sld [smem:[#allocation9 + $0x89]]  ;;  %v8961_v9 = vstv %s8958_s0 }
 0x280   :  { %s8962_s21 = sld [smem:[#allocation102_spill]]  ;;  %v614_v49 = vmul.f32 %v8961_v9, %v5259_v5  ;;  %v1525_v51 = vadd.f32 %v1523_v62, %v1501_v42 }
 0x281   :  { %8959 = sst [smem:[#allocation99_spill]] %s5825_s19  ;;  %v8534_v39 = vstv %s5825_s19 }
 0x282   :  { %s5846_s12 = sld [smem:[#allocation9 + $0x109]]  ;;  %v616_v9 = vadd.f32 %v614_v49, %v592_v15  ;;  %v8514_v29 = vstv %s5831_s15  ;;  %v1529_v8 = vadd.f32 %v1525_v51, %v1519_v26 }
 0x283   :  { %s8964_s29 = sld [smem:[#allocation103_spill]] }
 0x284   :  { %s5852_s30 = sld [smem:[#allocation9 + $0x189]]  ;;  %v620_v15 = vadd.f32 %v616_v9, %v610_v56 }
 0x285   :  { %8960 = sst [smem:[#allocation175_spill]] %s5837_s20  ;;  %v8513_v56 = vstv %s5837_s20 }
 0x286   :  { %s8965_s0 = sld [smem:[#allocation104_spill]]  ;;  %v8966_v37 = vstv %s8962_s21  ;;  %v622_v9 = vadd.f32 %v620_v15, %v618_v17  ;;  %v1551_v62 = vmul.f32 %v8513_v56, %v4311_v55  ;;  %v1531_v56 = vadd.f32 %v1529_v8, %v1527_v52 }
 0x287   :  { %s5858_s18 = sld [smem:[#allocation9 + $0x209]]  ;;  %v638_v6 = vmul.f32 %v8966_v37, %v4803_v3  ;;  %v1547_v37 = vmul.f32 %v8514_v29, %v4233_v21 }
 0x288   :  { %8963 = sst [smem:[#allocation102_spill]] %s5846_s12  ;;  %v1535_v8 = vadd.f32 %v8519_v53, %v1531_v56 }
 0x289   :  { %s8967_s16 = sld [smem:[#allocation105_spill]]  ;;  %v8969_v47 = vstv %s8964_s29 }
 0x28a   :  { %s5864_s25 = sld [smem:[#allocation9 + $0x289]]  ;;  %v642_v49 = vmul.f32 %v8969_v47, %v4811_v11  ;;  %v8516_v47 = vstv %s5846_s12  ;;  %v1558_v15 = vstv %s5852_s30 }
 0x28b   :  { %s8970_s23 = sld [smem:[#allocation106_spill]]  ;;  %v1555_v17 = vmul.f32 %v8516_v47, %v4320_v59 }
 0x28c   :  { %s8971_s5 = sld [smem:[#allocation100_spill]]  ;;  %v8973_v30 = vstv %s8965_s0 }
 0x28d   :  { %s5870_s21 = sld [smem:[#allocation9 + $0x309]]  ;;  %v646_v54 = vmul.f32 %v8973_v30, %v4830_v45  ;;  %v1562_v29 = vstv %s5858_s18 }
 0x28e   :  { %s8974_s7 = sld [smem:[#allocation107_spill]]  ;;  %v1563_v47 = vmul.f32 %v1562_v29, %v4332_v2 }
 0x28f   :  { %s5879_s29 = sld [smem:[#allocation9 + $0x389]]  ;;  %v8976_v42 = vstv %s8967_s16 }
 0x290   :  { %8968 = sst [smem:[#allocation103_spill]] %s5864_s25  ;;  %v5884_v25 = vmul.f32 %v8976_v42, %v4862_v46  ;;  %v1568_v44 = vstv %s5864_s25 }
 0x291   :  { %s5890_s0 = sld [smem:[#allocation9 + $0x409]]  ;;  %v8978_v21 = vstv %s8970_s23 }
 0x292   :  { %v654_v30 = vmul.f32 %v8978_v21, %v4870_v0  ;;  %s5899_s16 = sld [smem:[#allocation9 + $0x489]]  ;;  %v8980_v26 = vstv %s8971_s5  ;;  %v1559_v21 = vmul.f32 %v1558_v15, %v4330_v63  ;;  %v1569_v63 = vmul.f32 %v1568_v44, %v4340_v12 }
 0x293   :  { %8972 = sst [smem:[#allocation104_spill]] %s5870_s21  ;;  %v626_v51 = vadd.f32 %v8980_v26, %v622_v9  ;;  %v1574_v26 = vstv %s5870_s21  ;;  %v1537_v12 = vmax.f32 %v1535_v8, 0.0 }
 0x294   :  { %v8981_v42 = vstv %s8974_s7  ;;  %s8982_s20 = sld [smem:[#allocation108_spill]]  ;;  %v656_v59 = vadd.f32 %v654_v30, %v638_v6  ;;  %v1565_v30 = vadd.f32 %v1563_v47, %v1547_v37 }
 0x295   :  { %8975 = sst [smem:[#allocation105_spill]] %s5879_s29  ;;  %v660_v55 = vmul.f32 %v8981_v42, %v4900_v19  ;;  %v628_v9 = vmax.f32 %v626_v51, 0.0  ;;  %v1575_v51 = vmul.f32 %v1574_v26, %v4342_v13 }
 0x296   :  { %s5910_s23 = sld [smem:[#allocation9 + $0x509]] }
 0x297   :  { %8977 = sst [smem:[#allocation106_spill]] %s5890_s0  ;;  %v5918_v52 = vadd.f32 %v660_v55, %v642_v49  ;;  %v1580_v49 = vstv %s5879_s29  ;;  %v1571_v55 = vadd.f32 %v1569_v63, %v1551_v62  ;;  %v1577_v37 = vadd.f32 %v1575_v51, %v1555_v17 }
 0x298   :  { %8979 = sst [smem:[#allocation100_spill]] %s5899_s16  ;;  %v1581_v53 = vmul.f32 %v1580_v49, %v4344_v14  ;;  %v1592_v47 = vstv %s5899_s16  ;;  %v1541_v62 = vmul.f32 %v8534_v39, %v1537_v12 }
 0x299   :  { %s8984_s12 = sld [smem:[#allocation101_spill]]  ;;  %v1593_v14 = vmul.f32 %v1592_v47, %v4353_v23 }
 0x29a   :  { %s5916_s5 = sld [smem:[#allocation9 + $0x589]]  ;;  %v8987_v2 = vstv %s8982_s20  ;;  %v1583_v8 = vadd.f32 %v1581_v53, %v1559_v21  ;;  %v5969_v53 = vadd.f32 %v1541_v62, %v5795_v50 }
 0x29b   :  { %s5926_s7 = sld [smem:[#allocation9 + $0x609]]  ;;  %v666_v6 = vmul.f32 %v8987_v2, %v4951_v31  ;;  %v1586_v2 = vstv %s5890_s0  ;;  %v1595_v23 = vadd.f32 %v1593_v14, %v1571_v55 }
 0x29c   :  { %8983 = sst [smem:[#allocation107_spill]] %s5910_s23  ;;  %v1587_v13 = vmul.f32 %v1586_v2, %v4351_v22  ;;  %v1598_v17 = vstv %s5910_s23 }
 0x29d   :  { %s5935_s9 = sld [smem:[#allocation9 + $0x689]]  ;;  %v1599_v63 = vmul.f32 %v1598_v17, %v4359_v27  ;;  %v668_v51 = vadd.f32 %v666_v6, %v646_v54 }
 0x29e   :  { %s5943_s20 = sld [smem:[#allocation9 + $0x709]]  ;;  %v1589_v22 = vadd.f32 %v1587_v13, %v1565_v30 }
 0x29f   :  { %v8989_v56 = vstv %s8984_s12  ;;  %s5949_s21 = sld [smem:[#allocation9 + $0x789]] }
 0x2a0   :  { %8985 = sst [smem:[#allocation108_spill]] %s5916_s5  ;;  %v632_v42 = vmul.f32 %v8989_v56, %v628_v9  ;;  %v1601_v56 = vadd.f32 %v1599_v63, %v1577_v37 }
 0x2a1   :  { %8986 = sst [smem:[#allocation101_spill]] %s5926_s7  ;;  %v1610_v30 = vstv %s5926_s7 }
 0x2a2   :  { %v5952_v9 = vadd.f32 %v632_v42, %v5623_v38  ;;  %s8992_s12 = sld [smem:[#allocation109_spill]]  ;;  %v1604_v38 = vstv %s5916_s5  ;;  %v1611_v27 = vmul.f32 %v1610_v30, %v4363_v35 }
 0x2a3   :  { %8988 = sst [smem:[#allocation176_spill]] %s5935_s9  ;;  %v1605_v21 = vmul.f32 %v1604_v38, %v4361_v28  ;;  %v1616_v42 = vstv %s5935_s9 }
 0x2a4   :  { %8990 = sst [smem:[#allocation177_spill]] %s5943_s20  ;;  %v1617_v28 = vmul.f32 %v1616_v42, %v4368_v41  ;;  %v1622_v12 = vstv %s5943_s20  ;;  %v1613_v37 = vadd.f32 %v1611_v27, %v1589_v22 }
 0x2a5   :  { %8991 = sst [smem:[#allocation178_spill]] %s5949_s21  ;;  %v1607_v6 = vadd.f32 %v1605_v21, %v1583_v8  ;;  %v1623_v13 = vmul.f32 %v1622_v12, %v4370_v43  ;;  %v1628_v62 = vstv %s5949_s21 }
 0x2a6   :  { %s5960_s0 = sld [smem:[#allocation9 + $0x809]]  ;;  %v1619_v8 = vadd.f32 %v1617_v28, %v1595_v23  ;;  %v1629_v14 = vmul.f32 %v1628_v62, %v4466_v58 }
 0x2a7   :  { %s5966_s29 = sld [smem:[#allocation9 + $0x889]]  ;;  %v1625_v22 = vadd.f32 %v1623_v13, %v1601_v56 }
 0x2a8   :  { %s8995_s19 = sld [smem:[#allocation110_spill]]  ;;  %v8998_v50 = vstv %s8992_s12 }
 0x2a9   :  { %s5975_s16 = sld [smem:[#allocation9 + $0x909]]  ;;  %v672_v54 = vmul.f32 %v8998_v50, %v4959_v36 }
 0x2aa   :  { %s5981_s23 = sld [smem:[#allocation9 + $0x989]] }
 0x2ab   :  { %s8999_s5 = sld [smem:[#allocation111_spill]]  ;;  %v674_v41 = vadd.f32 %v672_v54, %v5884_v25  ;;  %v1631_v25 = vadd.f32 %v1629_v14, %v1607_v6 }
 0x2ac   :  { %8993 = sst [smem:[#allocation109_spill]] %s5960_s0  ;;  %v1634_v63 = vstv %s5960_s0 }
 0x2ad   :  { %8994 = sst [smem:[#allocation179_spill]] %s5966_s29  ;;  %v1635_v27 = vmul.f32 %v1634_v63, %v4491_v60  ;;  %v8540_v43 = vstv %s5966_s29 }
 0x2ae   :  { %s5990_s25 = sld [smem:[#allocation10 + $0x9]]  ;;  %v9000_v55 = vstv %s8995_s19  ;;  %v1641_v23 = vmul.f32 %v8540_v43, %v4493_v33 }
 0x2af   :  { %8996 = sst [smem:[#allocation110_spill]] %s5975_s16  ;;  %v678_v35 = vmul.f32 %v9000_v55, %v4998_v40  ;;  %v8536_v58 = vstv %s5975_s16  ;;  %v1637_v56 = vadd.f32 %v1635_v27, %v1613_v37 }
 0x2b0   :  { %8997 = sst [smem:[#allocation180_spill]] %s5981_s23  ;;  %v1647_v60 = vmul.f32 %v8536_v58, %v4505_v24  ;;  %v8538_v28 = vstv %s5981_s23  ;;  %v1643_v13 = vadd.f32 %v1641_v23, %v1619_v8 }
 0x2b1   :  { %s9001_s12 = sld [smem:[#allocation112_spill]]  ;;  %v680_v21 = vadd.f32 %v678_v35, %v656_v59  ;;  %v9002_v50 = vstv %s8999_s5  ;;  %v1653_v6 = vmul.f32 %v8538_v28, %v4507_v10 }
 0x2b2   :  { %s5999_s7 = sld [smem:[#allocation12 + $0x9]]  ;;  %v684_v55 = vmul.f32 %v9002_v50, %v5008_v20  ;;  %v1649_v50 = vadd.f32 %v1647_v60, %v1625_v22 }
 0x2b3   :  { %s9003_s19 = sld [smem:[#allocation113_spill]]  ;;  %v1655_v58 = vadd.f32 %v1653_v6, %v1631_v25 }
 0x2b4   :  { %s9004_s20 = sld [smem:[#allocation114_spill]]  ;;  %v686_v35 = vadd.f32 %v684_v55, %v5918_v52  ;;  %v8539_v33 = vstv %s5990_s25  ;;  %v1657_v52 = vadd.f32 %v1643_v13, %v1637_v56 }
 0x2b5   :  { %s9006_s21 = sld [smem:[#allocation115_spill]]  ;;  %v1659_v25 = vadd.f32 %v1655_v58, %v1649_v50 }
 0x2b6   :  { %s9007_s9 = sld [smem:[#allocation116_spill]] }
 0x2b7   :  { %v9005_v54 = vstv %s9001_s12  ;;  %s9008_s5 = sld [smem:[#allocation117_spill]]  ;;  %v1661_v58 = vadd.f32 %v1659_v25, %v1657_v52  ;;  %v9033_v25 = vstv %s4788_s6 }
 0x2b8   :  { %v690_v59 = vmul.f32 %v9005_v54, %v5016_v1  ;;  %s9009_s0 = sld [smem:[#allocation118_spill]]  ;;  %v8541_v39 = vstv %s5999_s7 }
 0x2b9   :  { %s9010_s29 = sld [smem:[#allocation119_spill]]  ;;  %v9011_v54 = vstv %s9003_s19 }
 0x2ba   :  { %v692_v14 = vadd.f32 %v690_v59, %v668_v51  ;;  %v696_v37 = vmul.f32 %v9011_v54, %v5057_v57  ;;  %v9012_v27 = vstv %s9004_s20  ;;  %s9013_s12 = sld [smem:[#allocation120_spill]]  ;;  %v9018_v59 = vld [vmem:[#allocation132_spill] sm:$0xff] }
 0x2bb   :  { %v702_v24 = vmul.f32 %v9012_v27, %v5071_v7  ;;  %s9014_s16 = sld [smem:[#allocation121_spill]]  ;;  %v9015_v8 = vstv %s9006_s21 }
 0x2bc   :  { %v708_v55 = vmul.f32 %v9015_v8, %v5104_v4  ;;  %v9016_v10 = vstv %s9007_s9  ;;  %s9017_s23 = sld [smem:[#allocation123_spill]]  ;;  %v698_v22 = vadd.f32 %v696_v37, %v674_v41 }
 0x2bd   :  { %v714_v51 = vmul.f32 %v9016_v10, %v5155_v48  ;;  %v704_v23 = vadd.f32 %v702_v24, %v680_v21  ;;  %v9019_v60 = vstv %s9008_s5  ;;  %s9021_s20 = sld [smem:[#allocation35_spill]] }
 0x2be   :  { %v720_v54 = vmul.f32 %v9019_v60, %v9018_v59  ;;  %v9020_v28 = vstv %s9009_s0  ;;  %v710_v56 = vadd.f32 %v708_v55, %v686_v35  ;;  %s9024_s9 = sld [smem:[#allocation34_spill]]  ;;  %v9028_v55 = vstv %s4759_s17 }
 0x2bf   :  { %v726_v27 = vmul.f32 %v9020_v28, %v5204_v18  ;;  %v716_v13 = vadd.f32 %v714_v51, %v692_v14  ;;  %v9022_v6 = vstv %s9010_s29  ;;  %s9026_s21 = sld [smem:[#allocation36_spill]]  ;;  %v772_v51 = vmul.f32 %v9028_v55, %v4811_v11 }
 0x2c0   :  { %v732_v8 = vmul.f32 %v9022_v6, %v5206_v16  ;;  %v722_v10 = vadd.f32 %v720_v54, %v698_v22  ;;  %v9023_v21 = vstv %s9013_s12  ;;  %s9029_s29 = sld [smem:[#allocation37_spill]]  ;;  %v9039_v55 = vstv %s4819_s8 }
 0x2c1   :  { %v728_v41 = vadd.f32 %v726_v27, %v704_v23  ;;  %v738_v37 = vmul.f32 %v9023_v21, %v5214_v61  ;;  %v9025_v24 = vstv %s9014_s16  ;;  %v9031_v27 = vstv %s4779_s2  ;;  %s9032_s0 = sld [smem:[#allocation38_spill]] }
 0x2c2   :  { %v744_v28 = vmul.f32 %v9025_v24, %v5259_v5  ;;  %v734_v50 = vadd.f32 %v732_v8, %v710_v56  ;;  %v9027_v35 = vstv %s9017_s23  ;;  %v780_v6 = vmul.f32 %v9031_v27, %v4862_v46  ;;  %s9035_s17 = sld [smem:[#allocation39_spill]] }
 0x2c3   :  { %v768_v14 = vmul.f32 %v9027_v35, %v4803_v3  ;;  %v740_v22 = vadd.f32 %v738_v37, %v716_v13  ;;  %v9030_v60 = vstv %s9021_s20  ;;  %v1665_v21 = vadd.f32 %v8539_v33, %v1661_v58  ;;  %s9037_s16 = sld [smem:[#allocation122_spill]] }
 0x2c4   :  { %v746_v23 = vadd.f32 %v744_v28, %v722_v10  ;;  %v776_v54 = vmul.f32 %v9030_v60, %v4830_v45  ;;  %v748_v52 = vadd.f32 %v734_v50, %v728_v41  ;;  %v784_v56 = vmul.f32 %v9033_v25, %v4870_v0  ;;  %s9042_s2 = sld [smem:[#allocation40_spill]] }
 0x2c5   :  { %v9034_v8 = vstv %s4793_s14  ;;  %v9036_v10 = vstv %s9024_s9  ;;  %v9038_v28 = vstv %s9026_s21  ;;  %v808_v58 = vmul.f32 %v9039_v55, %v4998_v40  ;;  %s9041_s14 = sld [smem:[#allocation41_spill]] }
 0x2c6   :  { %v790_v24 = vmul.f32 %v9034_v8, %v4900_v19  ;;  %v750_v13 = vadd.f32 %v746_v23, %v740_v22  ;;  %v796_v37 = vmul.f32 %v9036_v10, %v4951_v31  ;;  %v802_v35 = vmul.f32 %v9038_v28, %v4959_v36  ;;  %s9044_s6 = sld [smem:[#allocation42_spill]] }
 0x2c7   :  { %v1667_v41 = vmax.f32 %v1665_v21, 0.0  ;;  %v786_v50 = vadd.f32 %v784_v56, %v768_v14  ;;  %v9040_v27 = vstv %s9029_s29  ;;  %v9043_v10 = vstv %s9032_s0  ;;  %s9047_s8 = sld [smem:[#allocation43_spill]] }
 0x2c8   :  { %v792_v60 = vadd.f32 %v790_v24, %v772_v51  ;;  %v814_v25 = vmul.f32 %v9040_v27, %v5008_v20  ;;  %v752_v22 = vadd.f32 %v750_v13, %v748_v52  ;;  %v798_v23 = vadd.f32 %v796_v37, %v776_v54  ;;  %s9048_s23 = sld [smem:[#allocation33_spill]] }
 0x2c9   :  { %v804_v8 = vadd.f32 %v802_v35, %v780_v6  ;;  %v820_v33 = vmul.f32 %v9043_v10, %v5016_v1  ;;  %v1671_v28 = vmul.f32 %v8541_v39, %v1667_v41  ;;  %v810_v43 = vadd.f32 %v808_v58, %v786_v50  ;;  %s9051_s19 = sld [smem:[#allocation44_spill]] }
 0x2ca   :  { %v816_v55 = vadd.f32 %v814_v25, %v792_v60  ;;  %v9045_v21 = vstv %s9035_s17  ;;  %v9046_v51 = vstv %s9037_s16  ;;  %v9049_v52 = vstv %s4860_s22  ;;  %s9052_s5 = sld [smem:[#allocation45_spill]] }
 0x2cb   :  { %v826_v14 = vmul.f32 %v9045_v21, %v5057_v57  ;;  %v756_v56 = vadd.f32 %v9046_v51, %v752_v22  ;;  %v822_v24 = vadd.f32 %v820_v33, %v798_v23  ;;  %v832_v54 = vmul.f32 %v9049_v52, %v5071_v7  ;;  %s9055_s12 = sld [smem:[#allocation125_spill]] }
 0x2cc   :  { %v9050_v6 = vstv %s4868_s24  ;;  %v1673_v37 = vadd.f32 %v1671_v28, %v5969_v53  ;;  %v9053_v58 = vstv %s9041_s14  ;;  %v9054_v50 = vstv %s9042_s2  ;;  %s9056_s20 = sld [smem:[#allocation126_spill]] }
 0x2cd   :  { %v838_v13 = vmul.f32 %v9050_v6, %v5104_v4  ;;  %v828_v35 = vadd.f32 %v826_v14, %v804_v8  ;;  %v844_v41 = vmul.f32 %v9053_v58, %v5155_v48  ;;  %v850_v60 = vmul.f32 %v9054_v50, %v9018_v59  ;;  %s9057_s9 = sld [smem:[#allocation47_spill]] }
 0x2ce   :  { %v758_v33 = vmax.f32 %v756_v56, 0.0  ;;  %v834_v27 = vadd.f32 %v832_v54, %v810_v43  ;;  %v9058_v22 = vstv %s9044_s6  ;;  %v9059_v53 = vstv %s8778_s1  ;;  %s9062_s21 = sld [smem:[#allocation48_spill]] }
 0x2cf   :  { %v840_v25 = vadd.f32 %v838_v13, %v816_v55  ;;  %v856_v23 = vmul.f32 %v9058_v22, %v5204_v18  ;;  %v6119_v8 = vadd.f32 %v9059_v53, %v1673_v37  ;;  %v846_v10 = vadd.f32 %v844_v41, %v822_v24  ;;  %s9064_s29 = sld [smem:[#allocation127_spill]] }
 0x2d0   :  { %v852_v28 = vadd.f32 %v850_v60, %v828_v35  ;;  %v9061_v21 = vstv %s9047_s8  ;;  %v9063_v51 = vstv %s9048_s23  ;;  %s9065_s0 = sld [smem:[#allocation128_spill]]  ;;  %v9066_v56 = vstv %s9051_s19 }
 0x2d1   :  { %9060 = vst [vmem:[#allocation132_spill] sm:$0xff] %v6119_v8  ;;  %v862_v14 = vmul.f32 %v9061_v21, %v5206_v16  ;;  %v762_v43 = vmul.f32 %v9063_v51, %v758_v33  ;;  %v858_v55 = vadd.f32 %v856_v23, %v834_v27  ;;  %v868_v52 = vmul.f32 %v9066_v56, %v5214_v61  ;;  %s9068_s17 = sld [smem:[#allocation50_spill]] }
 0x2d2   :  { %v9067_v54 = vstv %s9052_s5  ;;  %s9069_s16 = sld [smem:[#allocation52_spill]]  ;;  %3197 = vst [vmem:[#allocation22] sm:$0xff] %v6119_v8  ;;  %v9071_v13 = vstv %s9055_s12  ;;  %v9072_v35 = vstv %s9056_s20  ;;  %v9075_v22 = vstv %s4965_s11 }
 0x2d3   :  { %v874_v6 = vmul.f32 %v9067_v54, %v5259_v5  ;;  %s9070_s14 = sld [smem:[#allocation51_spill]]  ;;  %v864_v24 = vadd.f32 %v862_v14, %v840_v25  ;;  %v898_v37 = vmul.f32 %v9071_v13, %v4803_v3  ;;  %v902_v58 = vmul.f32 %v9072_v35, %v4811_v11 }
 0x2d4   :  { %v9073_v41 = vstv %s9057_s9  ;;  %s9074_s2 = sld [smem:[#allocation54_spill]]  ;;  %v764_v60 = vadd.f32 %v762_v43, %v5952_v9  ;;  %v870_v33 = vadd.f32 %v868_v52, %v846_v10  ;;  %v910_v23 = vmul.f32 %v9075_v22, %v4862_v46 }
 0x2d5   :  { %v906_v50 = vmul.f32 %v9073_v41, %v4830_v45  ;;  %v876_v27 = vadd.f32 %v874_v6, %v852_v28  ;;  %s9076_s6 = sld [smem:[#allocation53_spill]]  ;;  %v878_v25 = vadd.f32 %v864_v24, %v858_v55  ;;  %v9078_v53 = vstv %s9062_s21 }
 0x2d6   :  { %s9077_s8 = sld [smem:[#allocation129_spill]]  ;;  %v914_v21 = vmul.f32 %v9078_v53, %v4870_v0  ;;  %v9079_v14 = vstv %s9064_s29  ;;  %v9080_v56 = vstv %s9065_s0 }
 0x2d7   :  { %v920_v51 = vmul.f32 %v9079_v14, %v4900_v19  ;;  %v926_v54 = vmul.f32 %v9080_v56, %v4951_v31  ;;  %s9081_s23 = sld [smem:[#allocation130_spill]]  ;;  %v880_v13 = vadd.f32 %v876_v27, %v870_v33  ;;  %v9082_v9 = vstv %s9068_s17 }
 0x2d8   :  { %s9083_s19 = sld [smem:[#allocation46_spill]]  ;;  %v932_v10 = vmul.f32 %v9082_v9, %v4959_v36  ;;  %v9084_v28 = vstv %s9069_s16  ;;  %v916_v6 = vadd.f32 %v914_v21, %v898_v37 }
 0x2d9   :  { %v938_v43 = vmul.f32 %v9084_v28, %v4998_v40  ;;  %v9085_v55 = vstv %s9070_s14  ;;  %s9086_s11 = sld [smem:[#allocation55_spill]]  ;;  %v922_v24 = vadd.f32 %v920_v51, %v902_v58  ;;  %v928_v35 = vadd.f32 %v926_v54, %v906_v50 }
 0x2da   :  { %v944_v52 = vmul.f32 %v9085_v55, %v5008_v20  ;;  %v9087_v41 = vstv %s9074_s2  ;;  %v882_v33 = vadd.f32 %v880_v13, %v878_v25  ;;  %v934_v27 = vadd.f32 %v932_v10, %v910_v23  ;;  %s9090_s5 = sld [smem:[#allocation56_spill]] }
 0x2db   :  { %v950_v22 = vmul.f32 %v9087_v41, %v5016_v1  ;;  %v9088_v53 = vstv %s9076_s6  ;;  %v940_v28 = vadd.f32 %v938_v43, %v916_v6  ;;  %s9092_s12 = sld [smem:[#allocation58_spill]]  ;;  %v9096_v54 = vstv %s5069_s4 }
 0x2dc   :  { %v956_v14 = vmul.f32 %v9088_v53, %v5057_v57  ;;  %v9089_v56 = vstv %s9077_s8  ;;  %v946_v55 = vadd.f32 %v944_v52, %v922_v24  ;;  %s9094_s20 = sld [smem:[#allocation124_spill]]  ;;  %v980_v13 = vmul.f32 %v9096_v54, %v9018_v59 }
 0x2dd   :  { %v962_v9 = vmul.f32 %v9089_v56, %v5071_v7  ;;  %v952_v39 = vadd.f32 %v950_v22, %v928_v35  ;;  %v9091_v37 = vstv %s9081_s23  ;;  %v9097_v52 = vstv %s5079_s10  ;;  %s9099_s9 = sld [smem:[#allocation59_spill]] }
 0x2de   :  { %v968_v58 = vmul.f32 %v9091_v37, %v5104_v4  ;;  %v9093_v50 = vstv %s9083_s19  ;;  %v958_v25 = vadd.f32 %v956_v14, %v934_v27  ;;  %v986_v6 = vmul.f32 %v9097_v52, %v5204_v18  ;;  %s9100_s22 = sld [smem:[#allocation60_spill]] }
 0x2df   :  { %v886_v21 = vadd.f32 %v9093_v50, %v882_v33  ;;  %v9095_v23 = vstv %s9086_s11  ;;  %v964_v10 = vadd.f32 %v962_v9, %v940_v28  ;;  %v9098_v24 = vstv %s5085_s13  ;;  %s9102_s4 = sld [smem:[#allocation133_spill]] }
 0x2e0   :  { %v974_v51 = vmul.f32 %v9095_v23, %v5155_v48  ;;  %v970_v43 = vadd.f32 %v968_v58, %v946_v55  ;;  %v992_v35 = vmul.f32 %v9098_v24, %v5206_v16  ;;  %v982_v33 = vadd.f32 %v980_v13, %v958_v25  ;;  %s9103_s24 = sld [smem:[#allocation134_spill]] }
 0x2e1   :  { %v888_v41 = vmax.f32 %v886_v21, 0.0  ;;  %v9101_v27 = vstv %s9090_s5  ;;  %v988_v14 = vadd.f32 %v986_v6, %v964_v10  ;;  %v9104_v9 = vstv %s9092_s12  ;;  %s9106_s13 = sld [smem:[#allocation135_spill]] }
 0x2e2   :  { %v976_v22 = vadd.f32 %v974_v51, %v952_v39  ;;  %v998_v53 = vmul.f32 %v9101_v27, %v5214_v61  ;;  %v994_v56 = vadd.f32 %v992_v35, %v970_v43  ;;  %v1004_v28 = vmul.f32 %v9104_v9, %v5259_v5  ;;  %s9108_s10 = sld [smem:[#allocation61_spill]] }
 0x2e3   :  { %v9105_v55 = vstv %s5128_s28  ;;  %v9107_v58 = vstv %s9094_s20  ;;  %v9109_v21 = vstv %s5137_s26  ;;  %v9110_v23 = vstv %s5145_s27  ;;  %s9111_s21 = sld [smem:[#allocation136_spill]] }
 0x2e4   :  { %v1028_v37 = vmul.f32 %v9105_v55, %v4803_v3  ;;  %v892_v50 = vmul.f32 %v9107_v58, %v888_v41  ;;  %v1000_v39 = vadd.f32 %v998_v53, %v976_v22  ;;  %v1032_v25 = vmul.f32 %v9109_v21, %v4811_v11  ;;  %s9114_s28 = sld [smem:[#allocation137_spill]] }
 0x2e5   :  { %v1036_v51 = vmul.f32 %v9110_v23, %v4830_v45  ;;  %v1006_v54 = vadd.f32 %v1004_v28, %v982_v33  ;;  %v1008_v13 = vadd.f32 %v994_v56, %v988_v14  ;;  %v9112_v10 = vstv %s5153_s3  ;;  %s9115_s29 = sld [smem:[#allocation138_spill]] }
 0x2e6   :  { %v1040_v43 = vmul.f32 %v9112_v10, %v4862_v46  ;;  %v9113_v52 = vstv %s9099_s9  ;;  %v894_v24 = vadd.f32 %v892_v50, %v764_v60  ;;  %v9116_v35 = vstv %s9100_s22  ;;  %s9119_s26 = sld [smem:[#allocation139_spill]] }
 0x2e7   :  { %v1044_v6 = vmul.f32 %v9113_v52, %v4870_v0  ;;  %v1050_v41 = vmul.f32 %v9116_v35, %v4900_v19  ;;  %v9117_v22 = vstv %s9102_s4  ;;  %v9118_v53 = vstv %s9103_s24  ;;  %s9120_s27 = sld [smem:[#allocation49_spill]] }
 0x2e8   :  { %v1056_v27 = vmul.f32 %v9117_v22, %v4951_v31  ;;  %v1062_v33 = vmul.f32 %v9118_v53, %v4959_v36  ;;  %v1010_v14 = vadd.f32 %v1006_v54, %v1000_v39  ;;  %s9121_s3 = sld [smem:[#allocation131_spill]]  ;;  %v9122_v9 = vstv %s9106_s13 }
 0x2e9   :  { %v1046_v56 = vadd.f32 %v1044_v6, %v1028_v37  ;;  %v1068_v28 = vmul.f32 %v9122_v9, %v4998_v40  ;;  %v9123_v55 = vstv %s9108_s10  ;;  %s9124_s0 = sld [smem:[#allocation140_spill]]  ;;  %v1052_v58 = vadd.f32 %v1050_v41, %v1032_v25 }
 0x2ea   :  { %v1074_v60 = vmul.f32 %v9123_v55, %v5008_v20  ;;  %v1058_v50 = vadd.f32 %v1056_v27, %v1036_v51  ;;  %v1064_v21 = vadd.f32 %v1062_v33, %v1040_v43  ;;  %v9125_v23 = vstv %s9111_s21  ;;  %s9126_s17 = sld [smem:[#allocation62_spill]] }
 0x2eb   :  { %v1080_v10 = vmul.f32 %v9125_v23, %v5016_v1  ;;  %s9127_s16 = sld [smem:[#allocation141_spill]]  ;;  %v1012_v52 = vadd.f32 %v1010_v14, %v1008_v13  ;;  %v1070_v35 = vadd.f32 %v1068_v28, %v1046_v56  ;;  %v9128_v39 = vstv %s9114_s28 }
 0x2ec   :  { %v1086_v37 = vmul.f32 %v9128_v39, %v5057_v57  ;;  %v9129_v54 = vstv %s9115_s29  ;;  %s9130_s14 = sld [smem:[#allocation63_spill]]  ;;  %v1076_v22 = vadd.f32 %v1074_v60, %v1052_v58  ;;  %v9132_v25 = vstv %s9119_s26 }
 0x2ed   :  { %v1092_v6 = vmul.f32 %v9129_v54, %v5071_v7  ;;  %s9131_s2 = sld [smem:[#allocation64_spill]]  ;;  %v1082_v53 = vadd.f32 %v1080_v10, %v1058_v50  ;;  %v1098_v51 = vmul.f32 %v9132_v25, %v5104_v4  ;;  %v9133_v43 = vstv %s9120_s27 }
 0x2ee   :  { %s9134_s6 = sld [smem:[#allocation65_spill]]  ;;  %v1104_v41 = vmul.f32 %v9133_v43, %v5155_v48  ;;  %v9135_v27 = vstv %s9121_s3  ;;  %v1088_v33 = vadd.f32 %v1086_v37, %v1064_v21 }
 0x2ef   :  { %s9136_s8 = sld [smem:[#allocation66_spill]]  ;;  %v1016_v13 = vadd.f32 %v9135_v27, %v1012_v52  ;;  %v1094_v14 = vadd.f32 %v1092_v6, %v1070_v35  ;;  %v9138_v56 = vstv %s9124_s0  ;;  %v1100_v28 = vadd.f32 %v1098_v51, %v1076_v22 }
 0x2f0   :  { %s9137_s23 = sld [smem:[#allocation57_spill]]  ;;  %v1110_v9 = vmul.f32 %v9138_v56, %v9018_v59  ;;  %v1106_v55 = vadd.f32 %v1104_v41, %v1082_v53  ;;  %v9140_v60 = vstv %s9126_s17 }
 0x2f1   :  { %s9139_s19 = sld [smem:[#allocation144_spill]]  ;;  %v1116_v58 = vmul.f32 %v9140_v60, %v5204_v18  ;;  %v9142_v50 = vstv %s9127_s16  ;;  %v1018_v10 = vmax.f32 %v1016_v13, 0.0 }
 0x2f2   :  { %s9141_s11 = sld [smem:[#allocation67_spill]]  ;;  %v1122_v23 = vmul.f32 %v9142_v50, %v5206_v16  ;;  %v1112_v52 = vadd.f32 %v1110_v9, %v1088_v33  ;;  %v9145_v21 = vstv %s9130_s14 }
 0x2f3   :  { %s9143_s5 = sld [smem:[#allocation68_spill]]  ;;  %v1128_v35 = vmul.f32 %v9145_v21, %v5214_v61  ;;  %v9146_v39 = vstv %s9131_s2  ;;  %v1118_v54 = vadd.f32 %v1116_v58, %v1094_v14 }
 0x2f4   :  { %s9144_s12 = sld [smem:[#allocation69_spill]]  ;;  %v1134_v37 = vmul.f32 %v9146_v39, %v5259_v5  ;;  %v1124_v6 = vadd.f32 %v1122_v23, %v1100_v28  ;;  %v9149_v22 = vstv %s9134_s6 }
 0x2f5   :  { %s9147_s20 = sld [smem:[#allocation145_spill]]  ;;  %v1158_v53 = vmul.f32 %v9149_v22, %v4803_v3  ;;  %v9150_v25 = vstv %s9136_s8  ;;  %v1130_v27 = vadd.f32 %v1128_v35, %v1106_v55 }
 0x2f6   :  { %s9148_s9 = sld [smem:[#allocation70_spill]]  ;;  %v1162_v51 = vmul.f32 %v9150_v25, %v4811_v11  ;;  %v9152_v43 = vstv %s9137_s23  ;;  %v1136_v13 = vadd.f32 %v1134_v37, %v1112_v52  ;;  %v1138_v9 = vadd.f32 %v1124_v6, %v1118_v54 }
 0x2f7   :  { %s9151_s22 = sld [smem:[#allocation71_spill]]  ;;  %v1022_v41 = vmul.f32 %v9152_v43, %v1018_v10  ;;  %v9154_v33 = vstv %s9139_s19 }
 0x2f8   :  { %s9153_s4 = sld [smem:[#allocation72_spill]]  ;;  %v1166_v56 = vmul.f32 %v9154_v33, %v4830_v45  ;;  %v9156_v14 = vstv %s9141_s11  ;;  %v1140_v55 = vadd.f32 %v1136_v13, %v1130_v27 }
 0x2f9   :  { %s9155_s24 = sld [smem:[#allocation146_spill]]  ;;  %v1170_v28 = vmul.f32 %v9156_v14, %v4862_v46  ;;  %v9157_v60 = vstv %s9143_s5  ;;  %v1024_v21 = vadd.f32 %v1022_v41, %v894_v24 }
 0x2fa   :  { %v1174_v58 = vmul.f32 %v9157_v60, %v4870_v0  ;;  %v9158_v50 = vstv %s9144_s12  ;;  %s9159_s13 = sld [smem:[#allocation147_spill]]  ;;  %v1142_v24 = vadd.f32 %v1140_v55, %v1138_v9 }
 0x2fb   :  { %v1180_v23 = vmul.f32 %v9158_v50, %v4900_v19  ;;  %s9160_s10 = sld [smem:[#allocation148_spill]]  ;;  %v9162_v10 = vstv %s9147_s20 }
 0x2fc   :  { %s9161_s21 = sld [smem:[#allocation142_spill]]  ;;  %v1186_v52 = vmul.f32 %v9162_v10, %v4951_v31  ;;  %v9163_v35 = vstv %s9148_s9  ;;  %v1176_v37 = vadd.f32 %v1174_v58, %v1158_v53 }
 0x2fd   :  { %s9164_s28 = sld [smem:[#allocation73_spill]]  ;;  %v1192_v39 = vmul.f32 %v9163_v35, %v4959_v36  ;;  %v1182_v54 = vadd.f32 %v1180_v23, %v1162_v51  ;;  %v9166_v6 = vstv %s9151_s22 }
 0x2fe   :  { %s9165_s29 = sld [smem:[#allocation149_spill]]  ;;  %v1198_v22 = vmul.f32 %v9166_v6, %v4998_v40  ;;  %v9167_v25 = vstv %s9153_s4  ;;  %v1188_v41 = vadd.f32 %v1186_v52, %v1166_v56 }
 0x2ff   :  { %s9168_s26 = sld [smem:[#allocation150_spill]]  ;;  %v1204_v43 = vmul.f32 %v9167_v25, %v5008_v20  ;;  %v1194_v27 = vadd.f32 %v1192_v39, %v1170_v28  ;;  %v9170_v13 = vstv %s9155_s24 }
 0x300   :  { %s9169_s27 = sld [smem:[#allocation74_spill]]  ;;  %v1210_v33 = vmul.f32 %v9170_v13, %v5016_v1  ;;  %v1200_v14 = vadd.f32 %v1198_v22, %v1176_v37  ;;  %v9172_v53 = vstv %s9159_s13 }
 0x301   :  { %s9171_s3 = sld [smem:[#allocation151_spill]]  ;;  %v1206_v60 = vadd.f32 %v1204_v43, %v1182_v54  ;;  %v1216_v51 = vmul.f32 %v9172_v53, %v5057_v57  ;;  %v9173_v58 = vstv %s9160_s10 }
 0x302   :  { %s9174_s0 = sld [smem:[#allocation152_spill]]  ;;  %v1222_v50 = vmul.f32 %v9173_v58, %v5071_v7  ;;  %v9175_v23 = vstv %s9161_s21  ;;  %v1212_v9 = vadd.f32 %v1210_v33, %v1188_v41 }
 0x303   :  { %s9176_s17 = sld [smem:[#allocation153_spill]]  ;;  %v1146_v10 = vadd.f32 %v9175_v23, %v1142_v24  ;;  %v9178_v56 = vstv %s9164_s28  ;;  %v1218_v35 = vadd.f32 %v1216_v51, %v1194_v27 }
 0x304   :  { %s9177_s16 = sld [smem:[#allocation143_spill]]  ;;  %v1228_v28 = vmul.f32 %v9178_v56, %v5104_v4  ;;  %v9179_v55 = vstv %s9165_s29  ;;  %v1224_v39 = vadd.f32 %v1222_v50, %v1200_v14 }
 0x305   :  { %s9180_s14 = sld [smem:[#allocation76_spill]]  ;;  %v1234_v52 = vmul.f32 %v9179_v55, %v5155_v48  ;;  %v9182_v37 = vstv %s9168_s26  ;;  %v1148_v25 = vmax.f32 %v1146_v10, 0.0 }
 0x306   :  { %s9181_s2 = sld [smem:[#allocation155_spill]]  ;;  %v1240_v54 = vmul.f32 %v9182_v37, %v9018_v59  ;;  %v9183_v6 = vstv %s9169_s27  ;;  %v1230_v43 = vadd.f32 %v1228_v28, %v1206_v60 }
 0x307   :  { %s9184_s6 = sld [smem:[#allocation77_spill]]  ;;  %v1246_v22 = vmul.f32 %v9183_v6, %v5204_v18  ;;  %v1236_v24 = vadd.f32 %v1234_v52, %v1212_v9  ;;  %v9186_v41 = vstv %s9171_s3 }
 0x308   :  { %s9185_s8 = sld [smem:[#allocation156_spill]]  ;;  %v1252_v13 = vmul.f32 %v9186_v41, %v5206_v16  ;;  %v1242_v33 = vadd.f32 %v1240_v54, %v1218_v35  ;;  %v9189_v27 = vstv %s9174_s0 }
 0x309   :  { %s9187_s23 = sld [smem:[#allocation80_spill]]  ;;  %v1248_v53 = vadd.f32 %v1246_v22, %v1224_v39  ;;  %v1258_v14 = vmul.f32 %v9189_v27, %v5214_v61  ;;  %v9191_v51 = vstv %s9176_s17 }
 0x30a   :  { %s9188_s19 = sld [smem:[#allocation81_spill]]  ;;  %v1264_v58 = vmul.f32 %v9191_v51, %v5259_v5  ;;  %v9193_v50 = vstv %s9177_s16  ;;  %v1254_v60 = vadd.f32 %v1252_v13, %v1230_v43 }
 0x30b   :  { %s9190_s11 = sld [smem:[#allocation82_spill]]  ;;  %v1152_v23 = vmul.f32 %v9193_v50, %v1148_v25  ;;  %v9195_v10 = vstv %s9180_s14  ;;  %v1260_v55 = vadd.f32 %v1258_v14, %v1236_v24 }
 0x30c   :  { %s9192_s5 = sld [smem:[#allocation83_spill]]  ;;  %v1288_v9 = vmul.f32 %v9195_v10, %v4803_v3  ;;  %v9196_v56 = vstv %s9181_s2  ;;  %v1266_v52 = vadd.f32 %v1264_v58, %v1242_v33  ;;  %v1268_v22 = vadd.f32 %v1254_v60, %v1248_v53 }
 0x30d   :  { %s9194_s12 = sld [smem:[#allocation84_spill]]  ;;  %v1292_v28 = vmul.f32 %v9196_v56, %v4811_v11  ;;  %v9199_v35 = vstv %s9184_s6  ;;  %v1154_v6 = vadd.f32 %v1152_v23, %v1024_v21 }
 0x30e   :  { %s9197_s20 = sld [smem:[#allocation85_spill]]  ;;  %v1296_v39 = vmul.f32 %v9199_v35, %v4830_v45  ;;  %v9200_v37 = vstv %s9185_s8  ;;  %v1270_v27 = vadd.f32 %v1266_v52, %v1260_v55 }
 0x30f   :  { %s9198_s9 = sld [smem:[#allocation157_spill]]  ;;  %v1300_v54 = vmul.f32 %v9200_v37, %v4862_v46  ;;  %v9202_v25 = vstv %s9187_s23 }
 0x310   :  { %s9201_s22 = sld [smem:[#allocation78_spill]]  ;;  %v1304_v43 = vmul.f32 %v9202_v25, %v4870_v0  ;;  %v9203_v41 = vstv %s9188_s19  ;;  %v1272_v55 = vadd.f32 %v1270_v27, %v1268_v22 }
 0x311   :  { %s9204_s4 = sld [smem:[#allocation158_spill]]  ;;  %v1310_v13 = vmul.f32 %v9203_v41, %v4900_v19  ;;  %v9206_v24 = vstv %s9190_s11 }
 0x312   :  { %s9205_s24 = sld [smem:[#allocation159_spill]]  ;;  %v1316_v33 = vmul.f32 %v9206_v24, %v4951_v31  ;;  %v9208_v14 = vstv %s9192_s5  ;;  %v1306_v53 = vadd.f32 %v1304_v43, %v1288_v9 }
 0x313   :  { %s9207_s13 = sld [smem:[#allocation154_spill]]  ;;  %v1322_v51 = vmul.f32 %v9208_v14, %v4959_v36  ;;  %v9209_v58 = vstv %s9194_s12  ;;  %v1312_v50 = vadd.f32 %v1310_v13, %v1292_v28 }
 0x314   :  { %v1328_v21 = vmul.f32 %v9209_v58, %v4998_v40  ;;  %s9210_s10 = sld [smem:[#allocation79_spill]]  ;;  %v9211_v23 = vstv %s9197_s20  ;;  %v1318_v52 = vadd.f32 %v1316_v33, %v1296_v39 }
 0x315   :  { %v1334_v60 = vmul.f32 %v9211_v23, %v5008_v20  ;;  %v9212_v10 = vstv %s9198_s9  ;;  %s9213_s21 = sld [smem:[#allocation160_spill]]  ;;  %v1324_v35 = vadd.f32 %v1322_v51, %v1300_v54 }
 0x316   :  { %v1340_v56 = vmul.f32 %v9212_v10, %v5016_v1  ;;  %s9214_s28 = sld [smem:[#allocation161_spill]]  ;;  %v9215_v37 = vstv %s9201_s22  ;;  %v1330_v41 = vadd.f32 %v1328_v21, %v1306_v53 }
 0x317   :  { %s9216_s29 = sld [smem:[#allocation162_spill]]  ;;  %v1346_v25 = vmul.f32 %v9215_v37, %v5057_v57  ;;  %v1336_v24 = vadd.f32 %v1334_v60, %v1312_v50  ;;  %v9218_v9 = vstv %s9204_s4 }
 0x318   :  { %s9217_s26 = sld [smem:[#allocation86_spill]]  ;;  %v1352_v28 = vmul.f32 %v9218_v9, %v5071_v7  ;;  %v9219_v43 = vstv %s9205_s24  ;;  %v1342_v39 = vadd.f32 %v1340_v56, %v1318_v52 }
 0x319   :  { %s9220_s27 = sld [smem:[#allocation87_spill]]  ;;  %v1358_v13 = vmul.f32 %v9219_v43, %v5104_v4  ;;  %v9221_v14 = vstv %s9207_s13  ;;  %v1348_v54 = vadd.f32 %v1346_v25, %v1324_v35 }
 0x31a   :  { %s9222_s3 = sld [smem:[#allocation88_spill]]  ;;  %v1276_v58 = vadd.f32 %v9221_v14, %v1272_v55  ;;  %v9224_v22 = vstv %s9210_s10  ;;  %v1354_v33 = vadd.f32 %v1352_v28, %v1330_v41 }
 0x31b   :  { %s9223_s0 = sld [smem:[#allocation75_spill]]  ;;  %v1364_v27 = vmul.f32 %v9224_v22, %v5155_v48  ;;  %v1360_v51 = vadd.f32 %v1358_v13, %v1336_v24  ;;  %v9226_v21 = vstv %s9213_s21 }
 0x31c   :  { %s9225_s17 = sld [smem:[#allocation89_spill]]  ;;  %v1370_v53 = vmul.f32 %v9226_v21, %v9018_v59  ;;  %v9228_v50 = vstv %s9214_s28  ;;  %v1278_v60 = vmax.f32 %v1276_v58, 0.0 }
 0x31d   :  { %s9227_s16 = sld [smem:[#allocation165_spill]]  ;;  %v1376_v23 = vmul.f32 %v9228_v50, %v5204_v18  ;;  %v1366_v10 = vadd.f32 %v1364_v27, %v1342_v39  ;;  %v9231_v56 = vstv %s9216_s29 }
 0x31e   :  { %s9229_s14 = sld [smem:[#allocation90_spill]]  ;;  %v1382_v55 = vmul.f32 %v9231_v56, %v5206_v16  ;;  %v9232_v52 = vstv %s9217_s26  ;;  %v1372_v37 = vadd.f32 %v1370_v53, %v1348_v54 }
 0x31f   :  { %s9230_s2 = sld [smem:[#allocation91_spill]]  ;;  %v1388_v35 = vmul.f32 %v9232_v52, %v5214_v61  ;;  %v1378_v25 = vadd.f32 %v1376_v23, %v1354_v33  ;;  %v9235_v41 = vstv %s9220_s27 }
 0x320   :  { %s9233_s6 = sld [smem:[#allocation92_spill]]  ;;  %v1394_v24 = vmul.f32 %v9235_v41, %v5259_v5  ;;  %v9236_v9 = vstv %s9222_s3  ;;  %v1384_v14 = vadd.f32 %v1382_v55, %v1360_v51  ;;  %v1446_v55 = vmul.f32 %v1444_v34, %v4951_v31 }
 0x321   :  { %s9237_s23 = sld [smem:[#allocation93_spill]]  ;;  %v1418_v28 = vmul.f32 %v9236_v9, %v4803_v3  ;;  %v9238_v43 = vstv %s9223_s0  ;;  %v1390_v58 = vadd.f32 %v1388_v35, %v1366_v10 }
 0x322   :  { %s9239_s19 = sld [smem:[#allocation94_spill]]  ;;  %v1282_v13 = vmul.f32 %v9238_v43, %v1278_v60  ;;  %v9240_v39 = vstv %s9225_s17  ;;  %v1396_v27 = vadd.f32 %v1394_v24, %v1372_v37  ;;  %v1398_v60 = vadd.f32 %v1384_v14, %v1378_v25 }
 0x323   :  { %v1422_v22 = vmul.f32 %v9240_v39, %v4811_v11  ;;  %s9242_s5 = sld [smem:[#allocation167_spill]]  ;;  %v9243_v54 = vstv %s9227_s16  ;;  %v1464_v43 = vmul.f32 %v1462_v32, %v5008_v20 }
 0x324   :  { %v1426_v33 = vmul.f32 %v9243_v54, %v4830_v45  ;;  %v9244_v21 = vstv %s9229_s14  ;;  %s9246_s12 = sld [smem:[#allocation168_spill]]  ;;  %v1284_v56 = vadd.f32 %v1282_v13, %v1154_v6  ;;  %v1400_v52 = vadd.f32 %v1396_v27, %v1390_v58 }
 0x325   :  { %v1430_v53 = vmul.f32 %v9244_v21, %v4862_v46  ;;  %v9245_v50 = vstv %s9230_s2  ;;  %s9248_s20 = sld [smem:[#allocation169_spill]] }
 0x326   :  { %v1434_v23 = vmul.f32 %v9245_v50, %v4870_v0  ;;  %v9247_v51 = vstv %s9233_s6  ;;  %s9249_s9 = sld [smem:[#allocation96_spill]]  ;;  %v1448_v25 = vadd.f32 %v1446_v55, %v1426_v33  ;;  %v1402_v14 = vadd.f32 %v1400_v52, %v1398_v60 }
 0x327   :  { %v1440_v10 = vmul.f32 %v9247_v51, %v4900_v19  ;;  %s9250_s22 = sld [smem:[#allocation163_spill]]  ;;  %v9251_v37 = vstv %s9237_s23 }
 0x328   :  { %v1436_v35 = vadd.f32 %v1434_v23, %v1418_v28  ;;  %v1452_v41 = vmul.f32 %v9251_v37, %v4959_v36  ;;  %v9252_v24 = vstv %s9239_s19  ;;  %s9253_s4 = sld [smem:[#allocation170_spill]] }
 0x329   :  { %v1458_v9 = vmul.f32 %v9252_v24, %v4998_v40  ;;  %s9254_s24 = sld [smem:[#allocation171_spill]]  ;;  %v1442_v6 = vadd.f32 %v1440_v10, %v1422_v22  ;;  %v9255_v13 = vstv %s9242_s5 }
 0x32a   :  { %s9256_s13 = sld [smem:[#allocation97_spill]]  ;;  %v1470_v34 = vmul.f32 %v9255_v13, %v5016_v1  ;;  %v1454_v28 = vadd.f32 %v1452_v41, %v1430_v53  ;;  %v9258_v39 = vstv %s9246_s12 }
 0x32b   :  { %s9257_s10 = sld [smem:[#allocation172_spill]]  ;;  %v1460_v58 = vadd.f32 %v1458_v9, %v1436_v35  ;;  %v1476_v27 = vmul.f32 %v9258_v39, %v5057_v57  ;;  %v1466_v54 = vadd.f32 %v1464_v43, %v1442_v6  ;;  %v9260_v22 = vstv %s9248_s20 }
 0x32c   :  { %s9259_s21 = sld [smem:[#allocation98_spill]]  ;;  %v1472_v21 = vadd.f32 %v1470_v34, %v1448_v25  ;;  %v1482_v33 = vmul.f32 %v9260_v22, %v5071_v7  ;;  %v9261_v50 = vstv %s9249_s9 }
 0x32d   :  { %s9262_s28 = sld [smem:[#allocation173_spill]]  ;;  %v1488_v32 = vmul.f32 %v9261_v50, %v5104_v4  ;;  %v9263_v23 = vstv %s9250_s22  ;;  %v1478_v60 = vadd.f32 %v1476_v27, %v1454_v28 }
 0x32e   :  { %v1406_v51 = vadd.f32 %v9263_v23, %v1402_v14  ;;  %s9264_s29 = sld [smem:[#allocation164_spill]]  ;;  %v9265_v53 = vstv %s9253_s4  ;;  %v1484_v35 = vadd.f32 %v1482_v33, %v1460_v58 }
 0x32f   :  { %v1494_v10 = vmul.f32 %v9265_v53, %v5155_v48  ;;  %v9266_v55 = vstv %s9254_s24  ;;  %s9267_s26 = sld [smem:[#allocation175_spill]]  ;;  %v1490_v37 = vadd.f32 %v1488_v32, %v1466_v54  ;;  %v9276_v54 = vstv %s5831_s15 }
 0x330   :  { %v1500_v52 = vmul.f32 %v9266_v55, %v9018_v59  ;;  %s9268_s27 = sld [smem:[#allocation102_spill]]  ;;  %v9269_v41 = vstv %s9256_s13  ;;  %v1408_v25 = vmax.f32 %v1406_v51, 0.0  ;;  %v1548_v22 = vmul.f32 %v9276_v54, %v4803_v3 }
 0x331   :  { %v1506_v24 = vmul.f32 %v9269_v41, %v5204_v18  ;;  %v9270_v9 = vstv %s9257_s10  ;;  %v1496_v43 = vadd.f32 %v1494_v10, %v1472_v21  ;;  %v1560_v55 = vmul.f32 %v1558_v15, %v4862_v46  ;;  %s6469_s2 = sld [smem:[#allocation13]] }
 0x332   :  { %v1512_v6 = vmul.f32 %v9270_v9, %v5206_v16  ;;  %v1502_v13 = vadd.f32 %v1500_v52, %v1478_v60  ;;  %v9271_v34 = vstv %s9259_s21  ;;  %v1564_v3 = vmul.f32 %v1562_v29, %v4870_v0  ;;  %s6480_s30 = sld [smem:[#allocation15]] }
 0x333   :  { %v1518_v14 = vmul.f32 %v9271_v34, %v5214_v61  ;;  %v1508_v28 = vadd.f32 %v1506_v24, %v1484_v35  ;;  %v9275_v39 = vstv %s9262_s28  ;;  %v1570_v35 = vmul.f32 %v1568_v44, %v4900_v19  ;;  %s6488_s19 = sld [smem:[#allocation13 + $0x1]] }
 0x334   :  { %v1514_v58 = vadd.f32 %v1512_v6, %v1490_v37  ;;  %v1524_v27 = vmul.f32 %v9275_v39, %v5259_v5  ;;  %v9277_v33 = vstv %s9264_s29  ;;  %v1566_v15 = vadd.f32 %v1564_v3, %v1548_v22  ;;  %s9287_s11 = sld [smem:[#allocation174_spill]] }
 0x335   :  { %v1412_v50 = vmul.f32 %v9277_v33, %v1408_v25  ;;  %v1520_v32 = vadd.f32 %v1518_v14, %v1496_v43  ;;  %v9279_v21 = vstv %s9267_s26  ;;  %v1588_v0 = vmul.f32 %v1586_v2, %v4998_v40  ;;  %s6493_s12 = sld [smem:[#allocation15 + $0x1]] }
 0x336   :  { %v1552_v23 = vmul.f32 %v9279_v21, %v4811_v11  ;;  %v9281_v51 = vstv %s9268_s27  ;;  %v1526_v53 = vadd.f32 %v1524_v27, %v1502_v13  ;;  %v1528_v10 = vadd.f32 %v1514_v58, %v1508_v28  ;;  %s9290_s9 = sld [smem:[#allocation179_spill]] }
 0x337   :  { %v1556_v60 = vmul.f32 %v9281_v51, %v4830_v45  ;;  %v1414_v52 = vadd.f32 %v1412_v50, %v1284_v56  ;;  %v1576_v11 = vmul.f32 %v1574_v26, %v4951_v31  ;;  %v1582_v45 = vmul.f32 %v1580_v49, %v4959_v36  ;;  %s6501_s22 = sld [smem:[#allocation13 + $0x2]] }
 0x338   :  { %v1530_v46 = vadd.f32 %v1526_v53, %v1520_v32  ;;  %v1594_v19 = vmul.f32 %v1592_v47, %v5008_v20  ;;  %v1572_v31 = vadd.f32 %v1570_v35, %v1552_v23  ;;  %v1600_v36 = vmul.f32 %v1598_v17, %v5016_v1  ;;  %s9291_s4 = sld [smem:[#allocation110_spill]] }
 0x339   :  { %v1578_v44 = vadd.f32 %v1576_v11, %v1556_v60  ;;  %v1584_v29 = vadd.f32 %v1582_v45, %v1560_v55  ;;  %v1590_v49 = vadd.f32 %v1588_v0, %v1566_v15  ;;  %v1606_v40 = vmul.f32 %v1604_v38, %v5057_v57  ;;  %s9292_s24 = sld [smem:[#allocation180_spill]] }
 0x33a   :  { %v1532_v26 = vadd.f32 %v1530_v46, %v1528_v10  ;;  %v1612_v20 = vmul.f32 %v1610_v30, %v5071_v7  ;;  %v1596_v2 = vadd.f32 %v1594_v19, %v1572_v31  ;;  %v1618_v1 = vmul.f32 %v1616_v42, %v5104_v4  ;;  %s6509_s13 = sld [smem:[#allocation15 + $0x2]] }
 0x33b   :  { %v1602_v47 = vadd.f32 %v1600_v36, %v1578_v44  ;;  %v1624_v17 = vmul.f32 %v1622_v12, %v5155_v48  ;;  %v9293_v56 = vstv %s9287_s11  ;;  %v1608_v38 = vadd.f32 %v1606_v40, %v1584_v29  ;;  %s6516_s10 = sld [smem:[#allocation13 + $0x3]] }
 0x33c   :  { %v1536_v57 = vadd.f32 %v9293_v56, %v1532_v26  ;;  %v1614_v37 = vadd.f32 %v1612_v20, %v1590_v49  ;;  %v1630_v7 = vmul.f32 %v1628_v62, %v9018_v59  ;;  %s9294_s21 = sld [smem:[#allocation99_spill]]  ;;  %v1620_v30 = vadd.f32 %v1618_v1, %v1596_v2 }
 0x33d   :  { %v1626_v4 = vadd.f32 %v1624_v17, %v1602_v47  ;;  %v1636_v42 = vmul.f32 %v1634_v63, %v5204_v18  ;;  %v9295_v48 = vstv %s9290_s9  ;;  %s6524_s28 = sld [smem:[#allocation15 + $0x3]]  ;;  %v1680_v18 = vstv %s6469_s2 }
 0x33e   :  { %v1642_v12 = vmul.f32 %v9295_v48, %v5206_v16  ;;  %v1538_v41 = vmax.f32 %v1536_v57, 0.0  ;;  %v1632_v24 = vadd.f32 %v1630_v7, %v1608_v38  ;;  %v9296_v9 = vstv %s9291_s4  ;;  %s6532_s29 = sld [smem:[#allocation13 + $0x4]] }
 0x33f   :  { %v1648_v6 = vmul.f32 %v9296_v9, %v5214_v61  ;;  %v9297_v62 = vstv %s9292_s24  ;;  %v1638_v25 = vadd.f32 %v1636_v42, %v1614_v37  ;;  %v1684_v63 = vstv %s6480_s30  ;;  %s6536_s26 = sld [smem:[#allocation15 + $0x4]] }
 0x340   :  { %v1654_v59 = vmul.f32 %v9297_v62, %v5259_v5  ;;  %v1644_v43 = vadd.f32 %v1642_v12, %v1620_v30  ;;  %s9299_s0 = sld [smem:[#allocation201_spill]]  ;;  %v1690_v27 = vstv %s6488_s19  ;;  %v1694_v54 = vstv %s6493_s12 }
 0x341   :  { %v1650_v34 = vadd.f32 %v1648_v6, %v1626_v4  ;;  %s6546_s17 = sld [smem:[#allocation13 + $0x5]]  ;;  %v1700_v51 = vstv %s6501_s22  ;;  %v1704_v60 = vstv %s6509_s13  ;;  %v1710_v45 = vstv %s6516_s10 }
 0x342   :  { %v9298_v16 = vstv %s9294_s21  ;;  %v1656_v14 = vadd.f32 %v1654_v59, %v1632_v24  ;;  %v1658_v28 = vadd.f32 %v1644_v43, %v1638_v25  ;;  %s6556_s15 = sld [smem:[#allocation15 + $0x5]]  ;;  %v9300_v46 = vstv %s5990_s25 }
 0x343   :  { %v1542_v13 = vmul.f32 %v9298_v16, %v1538_v41  ;;  %s6559_s2 = sld [smem:[#allocation13 + $0x6]]  ;;  %v1714_v26 = vstv %s6524_s28  ;;  %v9304_v57 = vstv %s5999_s7 }
 0x344   :  { %v1660_v33 = vadd.f32 %v1656_v14, %v1650_v34  ;;  %s6564_s6 = sld [smem:[#allocation15 + $0x6]]  ;;  %v1720_v2 = vstv %s6532_s29 }
 0x345   :  { %v1544_v22 = vadd.f32 %v1542_v13, %v1414_v52  ;;  %s6569_s8 = sld [smem:[#allocation13 + $0x7]]  ;;  %v1724_v7 = vstv %s6536_s26 }
 0x346   :  { %v6543_v61 = vld [vmem:[%s9299_s0] sm:$0xff]  ;;  %v6551_v58 = vld [vmem:[%s9299_s0 + $0x8] sm:$0xff]  ;;  %v1662_v53 = vadd.f32 %v1660_v33, %v1658_v28  ;;  %s6575_s30 = sld [smem:[#allocation15 + $0x7]] }
 0x347   :  { %v1681_v5 = vmul.f32 %v6543_v61, %v1680_v18  ;;  %v1682_v39 = vmul.f32 %v6551_v58, %v1680_v18  ;;  %v1691_v32 = vmul.f32 %v6543_v61, %v1690_v27  ;;  %v1692_v23 = vmul.f32 %v6551_v58, %v1690_v27  ;;  %s6582_s18 = sld [smem:[#allocation13 + $0x8]] }
 0x348   :  { %v1701_v3 = vmul.f32 %v6543_v61, %v1700_v51  ;;  %v1702_v11 = vmul.f32 %v6551_v58, %v1700_v51  ;;  %v1666_v15 = vadd.f32 %v9300_v46, %v1662_v53  ;;  %v1711_v31 = vmul.f32 %v6543_v61, %v1710_v45  ;;  %s6588_s23 = sld [smem:[#allocation15 + $0x8]] }
 0x349   :  { %v1685_v50 = vadd.f32 %v1684_v63, %v1681_v5  ;;  %v1686_v21 = vadd.f32 %v1684_v63, %v1682_v39  ;;  %v1695_v55 = vadd.f32 %v1694_v54, %v1691_v32  ;;  %v1696_v35 = vadd.f32 %v1694_v54, %v1692_v23  ;;  %s6593_s25 = sld [smem:[#allocation13 + $0x9]] }
 0x34a   :  { %v1705_v19 = vadd.f32 %v1704_v60, %v1701_v3  ;;  %v1706_v29 = vadd.f32 %v1704_v60, %v1702_v11  ;;  %v1712_v36 = vmul.f32 %v6551_v58, %v1710_v45  ;;  %v1668_v49 = vmax.f32 %v1666_v15, 0.0  ;;  %s6599_s19 = sld [smem:[#allocation15 + $0x9]] }
 0x34b   :  { %v6566_v10 = vmax.f32 %v1685_v50, 0.0  ;;  %v6571_v52 = vmax.f32 %v1686_v21, 0.0  ;;  %v6579_v0 = vmax.f32 %v1695_v55, 0.0  ;;  %v6584_v44 = vmax.f32 %v1696_v35, 0.0  ;;  %s6607_s11 = sld [smem:[#allocation13 + $0xa]] }
 0x34c   :  { %v6590_v40 = vmax.f32 %v1705_v19, 0.0  ;;  %v1715_v20 = vadd.f32 %v1714_v26, %v1711_v31  ;;  %v6595_v47 = vmax.f32 %v1706_v29, 0.0  ;;  %v1716_v1 = vadd.f32 %v1714_v26, %v1712_v36  ;;  %s6612_s5 = sld [smem:[#allocation15 + $0xa]] }
 0x34d   :  { %9301 = vst [vmem:[#allocation181_spill] sm:$0xff] %v6584_v44  ;;  %v1721_v17 = vmul.f32 %v6543_v61, %v1720_v2  ;;  %v1722_v56 = vmul.f32 %v6551_v58, %v1720_v2  ;;  %v1672_v38 = vmul.f32 %v9304_v57, %v1668_v49  ;;  %v1730_v30 = vstv %s6546_s17  ;;  %s6617_s7 = sld [smem:[#allocation13 + $0xb]] }
 0x34e   :  { %9302 = vst [vmem:[#allocation182_spill] sm:$0xff] %v6590_v40  ;;  %9303 = vst [vmem:[#allocation183_spill] sm:$0xff] %v6595_v47  ;;  %v6603_v37 = vmax.f32 %v1715_v20, 0.0  ;;  %v6609_v4 = vmax.f32 %v1716_v1, 0.0  ;;  %v1731_v12 = vmul.f32 %v6543_v61, %v1730_v30  ;;  %v1732_v24 = vmul.f32 %v6551_v58, %v1730_v30  ;;  %s6624_s12 = sld [smem:[#allocation15 + $0xb]] }
 0x34f   :  { %v1725_v42 = vadd.f32 %v1724_v7, %v1721_v17  ;;  %v1726_v48 = vadd.f32 %v1724_v7, %v1722_v56  ;;  %v1674_v41 = vadd.f32 %v1672_v38, %v1544_v22  ;;  %v1734_v9 = vstv %s6556_s15  ;;  %s6634_s22 = sld [smem:[#allocation13 + $0xc]] }
 0x350   :  { %9305 = vst [vmem:[#allocation184_spill] sm:$0xff] %v6603_v37  ;;  %9306 = vst [vmem:[#allocation185_spill] sm:$0xff] %v6609_v4  ;;  %v1740_v6 = vstv %s6559_s2  ;;  %v1735_v25 = vadd.f32 %v1734_v9, %v1731_v12  ;;  %v9309_v18 = vstv %s8778_s1  ;;  %v1736_v16 = vadd.f32 %v1734_v9, %v1732_v24  ;;  %s6640_s4 = sld [smem:[#allocation15 + $0xc]] }
 0x351   :  { %v6619_v62 = vmax.f32 %v1725_v42, 0.0  ;;  %v6621_v59 = vmax.f32 %v1726_v48, 0.0  ;;  %v1741_v43 = vmul.f32 %v6543_v61, %v1740_v6  ;;  %v6630_v63 = vadd.f32 %v9309_v18, %v1674_v41  ;;  %s6647_s1 = sld [smem:[#allocation13 + $0xd]] }
 0x352   :  { %v1742_v13 = vmul.f32 %v6551_v58, %v1740_v6  ;;  %v1744_v34 = vstv %s6564_s6  ;;  %v6636_v14 = vmax.f32 %v1735_v25, 0.0  ;;  %v1750_v28 = vstv %s6569_s8  ;;  %s6654_s24 = sld [smem:[#allocation15 + $0xd]] }
 0x353   :  { %9307 = vst [vmem:[#allocation186_spill] sm:$0xff] %v6619_v62  ;;  %9308 = vst [vmem:[#allocation187_spill] sm:$0xff] %v6621_v59  ;;  %v1745_v5 = vadd.f32 %v1744_v34, %v1741_v43  ;;  %v1754_v39 = vstv %s6575_s30  ;;  %v6643_v27 = vmax.f32 %v1736_v16, 0.0  ;;  %v1751_v22 = vmul.f32 %v6543_v61, %v1750_v28  ;;  %s6659_s13 = sld [smem:[#allocation13 + $0xe]] }
 0x354   :  { %9310 = vst [vmem:[#allocation188_spill] sm:$0xff] %v6630_v63  ;;  %9311 = vst [vmem:[#allocation189_spill] sm:$0xff] %v6636_v14  ;;  %v1746_v54 = vadd.f32 %v1744_v34, %v1742_v13  ;;  %v1752_v33 = vmul.f32 %v6551_v58, %v1750_v28  ;;  %v1760_v32 = vstv %s6582_s18  ;;  %v1764_v21 = vstv %s6588_s23  ;;  %s6665_s10 = sld [smem:[#allocation15 + $0xe]] }
 0x355   :  { %3198 = vst [vmem:[#allocation22 + $0x8] sm:$0xff] %v6630_v63  ;;  %9312 = vst [vmem:[#allocation190_spill] sm:$0xff] %v6643_v27  ;;  %v6649_v50 = vmax.f32 %v1745_v5, 0.0  ;;  %v1770_v23 = vstv %s6593_s25  ;;  %v1755_v60 = vadd.f32 %v1754_v39, %v1751_v22  ;;  %v1761_v55 = vmul.f32 %v6543_v61, %v1760_v32  ;;  %s6672_s21 = sld [smem:[#allocation13 + $0xf]] }
 0x356   :  { %v6656_v51 = vmax.f32 %v1746_v54, 0.0  ;;  %v1756_v53 = vadd.f32 %v1754_v39, %v1752_v33  ;;  %v1762_v3 = vmul.f32 %v6551_v58, %v1760_v32  ;;  %v1771_v35 = vmul.f32 %v6543_v61, %v1770_v23  ;;  %s6675_s28 = sld [smem:[#allocation15 + $0xf]] }
 0x357   :  { %9313 = vst [vmem:[#allocation191_spill] sm:$0xff] %v6649_v50  ;;  %v1772_v11 = vmul.f32 %v6551_v58, %v1770_v23  ;;  %v1774_v45 = vstv %s6599_s19  ;;  %v6667_v46 = vmax.f32 %v1755_v60, 0.0  ;;  %v1765_v19 = vadd.f32 %v1764_v21, %v1761_v55  ;;  %s6682_s29 = sld [smem:[#allocation13 + $0x10]] }
 0x358   :  { %9314 = vst [vmem:[#allocation192_spill] sm:$0xff] %v6656_v51  ;;  %v6669_v15 = vmax.f32 %v1756_v53, 0.0  ;;  %v1780_v31 = vstv %s6607_s11  ;;  %v1766_v29 = vadd.f32 %v1764_v21, %v1762_v3  ;;  %v1775_v36 = vadd.f32 %v1774_v45, %v1771_v35  ;;  %s6690_s26 = sld [smem:[#allocation15 + $0x10]] }
 0x359   :  { %9315 = vst [vmem:[#allocation193_spill] sm:$0xff] %v6667_v46  ;;  %v1776_v26 = vadd.f32 %v1774_v45, %v1772_v11  ;;  %v1781_v49 = vmul.f32 %v6543_v61, %v1780_v31  ;;  %v6677_v20 = vmax.f32 %v1765_v19, 0.0  ;;  %v1782_v2 = vmul.f32 %v6551_v58, %v1780_v31  ;;  %s6695_s27 = sld [smem:[#allocation13 + $0x11]] }
 0x35a   :  { %9316 = vst [vmem:[#allocation194_spill] sm:$0xff] %v6669_v15  ;;  %v1784_v1 = vstv %s6612_s5  ;;  %v1790_v17 = vstv %s6617_s7  ;;  %v6684_v56 = vmax.f32 %v1766_v29, 0.0  ;;  %v6686_v57 = vmax.f32 %v1775_v36, 0.0  ;;  %s6702_s3 = sld [smem:[#allocation15 + $0x11]] }
 0x35b   :  { %9317 = vst [vmem:[#allocation195_spill] sm:$0xff] %v6677_v20  ;;  %v6688_v38 = vmax.f32 %v1776_v26, 0.0  ;;  %v1785_v7 = vadd.f32 %v1784_v1, %v1781_v49  ;;  %v1786_v30 = vadd.f32 %v1784_v1, %v1782_v2  ;;  %v1791_v42 = vmul.f32 %v6543_v61, %v1790_v17  ;;  %s6707_s0 = sld [smem:[#allocation13 + $0x12]] }
 0x35c   :  { %9318 = vst [vmem:[#allocation196_spill] sm:$0xff] %v6686_v57  ;;  %v1792_v48 = vmul.f32 %v6551_v58, %v1790_v17  ;;  %v1794_v12 = vstv %s6624_s12  ;;  %v1800_v24 = vstv %s6634_s22  ;;  %v1804_v9 = vstv %s6640_s4  ;;  %s6713_s17 = sld [smem:[#allocation15 + $0x12]] }
 0x35d   :  { %9319 = vst [vmem:[#allocation197_spill] sm:$0xff] %v6688_v38  ;;  %v6697_v41 = vmax.f32 %v1785_v7, 0.0  ;;  %v1810_v6 = vstv %s6647_s1  ;;  %v6704_v25 = vmax.f32 %v1786_v30, 0.0  ;;  %v1795_v43 = vadd.f32 %v1794_v12, %v1791_v42  ;;  %s6720_s16 = sld [smem:[#allocation13 + $0x13]] }
 0x35e   :  { %v1796_v18 = vadd.f32 %v1794_v12, %v1792_v48  ;;  %v1801_v16 = vmul.f32 %v6543_v61, %v1800_v24  ;;  %v1802_v13 = vmul.f32 %v6551_v58, %v1800_v24  ;;  %v1811_v34 = vmul.f32 %v6543_v61, %v1810_v6  ;;  %s6723_s14 = sld [smem:[#allocation15 + $0x13]] }
 0x35f   :  { %9320 = vst [vmem:[#allocation198_spill] sm:$0xff] %v6697_v41  ;;  %v1812_v5 = vmul.f32 %v6551_v58, %v1810_v6  ;;  %v1814_v28 = vstv %s6654_s24  ;;  %v6715_v39 = vmax.f32 %v1795_v43, 0.0  ;;  %v1820_v33 = vstv %s6659_s13  ;;  %s6730_s15 = sld [smem:[#allocation16]] }
 0x360   :  { %v6717_v54 = vmax.f32 %v1796_v18, 0.0  ;;  %v1805_v22 = vadd.f32 %v1804_v9, %v1801_v16  ;;  %v1806_v32 = vadd.f32 %v1804_v9, %v1802_v13  ;;  %v1815_v21 = vadd.f32 %v1814_v28, %v1811_v34  ;;  %s6738_s2 = sld [smem:[#allocation16 + $0x80]] }
 0x361   :  { %9321 = vst [vmem:[#allocation199_spill] sm:$0xff] %v6715_v39  ;;  %v1816_v23 = vadd.f32 %v1814_v28, %v1812_v5  ;;  %v1821_v60 = vmul.f32 %v6543_v61, %v1820_v33  ;;  %v1822_v55 = vmul.f32 %v6551_v58, %v1820_v33  ;;  %v1824_v3 = vstv %s6665_s10  ;;  %s6743_s6 = sld [smem:[#allocation16 + $0x100]] }
 0x362   :  { %9322 = vst [vmem:[#allocation200_spill] sm:$0xff] %v6717_v54  ;;  %v6725_v53 = vmax.f32 %v1805_v22, 0.0  ;;  %v1830_v35 = vstv %s6672_s21  ;;  %v6732_v11 = vmax.f32 %v1806_v32, 0.0  ;;  %v6734_v45 = vmax.f32 %v1815_v21, 0.0  ;;  %s6750_s8 = sld [smem:[#allocation16 + $0x180]] }
 0x363   :  { %v6736_v19 = vmax.f32 %v1816_v23, 0.0  ;;  %v1825_v31 = vadd.f32 %v1824_v3, %v1821_v60  ;;  %v1826_v29 = vadd.f32 %v1824_v3, %v1822_v55  ;;  %v1831_v36 = vmul.f32 %v6543_v61, %v1830_v35  ;;  %s6755_s30 = sld [smem:[#allocation16 + $0x200]] }
 0x364   :  { %v1832_v26 = vmul.f32 %v6551_v58, %v1830_v35  ;;  %v1834_v49 = vstv %s6675_s28  ;;  %v1840_v1 = vstv %s6682_s29  ;;  %v1844_v17 = vstv %s6690_s26  ;;  %s6761_s18 = sld [smem:[#allocation16 + $0x280]] }
 0x365   :  { %v6745_v2 = vmax.f32 %v1825_v31, 0.0  ;;  %v1850_v7 = vstv %s6695_s27  ;;  %v6752_v30 = vmax.f32 %v1826_v29, 0.0  ;;  %v1835_v42 = vadd.f32 %v1834_v49, %v1831_v36  ;;  %s6768_s23 = sld [smem:[#allocation16 + $0x300]] }
 0x366   :  { %v1836_v48 = vadd.f32 %v1834_v49, %v1832_v26  ;;  %v1841_v12 = vmul.f32 %v6543_v61, %v1840_v1  ;;  %v1842_v24 = vmul.f32 %v6551_v58, %v1840_v1  ;;  %v1851_v9 = vmul.f32 %v6543_v61, %v1850_v7  ;;  %s6771_s25 = sld [smem:[#allocation16 + $0x380]] }
 0x367   :  { %v1852_v6 = vmul.f32 %v6551_v58, %v1850_v7  ;;  %v1854_v43 = vstv %s6702_s3  ;;  %v6763_v18 = vmax.f32 %v1835_v42, 0.0  ;;  %v1860_v34 = vstv %s6707_s0  ;;  %s6778_s19 = sld [smem:[#allocation16 + $0x400]] }
 0x368   :  { %v6765_v16 = vmax.f32 %v1836_v48, 0.0  ;;  %v1845_v13 = vadd.f32 %v1844_v17, %v1841_v12  ;;  %v1846_v5 = vadd.f32 %v1844_v17, %v1842_v24  ;;  %v1855_v28 = vadd.f32 %v1854_v43, %v1851_v9  ;;  %s6786_s11 = sld [smem:[#allocation16 + $0x480]] }
 0x369   :  { %v1856_v22 = vadd.f32 %v1854_v43, %v1852_v6  ;;  %v1861_v33 = vmul.f32 %v6543_v61, %v1860_v34  ;;  %v1862_v21 = vmul.f32 %v6551_v58, %v1860_v34  ;;  %v1864_v23 = vstv %s6713_s17  ;;  %s6799_s5 = sld [smem:[#allocation16 + $0x500]] }
 0x36a   :  { %v6773_v32 = vmax.f32 %v1845_v13, 0.0  ;;  %v1870_v60 = vstv %s6720_s16  ;;  %v6780_v55 = vmax.f32 %v1846_v5, 0.0  ;;  %v6782_v3 = vmax.f32 %v1855_v28, 0.0  ;;  %s6805_s7 = sld [smem:[#allocation16 + $0x580]] }
 0x36b   :  { %v6784_v35 = vmax.f32 %v1856_v22, 0.0  ;;  %v1865_v31 = vadd.f32 %v1864_v23, %v1861_v33  ;;  %v1866_v29 = vadd.f32 %v1864_v23, %v1862_v21  ;;  %v1871_v36 = vmul.f32 %v6543_v61, %v1870_v60  ;;  %s6813_s12 = sld [smem:[#allocation16 + $0x600]] }
 0x36c   :  { %v1872_v26 = vmul.f32 %v6551_v58, %v1870_v60  ;;  %v1874_v49 = vstv %s6723_s14  ;;  %v1880_v17 = vstv %s6730_s15  ;;  %v1884_v7 = vstv %s6738_s2  ;;  %s6819_s20 = sld [smem:[#allocation16 + $0x680]] }
 0x36d   :  { %v6791_v1 = vmax.f32 %v1865_v31, 0.0  ;;  %v1888_v42 = vstv %s6743_s6  ;;  %v6796_v48 = vmax.f32 %v1866_v29, 0.0  ;;  %v1875_v12 = vadd.f32 %v1874_v49, %v1871_v36  ;;  %s6829_s9 = sld [smem:[#allocation16 + $0x700]] }
 0x36e   :  { %v1876_v24 = vadd.f32 %v1874_v49, %v1872_v26  ;;  %v1881_v9 = vmul.f32 %v1880_v17, %v6566_v10  ;;  %v1882_v61 = vmul.f32 %v1880_v17, %v6571_v52  ;;  %v1885_v58 = vmul.f32 %v1884_v7, %v6579_v0  ;;  %s6831_s22 = sld [smem:[#allocation16 + $0x780]] }
 0x36f   :  { %v1886_v6 = vmul.f32 %v1884_v7, %v6584_v44  ;;  %v1889_v43 = vmul.f32 %v1888_v42, %v6590_v40  ;;  %v6807_v13 = vmax.f32 %v1875_v12, 0.0  ;;  %v1890_v5 = vmul.f32 %v1888_v42, %v6595_v47  ;;  %s6837_s4 = sld [smem:[#allocation16 + $0x800]] }
 0x370   :  { %v6809_v34 = vmax.f32 %v1876_v24, 0.0  ;;  %v1892_v28 = vstv %s6750_s8  ;;  %v1896_v21 = vstv %s6755_s30  ;;  %v1902_v23 = vstv %s6761_s18  ;;  %s6843_s1 = sld [smem:[#allocation16 + $0x880]] }
 0x371   :  { %v1893_v22 = vmul.f32 %v1892_v28, %v6603_v37  ;;  %v1894_v33 = vmul.f32 %v1892_v28, %v6609_v4  ;;  %v1897_v60 = vmul.f32 %v1896_v21, %v6619_v62  ;;  %v1898_v31 = vmul.f32 %v1896_v21, %v6621_v59  ;;  %s6853_s24 = sld [smem:[#allocation16 + $0x900]] }
 0x372   :  { %v1903_v29 = vmul.f32 %v1902_v23, %v6636_v14  ;;  %v1904_v36 = vmul.f32 %v1902_v23, %v6643_v27  ;;  %v1908_v26 = vstv %s6768_s23  ;;  %v1914_v49 = vstv %s6771_s25  ;;  %s6859_s13 = sld [smem:[#allocation16 + $0x980]] }
 0x373   :  { %v1920_v17 = vstv %s6778_s19  ;;  %v1926_v7 = vstv %s6786_s11  ;;  %v1899_v42 = vadd.f32 %v1897_v60, %v1881_v9  ;;  %v1900_v12 = vadd.f32 %v1898_v31, %v1882_v61  ;;  %s6861_s10 = sld [smem:[#allocation16 + $0x1]] }
 0x374   :  { %v1905_v24 = vadd.f32 %v1903_v29, %v1885_v58  ;;  %v1906_v28 = vadd.f32 %v1904_v36, %v1886_v6  ;;  %v1909_v63 = vmul.f32 %v1908_v26, %v6649_v50  ;;  %v1910_v21 = vmul.f32 %v1908_v26, %v6656_v51  ;;  %s6863_s21 = sld [smem:[#allocation16 + $0x81]] }
 0x375   :  { %v1915_v8 = vmul.f32 %v1914_v49, %v6667_v46  ;;  %v1916_v23 = vmul.f32 %v1914_v49, %v6669_v15  ;;  %v1921_v9 = vmul.f32 %v1920_v17, %v6677_v20  ;;  %v1922_v61 = vmul.f32 %v1920_v17, %v6684_v56  ;;  %s6869_s28 = sld [smem:[#allocation18]] }
 0x376   :  { %v1927_v58 = vmul.f32 %v1926_v7, %v6686_v57  ;;  %v1928_v6 = vmul.f32 %v1926_v7, %v6688_v38  ;;  %v1911_v60 = vadd.f32 %v1909_v63, %v1889_v43  ;;  %v1912_v31 = vadd.f32 %v1910_v21, %v1890_v5  ;;  %s6875_s29 = sld [smem:[#allocation16 + $0x101]] }
 0x377   :  { %v1917_v29 = vadd.f32 %v1915_v8, %v1893_v22  ;;  %v1918_v36 = vadd.f32 %v1916_v23, %v1894_v33  ;;  %v1923_v26 = vadd.f32 %v1921_v9, %v1899_v42  ;;  %v1924_v49 = vadd.f32 %v1922_v61, %v1900_v12  ;;  %s6881_s26 = sld [smem:[#allocation16 + $0x181]] }
 0x378   :  { %v1929_v15 = vadd.f32 %v1927_v58, %v1905_v24  ;;  %v1930_v46 = vadd.f32 %v1928_v6, %v1906_v28  ;;  %v1932_v51 = vstv %s6799_s5  ;;  %v1938_v50 = vstv %s6805_s7  ;;  %s6883_s27 = sld [smem:[#allocation16 + $0x201]] }
 0x379   :  { %v1944_v20 = vstv %s6813_s12  ;;  %v1950_v4 = vstv %s6819_s20  ;;  %v1933_v17 = vmul.f32 %v1932_v51, %v6697_v41  ;;  %v1934_v57 = vmul.f32 %v1932_v51, %v6704_v25  ;;  %s6885_s3 = sld [smem:[#allocation16 + $0x281]] }
 0x37a   :  { %v1939_v7 = vmul.f32 %v1938_v50, %v6715_v39  ;;  %v1940_v38 = vmul.f32 %v1938_v50, %v6717_v54  ;;  %v1945_v8 = vmul.f32 %v1944_v20, %v6725_v53  ;;  %v1946_v63 = vmul.f32 %v1944_v20, %v6732_v11  ;;  %s6889_s0 = sld [smem:[#allocation16 + $0x301]] }
 0x37b   :  { %v1951_v43 = vmul.f32 %v1950_v4, %v6734_v45  ;;  %v1952_v5 = vmul.f32 %v1950_v4, %v6736_v19  ;;  %v1935_v51 = vadd.f32 %v1933_v17, %v1911_v60  ;;  %v1936_v22 = vadd.f32 %v1934_v57, %v1912_v31  ;;  %s6895_s17 = sld [smem:[#allocation16 + $0x381]] }
 0x37c   :  { %v1941_v33 = vadd.f32 %v1939_v7, %v1917_v29  ;;  %v1942_v50 = vadd.f32 %v1940_v38, %v1918_v36  ;;  %v1947_v42 = vadd.f32 %v1945_v8, %v1923_v26  ;;  %v1948_v12 = vadd.f32 %v1946_v63, %v1924_v49  ;;  %s6899_s16 = sld [smem:[#allocation16 + $0x401]] }
 0x37d   :  { %v1953_v24 = vadd.f32 %v1951_v43, %v1929_v15  ;;  %v1954_v28 = vadd.f32 %v1952_v5, %v1930_v46  ;;  %v1956_v20 = vstv %s6829_s9  ;;  %v1962_v21 = vstv %s6831_s22  ;;  %s6902_s14 = sld [smem:[#allocation16 + $0x481]] }
 0x37e   :  { %v1968_v23 = vstv %s6837_s4  ;;  %v1974_v9 = vstv %s6843_s1  ;;  %v1957_v4 = vmul.f32 %v1956_v20, %v6745_v2  ;;  %v1958_v57 = vmul.f32 %v1956_v20, %v6752_v30  ;;  %s6910_s15 = sld [smem:[#allocation16 + $0x501]] }
 0x37f   :  { %v1963_v38 = vmul.f32 %v1962_v21, %v6763_v18  ;;  %v1964_v61 = vmul.f32 %v1962_v21, %v6765_v16  ;;  %v1969_v46 = vmul.f32 %v1968_v23, %v6773_v32  ;;  %v1970_v15 = vmul.f32 %v1968_v23, %v6780_v55  ;;  %s6914_s2 = sld [smem:[#allocation16 + $0x581]] }
 0x380   :  { %v1975_v58 = vmul.f32 %v1974_v9, %v6782_v3  ;;  %v1976_v6 = vmul.f32 %v1974_v9, %v6784_v35  ;;  %v1959_v60 = vadd.f32 %v1957_v4, %v1935_v51  ;;  %v1960_v31 = vadd.f32 %v1958_v57, %v1936_v22  ;;  %s6924_s6 = sld [smem:[#allocation16 + $0x601]] }
 0x381   :  { %v1965_v29 = vadd.f32 %v1963_v38, %v1941_v33  ;;  %v1966_v36 = vadd.f32 %v1964_v61, %v1942_v50  ;;  %v1971_v26 = vadd.f32 %v1969_v46, %v1947_v42  ;;  %v1972_v49 = vadd.f32 %v1970_v15, %v1948_v12  ;;  %s6932_s8 = sld [smem:[#allocation16 + $0x681]] }
 0x382   :  { %v1977_v17 = vadd.f32 %v1975_v58, %v1953_v24  ;;  %v1978_v7 = vadd.f32 %v1976_v6, %v1954_v28  ;;  %v1980_v8 = vstv %s6853_s24  ;;  %v1986_v63 = vstv %s6859_s13  ;;  %s6936_s30 = sld [smem:[#allocation16 + $0x701]] }
 0x383   :  { %v1981_v43 = vmul.f32 %v1980_v8, %v6791_v1  ;;  %v1982_v5 = vmul.f32 %v1980_v8, %v6796_v48  ;;  %v1987_v51 = vmul.f32 %v1986_v63, %v6807_v13  ;;  %v1988_v22 = vmul.f32 %v1986_v63, %v6809_v34  ;;  %s6942_s18 = sld [smem:[#allocation16 + $0x781]] }
 0x384   :  { %v1991_v33 = vadd.f32 %v1977_v17, %v1971_v26  ;;  %v1992_v50 = vadd.f32 %v1978_v7, %v1972_v49  ;;  %v2008_v42 = vstv %s6861_s10  ;;  %v2012_v12 = vstv %s6863_s21  ;;  %s6944_s23 = sld [smem:[#allocation19]] }
 0x385   :  { %v1983_v24 = vadd.f32 %v1981_v43, %v1959_v60  ;;  %v1984_v28 = vadd.f32 %v1982_v5, %v1960_v31  ;;  %v1989_v20 = vadd.f32 %v1987_v51, %v1965_v29  ;;  %v1990_v21 = vadd.f32 %v1988_v22, %v1966_v36  ;;  %s6948_s25 = sld [smem:[#allocation16 + $0x801]] }
 0x386   :  { %v1998_v23 = vstv %s6869_s28  ;;  %v2009_v57 = vmul.f32 %v2008_v42, %v6566_v10  ;;  %v2016_v38 = vstv %s6875_s29  ;;  %v2010_v61 = vmul.f32 %v2008_v42, %v6571_v52  ;;  %s6954_s19 = sld [smem:[#allocation16 + $0x881]] }
 0x387   :  { %v1993_v9 = vadd.f32 %v1989_v20, %v1983_v24  ;;  %v1994_v4 = vadd.f32 %v1990_v21, %v1984_v28  ;;  %v2013_v46 = vmul.f32 %v2012_v12, %v6579_v0  ;;  %v2014_v15 = vmul.f32 %v2012_v12, %v6584_v44  ;;  %v9324_v24 = vld [vmem:[#allocation191_spill] sm:$0xff]  ;;  %v9325_v20 = vld [vmem:[#allocation192_spill] sm:$0xff]  ;;  %s6958_s11 = sld [smem:[#allocation16 + $0x901]] }
 0x388   :  { %v2020_v58 = vstv %s6881_s26  ;;  %v2024_v31 = vstv %s6883_s27  ;;  %v2030_v29 = vstv %s6885_s3  ;;  %v2017_v36 = vmul.f32 %v2016_v38, %v6590_v40  ;;  %s6962_s5 = sld [smem:[#allocation16 + $0x981]] }
 0x389   :  { %v1995_v6 = vadd.f32 %v1993_v9, %v1991_v33  ;;  %v1996_v60 = vadd.f32 %v1994_v4, %v1992_v50  ;;  %v2018_v26 = vmul.f32 %v2016_v38, %v6595_v47  ;;  %v2025_v49 = vmul.f32 %v2024_v31, %v6619_v62  ;;  %v9323_v33 = vld [vmem:[#allocation185_spill] sm:$0xff]  ;;  %v9327_v38 = vld [vmem:[#allocation194_spill] sm:$0xff]  ;;  %s6966_s7 = sld [smem:[#allocation18 + $0x1]] }
 0x38a   :  { %v2026_v17 = vmul.f32 %v2024_v31, %v6621_v59  ;;  %v2031_v7 = vmul.f32 %v2030_v29, %v6636_v14  ;;  %v2032_v8 = vmul.f32 %v2030_v29, %v6643_v27  ;;  %v2036_v63 = vstv %s6889_s0  ;;  %v9326_v9 = vld [vmem:[#allocation193_spill] sm:$0xff]  ;;  %s6970_s12 = sld [smem:[#allocation19 + $0x1]] }
 0x38b   :  { %v2042_v43 = vstv %s6895_s17  ;;  %v6926_v5 = vadd.f32 %v1998_v23, %v1995_v6  ;;  %v6928_v51 = vadd.f32 %v1998_v23, %v1996_v60  ;;  %v2021_v22 = vmul.f32 %v2020_v58, %v6603_v37  ;;  %s6976_s20 = sld [smem:[#allocation16 + $0x2]] }
 0x38c   :  { %v2022_v50 = vmul.f32 %v2020_v58, %v9323_v33  ;;  %v2027_v42 = vadd.f32 %v2025_v49, %v2009_v57  ;;  %v2028_v12 = vadd.f32 %v2026_v17, %v2010_v61  ;;  %v2037_v28 = vmul.f32 %v2036_v63, %v9324_v24  ;;  %v9328_v17 = vld [vmem:[#allocation195_spill] sm:$0xff]  ;;  %s6980_s9 = sld [smem:[#allocation16 + $0x82]] }
 0x38d   :  { %v2038_v21 = vmul.f32 %v2036_v63, %v9325_v20  ;;  %v2043_v4 = vmul.f32 %v2042_v43, %v9326_v9  ;;  %v2044_v6 = vmul.f32 %v2042_v43, %v9327_v38  ;;  %v2048_v23 = vstv %s6899_s16  ;;  %v9329_v43 = vld [vmem:[#allocation196_spill] sm:$0xff]  ;;  %v9330_v20 = vld [vmem:[#allocation197_spill] sm:$0xff]  ;;  %s6984_s22 = sld [smem:[#allocation16 + $0x102]] }
 0x38e   :  { %v2054_v60 = vstv %s6902_s14  ;;  %v2033_v57 = vadd.f32 %v2031_v7, %v2013_v46  ;;  %v2034_v61 = vadd.f32 %v2032_v8, %v2014_v15  ;;  %v2039_v58 = vadd.f32 %v2037_v28, %v2017_v36  ;;  %s6988_s4 = sld [smem:[#allocation16 + $0x182]] }
 0x38f   :  { %v2040_v31 = vadd.f32 %v2038_v21, %v2018_v26  ;;  %v2045_v29 = vadd.f32 %v2043_v4, %v2021_v22  ;;  %v2046_v49 = vadd.f32 %v2044_v6, %v2022_v50  ;;  %v2049_v63 = vmul.f32 %v2048_v23, %v9328_v17  ;;  %s6992_s1 = sld [smem:[#allocation16 + $0x202]] }
 0x390   :  { %v2050_v9 = vmul.f32 %v2048_v23, %v6684_v56  ;;  %v2055_v38 = vmul.f32 %v2054_v60, %v9329_v43  ;;  %v2056_v24 = vmul.f32 %v2054_v60, %v9330_v20  ;;  %v2060_v33 = vstv %s6910_s15  ;;  %s6998_s24 = sld [smem:[#allocation16 + $0x282]] }
 0x391   :  { %v2066_v37 = vstv %s6914_s2  ;;  %v2051_v46 = vadd.f32 %v2049_v63, %v2027_v42  ;;  %v2061_v36 = vmul.f32 %v2060_v33, %v6697_v41  ;;  %v2062_v26 = vmul.f32 %v2060_v33, %v6704_v25  ;;  %s7002_s13 = sld [smem:[#allocation16 + $0x302]] }
 0x392   :  { %v2052_v15 = vadd.f32 %v2050_v9, %v2028_v12  ;;  %v2057_v7 = vadd.f32 %v2055_v38, %v2033_v57  ;;  %v2058_v8 = vadd.f32 %v2056_v24, %v2034_v61  ;;  %v2067_v22 = vmul.f32 %v2066_v37, %v6715_v39  ;;  %s7007_s10 = sld [smem:[#allocation16 + $0x382]] }
 0x393   :  { %v2068_v50 = vmul.f32 %v2066_v37, %v6717_v54  ;;  %v2063_v28 = vadd.f32 %v2061_v36, %v2039_v58  ;;  %v2064_v21 = vadd.f32 %v2062_v26, %v2040_v31  ;;  %v2072_v42 = vstv %s6924_s6  ;;  %s7009_s21 = sld [smem:[#allocation16 + $0x402]] }
 0x394   :  { %v2078_v12 = vstv %s6932_s8  ;;  %v2069_v9 = vadd.f32 %v2067_v22, %v2045_v29  ;;  %v2073_v4 = vmul.f32 %v2072_v42, %v6725_v53  ;;  %v2074_v24 = vmul.f32 %v2072_v42, %v6732_v11  ;;  %s7015_s28 = sld [smem:[#allocation16 + $0x482]] }
 0x395   :  { %v2070_v33 = vadd.f32 %v2068_v50, %v2046_v49  ;;  %v2079_v38 = vmul.f32 %v2078_v12, %v6734_v45  ;;  %v2080_v37 = vmul.f32 %v2078_v12, %v6736_v19  ;;  %v2084_v6 = vstv %s6936_s30  ;;  %s7019_s29 = sld [smem:[#allocation16 + $0x502]] }
 0x396   :  { %v2090_v23 = vstv %s6942_s18  ;;  %v2075_v60 = vadd.f32 %v2073_v4, %v2051_v46  ;;  %v2076_v57 = vadd.f32 %v2074_v24, %v2052_v15  ;;  %v2085_v61 = vmul.f32 %v2084_v6, %v6745_v2  ;;  %s7025_s26 = sld [smem:[#allocation16 + $0x582]] }
 0x397   :  { %v2086_v58 = vmul.f32 %v2084_v6, %v6752_v30  ;;  %v2081_v31 = vadd.f32 %v2079_v38, %v2057_v7  ;;  %v2082_v29 = vadd.f32 %v2080_v37, %v2058_v8  ;;  %v2091_v49 = vmul.f32 %v2090_v23, %v6763_v18  ;;  %s7039_s27 = sld [smem:[#allocation16 + $0x602]] }
 0x398   :  { %v2092_v63 = vmul.f32 %v2090_v23, %v6765_v16  ;;  %v2087_v36 = vadd.f32 %v2085_v61, %v2063_v28  ;;  %v2096_v46 = vstv %s6948_s25  ;;  %v2102_v15 = vstv %s6954_s19  ;;  %s7045_s3 = sld [smem:[#allocation16 + $0x682]] }
 0x399   :  { %v2088_v26 = vadd.f32 %v2086_v58, %v2064_v21  ;;  %v2093_v22 = vadd.f32 %v2091_v49, %v2069_v9  ;;  %v2097_v42 = vmul.f32 %v2096_v46, %v6773_v32  ;;  %v2098_v7 = vmul.f32 %v2096_v46, %v6780_v55  ;;  %s7051_s0 = sld [smem:[#allocation16 + $0x702]] }
 0x39a   :  { %v2094_v50 = vadd.f32 %v2092_v63, %v2070_v33  ;;  %v2103_v8 = vmul.f32 %v2102_v15, %v6782_v3  ;;  %v2104_v12 = vmul.f32 %v2102_v15, %v6784_v35  ;;  %v2108_v4 = vstv %s6958_s11  ;;  %s7055_s17 = sld [smem:[#allocation16 + $0x782]] }
 0x39b   :  { %v2114_v28 = vstv %s6962_s5  ;;  %v2099_v21 = vadd.f32 %v2097_v42, %v2075_v60  ;;  %v2100_v24 = vadd.f32 %v2098_v7, %v2076_v57  ;;  %v2109_v9 = vmul.f32 %v2108_v4, %v6791_v1  ;;  %s7063_s16 = sld [smem:[#allocation16 + $0x802]] }
 0x39c   :  { %v2110_v33 = vmul.f32 %v2108_v4, %v6796_v48  ;;  %v2105_v38 = vadd.f32 %v2103_v8, %v2081_v31  ;;  %v2106_v37 = vadd.f32 %v2104_v12, %v2082_v29  ;;  %v2115_v6 = vmul.f32 %v2114_v28, %v6807_v13  ;;  %s7065_s14 = sld [smem:[#allocation16 + $0x882]] }
 0x39d   :  { %v2116_v23 = vmul.f32 %v2114_v28, %v6809_v34  ;;  %v2111_v58 = vadd.f32 %v2109_v9, %v2087_v36  ;;  %v2138_v15 = vstv %s6976_s20  ;;  %v2142_v42 = vstv %s6980_s9  ;;  %s7071_s15 = sld [smem:[#allocation16 + $0x902]] }
 0x39e   :  { %v2112_v60 = vadd.f32 %v2110_v33, %v2088_v26  ;;  %v2117_v57 = vadd.f32 %v2115_v6, %v2093_v22  ;;  %v2119_v63 = vadd.f32 %v2105_v38, %v2099_v21  ;;  %v2120_v46 = vadd.f32 %v2106_v37, %v2100_v24  ;;  %s7077_s2 = sld [smem:[#allocation16 + $0x982]] }
 0x39f   :  { %v2118_v49 = vadd.f32 %v2116_v23, %v2094_v50  ;;  %v2126_v22 = vstv %s6966_s7  ;;  %v2146_v50 = vstv %s6984_s22  ;;  %v2139_v8 = vmul.f32 %v2138_v15, %v6566_v10  ;;  %s7083_s6 = sld [smem:[#allocation18 + $0x2]] }
 0x3a0   :  { %v2121_v36 = vadd.f32 %v2117_v57, %v2111_v58  ;;  %v2140_v12 = vmul.f32 %v2138_v15, %v6571_v52  ;;  %v2150_v4 = vstv %s6988_s4  ;;  %v2143_v24 = vmul.f32 %v2142_v42, %v6579_v0  ;;  %s7089_s8 = sld [smem:[#allocation19 + $0x2]] }
 0x3a1   :  { %v2122_v26 = vadd.f32 %v2118_v49, %v2112_v60  ;;  %v2144_v9 = vmul.f32 %v2142_v42, %v6584_v44  ;;  %v2147_v33 = vmul.f32 %v2146_v50, %v6590_v40  ;;  %v2154_v38 = vstv %s6992_s1  ;;  %v9331_v42 = vld [vmem:[#allocation184_spill] sm:$0xff]  ;;  %s7095_s30 = sld [smem:[#allocation16 + $0x3]] }
 0x3a2   :  { %v2123_v28 = vadd.f32 %v2121_v36, %v2119_v63  ;;  %v2160_v37 = vstv %s6998_s24  ;;  %v2166_v6 = vstv %s7002_s13  ;;  %v2155_v60 = vmul.f32 %v2154_v38, %v6619_v62  ;;  %s7097_s18 = sld [smem:[#allocation16 + $0x83]] }
 0x3a3   :  { %v2124_v21 = vadd.f32 %v2122_v26, %v2120_v46  ;;  %v2156_v57 = vmul.f32 %v2154_v38, %v6621_v59  ;;  %v2148_v49 = vmul.f32 %v2146_v50, %v6595_v47  ;;  %v2161_v63 = vmul.f32 %v2160_v37, %v6636_v14  ;;  %v9332_v26 = vld [vmem:[#allocation185_spill] sm:$0xff]  ;;  %v9334_v38 = vld [vmem:[#allocation192_spill] sm:$0xff]  ;;  %s7099_s25 = sld [smem:[#allocation16 + $0x103]] }
 0x3a4   :  { %v7033_v23 = vadd.f32 %v2126_v22, %v2123_v28  ;;  %v2162_v46 = vmul.f32 %v2160_v37, %v6643_v27  ;;  %v2172_v15 = vstv %s7007_s10  ;;  %v2151_v36 = vmul.f32 %v2150_v4, %v9331_v42  ;;  %v9333_v28 = vld [vmem:[#allocation191_spill] sm:$0xff]  ;;  %v9335_v27 = vld [vmem:[#allocation193_spill] sm:$0xff]  ;;  %s7105_s19 = sld [smem:[#allocation16 + $0x183]] }
 0x3a5   :  { %v7035_v58 = vadd.f32 %v2126_v22, %v2124_v21  ;;  %v2152_v22 = vmul.f32 %v2150_v4, %v9332_v26  ;;  %v2167_v21 = vmul.f32 %v2166_v6, %v9333_v28  ;;  %v2168_v7 = vmul.f32 %v2166_v6, %v9334_v38  ;;  %v9336_v4 = vld [vmem:[#allocation194_spill] sm:$0xff]  ;;  %s7111_s11 = sld [smem:[#allocation16 + $0x203]] }
 0x3a6   :  { %v2157_v29 = vadd.f32 %v2155_v60, %v2139_v8  ;;  %v2158_v61 = vadd.f32 %v2156_v57, %v2140_v12  ;;  %v2163_v31 = vadd.f32 %v2161_v63, %v2143_v24  ;;  %v2164_v42 = vadd.f32 %v2162_v46, %v2144_v9  ;;  %s7117_s5 = sld [smem:[#allocation16 + $0x283]] }
 0x3a7   :  { %v2173_v14 = vmul.f32 %v2172_v15, %v9335_v27  ;;  %v2174_v26 = vmul.f32 %v2172_v15, %v9336_v4  ;;  %v2178_v59 = vstv %s7009_s21  ;;  %v2184_v28 = vstv %s7015_s28  ;;  %s7119_s7 = sld [smem:[#allocation16 + $0x303]] }
 0x3a8   :  { %v2190_v62 = vstv %s7019_s29  ;;  %v2196_v6 = vstv %s7025_s26  ;;  %v2169_v38 = vadd.f32 %v2167_v21, %v2147_v33  ;;  %v2170_v50 = vadd.f32 %v2168_v7, %v2148_v49  ;;  %s7121_s20 = sld [smem:[#allocation16 + $0x383]] }
 0x3a9   :  { %v2175_v47 = vadd.f32 %v2173_v14, %v2151_v36  ;;  %v2176_v37 = vadd.f32 %v2174_v26, %v2152_v22  ;;  %v2179_v8 = vmul.f32 %v2178_v59, %v9328_v17  ;;  %v2180_v12 = vmul.f32 %v2178_v59, %v6684_v56  ;;  %s7137_s9 = sld [smem:[#allocation16 + $0x403]] }
 0x3aa   :  { %v2185_v24 = vmul.f32 %v2184_v28, %v9329_v43  ;;  %v2186_v9 = vmul.f32 %v2184_v28, %v9330_v20  ;;  %v2191_v33 = vmul.f32 %v2190_v62, %v6697_v41  ;;  %v2192_v14 = vmul.f32 %v2190_v62, %v6704_v25  ;;  %s7169_s22 = sld [smem:[#allocation16 + $0x583]] }
 0x3ab   :  { %v2197_v7 = vmul.f32 %v2196_v6, %v6715_v39  ;;  %v2198_v60 = vmul.f32 %v2196_v6, %v6717_v54  ;;  %v2181_v59 = vadd.f32 %v2179_v8, %v2157_v29  ;;  %v2182_v57 = vadd.f32 %v2180_v12, %v2158_v61  ;;  %s7179_s4 = sld [smem:[#allocation16 + $0x603]] }
 0x3ac   :  { %v2187_v49 = vadd.f32 %v2185_v24, %v2163_v31  ;;  %v2188_v63 = vadd.f32 %v2186_v9, %v2164_v42  ;;  %v2193_v46 = vadd.f32 %v2191_v33, %v2169_v38  ;;  %v2194_v15 = vadd.f32 %v2192_v14, %v2170_v50  ;;  %s7185_s1 = sld [smem:[#allocation16 + $0x683]] }
 0x3ad   :  { %v2199_v36 = vadd.f32 %v2197_v7, %v2175_v47  ;;  %v2200_v26 = vadd.f32 %v2198_v60, %v2176_v37  ;;  %v2202_v22 = vstv %s7039_s27  ;;  %v2208_v28 = vstv %s7045_s3  ;;  %s7189_s24 = sld [smem:[#allocation16 + $0x703]] }
 0x3ae   :  { %v2214_v21 = vstv %s7051_s0  ;;  %v2220_v41 = vstv %s7055_s17  ;;  %v2203_v62 = vmul.f32 %v2202_v22, %v6725_v53  ;;  %v2204_v6 = vmul.f32 %v2202_v22, %v6732_v11  ;;  %s7195_s13 = sld [smem:[#allocation16 + $0x783]] }
 0x3af   :  { %v2209_v54 = vmul.f32 %v2208_v28, %v6734_v45  ;;  %v2210_v61 = vmul.f32 %v2208_v28, %v6736_v19  ;;  %v2215_v47 = vmul.f32 %v2214_v21, %v6745_v2  ;;  %v2216_v31 = vmul.f32 %v2214_v21, %v6752_v30  ;;  %s7199_s10 = sld [smem:[#allocation16 + $0x803]] }
 0x3b0   :  { %v2221_v29 = vmul.f32 %v2220_v41, %v6763_v18  ;;  %v2222_v42 = vmul.f32 %v2220_v41, %v6765_v16  ;;  %v2205_v38 = vadd.f32 %v2203_v62, %v2181_v59  ;;  %v2206_v50 = vadd.f32 %v2204_v6, %v2182_v57  ;;  %s7205_s21 = sld [smem:[#allocation16 + $0x883]] }
 0x3b1   :  { %v2211_v37 = vadd.f32 %v2209_v54, %v2187_v49  ;;  %v2212_v8 = vadd.f32 %v2210_v61, %v2188_v63  ;;  %v2217_v12 = vadd.f32 %v2215_v47, %v2193_v46  ;;  %v2218_v24 = vadd.f32 %v2216_v31, %v2194_v15  ;;  %s7209_s28 = sld [smem:[#allocation16 + $0x903]] }
 0x3b2   :  { %v2223_v9 = vadd.f32 %v2221_v29, %v2199_v36  ;;  %v2224_v33 = vadd.f32 %v2222_v42, %v2200_v26  ;;  %v2226_v14 = vstv %s7063_s16  ;;  %v2232_v7 = vstv %s7065_s14  ;;  %s7213_s29 = sld [smem:[#allocation16 + $0x983]] }
 0x3b3   :  { %v2238_v60 = vstv %s7071_s15  ;;  %v2244_v22 = vstv %s7077_s2  ;;  %v2227_v41 = vmul.f32 %v2226_v14, %v6773_v32  ;;  %v2228_v59 = vmul.f32 %v2226_v14, %v6780_v55  ;;  %s7217_s26 = sld [smem:[#allocation18 + $0x3]] }
 0x3b4   :  { %v2233_v54 = vmul.f32 %v2232_v7, %v6782_v3  ;;  %v2234_v57 = vmul.f32 %v2232_v7, %v6784_v35  ;;  %v2239_v49 = vmul.f32 %v2238_v60, %v6791_v1  ;;  %v2240_v63 = vmul.f32 %v2238_v60, %v6796_v48  ;;  %s7221_s27 = sld [smem:[#allocation19 + $0x3]] }
 0x3b5   :  { %v2245_v46 = vmul.f32 %v2244_v22, %v6807_v13  ;;  %v2246_v15 = vmul.f32 %v2244_v22, %v6809_v34  ;;  %v2229_v36 = vadd.f32 %v2227_v41, %v2205_v38  ;;  %v2230_v26 = vadd.f32 %v2228_v59, %v2206_v50  ;;  %s7227_s3 = sld [smem:[#allocation16 + $0x4]] }
 0x3b6   :  { %v2235_v28 = vadd.f32 %v2233_v54, %v2211_v37  ;;  %v2236_v21 = vadd.f32 %v2234_v57, %v2212_v8  ;;  %v2241_v62 = vadd.f32 %v2239_v49, %v2217_v12  ;;  %v2242_v6 = vadd.f32 %v2240_v63, %v2218_v24  ;;  %v9353_v54 = vld [vmem:[#allocation192_spill] sm:$0xff]  ;;  %s7231_s0 = sld [smem:[#allocation16 + $0x84]] }
 0x3b7   :  { %v2247_v61 = vadd.f32 %v2245_v46, %v2223_v9  ;;  %v2248_v47 = vadd.f32 %v2246_v15, %v2224_v33  ;;  %v9337_v31 = vmax.f32 %v6926_v5, 0.0  ;;  %v9338_v29 = vstv %s6944_s23  ;;  %s7153_s23 = sld [smem:[#allocation16 + $0x483]] }
 0x3b8   :  { %v9339_v38 = vmax.f32 %v6928_v51, 0.0  ;;  %v9340_v50 = vmov %v9338_v29  ;;  %v2249_v8 = vadd.f32 %v2235_v28, %v2229_v36  ;;  %v2250_v12 = vadd.f32 %v2236_v21, %v2230_v26  ;;  %s7235_s17 = sld [smem:[#allocation16 + $0x104]] }
 0x3b9   :  { %v7127_v42 = vmul.f32 %v9338_v29, %v9337_v31  ;;  %v2251_v14 = vadd.f32 %v2247_v61, %v2241_v62  ;;  %v2252_v24 = vadd.f32 %v2248_v47, %v2242_v6  ;;  %v2268_v9 = vstv %s7095_s30  ;;  %v9345_v61 = vld [vmem:[#allocation183_spill] sm:$0xff]  ;;  %v9346_v31 = vld [vmem:[#allocation186_spill] sm:$0xff]  ;;  %s7239_s16 = sld [smem:[#allocation16 + $0x184]] }
 0x3ba   :  { %v7133_v37 = vmul.f32 %v9340_v50, %v9339_v38  ;;  %v2272_v33 = vstv %s7097_s18  ;;  %v9341_v5 = vmax.f32 %v7033_v23, 0.0  ;;  %v9342_v7 = vstv %s6970_s12  ;;  %s7161_s12 = sld [smem:[#allocation16 + $0x503]]  ;;  %v9347_v38 = vld [vmem:[#allocation187_spill] sm:$0xff] }
 0x3bb   :  { %v9343_v51 = vmax.f32 %v7035_v58, 0.0  ;;  %v9344_v22 = vmov %v9342_v7  ;;  %v2256_v59 = vstv %s7083_s6  ;;  %v2253_v57 = vadd.f32 %v2251_v14, %v2249_v8  ;;  %v9348_v8 = vld [vmem:[#allocation189_spill] sm:$0xff]  ;;  %v9349_v14 = vld [vmem:[#allocation190_spill] sm:$0xff]  ;;  %s7243_s14 = sld [smem:[#allocation16 + $0x204]] }
 0x3bc   :  { %v7143_v60 = vmul.f32 %v9342_v7, %v9341_v5  ;;  %v2254_v49 = vadd.f32 %v2252_v24, %v2250_v12  ;;  %v2269_v63 = vmul.f32 %v2268_v9, %v6566_v10  ;;  %v2276_v46 = vstv %s7099_s25  ;;  %s7249_s15 = sld [smem:[#allocation16 + $0x284]] }
 0x3bd   :  { %v7149_v41 = vmul.f32 %v9344_v22, %v9343_v51  ;;  %v2270_v23 = vmul.f32 %v2268_v9, %v6571_v52  ;;  %v2273_v15 = vmul.f32 %v2272_v33, %v6579_v0  ;;  %v2274_v58 = vmul.f32 %v2272_v33, %v6584_v44  ;;  %v9350_v51 = vld [vmem:[#allocation184_spill] sm:$0xff]  ;;  %s7253_s2 = sld [smem:[#allocation16 + $0x304]] }
 0x3be   :  { %v2280_v36 = vstv %s7105_s19  ;;  %v7163_v26 = vadd.f32 %v2256_v59, %v2253_v57  ;;  %v7165_v28 = vadd.f32 %v2256_v59, %v2254_v49  ;;  %v2284_v21 = vstv %s7111_s11  ;;  %v9351_v59 = vld [vmem:[#allocation185_spill] sm:$0xff]  ;;  %s7265_s6 = sld [smem:[#allocation16 + $0x384]] }
 0x3bf   :  { %v2290_v62 = vstv %s7117_s5  ;;  %v2277_v6 = vmul.f32 %v2276_v46, %v6590_v40  ;;  %v2278_v47 = vmul.f32 %v2276_v46, %v9345_v61  ;;  %v2285_v29 = vmul.f32 %v2284_v21, %v9346_v31  ;;  %s7267_s30 = sld [smem:[#allocation16 + $0x404]] }
 0x3c0   :  { %v2286_v50 = vmul.f32 %v2284_v21, %v9347_v38  ;;  %v2291_v12 = vmul.f32 %v2290_v62, %v9348_v8  ;;  %v2292_v24 = vmul.f32 %v2290_v62, %v9349_v14  ;;  %v2296_v9 = vstv %s7119_s7  ;;  %v9352_v21 = vld [vmem:[#allocation191_spill] sm:$0xff]  ;;  %s7283_s18 = sld [smem:[#allocation16 + $0x484]] }
 0x3c1   :  { %v2302_v33 = vstv %s7121_s20  ;;  %v2281_v22 = vmul.f32 %v2280_v36, %v9350_v51  ;;  %v2282_v57 = vmul.f32 %v2280_v36, %v9351_v59  ;;  %v2287_v49 = vadd.f32 %v2285_v29, %v2269_v63  ;;  %s7287_s25 = sld [smem:[#allocation16 + $0x504]] }
 0x3c2   :  { %v2288_v46 = vadd.f32 %v2286_v50, %v2270_v23  ;;  %v2297_v62 = vmul.f32 %v2296_v9, %v9352_v21  ;;  %v2298_v14 = vmul.f32 %v2296_v9, %v9353_v54  ;;  %v2303_v8 = vmul.f32 %v2302_v33, %v9335_v27  ;;  %s7307_s19 = sld [smem:[#allocation16 + $0x604]] }
 0x3c3   :  { %v2304_v5 = vmul.f32 %v2302_v33, %v9336_v4  ;;  %v2308_v7 = vstv %s7137_s9  ;;  %v2314_v51 = vstv %s7153_s23  ;;  %v2293_v36 = vadd.f32 %v2291_v12, %v2273_v15  ;;  %s7313_s11 = sld [smem:[#allocation16 + $0x684]] }
 0x3c4   :  { %v2294_v59 = vadd.f32 %v2292_v24, %v2274_v58  ;;  %v2299_v63 = vadd.f32 %v2297_v62, %v2277_v6  ;;  %v2300_v23 = vadd.f32 %v2298_v14, %v2278_v47  ;;  %v2305_v29 = vadd.f32 %v2303_v8, %v2281_v22  ;;  %v9354_v6 = vld [vmem:[#allocation198_spill] sm:$0xff]  ;;  %s7319_s5 = sld [smem:[#allocation16 + $0x704]] }
 0x3c5   :  { %v2306_v50 = vadd.f32 %v2304_v5, %v2282_v57  ;;  %v2309_v9 = vmul.f32 %v2308_v7, %v9328_v17  ;;  %v2310_v54 = vmul.f32 %v2308_v7, %v6684_v56  ;;  %v2315_v27 = vmul.f32 %v2314_v51, %v9329_v43  ;;  %v9355_v5 = vld [vmem:[#allocation200_spill] sm:$0xff]  ;;  %s7323_s7 = sld [smem:[#allocation16 + $0x784]] }
 0x3c6   :  { %v2316_v33 = vmul.f32 %v2314_v51, %v9330_v20  ;;  %v2320_v4 = vstv %s7161_s12  ;;  %v2326_v21 = vstv %s7169_s22  ;;  %v2332_v57 = vstv %s7179_s4  ;;  %s7331_s20 = sld [smem:[#allocation16 + $0x804]] }
 0x3c7   :  { %v2311_v15 = vadd.f32 %v2309_v9, %v2287_v49  ;;  %v2312_v58 = vadd.f32 %v2310_v54, %v2288_v46  ;;  %v2321_v47 = vmul.f32 %v2320_v4, %v9354_v6  ;;  %v2322_v8 = vmul.f32 %v2320_v4, %v6704_v25  ;;  %s7333_s9 = sld [smem:[#allocation16 + $0x884]] }
 0x3c8   :  { %v2317_v12 = vadd.f32 %v2315_v27, %v2293_v36  ;;  %v2318_v14 = vadd.f32 %v2316_v33, %v2294_v59  ;;  %v2327_v24 = vmul.f32 %v2326_v21, %v6715_v39  ;;  %v2328_v7 = vmul.f32 %v2326_v21, %v9355_v5  ;;  %s7339_s23 = sld [smem:[#allocation16 + $0x904]] }
 0x3c9   :  { %v2323_v51 = vadd.f32 %v2321_v47, %v2299_v63  ;;  %v2324_v22 = vadd.f32 %v2322_v8, %v2300_v23  ;;  %v2338_v54 = vstv %s7185_s1  ;;  %v2333_v46 = vmul.f32 %v2332_v57, %v6725_v53  ;;  %s7345_s12 = sld [smem:[#allocation16 + $0x984]] }
 0x3ca   :  { %v2329_v49 = vadd.f32 %v2327_v24, %v2305_v29  ;;  %v2330_v4 = vadd.f32 %v2328_v7, %v2306_v50  ;;  %v2334_v27 = vmul.f32 %v2332_v57, %v6732_v11  ;;  %v2339_v59 = vmul.f32 %v2338_v54, %v6734_v45  ;;  %s7351_s22 = sld [smem:[#allocation18 + $0x4]] }
 0x3cb   :  { %v2340_v21 = vmul.f32 %v2338_v54, %v6736_v19  ;;  %v2344_v62 = vstv %s7189_s24  ;;  %v2350_v36 = vstv %s7195_s13  ;;  %v2335_v63 = vadd.f32 %v2333_v46, %v2311_v15  ;;  %s7357_s4 = sld [smem:[#allocation19 + $0x4]] }
 0x3cc   :  { %v2336_v23 = vadd.f32 %v2334_v27, %v2312_v58  ;;  %v2345_v29 = vmul.f32 %v2344_v62, %v6745_v2  ;;  %v2346_v50 = vmul.f32 %v2344_v62, %v6752_v30  ;;  %v2341_v9 = vadd.f32 %v2339_v59, %v2317_v12  ;;  %s7363_s1 = sld [smem:[#allocation16 + $0x5]] }
 0x3cd   :  { %v2342_v33 = vadd.f32 %v2340_v21, %v2318_v14  ;;  %v2351_v47 = vmul.f32 %v2350_v36, %v6763_v18  ;;  %v2352_v8 = vmul.f32 %v2350_v36, %v6765_v16  ;;  %v2356_v15 = vstv %s7199_s10  ;;  %s7365_s24 = sld [smem:[#allocation16 + $0x85]] }
 0x3ce   :  { %v2347_v24 = vadd.f32 %v2345_v29, %v2323_v51  ;;  %v2348_v7 = vadd.f32 %v2346_v50, %v2324_v22  ;;  %v2362_v58 = vstv %s7205_s21  ;;  %v2357_v46 = vmul.f32 %v2356_v15, %v6773_v32  ;;  %s7367_s13 = sld [smem:[#allocation16 + $0x105]] }
 0x3cf   :  { %v2353_v57 = vadd.f32 %v2351_v47, %v2329_v49  ;;  %v2354_v54 = vadd.f32 %v2352_v8, %v2330_v4  ;;  %v2358_v12 = vmul.f32 %v2356_v15, %v6780_v55  ;;  %v2363_v14 = vmul.f32 %v2362_v58, %v6782_v3  ;;  %s7373_s10 = sld [smem:[#allocation16 + $0x185]] }
 0x3d0   :  { %v2364_v27 = vmul.f32 %v2362_v58, %v6784_v35  ;;  %v2368_v59 = vstv %s7209_s28  ;;  %v2374_v21 = vstv %s7213_s29  ;;  %v2359_v51 = vadd.f32 %v2357_v46, %v2335_v63  ;;  %s7379_s21 = sld [smem:[#allocation16 + $0x205]] }
 0x3d1   :  { %v2360_v22 = vadd.f32 %v2358_v12, %v2336_v23  ;;  %v2369_v62 = vmul.f32 %v2368_v59, %v6791_v1  ;;  %v2370_v49 = vmul.f32 %v2368_v59, %v6796_v48  ;;  %v2365_v4 = vadd.f32 %v2363_v14, %v2341_v9  ;;  %s7385_s28 = sld [smem:[#allocation16 + $0x285]] }
 0x3d2   :  { %v2366_v36 = vadd.f32 %v2364_v27, %v2342_v33  ;;  %v2375_v29 = vmul.f32 %v2374_v21, %v6807_v13  ;;  %v2376_v50 = vmul.f32 %v2374_v21, %v6809_v34  ;;  %v7259_v63 = vadd.f32 %v7143_v60, %v7127_v42  ;;  %s7387_s29 = sld [smem:[#allocation16 + $0x305]] }
 0x3d3   :  { %v7263_v23 = vadd.f32 %v7149_v41, %v7133_v37  ;;  %v2371_v47 = vadd.f32 %v2369_v62, %v2347_v24  ;;  %v2372_v8 = vadd.f32 %v2370_v49, %v2348_v7  ;;  %v2379_v15 = vadd.f32 %v2365_v4, %v2359_v51 }
 0x3d4   :  { %v2377_v9 = vadd.f32 %v2375_v29, %v2353_v57  ;;  %v2378_v33 = vadd.f32 %v2376_v50, %v2354_v54  ;;  %v2380_v58 = vadd.f32 %v2366_v36, %v2360_v22  ;;  %v9356_v42 = vmax.f32 %v7163_v26, 0.0 }
 0x3d5   :  { %v9357_v60 = vstv %s7089_s8  ;;  %v9358_v37 = vmax.f32 %v7165_v28, 0.0  ;;  %v2398_v7 = vstv %s7227_s3  ;;  %v2402_v12 = vstv %s7231_s0  ;;  %s7293_s8 = sld [smem:[#allocation16 + $0x584]] }
 0x3d6   :  { %v7273_v46 = vmul.f32 %v9357_v60, %v9356_v42  ;;  %v9359_v41 = vmov %v9357_v60  ;;  %v2381_v57 = vadd.f32 %v2377_v9, %v2371_v47  ;;  %v2382_v54 = vadd.f32 %v2378_v33, %v2372_v8  ;;  %v9361_v60 = vld [vmem:[#allocation190_spill] sm:$0xff]  ;;  %s7401_s3 = sld [smem:[#allocation16 + $0x405]] }
 0x3d7   :  { %v7279_v24 = vmul.f32 %v9359_v41, %v9358_v37  ;;  %v2386_v14 = vstv %s7217_s26  ;;  %v2406_v27 = vstv %s7235_s17  ;;  %v2399_v59 = vmul.f32 %v2398_v7, %v6566_v10  ;;  %s7389_s26 = sld [smem:[#allocation16 + $0x385]] }
 0x3d8   :  { %v2400_v28 = vmul.f32 %v2398_v7, %v6571_v52  ;;  %v2410_v21 = vstv %s7239_s16  ;;  %v2383_v51 = vadd.f32 %v2381_v57, %v2379_v15  ;;  %v2384_v22 = vadd.f32 %v2382_v54, %v2380_v58  ;;  %v9360_v58 = vld [vmem:[#allocation189_spill] sm:$0xff]  ;;  %v9362_v7 = vld [vmem:[#allocation184_spill] sm:$0xff]  ;;  %s7417_s0 = sld [smem:[#allocation16 + $0x485]] }
 0x3d9   :  { %v2403_v62 = vmul.f32 %v2402_v12, %v6579_v0  ;;  %v2404_v49 = vmul.f32 %v2402_v12, %v6584_v44  ;;  %v2407_v4 = vmul.f32 %v2406_v27, %v6590_v40  ;;  %v2414_v36 = vstv %s7243_s14  ;;  %v9363_v57 = vld [vmem:[#allocation185_spill] sm:$0xff]  ;;  %s7433_s17 = sld [smem:[#allocation16 + $0x585]] }
 0x3da   :  { %v2420_v29 = vstv %s7249_s15  ;;  %v2426_v50 = vstv %s7253_s2  ;;  %v7301_v47 = vadd.f32 %v2386_v14, %v2383_v51  ;;  %v7303_v8 = vadd.f32 %v2386_v14, %v2384_v22  ;;  %v9364_v14 = vld [vmem:[#allocation191_spill] sm:$0xff]  ;;  %v9365_v22 = vld [vmem:[#allocation192_spill] sm:$0xff]  ;;  %s7443_s16 = sld [smem:[#allocation16 + $0x605]] }
 0x3db   :  { %v2415_v9 = vmul.f32 %v2414_v36, %v9346_v31  ;;  %v2416_v33 = vmul.f32 %v2414_v36, %v9347_v38  ;;  %v2408_v15 = vmul.f32 %v2406_v27, %v9345_v61  ;;  %v2421_v42 = vmul.f32 %v2420_v29, %v9360_v58  ;;  %v9366_v38 = vld [vmem:[#allocation193_spill] sm:$0xff]  ;;  %s7449_s14 = sld [smem:[#allocation16 + $0x685]] }
 0x3dc   :  { %v2422_v37 = vmul.f32 %v2420_v29, %v9361_v60  ;;  %v2432_v41 = vstv %s7265_s6  ;;  %v2411_v12 = vmul.f32 %v2410_v21, %v9362_v7  ;;  %v2412_v54 = vmul.f32 %v2410_v21, %v9363_v57  ;;  %v9367_v21 = vld [vmem:[#allocation194_spill] sm:$0xff]  ;;  %s7453_s15 = sld [smem:[#allocation16 + $0x705]] }
 0x3dd   :  { %v2427_v51 = vmul.f32 %v2426_v50, %v9364_v14  ;;  %v2428_v36 = vmul.f32 %v2426_v50, %v9365_v22  ;;  %v2417_v26 = vadd.f32 %v2415_v9, %v2399_v59  ;;  %v2418_v60 = vadd.f32 %v2416_v33, %v2400_v28  ;;  %s7459_s2 = sld [smem:[#allocation16 + $0x785]] }
 0x3de   :  { %v2423_v58 = vadd.f32 %v2421_v42, %v2403_v62  ;;  %v2424_v7 = vadd.f32 %v2422_v37, %v2404_v49  ;;  %v2433_v31 = vmul.f32 %v2432_v41, %v9366_v38  ;;  %v2434_v57 = vmul.f32 %v2432_v41, %v9367_v21  ;;  %s7463_s6 = sld [smem:[#allocation16 + $0x805]] }
 0x3df   :  { %v2438_v61 = vstv %s7267_s30  ;;  %v2444_v14 = vstv %s7283_s18  ;;  %v2450_v40 = vstv %s7287_s25  ;;  %v2456_v50 = vstv %s7293_s8  ;;  %s7469_s30 = sld [smem:[#allocation16 + $0x885]] }
 0x3e0   :  { %v2429_v22 = vadd.f32 %v2427_v51, %v2407_v4  ;;  %v2430_v27 = vadd.f32 %v2428_v36, %v2408_v15  ;;  %v2435_v44 = vadd.f32 %v2433_v31, %v2411_v12  ;;  %v2436_v29 = vadd.f32 %v2434_v57, %v2412_v54  ;;  %s7473_s18 = sld [smem:[#allocation16 + $0x905]] }
 0x3e1   :  { %v2439_v59 = vmul.f32 %v2438_v61, %v9328_v17  ;;  %v2440_v28 = vmul.f32 %v2438_v61, %v6684_v56  ;;  %v2445_v62 = vmul.f32 %v2444_v14, %v9329_v43  ;;  %v2446_v49 = vmul.f32 %v2444_v14, %v9330_v20  ;;  %s7477_s25 = sld [smem:[#allocation16 + $0x985]] }
 0x3e2   :  { %v2451_v4 = vmul.f32 %v2450_v40, %v9354_v6  ;;  %v2452_v31 = vmul.f32 %v2450_v40, %v6704_v25  ;;  %v2457_v9 = vmul.f32 %v2456_v50, %v6715_v39  ;;  %v2458_v33 = vmul.f32 %v2456_v50, %v9355_v5  ;;  %s7481_s8 = sld [smem:[#allocation18 + $0x5]] }
 0x3e3   :  { %v2441_v61 = vadd.f32 %v2439_v59, %v2417_v26  ;;  %v2442_v15 = vadd.f32 %v2440_v28, %v2418_v60  ;;  %v2447_v42 = vadd.f32 %v2445_v62, %v2423_v58  ;;  %v2448_v37 = vadd.f32 %v2446_v49, %v2424_v7 }
 0x3e4   :  { %v2453_v41 = vadd.f32 %v2451_v4, %v2429_v22  ;;  %v2454_v12 = vadd.f32 %v2452_v31, %v2430_v27  ;;  %v2459_v57 = vadd.f32 %v2457_v9, %v2435_v44  ;;  %v2460_v54 = vadd.f32 %v2458_v33, %v2436_v29 }
 0x3e5   :  { %v2462_v14 = vstv %s7307_s19  ;;  %v2468_v51 = vstv %s7313_s11  ;;  %v2474_v36 = vstv %s7319_s5  ;;  %v2480_v6 = vstv %s7323_s7  ;;  %s7485_s19 = sld [smem:[#allocation19 + $0x5]] }
 0x3e6   :  { %v2463_v40 = vmul.f32 %v2462_v14, %v6725_v53  ;;  %v2464_v50 = vmul.f32 %v2462_v14, %v6732_v11  ;;  %v2469_v5 = vmul.f32 %v2468_v51, %v6734_v45  ;;  %v2470_v26 = vmul.f32 %v2468_v51, %v6736_v19  ;;  %s7491_s11 = sld [smem:[#allocation16 + $0x6]] }
 0x3e7   :  { %v2475_v44 = vmul.f32 %v2474_v36, %v6745_v2  ;;  %v2476_v58 = vmul.f32 %v2474_v36, %v6752_v30  ;;  %v2481_v60 = vmul.f32 %v2480_v6, %v6763_v18  ;;  %v2482_v7 = vmul.f32 %v2480_v6, %v6765_v16  ;;  %s7495_s5 = sld [smem:[#allocation16 + $0x86]] }
 0x3e8   :  { %v2465_v22 = vadd.f32 %v2463_v40, %v2441_v61  ;;  %v2466_v27 = vadd.f32 %v2464_v50, %v2442_v15  ;;  %v2471_v29 = vadd.f32 %v2469_v5, %v2447_v42  ;;  %v2472_v59 = vadd.f32 %v2470_v26, %v2448_v37  ;;  %s7499_s7 = sld [smem:[#allocation16 + $0x106]] }
 0x3e9   :  { %v2477_v28 = vadd.f32 %v2475_v44, %v2453_v41  ;;  %v2478_v62 = vadd.f32 %v2476_v58, %v2454_v12  ;;  %v2483_v49 = vadd.f32 %v2481_v60, %v2459_v57  ;;  %v2484_v4 = vadd.f32 %v2482_v7, %v2460_v54 }
 0x3ea   :  { %v2486_v31 = vstv %s7331_s20  ;;  %v2492_v9 = vstv %s7333_s9  ;;  %v2498_v33 = vstv %s7339_s23  ;;  %v2504_v14 = vstv %s7345_s12  ;;  %s7503_s20 = sld [smem:[#allocation16 + $0x186]] }
 0x3eb   :  { %v2487_v6 = vmul.f32 %v2486_v31, %v6773_v32  ;;  %v2488_v61 = vmul.f32 %v2486_v31, %v6780_v55  ;;  %v2493_v5 = vmul.f32 %v2492_v9, %v6782_v3  ;;  %v2494_v15 = vmul.f32 %v2492_v9, %v6784_v35  ;;  %v9382_v31 = vld [vmem:[#allocation192_spill] sm:$0xff]  ;;  %s7507_s9 = sld [smem:[#allocation16 + $0x206]] }
 0x3ec   :  { %v2499_v42 = vmul.f32 %v2498_v33, %v6791_v1  ;;  %v2500_v37 = vmul.f32 %v2498_v33, %v6796_v48  ;;  %v2505_v41 = vmul.f32 %v2504_v14, %v6807_v13  ;;  %v2506_v12 = vmul.f32 %v2504_v14, %v6809_v34  ;;  %s7513_s23 = sld [smem:[#allocation16 + $0x286]] }
 0x3ed   :  { %v2489_v57 = vadd.f32 %v2487_v6, %v2465_v22  ;;  %v2490_v54 = vadd.f32 %v2488_v61, %v2466_v27  ;;  %v2495_v51 = vadd.f32 %v2493_v5, %v2471_v29  ;;  %v2496_v36 = vadd.f32 %v2494_v15, %v2472_v59  ;;  %s7517_s12 = sld [smem:[#allocation16 + $0x306]] }
 0x3ee   :  { %v2501_v40 = vadd.f32 %v2499_v42, %v2477_v28  ;;  %v2502_v50 = vadd.f32 %v2500_v37, %v2478_v62  ;;  %v2507_v26 = vadd.f32 %v2505_v41, %v2483_v49  ;;  %v2508_v44 = vadd.f32 %v2506_v12, %v2484_v4 }
 0x3ef   :  { %v7393_v58 = vadd.f32 %v7273_v46, %v7259_v63  ;;  %v7397_v60 = vadd.f32 %v7279_v24, %v7263_v23  ;;  %v2509_v7 = vadd.f32 %v2495_v51, %v2489_v57  ;;  %v2510_v22 = vadd.f32 %v2496_v36, %v2490_v54  ;;  %v9373_v57 = vld [vmem:[#allocation182_spill] sm:$0xff]  ;;  %v9374_v51 = vld [vmem:[#allocation183_spill] sm:$0xff] }
 0x3f0   :  { %v2511_v27 = vadd.f32 %v2507_v26, %v2501_v40  ;;  %v2512_v29 = vadd.f32 %v2508_v44, %v2502_v50  ;;  %v2528_v59 = vstv %s7363_s1  ;;  %v2532_v28 = vstv %s7365_s24  ;;  %v9375_v40 = vld [vmem:[#allocation186_spill] sm:$0xff]  ;;  %v9376_v26 = vld [vmem:[#allocation187_spill] sm:$0xff]  ;;  %s7531_s1 = sld [smem:[#allocation16 + $0x406]] }
 0x3f1   :  { %v9368_v62 = vmax.f32 %v7301_v47, 0.0  ;;  %v9369_v49 = vstv %s7221_s27  ;;  %v9370_v63 = vmax.f32 %v7303_v8, 0.0  ;;  %v2516_v24 = vstv %s7351_s22  ;;  %v9372_v8 = vld [vmem:[#allocation181_spill] sm:$0xff]  ;;  %s7425_s27 = sld [smem:[#allocation16 + $0x505]] }
 0x3f2   :  { %v9371_v46 = vmov %v9369_v49  ;;  %v2513_v9 = vadd.f32 %v2511_v27, %v2509_v7  ;;  %v2514_v33 = vadd.f32 %v2512_v29, %v2510_v22  ;;  %v2529_v14 = vmul.f32 %v2528_v59, %v6566_v10  ;;  %v9377_v7 = vld [vmem:[#allocation189_spill] sm:$0xff]  ;;  %v9378_v27 = vld [vmem:[#allocation190_spill] sm:$0xff]  ;;  %s7529_s22 = sld [smem:[#allocation16 + $0x386]] }
 0x3f3   :  { %v7407_v4 = vmul.f32 %v9369_v49, %v9368_v62  ;;  %v7413_v23 = vmul.f32 %v9371_v46, %v9370_v63  ;;  %v2536_v6 = vstv %s7367_s13  ;;  %v2530_v47 = vmul.f32 %v2528_v59, %v6571_v52  ;;  %v9379_v63 = vld [vmem:[#allocation184_spill] sm:$0xff]  ;;  %s7547_s24 = sld [smem:[#allocation16 + $0x486]] }
 0x3f4   :  { %v2533_v61 = vmul.f32 %v2532_v28, %v6579_v0  ;;  %v2534_v5 = vmul.f32 %v2532_v28, %v9372_v8  ;;  %v2540_v15 = vstv %s7373_s10  ;;  %v7427_v42 = vadd.f32 %v2516_v24, %v2513_v9  ;;  %s7551_s13 = sld [smem:[#allocation16 + $0x506]] }
 0x3f5   :  { %v7429_v37 = vadd.f32 %v2516_v24, %v2514_v33  ;;  %v2544_v41 = vstv %s7379_s21  ;;  %v2550_v12 = vstv %s7385_s28  ;;  %v2537_v54 = vmul.f32 %v2536_v6, %v9373_v57  ;;  %v9380_v24 = vld [vmem:[#allocation185_spill] sm:$0xff]  ;;  %s7571_s10 = sld [smem:[#allocation16 + $0x606]] }
 0x3f6   :  { %v2538_v36 = vmul.f32 %v2536_v6, %v9374_v51  ;;  %v2545_v50 = vmul.f32 %v2544_v41, %v9375_v40  ;;  %v2546_v44 = vmul.f32 %v2544_v41, %v9376_v26  ;;  %v2551_v22 = vmul.f32 %v2550_v12, %v9377_v7  ;;  %v9381_v41 = vld [vmem:[#allocation191_spill] sm:$0xff]  ;;  %s7577_s21 = sld [smem:[#allocation16 + $0x686]] }
 0x3f7   :  { %v2552_v29 = vmul.f32 %v2550_v12, %v9378_v27  ;;  %v2556_v59 = vstv %s7387_s29  ;;  %v2562_v28 = vstv %s7389_s26  ;;  %v2541_v46 = vmul.f32 %v2540_v15, %v9379_v63  ;;  %s7583_s28 = sld [smem:[#allocation16 + $0x706]] }
 0x3f8   :  { %v2542_v9 = vmul.f32 %v2540_v15, %v9380_v24  ;;  %v2547_v33 = vadd.f32 %v2545_v50, %v2529_v14  ;;  %v2548_v6 = vadd.f32 %v2546_v44, %v2530_v47  ;;  %v2557_v12 = vmul.f32 %v2556_v59, %v9381_v41  ;;  %s7587_s29 = sld [smem:[#allocation16 + $0x786]] }
 0x3f9   :  { %v2558_v27 = vmul.f32 %v2556_v59, %v9382_v31  ;;  %v2563_v7 = vmul.f32 %v2562_v28, %v9366_v38  ;;  %v2564_v62 = vmul.f32 %v2562_v28, %v9367_v21  ;;  %v2568_v49 = vstv %s7401_s3  ;;  %s7595_s26 = sld [smem:[#allocation16 + $0x806]] }
 0x3fa   :  { %v2574_v63 = vstv %s7417_s0  ;;  %v2553_v15 = vadd.f32 %v2551_v22, %v2533_v61  ;;  %v2554_v24 = vadd.f32 %v2552_v29, %v2534_v5  ;;  %v2559_v14 = vadd.f32 %v2557_v12, %v2537_v54  ;;  %v9383_v54 = vld [vmem:[#allocation198_spill] sm:$0xff]  ;;  %s7597_s3 = sld [smem:[#allocation16 + $0x886]] }
 0x3fb   :  { %v2560_v47 = vadd.f32 %v2558_v27, %v2538_v36  ;;  %v2565_v50 = vadd.f32 %v2563_v7, %v2541_v46  ;;  %v2566_v44 = vadd.f32 %v2564_v62, %v2542_v9  ;;  %v2569_v59 = vmul.f32 %v2568_v49, %v9328_v17  ;;  %v9384_v62 = vld [vmem:[#allocation200_spill] sm:$0xff]  ;;  %s7603_s0 = sld [smem:[#allocation16 + $0x906]] }
 0x3fc   :  { %v2570_v31 = vmul.f32 %v2568_v49, %v6684_v56  ;;  %v2575_v38 = vmul.f32 %v2574_v63, %v9329_v43  ;;  %v2576_v28 = vmul.f32 %v2574_v63, %v9330_v20  ;;  %v2580_v21 = vstv %s7425_s27  ;;  %s7609_s27 = sld [smem:[#allocation16 + $0x986]] }
 0x3fd   :  { %v2586_v41 = vstv %s7433_s17  ;;  %v2571_v61 = vadd.f32 %v2569_v59, %v2547_v33  ;;  %v2581_v36 = vmul.f32 %v2580_v21, %v9383_v54  ;;  %v2582_v7 = vmul.f32 %v2580_v21, %v6704_v25  ;;  %s7611_s17 = sld [smem:[#allocation18 + $0x6]] }
 0x3fe   :  { %v2572_v5 = vadd.f32 %v2570_v31, %v2548_v6  ;;  %v2577_v22 = vadd.f32 %v2575_v38, %v2553_v15  ;;  %v2578_v27 = vadd.f32 %v2576_v28, %v2554_v24  ;;  %v2587_v29 = vmul.f32 %v2586_v41, %v6715_v39 }
 0x3ff   :  { %v2588_v49 = vmul.f32 %v2586_v41, %v9384_v62  ;;  %v2583_v63 = vadd.f32 %v2581_v36, %v2559_v14  ;;  %v2584_v46 = vadd.f32 %v2582_v7, %v2560_v47  ;;  %v2592_v9 = vstv %s7443_s16  ;;  %s7617_s16 = sld [smem:[#allocation19 + $0x6]] }
 0x400   :  { %v2598_v31 = vstv %s7449_s14  ;;  %v2589_v33 = vadd.f32 %v2587_v29, %v2565_v50  ;;  %v2593_v6 = vmul.f32 %v2592_v9, %v6725_v53  ;;  %v2594_v38 = vmul.f32 %v2592_v9, %v6732_v11  ;;  %s7623_s14 = sld [smem:[#allocation16 + $0x7]] }
 0x401   :  { %v2590_v21 = vadd.f32 %v2588_v49, %v2566_v44  ;;  %v2599_v24 = vmul.f32 %v2598_v31, %v6734_v45  ;;  %v2600_v41 = vmul.f32 %v2598_v31, %v6736_v19  ;;  %v2604_v12 = vstv %s7453_s15  ;;  %s7629_s15 = sld [smem:[#allocation16 + $0x87]] }
 0x402   :  { %v2610_v15 = vstv %s7459_s2  ;;  %v2595_v14 = vadd.f32 %v2593_v6, %v2571_v61  ;;  %v2596_v47 = vadd.f32 %v2594_v38, %v2572_v5  ;;  %v2605_v50 = vmul.f32 %v2604_v12, %v6745_v2  ;;  %s3993_s2 = smov [#allocation22]  }
 0x403   :  { %v2606_v44 = vmul.f32 %v2604_v12, %v6752_v30  ;;  %v2601_v59 = vadd.f32 %v2599_v24, %v2577_v22  ;;  %v2602_v28 = vadd.f32 %v2600_v41, %v2578_v27  ;;  %v2611_v36 = vmul.f32 %v2610_v15, %v6763_v18 }
 0x404   :  { %v2612_v7 = vmul.f32 %v2610_v15, %v6765_v16  ;;  %v2607_v29 = vadd.f32 %v2605_v50, %v2583_v63  ;;  %v2616_v61 = vstv %s7463_s6  ;;  %v2622_v5 = vstv %s7469_s30  ;;  %s3218_s6 = sshll.u32 %s3993_s2, 4  ;;  %s7631_s30 = sld [smem:[#allocation16 + $0x107]]  ;;  %s3219_s6 = int_to_ptr.vmem [resolvable:$true] %s3218_s6 }
 0x405   :  { %v2608_v49 = vadd.f32 %v2606_v44, %v2584_v46  ;;  %v2613_v9 = vadd.f32 %v2611_v36, %v2589_v33  ;;  %v2617_v6 = vmul.f32 %v2616_v61, %v6773_v32  ;;  %v2618_v22 = vmul.f32 %v2616_v61, %v6780_v55  ;;  %p3910_p9 = scmp.lt.s32.totalorder %s3219_s6, %s3219_s6 }
 0x406   :  { %v2614_v31 = vadd.f32 %v2612_v7, %v2590_v21  ;;  %v2623_v27 = vmul.f32 %v2622_v5, %v6782_v3  ;;  %v2624_v38 = vmul.f32 %v2622_v5, %v6784_v35  ;;  %v2628_v24 = vstv %s7473_s18  ;;  %s7633_s18 = sld [smem:[#allocation16 + $0x187]] }
 0x407   :  { %v2634_v41 = vstv %s7477_s25  ;;  %v2619_v63 = vadd.f32 %v2617_v6, %v2595_v14  ;;  %v2620_v46 = vadd.f32 %v2618_v22, %v2596_v47  ;;  %v2629_v12 = vmul.f32 %v2628_v24, %v6791_v1  ;;  %s7639_s25 = sld [smem:[#allocation16 + $0x207]] }
 0x408   :  { %v2630_v33 = vmul.f32 %v2628_v24, %v6796_v48  ;;  %v2625_v21 = vadd.f32 %v2623_v27, %v2601_v59  ;;  %v2626_v15 = vadd.f32 %v2624_v38, %v2602_v28  ;;  %v2635_v50 = vmul.f32 %v2634_v41, %v6807_v13 }
 0x409   :  { %v2636_v44 = vmul.f32 %v2634_v41, %v6809_v34  ;;  %v7523_v14 = vadd.f32 %v7407_v4, %v7393_v58  ;;  %v7527_v47 = vadd.f32 %v7413_v23, %v7397_v60  ;;  %v2631_v36 = vadd.f32 %v2629_v12, %v2607_v29 }
 0x40a   :  { %v2632_v7 = vadd.f32 %v2630_v33, %v2608_v49  ;;  %v2637_v59 = vadd.f32 %v2635_v50, %v2613_v9  ;;  %v2639_v61 = vadd.f32 %v2625_v21, %v2619_v63  ;;  %v2640_v5 = vadd.f32 %v2626_v15, %v2620_v46 }
 0x40b   :  { %v2638_v28 = vadd.f32 %v2636_v44, %v2614_v31  ;;  %v9385_v58 = vmax.f32 %v7427_v42, 0.0  ;;  %v9386_v4 = vstv %s7357_s4  ;;  %v9387_v60 = vmax.f32 %v7429_v37, 0.0  ;;  %s7557_s4 = sld [smem:[#allocation16 + $0x586]] }
 0x40c   :  { %v9388_v23 = vmov %v9386_v4  ;;  %v2658_v49 = vstv %s7491_s11  ;;  %v2662_v22 = vstv %s7495_s5  ;;  %v2641_v9 = vadd.f32 %v2637_v59, %v2631_v36 }
 0x40d   :  { %v7537_v6 = vmul.f32 %v9386_v4, %v9385_v58  ;;  %v7543_v29 = vmul.f32 %v9388_v23, %v9387_v60  ;;  %v2642_v31 = vadd.f32 %v2638_v28, %v2632_v7  ;;  %v2646_v27 = vstv %s7481_s8  ;;  %v9390_v4 = vld [vmem:[#allocation190_spill] sm:$0xff]  ;;  %s3905_s8 = scalar_lea.vmem %s3219_s6, 256 }
 0x40e   :  { %v2666_v38 = vstv %s7499_s7  ;;  %v2659_v24 = vmul.f32 %v2658_v49, %v6566_v10  ;;  %v2660_v37 = vmul.f32 %v2658_v49, %v6571_v52  ;;  %v2670_v41 = vstv %s7503_s20  ;;  %v9391_v49 = vld [vmem:[#allocation184_spill] sm:$0xff]  ;;  %p3906_p8 = scmp.ne.s32.totalorder %s3219_s6, %s3905_s8  ;;  %p3911_p10 = scmp.lt.s32.totalorder %s3905_s8, %s3905_s8 }
 0x40f   :  { %v2643_v63 = vadd.f32 %v2641_v9, %v2639_v61  ;;  %v2644_v46 = vadd.f32 %v2642_v31, %v2640_v5  ;;  %v2663_v12 = vmul.f32 %v2662_v22, %v6579_v0  ;;  %v2664_v33 = vmul.f32 %v2662_v22, %v9372_v8  ;;  %v9389_v5 = vld [vmem:[#allocation189_spill] sm:$0xff] }
 0x410   :  { %v2667_v21 = vmul.f32 %v2666_v38, %v9373_v57  ;;  %v2674_v15 = vstv %s7507_s9  ;;  %v2680_v50 = vstv %s7513_s23  ;;  %v2686_v44 = vstv %s7517_s12  ;;  %v9392_v9 = vld [vmem:[#allocation185_spill] sm:$0xff]  ;;  %p3912_p11 = por %p3911_p10, %p3910_p9 }
 0x411   :  { %v7565_v36 = vadd.f32 %v2646_v27, %v2643_v63  ;;  %v7567_v7 = vadd.f32 %v2646_v27, %v2644_v46  ;;  %v2675_v59 = vmul.f32 %v2674_v15, %v9375_v40  ;;  %v2676_v28 = vmul.f32 %v2674_v15, %v9376_v26  ;;  %v9393_v27 = vld [vmem:[#allocation191_spill] sm:$0xff]  ;;  %v9394_v46 = vld [vmem:[#allocation192_spill] sm:$0xff]  ;;  %v9395_v26 = vld [vmem:[#allocation193_spill] sm:$0xff] }
 0x412   :  { %v2668_v61 = vmul.f32 %v2666_v38, %v9374_v51  ;;  %v2681_v58 = vmul.f32 %v2680_v50, %v9389_v5  ;;  %v2682_v60 = vmul.f32 %v2680_v50, %v9390_v4  ;;  %v2692_v23 = vstv %s7529_s22  ;;  %p3913_p12 = pnand %p3912_p11, %p3906_p8 }
 0x413   :  { %v2671_v22 = vmul.f32 %v2670_v41, %v9391_v49  ;;  %v2672_v31 = vmul.f32 %v2670_v41, %v9392_v9  ;;  %v2687_v63 = vmul.f32 %v2686_v44, %v9393_v27  ;;  %v2688_v15 = vmul.f32 %v2686_v44, %v9394_v46  ;;  %v9396_v41 = vld [vmem:[#allocation194_spill] sm:$0xff] }
 0x414   :  { %v2677_v42 = vadd.f32 %v2675_v59, %v2659_v24  ;;  %v2678_v4 = vadd.f32 %v2676_v28, %v2660_v37  ;;  %v2683_v5 = vadd.f32 %v2681_v58, %v2663_v12  ;;  %v2684_v49 = vadd.f32 %v2682_v60, %v2664_v33 }
 0x415   :  { %v2693_v40 = vmul.f32 %v2692_v23, %v9395_v26  ;;  %v2694_v9 = vmul.f32 %v2692_v23, %v9396_v41  ;;  %v2698_v51 = vstv %s7531_s1  ;;  %v2704_v27 = vstv %s7547_s24 }
 0x416   :  { %v2710_v57 = vstv %s7551_s13  ;;  %v2716_v44 = vstv %s7557_s4  ;;  %v2689_v46 = vadd.f32 %v2687_v63, %v2667_v21  ;;  %v2690_v38 = vadd.f32 %v2688_v15, %v2668_v61 }
 0x417   :  { %v2695_v8 = vadd.f32 %v2693_v40, %v2671_v22  ;;  %v2696_v50 = vadd.f32 %v2694_v9, %v2672_v31  ;;  %v2699_v24 = vmul.f32 %v2698_v51, %v9328_v17  ;;  %v2700_v37 = vmul.f32 %v2698_v51, %v6684_v56 }
 0x418   :  { %v2705_v12 = vmul.f32 %v2704_v27, %v9329_v43  ;;  %v2706_v33 = vmul.f32 %v2704_v27, %v9330_v20  ;;  %v2711_v59 = vmul.f32 %v2710_v57, %v9383_v54  ;;  %v2712_v40 = vmul.f32 %v2710_v57, %v6704_v25 }
 0x419   :  { %v2717_v21 = vmul.f32 %v2716_v44, %v6715_v39  ;;  %v2718_v28 = vmul.f32 %v2716_v44, %v9384_v62  ;;  %v2701_v51 = vadd.f32 %v2699_v24, %v2677_v42  ;;  %v2702_v61 = vadd.f32 %v2700_v37, %v2678_v4 }
 0x41a   :  { %v2707_v58 = vadd.f32 %v2705_v12, %v2683_v5  ;;  %v2708_v60 = vadd.f32 %v2706_v33, %v2684_v49  ;;  %v2713_v23 = vadd.f32 %v2711_v59, %v2689_v46  ;;  %v2714_v22 = vadd.f32 %v2712_v40, %v2690_v38 }
 0x41b   :  { %v2719_v9 = vadd.f32 %v2717_v21, %v2695_v8  ;;  %v2720_v31 = vadd.f32 %v2718_v28, %v2696_v50  ;;  %v2722_v27 = vstv %s7571_s10  ;;  %v2728_v63 = vstv %s7577_s21 }
 0x41c   :  { %v2734_v57 = vstv %s7583_s28  ;;  %v2740_v15 = vstv %s7587_s29  ;;  %v2723_v44 = vmul.f32 %v2722_v27, %v6725_v53  ;;  %v2724_v62 = vmul.f32 %v2722_v27, %v6732_v11 }
 0x41d   :  { %v2729_v42 = vmul.f32 %v2728_v63, %v6734_v45  ;;  %v2730_v5 = vmul.f32 %v2728_v63, %v6736_v19  ;;  %v2735_v8 = vmul.f32 %v2734_v57, %v6745_v2  ;;  %v2736_v4 = vmul.f32 %v2734_v57, %v6752_v30 }
 0x41e   :  { %v2741_v49 = vmul.f32 %v2740_v15, %v6763_v18  ;;  %v2742_v46 = vmul.f32 %v2740_v15, %v6765_v16  ;;  %v2725_v38 = vadd.f32 %v2723_v44, %v2701_v51  ;;  %v2726_v50 = vadd.f32 %v2724_v62, %v2702_v61 }
 0x41f   :  { %v2731_v24 = vadd.f32 %v2729_v42, %v2707_v58  ;;  %v2732_v37 = vadd.f32 %v2730_v5, %v2708_v60  ;;  %v2737_v12 = vadd.f32 %v2735_v8, %v2713_v23  ;;  %v2738_v33 = vadd.f32 %v2736_v4, %v2714_v22 }
 0x420   :  { %v2743_v59 = vadd.f32 %v2741_v49, %v2719_v9  ;;  %v2744_v40 = vadd.f32 %v2742_v46, %v2720_v31  ;;  %v2746_v21 = vstv %s7595_s26  ;;  %v2752_v28 = vstv %s7597_s3 }
 0x421   :  { %v2758_v27 = vstv %s7603_s0  ;;  %v2764_v63 = vstv %s7609_s27  ;;  %v2747_v51 = vmul.f32 %v2746_v21, %v6773_v32  ;;  %v2748_v62 = vmul.f32 %v2746_v21, %v6780_v55 }
 0x422   :  { %v2753_v61 = vmul.f32 %v2752_v28, %v6782_v3  ;;  %v2754_v58 = vmul.f32 %v2752_v28, %v6784_v35 }
 0x423   :  { %3916 = shalt.err (!%p3913_p12)
}
 0x424   :  { %s9397_s11 = smov 8   ;;  %s9398_s5 = smov 128   ;;  %v2759_v60 = vmul.f32 %v2758_v27, %v6791_v1  ;;  %v2760_v23 = vmul.f32 %v2758_v27, %v6796_v48  ;;  %v2765_v22 = vmul.f32 %v2764_v63, %v6807_v13  ;;  %v2766_v9 = vmul.f32 %v2764_v63, %v6809_v34  ;;  %v9413_v28 = vld [vmem:[#allocation191_spill] sm:$0xff] }
 0x425   :  { %s9399_s9 = sld [smem:[#allocation206_spill]]  ;;  %v2749_v31 = vadd.f32 %v2747_v51, %v2725_v38  ;;  %v2750_v57 = vadd.f32 %v2748_v62, %v2726_v50  ;;  %v2755_v15 = vadd.f32 %v2753_v61, %v2731_v24  ;;  %v2756_v44 = vadd.f32 %v2754_v58, %v2732_v37 }
 0x426   :  { %s7655_s23 = sld [smem:[#allocation16 + $0x287]]  ;;  %v2761_v42 = vadd.f32 %v2759_v60, %v2737_v12  ;;  %v2762_v5 = vadd.f32 %v2760_v23, %v2738_v33  ;;  %v2767_v8 = vadd.f32 %v2765_v22, %v2743_v59  ;;  %v2768_v4 = vadd.f32 %v2766_v9, %v2744_v40 }
 0x427   :  { %s7657_s12 = sld [smem:[#allocation16 + $0x307]]  ;;  %v7663_v49 = vadd.f32 %v7537_v6, %v7523_v14  ;;  %v7667_v46 = vadd.f32 %v7543_v29, %v7527_v47  ;;  %v2769_v38 = vadd.f32 %v2755_v15, %v2749_v31  ;;  %v2770_v50 = vadd.f32 %v2756_v44, %v2750_v57  ;;  %v9405_v57 = vld [vmem:[#allocation182_spill] sm:$0xff]  ;;  %v9406_v44 = vld [vmem:[#allocation183_spill] sm:$0xff] }
 0x428   :  { %s7659_s22 = sld [smem:[#allocation16 + $0x387]]  ;;  %v2771_v24 = vadd.f32 %v2767_v8, %v2761_v42  ;;  %v2772_v37 = vadd.f32 %v2768_v4, %v2762_v5  ;;  %v2788_v12 = vstv %s7623_s14  ;;  %v2792_v33 = vstv %s7629_s15  ;;  %v9407_v5 = vld [vmem:[#allocation186_spill] sm:$0xff]  ;;  %v9408_v4 = vld [vmem:[#allocation187_spill] sm:$0xff] }
 0x429   :  { %s7671_s1 = sld [smem:[#allocation16 + $0x407]]  ;;  %v9400_v59 = vmax.f32 %v7565_v36, 0.0  ;;  %v9401_v40 = vstv %s7485_s19  ;;  %v9402_v14 = vmax.f32 %v7567_v7, 0.0  ;;  %v2776_v29 = vstv %s7611_s17  ;;  %v9404_v7 = vld [vmem:[#allocation181_spill] sm:$0xff] }
 0x42a   :  { %v9403_v6 = vmov %v9401_v40  ;;  %s7687_s24 = sld [smem:[#allocation16 + $0x487]]  ;;  %v2773_v27 = vadd.f32 %v2771_v24, %v2769_v38  ;;  %v2774_v63 = vadd.f32 %v2772_v37, %v2770_v50  ;;  %v2789_v51 = vmul.f32 %v2788_v12, %v6566_v10  ;;  %v9409_v50 = vld [vmem:[#allocation189_spill] sm:$0xff]  ;;  %v9410_v37 = vld [vmem:[#allocation190_spill] sm:$0xff] }
 0x42b   :  { %3224 = dma.vmem_to_hbm [thread:$0]  %s3219_s6, 256, %s9399_s9, [#allocation23], %s9398_s5, %s9398_s5, %s9397_s11   ;;  %v7677_v21 = vmul.f32 %v9401_v40, %v9400_v59  ;;  %v7683_v47 = vmul.f32 %v9403_v6, %v9402_v14  ;;  %v2790_v36 = vmul.f32 %v2788_v12, %v6571_v52  ;;  %v2793_v61 = vmul.f32 %v2792_v33, %v6579_v0  ;;  %v9411_v6 = vld [vmem:[#allocation184_spill] sm:$0xff] }
 0x42c   :  { %v2796_v62 = vstv %s7631_s30  ;;  %v2794_v58 = vmul.f32 %v2792_v33, %v9404_v7  ;;  %v2800_v60 = vstv %s7633_s18  ;;  %s7695_s19 = sld [smem:[#allocation16 + $0x507]]  ;;  %v7697_v23 = vadd.f32 %v2776_v29, %v2773_v27  ;;  %v9412_v27 = vld [vmem:[#allocation185_spill] sm:$0xff] }
 0x42d   :  { %v7699_v22 = vadd.f32 %v2776_v29, %v2774_v63  ;;  %v2804_v9 = vstv %s7639_s25  ;;  %v2810_v31 = vstv %s7655_s23  ;;  %s7703_s13 = sld [smem:[#allocation16 + $0x587]]  ;;  %v2797_v15 = vmul.f32 %v2796_v62, %v9405_v57 }
 0x42e   :  { %v2798_v42 = vmul.f32 %v2796_v62, %v9406_v44  ;;  %v2805_v8 = vmul.f32 %v2804_v9, %v9407_v5  ;;  %v2806_v38 = vmul.f32 %v2804_v9, %v9408_v4  ;;  %v2811_v24 = vmul.f32 %v2810_v31, %v9409_v50  ;;  %s7713_s4 = sld [smem:[#allocation16 + $0x607]] }
 0x42f   :  { %v2812_v12 = vmul.f32 %v2810_v31, %v9410_v37  ;;  %v2816_v33 = vstv %s7657_s12  ;;  %v2822_v59 = vstv %s7659_s22  ;;  %v2801_v29 = vmul.f32 %v2800_v60, %v9411_v6  ;;  %s7719_s10 = sld [smem:[#allocation16 + $0x687]]  ;;  %v9414_v37 = vld [vmem:[#allocation192_spill] sm:$0xff] }
 0x430   :  { %v2802_v63 = vmul.f32 %v2800_v60, %v9412_v27  ;;  %v2807_v62 = vadd.f32 %v2805_v8, %v2789_v51  ;;  %v2808_v9 = vadd.f32 %v2806_v38, %v2790_v36  ;;  %v2817_v31 = vmul.f32 %v2816_v33, %v9413_v28  ;;  %s7723_s21 = sld [smem:[#allocation16 + $0x707]] }
 0x431   :  { %v2818_v50 = vmul.f32 %v2816_v33, %v9414_v37  ;;  %v2823_v44 = vmul.f32 %v2822_v59, %v9395_v26  ;;  %v2824_v40 = vmul.f32 %v2822_v59, %v9396_v41  ;;  %v2828_v14 = vstv %s7671_s1  ;;  %s7729_s28 = sld [smem:[#allocation16 + $0x787]] }
 0x432   :  { %v2834_v6 = vstv %s7687_s24  ;;  %v2813_v60 = vadd.f32 %v2811_v24, %v2793_v61  ;;  %v2814_v27 = vadd.f32 %v2812_v12, %v2794_v58  ;;  %v2819_v51 = vadd.f32 %v2817_v31, %v2797_v15  ;;  %s7733_s29 = sld [smem:[#allocation16 + $0x807]]  ;;  %v9415_v12 = vld [vmem:[#allocation200_spill] sm:$0xff] }
 0x433   :  { %v2820_v36 = vadd.f32 %v2818_v50, %v2798_v42  ;;  %v2825_v8 = vadd.f32 %v2823_v44, %v2801_v29  ;;  %v2826_v38 = vadd.f32 %v2824_v40, %v2802_v63  ;;  %v2829_v33 = vmul.f32 %v2828_v14, %v9328_v17  ;;  %s7739_s26 = sld [smem:[#allocation16 + $0x887]] }
 0x434   :  { %v2830_v37 = vmul.f32 %v2828_v14, %v6684_v56  ;;  %v2835_v26 = vmul.f32 %v2834_v6, %v9329_v43  ;;  %v2836_v59 = vmul.f32 %v2834_v6, %v9330_v20  ;;  %v2840_v41 = vstv %s7695_s19  ;;  %s7743_s3 = sld [smem:[#allocation16 + $0x907]] }
 0x435   :  { %v2846_v28 = vstv %s7703_s13  ;;  %v2831_v61 = vadd.f32 %v2829_v33, %v2807_v62  ;;  %v2841_v15 = vmul.f32 %v2840_v41, %v9383_v54  ;;  %v2842_v44 = vmul.f32 %v2840_v41, %v6704_v25  ;;  %s7747_s0 = sld [smem:[#allocation16 + $0x987]] }
 0x436   :  { %v2832_v58 = vadd.f32 %v2830_v37, %v2808_v9  ;;  %v2837_v42 = vadd.f32 %v2835_v26, %v2813_v60  ;;  %v2838_v50 = vadd.f32 %v2836_v59, %v2814_v27  ;;  %v2847_v24 = vmul.f32 %v2846_v28, %v6715_v39  ;;  %s7751_s27 = sld [smem:[#allocation18 + $0x7]] }
 0x437   :  { %v2848_v40 = vmul.f32 %v2846_v28, %v9415_v12  ;;  %v2843_v14 = vadd.f32 %v2841_v15, %v2819_v51  ;;  %v2844_v6 = vadd.f32 %v2842_v44, %v2820_v36  ;;  %v2852_v29 = vstv %s7713_s4  ;;  %s7755_s17 = sld [smem:[#allocation16 + $0x8]] }
 0x438   :  { %v2858_v37 = vstv %s7719_s10  ;;  %v2849_v63 = vadd.f32 %v2847_v24, %v2825_v8  ;;  %v2853_v62 = vmul.f32 %v2852_v29, %v6725_v53  ;;  %v2854_v26 = vmul.f32 %v2852_v29, %v6732_v11  ;;  %s7761_s14 = sld [smem:[#allocation19 + $0x7]] }
 0x439   :  { %v2850_v41 = vadd.f32 %v2848_v40, %v2826_v38  ;;  %v2859_v27 = vmul.f32 %v2858_v37, %v6734_v45  ;;  %v2860_v28 = vmul.f32 %v2858_v37, %v6736_v19  ;;  %v2864_v9 = vstv %s7723_s21  ;;  %s7765_s15 = sld [smem:[#allocation16 + $0x88]] }
 0x43a   :  { %v2870_v31 = vstv %s7729_s28  ;;  %v2855_v60 = vadd.f32 %v2853_v62, %v2831_v61  ;;  %v2856_v51 = vadd.f32 %v2854_v26, %v2832_v58  ;;  %v2865_v36 = vmul.f32 %v2864_v9, %v6745_v2  ;;  %s7769_s2 = sld [smem:[#allocation16 + $0x108]] }
 0x43b   :  { %v2866_v8 = vmul.f32 %v2864_v9, %v6752_v30  ;;  %v2861_v38 = vadd.f32 %v2859_v27, %v2837_v42  ;;  %v2862_v33 = vadd.f32 %v2860_v28, %v2838_v50  ;;  %v2871_v59 = vmul.f32 %v2870_v31, %v6763_v18  ;;  %s7773_s6 = sld [smem:[#allocation16 + $0x188]] }
 0x43c   :  { %v2872_v15 = vmul.f32 %v2870_v31, %v6765_v16  ;;  %v2867_v44 = vadd.f32 %v2865_v36, %v2843_v14  ;;  %v2876_v61 = vstv %s7733_s29  ;;  %v2882_v58 = vstv %s7739_s26  ;;  %s7777_s30 = sld [smem:[#allocation16 + $0x208]] }
 0x43d   :  { %v2868_v24 = vadd.f32 %v2866_v8, %v2844_v6  ;;  %v2873_v40 = vadd.f32 %v2871_v59, %v2849_v63  ;;  %v2877_v37 = vmul.f32 %v2876_v61, %v6773_v32  ;;  %v2878_v42 = vmul.f32 %v2876_v61, %v6780_v55  ;;  %s7783_s18 = sld [smem:[#allocation16 + $0x288]] }
 0x43e   :  { %v2874_v29 = vadd.f32 %v2872_v15, %v2850_v41  ;;  %v2883_v50 = vmul.f32 %v2882_v58, %v6782_v3  ;;  %v2884_v62 = vmul.f32 %v2882_v58, %v6784_v35  ;;  %v2888_v26 = vstv %s7743_s3  ;;  %s7787_s25 = sld [smem:[#allocation16 + $0x308]] }
 0x43f   :  { %v2894_v27 = vstv %s7747_s0  ;;  %v2879_v14 = vadd.f32 %v2877_v37, %v2855_v60  ;;  %v2880_v6 = vadd.f32 %v2878_v42, %v2856_v51  ;;  %v2889_v28 = vmul.f32 %v2888_v26, %v6791_v1  ;;  %s7799_s8 = sld [smem:[#allocation16 + $0x388]] }
 0x440   :  { %v2890_v63 = vmul.f32 %v2888_v26, %v6796_v48  ;;  %v2885_v41 = vadd.f32 %v2883_v50, %v2861_v38  ;;  %v2886_v9 = vadd.f32 %v2884_v62, %v2862_v33  ;;  %v2895_v31 = vmul.f32 %v2894_v27, %v6807_v13  ;;  %s7801_s7 = sld [smem:[#allocation16 + $0x408]] }
 0x441   :  { %v2896_v36 = vmul.f32 %v2894_v27, %v6809_v34  ;;  %v7793_v60 = vadd.f32 %v7677_v21, %v7663_v49  ;;  %v7797_v51 = vadd.f32 %v7683_v47, %v7667_v46  ;;  %v2891_v8 = vadd.f32 %v2889_v28, %v2867_v44  ;;  %s7817_s20 = sld [smem:[#allocation16 + $0x488]] }
 0x442   :  { %v2892_v59 = vadd.f32 %v2890_v63, %v2868_v24  ;;  %v2897_v38 = vadd.f32 %v2895_v31, %v2873_v40  ;;  %v2899_v15 = vadd.f32 %v2885_v41, %v2879_v14  ;;  %v2900_v61 = vadd.f32 %v2886_v9, %v2880_v6  ;;  %s7821_s9 = sld [smem:[#allocation16 + $0x508]] }
 0x443   :  { %v2898_v33 = vadd.f32 %v2896_v36, %v2874_v29  ;;  %v9416_v49 = vmax.f32 %v7697_v23, 0.0  ;;  %v9417_v21 = vstv %s7617_s16  ;;  %v9418_v46 = vmax.f32 %v7699_v22, 0.0  ;;  %s7827_s16 = sld [smem:[#allocation16 + $0x588]] }
 0x444   :  { %v9419_v47 = vmov %v9417_v21  ;;  %v2918_v24 = vstv %s7755_s17  ;;  %v2922_v37 = vstv %s7765_s15  ;;  %v2901_v40 = vadd.f32 %v2897_v38, %v2891_v8  ;;  %s7841_s23 = sld [smem:[#allocation16 + $0x608]] }
 0x445   :  { %v7807_v58 = vmul.f32 %v9417_v21, %v9416_v49  ;;  %v7813_v44 = vmul.f32 %v9419_v47, %v9418_v46  ;;  %v2902_v29 = vadd.f32 %v2898_v33, %v2892_v59  ;;  %v2906_v42 = vstv %s7751_s27  ;;  %v9420_v33 = vld [vmem:[#allocation183_spill] sm:$0xff]  ;;  %v9422_v21 = vld [vmem:[#allocation190_spill] sm:$0xff]  ;;  %s7847_s12 = sld [smem:[#allocation16 + $0x688]] }
 0x446   :  { %v2926_v50 = vstv %s7769_s2  ;;  %v2919_v62 = vmul.f32 %v2918_v24, %v6566_v10  ;;  %v2920_v22 = vmul.f32 %v2918_v24, %v6571_v52  ;;  %v2930_v26 = vstv %s7773_s6  ;;  %v9423_v24 = vld [vmem:[#allocation184_spill] sm:$0xff]  ;;  %s7853_s22 = sld [smem:[#allocation16 + $0x708]] }
 0x447   :  { %v2903_v27 = vadd.f32 %v2901_v40, %v2899_v15  ;;  %v2904_v14 = vadd.f32 %v2902_v29, %v2900_v61  ;;  %v2923_v6 = vmul.f32 %v2922_v37, %v6579_v0  ;;  %v2924_v28 = vmul.f32 %v2922_v37, %v9404_v7  ;;  %v9421_v61 = vld [vmem:[#allocation189_spill] sm:$0xff]  ;;  %s7857_s1 = sld [smem:[#allocation16 + $0x788]] }
 0x448   :  { %v2927_v63 = vmul.f32 %v2926_v50, %v9405_v57  ;;  %v2934_v41 = vstv %s7777_s30  ;;  %v2940_v9 = vstv %s7783_s18  ;;  %v2946_v31 = vstv %s7787_s25  ;;  %v9424_v40 = vld [vmem:[#allocation185_spill] sm:$0xff]  ;;  %s7865_s24 = sld [smem:[#allocation16 + $0x808]] }
 0x449   :  { %v7835_v36 = vadd.f32 %v2906_v42, %v2903_v27  ;;  %v7837_v8 = vadd.f32 %v2906_v42, %v2904_v14  ;;  %v2935_v59 = vmul.f32 %v2934_v41, %v9407_v5  ;;  %v2936_v38 = vmul.f32 %v2934_v41, %v9408_v4  ;;  %v9425_v42 = vld [vmem:[#allocation191_spill] sm:$0xff]  ;;  %v9426_v14 = vld [vmem:[#allocation192_spill] sm:$0xff]  ;;  %v9427_v4 = vld [vmem:[#allocation193_spill] sm:$0xff]  ;;  %s7867_s19 = sld [smem:[#allocation16 + $0x888]] }
 0x44a   :  { %v2928_v15 = vmul.f32 %v2926_v50, %v9420_v33  ;;  %v2941_v49 = vmul.f32 %v2940_v9, %v9421_v61  ;;  %v2942_v46 = vmul.f32 %v2940_v9, %v9422_v21  ;;  %v2952_v47 = vstv %s7799_s8  ;;  %s7873_s13 = sld [smem:[#allocation16 + $0x908]] }
 0x44b   :  { %v2931_v37 = vmul.f32 %v2930_v26, %v9423_v24  ;;  %v2932_v29 = vmul.f32 %v2930_v26, %v9424_v40  ;;  %v2947_v27 = vmul.f32 %v2946_v31, %v9425_v42  ;;  %v2948_v41 = vmul.f32 %v2946_v31, %v9426_v14  ;;  %v9428_v26 = vld [vmem:[#allocation194_spill] sm:$0xff]  ;;  %s7879_s4 = sld [smem:[#allocation16 + $0x988]] }
 0x44c   :  { %v2937_v23 = vadd.f32 %v2935_v59, %v2919_v62  ;;  %v2938_v21 = vadd.f32 %v2936_v38, %v2920_v22  ;;  %v2943_v61 = vadd.f32 %v2941_v49, %v2923_v6  ;;  %v2944_v24 = vadd.f32 %v2942_v46, %v2924_v28  ;;  %s7889_s10 = sld [smem:[#allocation16 + $0x9]] }
 0x44d   :  { %v2953_v5 = vmul.f32 %v2952_v47, %v9427_v4  ;;  %v2954_v40 = vmul.f32 %v2952_v47, %v9428_v26  ;;  %v2958_v33 = vstv %s7801_s7  ;;  %v2964_v42 = vstv %s7817_s20  ;;  %s7895_s21 = sld [smem:[#allocation16 + $0x89]] }
 0x44e   :  { %v2970_v57 = vstv %s7821_s9  ;;  %v2976_v31 = vstv %s7827_s16  ;;  %v2949_v14 = vadd.f32 %v2947_v27, %v2927_v63  ;;  %v2950_v50 = vadd.f32 %v2948_v41, %v2928_v15  ;;  %s7897_s28 = sld [smem:[#allocation18 + $0x8]] }
 0x44f   :  { %v2955_v7 = vadd.f32 %v2953_v5, %v2931_v37  ;;  %v2956_v9 = vadd.f32 %v2954_v40, %v2932_v29  ;;  %v2959_v62 = vmul.f32 %v2958_v33, %v9328_v17  ;;  %v2960_v22 = vmul.f32 %v2958_v33, %v6684_v56  ;;  %s7899_s29 = sld [smem:[#allocation16 + $0x109]] }
 0x450   :  { %v2965_v6 = vmul.f32 %v2964_v42, %v9329_v43  ;;  %v2966_v28 = vmul.f32 %v2964_v42, %v9330_v20  ;;  %v2971_v63 = vmul.f32 %v2970_v57, %v9383_v54  ;;  %v2972_v5 = vmul.f32 %v2970_v57, %v6704_v25  ;;  %s7905_s26 = sld [smem:[#allocation16 + $0x189]] }
 0x451   :  { %v2977_v59 = vmul.f32 %v2976_v31, %v6715_v39  ;;  %v2978_v38 = vmul.f32 %v2976_v31, %v9415_v12  ;;  %v2961_v33 = vadd.f32 %v2959_v62, %v2937_v23  ;;  %v2962_v15 = vadd.f32 %v2960_v22, %v2938_v21  ;;  %s7911_s3 = sld [smem:[#allocation16 + $0x209]] }
 0x452   :  { %v2967_v49 = vadd.f32 %v2965_v6, %v2943_v61  ;;  %v2968_v46 = vadd.f32 %v2966_v28, %v2944_v24  ;;  %v2973_v47 = vadd.f32 %v2971_v63, %v2949_v14  ;;  %v2974_v37 = vadd.f32 %v2972_v5, %v2950_v50  ;;  %s7917_s0 = sld [smem:[#allocation16 + $0x289]] }
 0x453   :  { %v2979_v40 = vadd.f32 %v2977_v59, %v2955_v7  ;;  %v2980_v29 = vadd.f32 %v2978_v38, %v2956_v9  ;;  %v2982_v42 = vstv %s7841_s23  ;;  %v2988_v27 = vstv %s7847_s12  ;;  %s7919_s27 = sld [smem:[#allocation16 + $0x309]] }
 0x454   :  { %v2994_v41 = vstv %s7853_s22  ;;  %v3000_v54 = vstv %s7857_s1  ;;  %v2983_v57 = vmul.f32 %v2982_v42, %v6725_v53  ;;  %v2984_v39 = vmul.f32 %v2982_v42, %v6732_v11  ;;  %s7921_s17 = sld [smem:[#allocation16 + $0x389]] }
 0x455   :  { %v2989_v31 = vmul.f32 %v2988_v27, %v6734_v45  ;;  %v2990_v12 = vmul.f32 %v2988_v27, %v6736_v19  ;;  %v2995_v23 = vmul.f32 %v2994_v41, %v6745_v2  ;;  %v2996_v7 = vmul.f32 %v2994_v41, %v6752_v30  ;;  %s7925_s15 = sld [smem:[#allocation16 + $0x409]] }
 0x456   :  { %v3001_v61 = vmul.f32 %v3000_v54, %v6763_v18  ;;  %v3002_v21 = vmul.f32 %v3000_v54, %v6765_v16  ;;  %v2985_v24 = vadd.f32 %v2983_v57, %v2961_v33  ;;  %v2986_v14 = vadd.f32 %v2984_v39, %v2962_v15  ;;  %s7941_s2 = sld [smem:[#allocation16 + $0x489]] }
 0x457   :  { %v2991_v50 = vadd.f32 %v2989_v31, %v2967_v49  ;;  %v2992_v9 = vadd.f32 %v2990_v12, %v2968_v46  ;;  %v2997_v62 = vadd.f32 %v2995_v23, %v2973_v47  ;;  %v2998_v22 = vadd.f32 %v2996_v7, %v2974_v37  ;;  %s7954_s6 = sld [smem:[#allocation16 + $0x509]] }
 0x458   :  { %v3003_v6 = vadd.f32 %v3001_v61, %v2979_v40  ;;  %v3004_v28 = vadd.f32 %v3002_v21, %v2980_v29  ;;  %v3006_v63 = vstv %s7865_s24  ;;  %v3012_v5 = vstv %s7867_s19  ;;  %s7970_s30 = sld [smem:[#allocation16 + $0x609]] }
 0x459   :  { %v3018_v59 = vstv %s7873_s13  ;;  %v3024_v38 = vstv %s7879_s4  ;;  %v3007_v54 = vmul.f32 %v3006_v63, %v6773_v32  ;;  %v3008_v39 = vmul.f32 %v3006_v63, %v6780_v55  ;;  %s7978_s18 = sld [smem:[#allocation16 + $0x689]]  ;;  %s3994_s13 = smov [#allocation24]  }
 0x45a   :  { %v3013_v12 = vmul.f32 %v3012_v5, %v6782_v3  ;;  %v3014_v33 = vmul.f32 %v3012_v5, %v6784_v35  ;;  %v3019_v15 = vmul.f32 %v3018_v59, %v6791_v1  ;;  %v3020_v49 = vmul.f32 %v3018_v59, %v6796_v48  ;;  %s7982_s25 = sld [smem:[#allocation16 + $0x709]]  ;;  %s3230_s4 = sshll.u32 %s3994_s13, 4  ;;  %s3231_s4 = int_to_ptr.vmem [resolvable:$true] %s3230_s4 }
 0x45b   :  { %v3025_v46 = vmul.f32 %v3024_v38, %v6807_v13  ;;  %v3026_v47 = vmul.f32 %v3024_v38, %v6809_v34  ;;  %v3009_v37 = vadd.f32 %v3007_v54, %v2985_v24  ;;  %v3010_v40 = vadd.f32 %v3008_v39, %v2986_v14  ;;  %v9433_v54 = vld [vmem:[#allocation181_spill] sm:$0xff]  ;;  %s7988_s8 = sld [smem:[#allocation16 + $0x789]]  ;;  %p3930_p0 = scmp.lt.s32.totalorder %s3231_s4, %s3231_s4 }
 0x45c   :  { %v3015_v29 = vadd.f32 %v3013_v12, %v2991_v50  ;;  %v3016_v42 = vadd.f32 %v3014_v33, %v2992_v9  ;;  %v3021_v27 = vadd.f32 %v3019_v15, %v2997_v62  ;;  %v3022_v41 = vadd.f32 %v3020_v49, %v2998_v22  ;;  %v9434_v15 = vld [vmem:[#allocation182_spill] sm:$0xff]  ;;  %v9435_v49 = vld [vmem:[#allocation183_spill] sm:$0xff]  ;;  %s7992_s7 = sld [smem:[#allocation16 + $0x809]] }
 0x45d   :  { %v3027_v57 = vadd.f32 %v3025_v46, %v3003_v6  ;;  %v3028_v31 = vadd.f32 %v3026_v47, %v3004_v28  ;;  %v3048_v24 = vstv %s7889_s10  ;;  %v3052_v14 = vstv %s7895_s21  ;;  %v9436_v47 = vld [vmem:[#allocation186_spill] sm:$0xff]  ;;  %s7998_s20 = sld [smem:[#allocation16 + $0x889]]  ;;  %s3925_s10 = scalar_lea.vmem %s3231_s4, 256 }
 0x45e   :  { %v3029_v23 = vadd.f32 %v3015_v29, %v3009_v37  ;;  %v3030_v7 = vadd.f32 %v3016_v42, %v3010_v40  ;;  %v7929_v50 = vadd.f32 %v7807_v58, %v7793_v60  ;;  %v7933_v9 = vadd.f32 %v7813_v44, %v7797_v51  ;;  %v9437_v40 = vld [vmem:[#allocation187_spill] sm:$0xff]  ;;  %s8002_s9 = sld [smem:[#allocation16 + $0x909]]  ;;  %p3926_p13 = scmp.ne.s32.totalorder %s3231_s4, %s3925_s10 }
 0x45f   :  { %v3031_v61 = vadd.f32 %v3027_v57, %v3021_v27  ;;  %v3032_v21 = vadd.f32 %v3028_v31, %v3022_v41  ;;  %v9429_v62 = vmax.f32 %v7835_v36, 0.0  ;;  %v9430_v22 = vstv %s7761_s14  ;;  %s7960_s14 = sld [smem:[#allocation16 + $0x589]]  ;;  %p3931_p1 = scmp.lt.s32.totalorder %s3925_s10, %s3925_s10 }
 0x460   :  { %v9431_v28 = vmax.f32 %v7837_v8, 0.0  ;;  %v9432_v63 = vmov %v9430_v22  ;;  %v3036_v59 = vstv %s7897_s28  ;;  %v3049_v60 = vmul.f32 %v3048_v24, %v6566_v10  ;;  %s8006_s16 = sld [smem:[#allocation16 + $0x989]] }
 0x461   :  { %v7939_v6 = vmul.f32 %v9430_v22, %v9429_v62  ;;  %v3056_v58 = vstv %s7899_s29  ;;  %v3033_v38 = vadd.f32 %v3031_v61, %v3029_v23  ;;  %v3034_v51 = vadd.f32 %v3032_v21, %v3030_v7  ;;  %v9440_v7 = vld [vmem:[#allocation184_spill] sm:$0xff]  ;;  %v9441_v21 = vld [vmem:[#allocation185_spill] sm:$0xff]  ;;  %v9442_v22 = vld [vmem:[#allocation191_spill] sm:$0xff]  ;;  %s8018_s23 = sld [smem:[#allocation19 + $0x8]]  ;;  %p3932_p2 = por %p3931_p1, %p3930_p0 }
 0x462   :  { %v7947_v5 = vmul.f32 %v9432_v63, %v9431_v28  ;;  %v3050_v44 = vmul.f32 %v3048_v24, %v6571_v52  ;;  %v3053_v36 = vmul.f32 %v3052_v14, %v6579_v0  ;;  %v3054_v39 = vmul.f32 %v3052_v14, %v9433_v54  ;;  %v9438_v52 = vld [vmem:[#allocation189_spill] sm:$0xff]  ;;  %v9439_v0 = vld [vmem:[#allocation190_spill] sm:$0xff]  ;;  %v9443_v63 = vld [vmem:[#allocation192_spill] sm:$0xff]  ;;  %s8026_s12 = sld [smem:[#allocation18 + $0x9]] }
 0x463   :  { %v3060_v8 = vstv %s7905_s26  ;;  %v3064_v12 = vstv %s7911_s3  ;;  %v3070_v33 = vstv %s7917_s0  ;;  %v3057_v10 = vmul.f32 %v3056_v58, %v9434_v15  ;;  %s3763_s22 = sld [smem:[#allocation19 + $0x9]]  ;;  %p3933_p3 = pnand %p3932_p2, %p3926_p13 }
 0x464   :  { %v3058_v46 = vmul.f32 %v3056_v58, %v9435_v49  ;;  %v3065_v37 = vmul.f32 %v3064_v12, %v9436_v47  ;;  %v3066_v29 = vmul.f32 %v3064_v12, %v9437_v40  ;;  %v3071_v42 = vmul.f32 %v3070_v33, %v9438_v52  ;;  %v9446_v52 = vld [vmem:[#allocation200_spill] sm:$0xff]  ;;  %s9447_s19 = sld [smem:[#allocation204_spill]] }
 0x465   :  { %v3072_v27 = vmul.f32 %v3070_v33, %v9439_v0  ;;  %v3076_v41 = vstv %s7919_s27  ;;  %v3082_v57 = vstv %s7921_s17  ;;  %v7972_v31 = vadd.f32 %v3036_v59, %v3033_v38 }
 0x466   :  { %v7974_v23 = vadd.f32 %v3036_v59, %v3034_v51  ;;  %v3061_v61 = vmul.f32 %v3060_v8, %v9440_v7  ;;  %v3062_v24 = vmul.f32 %v3060_v8, %v9441_v21  ;;  %v3067_v14 = vadd.f32 %v3065_v37, %v3049_v60 }
 0x467   :  { %v3068_v62 = vadd.f32 %v3066_v29, %v3050_v44  ;;  %v3077_v28 = vmul.f32 %v3076_v41, %v9442_v22  ;;  %v3078_v58 = vmul.f32 %v3076_v41, %v9443_v63  ;;  %v3083_v54 = vmul.f32 %v3082_v57, %v9427_v4  ;;  %v9445_v29 = vld [vmem:[#allocation199_spill] sm:$0xff] }
 0x468   :  { %v3084_v59 = vmul.f32 %v3082_v57, %v9428_v26  ;;  %v3088_v38 = vstv %s7925_s15  ;;  %v3094_v51 = vstv %s7941_s2  ;;  %v3073_v8 = vadd.f32 %v3071_v42, %v3053_v36 }
 0x469   :  { %v3074_v12 = vadd.f32 %v3072_v27, %v3054_v39  ;;  %v3079_v60 = vadd.f32 %v3077_v28, %v3057_v10  ;;  %v3080_v44 = vadd.f32 %v3078_v58, %v3058_v46  ;;  %v3085_v33 = vadd.f32 %v3083_v54, %v3061_v61  ;;  %v9444_v10 = vld [vmem:[#allocation198_spill] sm:$0xff] }
 0x46a   :  { %v3086_v15 = vadd.f32 %v3084_v59, %v3062_v24  ;;  %v3089_v49 = vmul.f32 %v3088_v38, %v9328_v17  ;;  %v3090_v47 = vmul.f32 %v3088_v38, %v6684_v56  ;;  %v3095_v4 = vmul.f32 %v3094_v51, %v9329_v43 }
 0x46b   :  { %v3096_v26 = vmul.f32 %v3094_v51, %v9330_v20  ;;  %v3100_v37 = vstv %s7954_s6  ;;  %v3106_v40 = vstv %s7960_s14  ;;  %v3112_v41 = vstv %s7970_s30 }
 0x46c   :  { %v3091_v36 = vadd.f32 %v3089_v49, %v3067_v14  ;;  %v3092_v39 = vadd.f32 %v3090_v47, %v3068_v62  ;;  %v3101_v46 = vmul.f32 %v3100_v37, %v9444_v10  ;;  %v3102_v17 = vmul.f32 %v3100_v37, %v6704_v25 }
 0x46d   :  { %v3097_v56 = vadd.f32 %v3095_v4, %v3073_v8  ;;  %v3098_v43 = vadd.f32 %v3096_v26, %v3074_v12  ;;  %v3107_v20 = vmul.f32 %v3106_v40, %v9445_v29  ;;  %v3108_v42 = vmul.f32 %v3106_v40, %v9446_v52 }
 0x46e   :  { %v3103_v0 = vadd.f32 %v3101_v46, %v3079_v60  ;;  %v3104_v27 = vadd.f32 %v3102_v17, %v3080_v44  ;;  %v3118_v57 = vstv %s7978_s18  ;;  %v3113_v25 = vmul.f32 %v3112_v41, %v6725_v53 }
 0x46f   :  { %v3109_v7 = vadd.f32 %v3107_v20, %v3085_v33  ;;  %v3110_v61 = vadd.f32 %v3108_v42, %v3086_v15  ;;  %v3114_v21 = vmul.f32 %v3112_v41, %v6732_v11  ;;  %v3119_v24 = vmul.f32 %v3118_v57, %v6734_v45 }
 0x470   :  { %v3120_v14 = vmul.f32 %v3118_v57, %v6736_v19  ;;  %v3124_v62 = vstv %s7982_s25  ;;  %v3130_v22 = vstv %s7988_s8  ;;  %v3115_v28 = vadd.f32 %v3113_v25, %v3091_v36 }
 0x471   :  { %v3116_v63 = vadd.f32 %v3114_v21, %v3092_v39  ;;  %v3125_v58 = vmul.f32 %v3124_v62, %v6745_v2  ;;  %v3126_v54 = vmul.f32 %v3124_v62, %v6752_v30  ;;  %v3121_v53 = vadd.f32 %v3119_v24, %v3097_v56 }
 0x472   :  { %v3122_v11 = vadd.f32 %v3120_v14, %v3098_v43  ;;  %v3131_v59 = vmul.f32 %v3130_v22, %v6763_v18  ;;  %v3132_v45 = vmul.f32 %v3130_v22, %v6765_v16  ;;  %v3136_v51 = vstv %s7992_s7 }
 0x473   :  { %v3127_v38 = vadd.f32 %v3125_v58, %v3103_v0  ;;  %v3128_v19 = vadd.f32 %v3126_v54, %v3104_v27  ;;  %v3142_v8 = vstv %s7998_s20  ;;  %v3137_v2 = vmul.f32 %v3136_v51, %v6773_v32 }
 0x474   :  { %v3133_v12 = vadd.f32 %v3131_v59, %v3109_v7  ;;  %v3134_v60 = vadd.f32 %v3132_v45, %v3110_v61  ;;  %v3138_v30 = vmul.f32 %v3136_v51, %v6780_v55  ;;  %v3143_v44 = vmul.f32 %v3142_v8, %v6782_v3 }
 0x475   :  { %v3144_v33 = vmul.f32 %v3142_v8, %v6784_v35  ;;  %v3148_v15 = vstv %s8002_s9  ;;  %v3154_v18 = vstv %s8006_s16  ;;  %v3139_v49 = vadd.f32 %v3137_v2, %v3115_v28 }
 0x476   :  { %v3140_v16 = vadd.f32 %v3138_v30, %v3116_v63  ;;  %v3149_v47 = vmul.f32 %v3148_v15, %v6791_v1  ;;  %v3150_v4 = vmul.f32 %v3148_v15, %v6796_v48  ;;  %v3145_v26 = vadd.f32 %v3143_v44, %v3121_v53 }
 0x477   :  { %v3146_v37 = vadd.f32 %v3144_v33, %v3122_v11  ;;  %v3155_v32 = vmul.f32 %v3154_v18, %v6807_v13  ;;  %v3156_v55 = vmul.f32 %v3154_v18, %v6809_v34  ;;  %v3039_v3 = vmax.f32 %v7972_v31, 0.0 }
 0x478   :  { %v3040_v35 = vmax.f32 %v7974_v23, 0.0  ;;  %v3151_v40 = vadd.f32 %v3149_v47, %v3127_v38  ;;  %v3152_v36 = vadd.f32 %v3150_v4, %v3128_v19  ;;  %v3159_v46 = vadd.f32 %v3145_v26, %v3139_v49 }
 0x479   :  { %v3157_v39 = vadd.f32 %v3155_v32, %v3133_v12  ;;  %v3158_v10 = vadd.f32 %v3156_v55, %v3134_v60  ;;  %v3160_v1 = vadd.f32 %v3146_v37, %v3140_v16  ;;  %v3042_v17 = vstv %s8018_s23 }
 0x47a   :  { %v2915_v13 = vadd.f32 %v7939_v6, %v7929_v50  ;;  %v2916_v34 = vadd.f32 %v7947_v5, %v7933_v9  ;;  %v3166_v43 = vstv %s8026_s12  ;;  %v3043_v31 = vmul.f32 %v3042_v17, %v3039_v3 }
 0x47b   :  { %v3161_v48 = vadd.f32 %v3157_v39, %v3151_v40  ;;  %v3162_v56 = vadd.f32 %v3158_v10, %v3152_v36  ;;  %v3044_v29 = vmul.f32 %v3042_v17, %v3040_v35  ;;  %v3172_v0 = vstv %s3763_s22 }
 0x47c   :  { %v3045_v27 = vadd.f32 %v3043_v31, %v2915_v13  ;;  %v3178_v50 = vstv %s9447_s19 }
 0x47d   :  { %v3163_v23 = vadd.f32 %v3161_v48, %v3159_v46  ;;  %v3164_v20 = vadd.f32 %v3162_v56, %v3160_v1  ;;  %v3046_v41 = vadd.f32 %v3044_v29, %v2916_v34 }
 0x47f   :  { %v3167_v52 = vadd.f32 %v3166_v43, %v3163_v23  ;;  %v3168_v42 = vadd.f32 %v3166_v43, %v3164_v20 }
 0x481   :  { %v3169_v57 = vmax.f32 %v3167_v52, 0.0  ;;  %v3170_v7 = vmax.f32 %v3168_v42, 0.0 }
 0x483   :  { %v3173_v61 = vmul.f32 %v3172_v0, %v3169_v57  ;;  %v3174_v25 = vmul.f32 %v3172_v0, %v3170_v7 }
 0x485   :  { %v3175_v9 = vadd.f32 %v3173_v61, %v3045_v27  ;;  %v3176_v6 = vadd.f32 %v3174_v25, %v3046_v41 }
 0x487   :  { %v3179_v5 = vadd.f32 %v3178_v50, %v3175_v9  ;;  %v3180_v21 = vadd.f32 %v3178_v50, %v3176_v6 }
 0x489   :  { %v3183_v24 = vmul.f32 0.5, %v3179_v5  ;;  %v3184_v14 = vmul.f32 0.5, %v3180_v21  ;;  %3199 = vst [vmem:[#allocation24] sm:$0xff] %v3179_v5  ;;  %3200 = vst [vmem:[#allocation24 + $0x8] sm:$0xff] %v3180_v21 }
 0x48a   :  { %3936 = shalt.err (!%p3933_p3)
}
 0x48b   :  { %s9448_s29 = sld [smem:[#allocation207_spill]]  ;;  %v3185_v62 = vmul.f32 1.442695, %v3183_v24  ;;  %v3187_v22 = vmul.f32 1.442695, %v3184_v14  ;;  %s3995_s15 = smov [#allocation21]  }
 0x48c   :  { %s9449_s0 = sld [smem:[#allocation202_spill]]  ;;  %s3206_s2 = sshll.u32 %s3995_s15, 4  ;;  %v9450_v38 = vld [vmem:[#allocation132_spill] sm:$0xff]  ;;  %s3207_s2 = int_to_ptr.vmem [resolvable:$true] %s3206_s2 }
 0x48d   :  { %3779 = vpow2.f32 %v3185_v62  ;;  %v9451_v51 = vld [vmem:[#allocation188_spill] sm:$0xff]  ;;  %s3945_s6 = scalar_lea.vmem %s3207_s2, 256  ;;  %p3950_p5 = scmp.lt.s32.totalorder %s3207_s2, %s3207_s2 }
 0x48e   :  { %3781 = vpow2.f32 %v3187_v22  ;;  %p3946_p4 = scmp.ne.s32.totalorder %s3207_s2, %s3945_s6  ;;  %p3951_p6 = scmp.lt.s32.totalorder %s3945_s6, %s3945_s6 }
 0x490   :  { %p3952_p7 = por %p3951_p6, %p3950_p5 }
 0x491   :  { %3236 = dma.vmem_to_hbm [thread:$0]  %s3231_s4, 256, %s9448_s29, [#allocation23], %s9398_s5, %s9398_s5, %s9397_s11  }
 0x492   :  { %v3181_v63 = vld [vmem:[%s9449_s0] sm:$0xff]  ;;  %v3182_v54 = vld [vmem:[%s9449_s0 + $0x8] sm:$0xff]  ;;  %p3953_p8 = pnand %p3952_p7, %p3946_p4 }
 0x49a   :  { %v3780_v28 = vpop.eup %3779 }
 0x49b   :  { %v3782_v58 = vpop.eup %3781  ;;  %v3189_v53 = vadd.f32 1e-05, %v3780_v28 }
 0x49c   :  { %v3190_v11 = vadd.f32 1e-05, %v3782_v58 }
 0x49d   :  { %v3191_v59 = vmul.f32 %v3189_v53, %v3181_v63 }
 0x49e   :  { %v3192_v45 = vmul.f32 %v3190_v11, %v3182_v54 }
 0x49f   :  { %v3193_v19 = vadd.f32 %v3191_v59, %v9450_v38 }
 0x4a0   :  { %v3194_v8 = vadd.f32 %v3192_v45, %v9451_v51 }
 0x4a1   :  { %3195 = vst [vmem:[#allocation21] sm:$0xff] %v3193_v19 }
 0x4a2   :  { %3196 = vst [vmem:[#allocation21 + $0x8] sm:$0xff] %v3194_v8 }
 0x4a3   :  { %3956 = shalt.err (!%p3953_p8)
}
 0x4a4   :  { %s9452_s18 = sld [smem:[#allocation205_spill]] }
 0x4aa   :  { %3212 = dma.vmem_to_hbm [thread:$0]  %s3207_s2, 256, %s9452_s18, [#allocation5], %s9398_s5, %s9398_s5, %s9397_s11  }
 0x4ab   :  { %3977 = dma.done.wait [#allocation5], 256  }
 0x4ac   :  { %3978 = vsyncadd [#allocation5], 4294967040 }
 0x4ad   :  { %3979 = dma.done.wait [#allocation23], 512  }
 0x4ae   :  { %3980 = vsyncadd [#allocation23], 4294966784 }
 0x4af   :  { %3246 = vsyncpa [#allocation5], 1 }
 0x4b0   :  { %3247 = vsyncpa [#allocation23], 1 }
 0x4b1   :  { %3248 = vsyncpa [#allocation6], 1 }
 0x4b2   :  { %3249 = vsyncpa [#allocation8], 1 }
 0x4b3   :  { %3250 = vsyncpa [#allocation11], 1 }
 0x4b4   :  { %3251 = vsyncpa [#allocation14], 1 }
 0x4b5   :  { %3252 = vsyncpa [#allocation17], 1 }
 0x4b6   :  { %3253 = vsyncpa [#allocation20], 1 }

</bundles_post_ra>
